<compile_context>
chip_gen: v5e
topology: v5e:2x2
jax: 0.10.0
libtpu: 0.0.40
codegen_flags: <defaults>
</compile_context>

<pallas_src>
import jax
import jax.numpy as jnp
import numpy as np
from jax.experimental import pallas as pl
from jax.experimental.pallas import tpu as pltpu

KSIZE = 5                       # Conv1d kernel_size
DIL = 5                         # Conv1d dilation
PAD = DIL * (KSIZE - 1) // 2    # 'same' padding, symmetric 10/10 for stride=1
NEG_SLOPE = 0.01                # nn.LeakyReLU default negative_slope

CONV_DIMS = [(1, 8), (8, 16), (16, 32), (32, 32), (32, 64)]     # (C_in, C_out)
FLAT = 960
LIN_DIMS = [(FLAT, FLAT // 2), (FLAT // 2, FLAT // 4), (FLAT // 4, FLAT // 8),
            (FLAT // 8, FLAT // 16), (FLAT // 16, 1)]


def _pool_len(L):
    return (L - 3) // 2 + 1     # MaxPool1d(kernel=3, stride=2), no padding, floor


def _conv_lens(L0, n):
    lens, L = [], L0
    for _ in range(n):
        Lo = _pool_len(L)
        lens.append((L, Lo))
        L = Lo
    return lens


# ---------------- fully fused forward kernel (one batch element per grid step) ----------------

def _make_fused_kernel(conv_dims, conv_lens, n_lin, n_ae_layers):
    n_conv = len(conv_dims)

    def kernel(*refs):
        x_ref = refs[0]
        conv_refs = refs[1:1 + 2 * n_conv]
        lin_refs = refs[1 + 2 * n_conv:1 + 2 * (n_conv + n_lin)]
        ext_ref = refs[1 + 2 * (n_conv + n_lin)]
        pred_ref = refs[2 + 2 * (n_conv + n_lin)]
        scratch = refs[3 + 2 * (n_conv + n_lin):]
        xp_scrs = scratch[0:n_conv]                 # zero-padded inputs  (L+2*PAD, C_in)
        tap_scrs = scratch[n_conv:2 * n_conv]       # stacked dilated taps (L, K*C_in)
        y_scrs = scratch[2 * n_conv:3 * n_conv]     # pre-pool activations (L, C_out)
        flat_scr = scratch[3 * n_conv]              # flattened features   (1, 960)

        h = x_ref[0]                                # (L0, C_in0): length in sublanes
        for li in range(n_conv):
            C_in, C_out = conv_dims[li]
            L_in, L_out = conv_lens[li]
            w_ref, b_ref = conv_refs[2 * li], conv_refs[2 * li + 1]
            xp, taps, ys = xp_scrs[li], tap_scrs[li], y_scrs[li]

            # in-VMEM 'same' padding (10 zeros each side along length)
            zpad = jnp.zeros((PAD, C_in), jnp.float32)
            xp[0:PAD, :] = zpad
            xp[PAD + L_in:PAD + L_in + PAD, :] = zpad
            xp[PAD:PAD + L_in, :] = h

            # pack K dilated taps along lanes -> single (L, K*C_in) x (K*C_in, C_out) matmul
            for k in range(KSIZE):
                taps[:, k * C_in:(k + 1) * C_in] = xp[k * DIL:k * DIL + L_in, :]
            acc = jnp.dot(taps[...], w_ref[...],
                          preferred_element_type=jnp.float32) + b_ref[...]
            y = jnp.where(acc >= 0, acc, NEG_SLOPE * acc)          # LeakyReLU
            ys[...] = y

            # MaxPool1d(3, stride=2): three stride-2 sublane loads + VPU max
            p0 = ys[pl.ds(0, L_out, stride=2), :]
            p1 = ys[pl.ds(1, L_out, stride=2), :]
            p2 = ys[pl.ds(2, L_out, stride=2), :]
            h = jnp.maximum(jnp.maximum(p0, p1), p2)               # (L_out, C_out)

            if li == n_ae_layers:
                ext_ref[0] = h                                     # autoencoder tap

        # Flatten (L5, C5) -> (1, L5*C5) in (l*C5 + c) order; the first linear weight's
        # rows are permuted on the host so this matches torch's (c*L5 + l) flatten.
        L5, C5 = conv_lens[-1][1], conv_dims[-1][1]
        for l in range(L5):
            flat_scr[:, l * C5:(l + 1) * C5] = h[l:l + 1, :]
        z = flat_scr[...]                                          # (1, 960)

        # MLP head: Linear -> ReLU (x4) -> Linear.
        # TODO(synk): nn.Dropout in TCN_trainer is implemented as inference-mode identity.
        for i in range(n_lin):
            w_ref, b_ref = lin_refs[2 * i], lin_refs[2 * i + 1]
            z = jnp.dot(z, w_ref[...], preferred_element_type=jnp.float32) + b_ref[...]
            if i < n_lin - 1:
                z = jnp.maximum(z, 0.0)
        pred_ref[0] = z                                            # (1, 1)

    return kernel


def temp_conv_network_forward(x, params, n_AE_layers=3):
    """x: (B, 1, L) float32 in PyTorch NCL layout. Returns (extracted_features, prediction)."""
    B, C0, L0 = x.shape
    n_conv, n_lin = len(params["conv"]), len(params["lin"])
    conv_lens = _conv_lens(L0, n_conv)
    conv_dims = [(w.shape[1], w.shape[0]) for (w, _) in params["conv"]]   # (C_in, C_out)
    L5, C5 = conv_lens[-1][1], conv_dims[-1][1]

    ops = [jnp.transpose(x, (0, 2, 1))]                  # (B, L0, C0): length -> sublanes
    in_specs = [pl.BlockSpec((1, L0, C0), lambda i: (i, 0, 0))]

    for (w, b) in params["conv"]:                        # torch layout (C_out, C_in, K)
        C_out, C_in, K = w.shape
        wk = jnp.transpose(w, (2, 1, 0)).reshape(K * C_in, C_out)   # row index = k*C_in + ci
        for arr in (wk, b.reshape(1, C_out)):
            ops.append(arr)
            in_specs.append(pl.BlockSpec(arr.shape, lambda i: (0, 0)))

    for idx, (w, b) in enumerate(params["lin"]):         # (in, out) = torch W.T
        if idx == 0:
            # permute rows from torch flatten order (c*L5 + l) to kernel order (l*C5 + c)
            w = w.reshape(C5, L5, w.shape[1]).transpose(1, 0, 2).reshape(C5 * L5, w.shape[1])
        for arr in (w, b.reshape(1, -1)):
            ops.append(arr)
            in_specs.append(pl.BlockSpec(arr.shape, lambda i: (0, 0)))

    L_ae, C_ae = conv_lens[n_AE_layers][1], conv_dims[n_AE_layers][1]
    out_shape = (jax.ShapeDtypeStruct((B, L_ae, C_ae), jnp.float32),
                 jax.ShapeDtypeStruct((B, 1, 1), jnp.float32))
    out_specs = (pl.BlockSpec((1, L_ae, C_ae), lambda i: (i, 0, 0)),
                 pl.BlockSpec((1, 1, 1), lambda i: (i, 0, 0)))

    scratch = (
        [pltpu.VMEM((Li + 2 * PAD, ci), jnp.float32)
         for (ci, _), (Li, _) in zip(conv_dims, conv_lens)] +            # padded inputs
        [pltpu.VMEM((Li, KSIZE * ci), jnp.float32)
         for (ci, _), (Li, _) in zip(conv_dims, conv_lens)] +            # stacked taps
        [pltpu.VMEM((Li, co), jnp.float32)
         for (_, co), (Li, _) in zip(conv_dims, conv_lens)] +            # pre-pool activations
        [pltpu.VMEM((1, L5 * C5), jnp.float32)]                          # flattened features
    )

    kernel = _make_fused_kernel(conv_dims, conv_lens, n_lin, n_AE_layers)
    ext, pred = pl.pallas_call(
        kernel,
        out_shape=out_shape,
        grid=(B,),
        in_specs=in_specs,
        out_specs=out_specs,
        scratch_shapes=scratch,
        compiler_params=pltpu.CompilerParams(dimension_semantics=("parallel",)),
    )(*ops)

    # Back to torch layouts: nn.Flatten on a (B, C, L) map uses (c*L + l) ordering.
    extracted = jnp.transpose(ext, (0, 2, 1)).reshape(B, C_ae * L_ae)
    return extracted, pred.reshape(B, 1)


# ---------------- parameter init (deterministic, PyTorch-like fan-in uniform) ----------------

def init_params(key):
    params = {"conv": [], "lin": []}
    keys = jax.random.split(key, len(CONV_DIMS) + len(LIN_DIMS))
    for i, (cin, cout) in enumerate(CONV_DIMS):
        kw, kb = jax.random.split(keys[i])
        bound = 1.0 / np.sqrt(cin * KSIZE)
        w = jax.random.uniform(kw, (cout, cin, KSIZE), jnp.float32, -bound, bound)  # torch Conv1d layout
        b = jax.random.uniform(kb, (cout,), jnp.float32, -bound, bound)
        params["conv"].append((w, b))
    for i, (fin, fout) in enumerate(LIN_DIMS):
        kw, kb = jax.random.split(keys[len(CONV_DIMS) + i])
        bound = 1.0 / np.sqrt(fin)
        w = jax.random.uniform(kw, (fin, fout), jnp.float32, -bound, bound)         # = torch W.T
        b = jax.random.uniform(kb, (fout,), jnp.float32, -bound, bound)
        params["lin"].append((w, b))
    return params


if __name__ == "__main__":
    key = jax.random.PRNGKey(0)
    k_x, k_p = jax.random.split(key)
    # (B=2, C=1, L=512): 512 -> 255 -> 127 -> 63 -> 31 -> 15, so 64*15 = 960 = flattened_length
    x = jax.random.normal(k_x, (2, 1, 512), dtype=jnp.float32)
    params = init_params(k_p)
    extracted_features, out = temp_conv_network_forward(x, params)
    jax.block_until_ready((extracted_features, out))
    assert extracted_features.shape == (2, 992), extracted_features.shape
    assert out.shape == (2, 1), out.shape
    print("KERNEL_OK")
</pallas_src>

<mosaic_0001>
module attributes {stable_mosaic.version = 11 : i64} {
  func.func @kernel(%arg0: i32, %arg1: memref<1x512x1xf32, #tpu.memory_space<vmem>>, %arg2: memref<5x8xf32, #tpu.memory_space<vmem>>, %arg3: memref<1x8xf32, #tpu.memory_space<vmem>>, %arg4: memref<40x16xf32, #tpu.memory_space<vmem>>, %arg5: memref<1x16xf32, #tpu.memory_space<vmem>>, %arg6: memref<80x32xf32, #tpu.memory_space<vmem>>, %arg7: memref<1x32xf32, #tpu.memory_space<vmem>>, %arg8: memref<160x32xf32, #tpu.memory_space<vmem>>, %arg9: memref<1x32xf32, #tpu.memory_space<vmem>>, %arg10: memref<160x64xf32, #tpu.memory_space<vmem>>, %arg11: memref<1x64xf32, #tpu.memory_space<vmem>>, %arg12: memref<960x480xf32, #tpu.memory_space<vmem>>, %arg13: memref<1x480xf32, #tpu.memory_space<vmem>>, %arg14: memref<480x240xf32, #tpu.memory_space<vmem>>, %arg15: memref<1x240xf32, #tpu.memory_space<vmem>>, %arg16: memref<240x120xf32, #tpu.memory_space<vmem>>, %arg17: memref<1x120xf32, #tpu.memory_space<vmem>>, %arg18: memref<120x60xf32, #tpu.memory_space<vmem>>, %arg19: memref<1x60xf32, #tpu.memory_space<vmem>>, %arg20: memref<60x1xf32, #tpu.memory_space<vmem>>, %arg21: memref<1x1xf32, #tpu.memory_space<vmem>>, %arg22: memref<1x31x32xf32, #tpu.memory_space<vmem>>, %arg23: memref<1x1x1xf32, #tpu.memory_space<vmem>>, %arg24: memref<532x1xf32, #tpu.memory_space<vmem>>, %arg25: memref<275x8xf32, #tpu.memory_space<vmem>>, %arg26: memref<147x16xf32, #tpu.memory_space<vmem>>, %arg27: memref<83x32xf32, #tpu.memory_space<vmem>>, %arg28: memref<51x32xf32, #tpu.memory_space<vmem>>, %arg29: memref<512x5xf32, #tpu.memory_space<vmem>>, %arg30: memref<255x40xf32, #tpu.memory_space<vmem>>, %arg31: memref<127x80xf32, #tpu.memory_space<vmem>>, %arg32: memref<63x160xf32, #tpu.memory_space<vmem>>, %arg33: memref<31x160xf32, #tpu.memory_space<vmem>>, %arg34: memref<512x8xf32, #tpu.memory_space<vmem>>, %arg35: memref<255x16xf32, #tpu.memory_space<vmem>>, %arg36: memref<127x32xf32, #tpu.memory_space<vmem>>, %arg37: memref<63x32xf32, #tpu.memory_space<vmem>>, %arg38: memref<31x64xf32, #tpu.memory_space<vmem>>, %arg39: memref<1x960xf32, #tpu.memory_space<vmem>>) attributes {dimension_semantics = [#tpu.dimension_semantics<parallel>], iteration_bounds = array<i64: 2>, scalar_prefetch = 0 : i64, scratch_operands = 16 : i64, tpu.core_type = #tpu.core_type<tc>, window_params = [{transform_indices = @transform_0, window_bounds = array<i64: 1, 512, 1>}, {pipeline_mode = #tpu.pipeline_mode<synchronous>, transform_indices = @transform_1, window_bounds = array<i64: 5, 8>}, {pipeline_mode = #tpu.pipeline_mode<synchronous>, transform_indices = @transform_2, window_bounds = array<i64: 1, 8>}, {pipeline_mode = #tpu.pipeline_mode<synchronous>, transform_indices = @transform_3, window_bounds = array<i64: 40, 16>}, {pipeline_mode = #tpu.pipeline_mode<synchronous>, transform_indices = @transform_4, window_bounds = array<i64: 1, 16>}, {pipeline_mode = #tpu.pipeline_mode<synchronous>, transform_indices = @transform_5, window_bounds = array<i64: 80, 32>}, {pipeline_mode = #tpu.pipeline_mode<synchronous>, transform_indices = @transform_6, window_bounds = array<i64: 1, 32>}, {pipeline_mode = #tpu.pipeline_mode<synchronous>, transform_indices = @transform_7, window_bounds = array<i64: 160, 32>}, {pipeline_mode = #tpu.pipeline_mode<synchronous>, transform_indices = @transform_8, window_bounds = array<i64: 1, 32>}, {pipeline_mode = #tpu.pipeline_mode<synchronous>, transform_indices = @transform_9, window_bounds = array<i64: 160, 64>}, {pipeline_mode = #tpu.pipeline_mode<synchronous>, transform_indices = @transform_10, window_bounds = array<i64: 1, 64>}, {pipeline_mode = #tpu.pipeline_mode<synchronous>, transform_indices = @transform_11, window_bounds = array<i64: 960, 480>}, {pipeline_mode = #tpu.pipeline_mode<synchronous>, transform_indices = @transform_12, window_bounds = array<i64: 1, 480>}, {pipeline_mode = #tpu.pipeline_mode<synchronous>, transform_indices = @transform_13, window_bounds = array<i64: 480, 240>}, {pipeline_mode = #tpu.pipeline_mode<synchronous>, transform_indices = @transform_14, window_bounds = array<i64: 1, 240>}, {pipeline_mode = #tpu.pipeline_mode<synchronous>, transform_indices = @transform_15, window_bounds = array<i64: 240, 120>}, {pipeline_mode = #tpu.pipeline_mode<synchronous>, transform_indices = @transform_16, window_bounds = array<i64: 1, 120>}, {pipeline_mode = #tpu.pipeline_mode<synchronous>, transform_indices = @transform_17, window_bounds = array<i64: 120, 60>}, {pipeline_mode = #tpu.pipeline_mode<synchronous>, transform_indices = @transform_18, window_bounds = array<i64: 1, 60>}, {pipeline_mode = #tpu.pipeline_mode<synchronous>, transform_indices = @transform_19, window_bounds = array<i64: 60, 1>}, {pipeline_mode = #tpu.pipeline_mode<synchronous>, transform_indices = @transform_20, window_bounds = array<i64: 1, 1>}, {transform_indices = @transform_21, window_bounds = array<i64: 1, 31, 32>}, {transform_indices = @transform_22, window_bounds = array<i64: 1, 1, 1>}]} {
    %c0 = arith.constant 0 : index
    %c0_0 = arith.constant 0 : index
    %c0_1 = arith.constant 0 : index
    %0 = vector.load %arg1[%c0, %c0_0, %c0_1] : memref<1x512x1xf32, #tpu.memory_space<vmem>>, vector<1x512x1xf32>
    %1 = vector.shape_cast %0 : vector<1x512x1xf32> to vector<512x1xf32>
    %cst = arith.constant 0.000000e+00 : f32
    %2 = vector.broadcast %cst : f32 to vector<10x1xf32>
    %c0_2 = arith.constant 0 : index
    %c0_3 = arith.constant 0 : index
    %3 = vector.load %arg24[%c0_2, %c0_3] : memref<532x1xf32, #tpu.memory_space<vmem>>, vector<10x1xf32>
    tpu.vector_store %arg24[%c0_2, %c0_3], %2 {strides = array<i32>} : memref<532x1xf32, #tpu.memory_space<vmem>>, vector<10x1xf32>,
    %c522 = arith.constant 522 : index
    %c0_4 = arith.constant 0 : index
    %4 = vector.load %arg24[%c522, %c0_4] : memref<532x1xf32, #tpu.memory_space<vmem>>, vector<10x1xf32>
    tpu.vector_store %arg24[%c522, %c0_4], %2 {strides = array<i32>} : memref<532x1xf32, #tpu.memory_space<vmem>>, vector<10x1xf32>,
    %c10 = arith.constant 10 : index
    %c0_5 = arith.constant 0 : index
    %5 = vector.load %arg24[%c10, %c0_5] : memref<532x1xf32, #tpu.memory_space<vmem>>, vector<512x1xf32>
    tpu.vector_store %arg24[%c10, %c0_5], %1 {strides = array<i32>} : memref<532x1xf32, #tpu.memory_space<vmem>>, vector<512x1xf32>,
    %c0_6 = arith.constant 0 : index
    %c0_7 = arith.constant 0 : index
    %6 = vector.load %arg24[%c0_6, %c0_7] : memref<532x1xf32, #tpu.memory_space<vmem>>, vector<512x1xf32>
    %c0_8 = arith.constant 0 : index
    %c0_9 = arith.constant 0 : index
    %7 = vector.load %arg29[%c0_8, %c0_9] : memref<512x5xf32, #tpu.memory_space<vmem>>, vector<512x1xf32>
    tpu.vector_store %arg29[%c0_8, %c0_9], %6 {strides = array<i32>} : memref<512x5xf32, #tpu.memory_space<vmem>>, vector<512x1xf32>,
    %c5 = arith.constant 5 : index
    %c0_10 = arith.constant 0 : index
    %8 = vector.load %arg24[%c5, %c0_10] : memref<532x1xf32, #tpu.memory_space<vmem>>, vector<512x1xf32>
    %c0_11 = arith.constant 0 : index
    %c1 = arith.constant 1 : index
    %9 = vector.load %arg29[%c0_11, %c1] : memref<512x5xf32, #tpu.memory_space<vmem>>, vector<512x1xf32>
    tpu.vector_store %arg29[%c0_11, %c1], %8 {strides = array<i32>} : memref<512x5xf32, #tpu.memory_space<vmem>>, vector<512x1xf32>,
    %c10_12 = arith.constant 10 : index
    %c0_13 = arith.constant 0 : index
    %10 = vector.load %arg24[%c10_12, %c0_13] : memref<532x1xf32, #tpu.memory_space<vmem>>, vector<512x1xf32>
    %c0_14 = arith.constant 0 : index
    %c2 = arith.constant 2 : index
    %11 = vector.load %arg29[%c0_14, %c2] : memref<512x5xf32, #tpu.memory_space<vmem>>, vector<512x1xf32>
    tpu.vector_store %arg29[%c0_14, %c2], %10 {strides = array<i32>} : memref<512x5xf32, #tpu.memory_space<vmem>>, vector<512x1xf32>,
    %c15 = arith.constant 15 : index
    %c0_15 = arith.constant 0 : index
    %12 = vector.load %arg24[%c15, %c0_15] : memref<532x1xf32, #tpu.memory_space<vmem>>, vector<512x1xf32>
    %c0_16 = arith.constant 0 : index
    %c3 = arith.constant 3 : index
    %13 = vector.load %arg29[%c0_16, %c3] : memref<512x5xf32, #tpu.memory_space<vmem>>, vector<512x1xf32>
    tpu.vector_store %arg29[%c0_16, %c3], %12 {strides = array<i32>} : memref<512x5xf32, #tpu.memory_space<vmem>>, vector<512x1xf32>,
    %c20 = arith.constant 20 : index
    %c0_17 = arith.constant 0 : index
    %14 = vector.load %arg24[%c20, %c0_17] : memref<532x1xf32, #tpu.memory_space<vmem>>, vector<512x1xf32>
    %c0_18 = arith.constant 0 : index
    %c4 = arith.constant 4 : index
    %15 = vector.load %arg29[%c0_18, %c4] : memref<512x5xf32, #tpu.memory_space<vmem>>, vector<512x1xf32>
    tpu.vector_store %arg29[%c0_18, %c4], %14 {strides = array<i32>} : memref<512x5xf32, #tpu.memory_space<vmem>>, vector<512x1xf32>,
    %c0_19 = arith.constant 0 : index
    %c0_20 = arith.constant 0 : index
    %16 = vector.load %arg29[%c0_19, %c0_20] : memref<512x5xf32, #tpu.memory_space<vmem>>, vector<512x5xf32>
    %c0_21 = arith.constant 0 : index
    %c0_22 = arith.constant 0 : index
    %17 = vector.load %arg2[%c0_21, %c0_22] : memref<5x8xf32, #tpu.memory_space<vmem>>, vector<5x8xf32>
    %cst_23 = arith.constant dense<0.000000e+00> : vector<512x8xf32>
    %18 = tpu.matmul %16, %17, %cst_23 {dimension_numbers = #tpu.dot_dimension_numbers<[1], [0], [0], [1], [0, 0, 1, 1], [], []>} : vector<512x5xf32>, vector<5x8xf32>, vector<512x8xf32> -> vector<512x8xf32>
    %c0_24 = arith.constant 0 : index
    %c0_25 = arith.constant 0 : index
    %19 = vector.load %arg3[%c0_24, %c0_25] : memref<1x8xf32, #tpu.memory_space<vmem>>, vector<1x8xf32>
    %20 = vector.broadcast %19 : vector<1x8xf32> to vector<512x8xf32>
    %21 = arith.addf %18, %20 : vector<512x8xf32>
    %cst_26 = arith.constant 0.000000e+00 : f32
    %22 = vector.broadcast %cst_26 : f32 to vector<512x8xf32>
    %23 = arith.cmpf oge, %21, %22 : vector<512x8xf32>
    %cst_27 = arith.constant 0.00999999977 : f32
    %24 = vector.broadcast %cst_27 : f32 to vector<512x8xf32>
    %25 = arith.mulf %24, %21 : vector<512x8xf32>
    %26 = arith.select %23, %21, %25 : vector<512x8xi1>, vector<512x8xf32>
    %c0_28 = arith.constant 0 : index
    %c0_29 = arith.constant 0 : index
    %27 = vector.load %arg34[%c0_28, %c0_29] : memref<512x8xf32, #tpu.memory_space<vmem>>, vector<512x8xf32>
    tpu.vector_store %arg34[%c0_28, %c0_29], %26 {strides = array<i32>} : memref<512x8xf32, #tpu.memory_space<vmem>>, vector<512x8xf32>,
    %c0_30 = arith.constant 0 : index
    %c0_31 = arith.constant 0 : index
    %28 = tpu.strided_load %arg34[%c0_30, %c0_31] {strides = array<i32: 2, 1>} : memref<512x8xf32, #tpu.memory_space<vmem>>, vector<255x8xf32>
    %c1_32 = arith.constant 1 : index
    %c0_33 = arith.constant 0 : index
    %29 = tpu.strided_load %arg34[%c1_32, %c0_33] {strides = array<i32: 2, 1>} : memref<512x8xf32, #tpu.memory_space<vmem>>, vector<255x8xf32>
    %c2_34 = arith.constant 2 : index
    %c0_35 = arith.constant 0 : index
    %30 = tpu.strided_load %arg34[%c2_34, %c0_35] {strides = array<i32: 2, 1>} : memref<512x8xf32, #tpu.memory_space<vmem>>, vector<255x8xf32>
    %31 = arith.maximumf %28, %29 : vector<255x8xf32>
    %32 = arith.maximumf %31, %30 : vector<255x8xf32>
    %cst_36 = arith.constant 0.000000e+00 : f32
    %33 = vector.broadcast %cst_36 : f32 to vector<10x8xf32>
    %c0_37 = arith.constant 0 : index
    %c0_38 = arith.constant 0 : index
    %34 = vector.load %arg25[%c0_37, %c0_38] : memref<275x8xf32, #tpu.memory_space<vmem>>, vector<10x8xf32>
    tpu.vector_store %arg25[%c0_37, %c0_38], %33 {strides = array<i32>} : memref<275x8xf32, #tpu.memory_space<vmem>>, vector<10x8xf32>,
    %c265 = arith.constant 265 : index
    %c0_39 = arith.constant 0 : index
    %35 = vector.load %arg25[%c265, %c0_39] : memref<275x8xf32, #tpu.memory_space<vmem>>, vector<10x8xf32>
    tpu.vector_store %arg25[%c265, %c0_39], %33 {strides = array<i32>} : memref<275x8xf32, #tpu.memory_space<vmem>>, vector<10x8xf32>,
    %c10_40 = arith.constant 10 : index
    %c0_41 = arith.constant 0 : index
    %36 = vector.load %arg25[%c10_40, %c0_41] : memref<275x8xf32, #tpu.memory_space<vmem>>, vector<255x8xf32>
    tpu.vector_store %arg25[%c10_40, %c0_41], %32 {strides = array<i32>} : memref<275x8xf32, #tpu.memory_space<vmem>>, vector<255x8xf32>,
    %c0_42 = arith.constant 0 : index
    %c0_43 = arith.constant 0 : index
    %37 = vector.load %arg25[%c0_42, %c0_43] : memref<275x8xf32, #tpu.memory_space<vmem>>, vector<255x8xf32>
    %c0_44 = arith.constant 0 : index
    %c0_45 = arith.constant 0 : index
    %38 = vector.load %arg30[%c0_44, %c0_45] : memref<255x40xf32, #tpu.memory_space<vmem>>, vector<255x8xf32>
    tpu.vector_store %arg30[%c0_44, %c0_45], %37 {strides = array<i32>} : memref<255x40xf32, #tpu.memory_space<vmem>>, vector<255x8xf32>,
    %c5_46 = arith.constant 5 : index
    %c0_47 = arith.constant 0 : index
    %39 = vector.load %arg25[%c5_46, %c0_47] : memref<275x8xf32, #tpu.memory_space<vmem>>, vector<255x8xf32>
    %c0_48 = arith.constant 0 : index
    %c8 = arith.constant 8 : index
    %40 = vector.load %arg30[%c0_48, %c8] : memref<255x40xf32, #tpu.memory_space<vmem>>, vector<255x8xf32>
    tpu.vector_store %arg30[%c0_48, %c8], %39 {strides = array<i32>} : memref<255x40xf32, #tpu.memory_space<vmem>>, vector<255x8xf32>,
    %c10_49 = arith.constant 10 : index
    %c0_50 = arith.constant 0 : index
    %41 = vector.load %arg25[%c10_49, %c0_50] : memref<275x8xf32, #tpu.memory_space<vmem>>, vector<255x8xf32>
    %c0_51 = arith.constant 0 : index
    %c16 = arith.constant 16 : index
    %42 = vector.load %arg30[%c0_51, %c16] : memref<255x40xf32, #tpu.memory_space<vmem>>, vector<255x8xf32>
    tpu.vector_store %arg30[%c0_51, %c16], %41 {strides = array<i32>} : memref<255x40xf32, #tpu.memory_space<vmem>>, vector<255x8xf32>,
    %c15_52 = arith.constant 15 : index
    %c0_53 = arith.constant 0 : index
    %43 = vector.load %arg25[%c15_52, %c0_53] : memref<275x8xf32, #tpu.memory_space<vmem>>, vector<255x8xf32>
    %c0_54 = arith.constant 0 : index
    %c24 = arith.constant 24 : index
    %44 = vector.load %arg30[%c0_54, %c24] : memref<255x40xf32, #tpu.memory_space<vmem>>, vector<255x8xf32>
    tpu.vector_store %arg30[%c0_54, %c24], %43 {strides = array<i32>} : memref<255x40xf32, #tpu.memory_space<vmem>>, vector<255x8xf32>,
    %c20_55 = arith.constant 20 : index
    %c0_56 = arith.constant 0 : index
    %45 = vector.load %arg25[%c20_55, %c0_56] : memref<275x8xf32, #tpu.memory_space<vmem>>, vector<255x8xf32>
    %c0_57 = arith.constant 0 : index
    %c32 = arith.constant 32 : index
    %46 = vector.load %arg30[%c0_57, %c32] : memref<255x40xf32, #tpu.memory_space<vmem>>, vector<255x8xf32>
    tpu.vector_store %arg30[%c0_57, %c32], %45 {strides = array<i32>} : memref<255x40xf32, #tpu.memory_space<vmem>>, vector<255x8xf32>,
    %c0_58 = arith.constant 0 : index
    %c0_59 = arith.constant 0 : index
    %47 = vector.load %arg30[%c0_58, %c0_59] : memref<255x40xf32, #tpu.memory_space<vmem>>, vector<255x40xf32>
    %c0_60 = arith.constant 0 : index
    %c0_61 = arith.constant 0 : index
    %48 = vector.load %arg4[%c0_60, %c0_61] : memref<40x16xf32, #tpu.memory_space<vmem>>, vector<40x16xf32>
    %cst_62 = arith.constant dense<0.000000e+00> : vector<255x16xf32>
    %49 = tpu.matmul %47, %48, %cst_62 {dimension_numbers = #tpu.dot_dimension_numbers<[1], [0], [0], [1], [0, 0, 1, 1], [], []>} : vector<255x40xf32>, vector<40x16xf32>, vector<255x16xf32> -> vector<255x16xf32>
    %c0_63 = arith.constant 0 : index
    %c0_64 = arith.constant 0 : index
    %50 = vector.load %arg5[%c0_63, %c0_64] : memref<1x16xf32, #tpu.memory_space<vmem>>, vector<1x16xf32>
    %51 = vector.broadcast %50 : vector<1x16xf32> to vector<255x16xf32>
    %52 = arith.addf %49, %51 : vector<255x16xf32>
    %cst_65 = arith.constant 0.000000e+00 : f32
    %53 = vector.broadcast %cst_65 : f32 to vector<255x16xf32>
    %54 = arith.cmpf oge, %52, %53 : vector<255x16xf32>
    %cst_66 = arith.constant 0.00999999977 : f32
    %55 = vector.broadcast %cst_66 : f32 to vector<255x16xf32>
    %56 = arith.mulf %55, %52 : vector<255x16xf32>
    %57 = arith.select %54, %52, %56 : vector<255x16xi1>, vector<255x16xf32>
    %c0_67 = arith.constant 0 : index
    %c0_68 = arith.constant 0 : index
    %58 = vector.load %arg35[%c0_67, %c0_68] : memref<255x16xf32, #tpu.memory_space<vmem>>, vector<255x16xf32>
    tpu.vector_store %arg35[%c0_67, %c0_68], %57 {strides = array<i32>} : memref<255x16xf32, #tpu.memory_space<vmem>>, vector<255x16xf32>,
    %c0_69 = arith.constant 0 : index
    %c0_70 = arith.constant 0 : index
    %59 = tpu.strided_load %arg35[%c0_69, %c0_70] {strides = array<i32: 2, 1>} : memref<255x16xf32, #tpu.memory_space<vmem>>, vector<127x16xf32>
    %c1_71 = arith.constant 1 : index
    %c0_72 = arith.constant 0 : index
    %60 = tpu.strided_load %arg35[%c1_71, %c0_72] {strides = array<i32: 2, 1>} : memref<255x16xf32, #tpu.memory_space<vmem>>, vector<127x16xf32>
    %c2_73 = arith.constant 2 : index
    %c0_74 = arith.constant 0 : index
    %61 = tpu.strided_load %arg35[%c2_73, %c0_74] {strides = array<i32: 2, 1>} : memref<255x16xf32, #tpu.memory_space<vmem>>, vector<127x16xf32>
    %62 = arith.maximumf %59, %60 : vector<127x16xf32>
    %63 = arith.maximumf %62, %61 : vector<127x16xf32>
    %cst_75 = arith.constant 0.000000e+00 : f32
    %64 = vector.broadcast %cst_75 : f32 to vector<10x16xf32>
    %c0_76 = arith.constant 0 : index
    %c0_77 = arith.constant 0 : index
    %65 = vector.load %arg26[%c0_76, %c0_77] : memref<147x16xf32, #tpu.memory_space<vmem>>, vector<10x16xf32>
    tpu.vector_store %arg26[%c0_76, %c0_77], %64 {strides = array<i32>} : memref<147x16xf32, #tpu.memory_space<vmem>>, vector<10x16xf32>,
    %c137 = arith.constant 137 : index
    %c0_78 = arith.constant 0 : index
    %66 = vector.load %arg26[%c137, %c0_78] : memref<147x16xf32, #tpu.memory_space<vmem>>, vector<10x16xf32>
    tpu.vector_store %arg26[%c137, %c0_78], %64 {strides = array<i32>} : memref<147x16xf32, #tpu.memory_space<vmem>>, vector<10x16xf32>,
    %c10_79 = arith.constant 10 : index
    %c0_80 = arith.constant 0 : index
    %67 = vector.load %arg26[%c10_79, %c0_80] : memref<147x16xf32, #tpu.memory_space<vmem>>, vector<127x16xf32>
    tpu.vector_store %arg26[%c10_79, %c0_80], %63 {strides = array<i32>} : memref<147x16xf32, #tpu.memory_space<vmem>>, vector<127x16xf32>,
    %c0_81 = arith.constant 0 : index
    %c0_82 = arith.constant 0 : index
    %68 = vector.load %arg26[%c0_81, %c0_82] : memref<147x16xf32, #tpu.memory_space<vmem>>, vector<127x16xf32>
    %c0_83 = arith.constant 0 : index
    %c0_84 = arith.constant 0 : index
    %69 = vector.load %arg31[%c0_83, %c0_84] : memref<127x80xf32, #tpu.memory_space<vmem>>, vector<127x16xf32>
    tpu.vector_store %arg31[%c0_83, %c0_84], %68 {strides = array<i32>} : memref<127x80xf32, #tpu.memory_space<vmem>>, vector<127x16xf32>,
    %c5_85 = arith.constant 5 : index
    %c0_86 = arith.constant 0 : index
    %70 = vector.load %arg26[%c5_85, %c0_86] : memref<147x16xf32, #tpu.memory_space<vmem>>, vector<127x16xf32>
    %c0_87 = arith.constant 0 : index
    %c16_88 = arith.constant 16 : index
    %71 = vector.load %arg31[%c0_87, %c16_88] : memref<127x80xf32, #tpu.memory_space<vmem>>, vector<127x16xf32>
    tpu.vector_store %arg31[%c0_87, %c16_88], %70 {strides = array<i32>} : memref<127x80xf32, #tpu.memory_space<vmem>>, vector<127x16xf32>,
    %c10_89 = arith.constant 10 : index
    %c0_90 = arith.constant 0 : index
    %72 = vector.load %arg26[%c10_89, %c0_90] : memref<147x16xf32, #tpu.memory_space<vmem>>, vector<127x16xf32>
    %c0_91 = arith.constant 0 : index
    %c32_92 = arith.constant 32 : index
    %73 = vector.load %arg31[%c0_91, %c32_92] : memref<127x80xf32, #tpu.memory_space<vmem>>, vector<127x16xf32>
    tpu.vector_store %arg31[%c0_91, %c32_92], %72 {strides = array<i32>} : memref<127x80xf32, #tpu.memory_space<vmem>>, vector<127x16xf32>,
    %c15_93 = arith.constant 15 : index
    %c0_94 = arith.constant 0 : index
    %74 = vector.load %arg26[%c15_93, %c0_94] : memref<147x16xf32, #tpu.memory_space<vmem>>, vector<127x16xf32>
    %c0_95 = arith.constant 0 : index
    %c48 = arith.constant 48 : index
    %75 = vector.load %arg31[%c0_95, %c48] : memref<127x80xf32, #tpu.memory_space<vmem>>, vector<127x16xf32>
    tpu.vector_store %arg31[%c0_95, %c48], %74 {strides = array<i32>} : memref<127x80xf32, #tpu.memory_space<vmem>>, vector<127x16xf32>,
    %c20_96 = arith.constant 20 : index
    %c0_97 = arith.constant 0 : index
    %76 = vector.load %arg26[%c20_96, %c0_97] : memref<147x16xf32, #tpu.memory_space<vmem>>, vector<127x16xf32>
    %c0_98 = arith.constant 0 : index
    %c64 = arith.constant 64 : index
    %77 = vector.load %arg31[%c0_98, %c64] : memref<127x80xf32, #tpu.memory_space<vmem>>, vector<127x16xf32>
    tpu.vector_store %arg31[%c0_98, %c64], %76 {strides = array<i32>} : memref<127x80xf32, #tpu.memory_space<vmem>>, vector<127x16xf32>,
    %c0_99 = arith.constant 0 : index
    %c0_100 = arith.constant 0 : index
    %78 = vector.load %arg31[%c0_99, %c0_100] : memref<127x80xf32, #tpu.memory_space<vmem>>, vector<127x80xf32>
    %c0_101 = arith.constant 0 : index
    %c0_102 = arith.constant 0 : index
    %79 = vector.load %arg6[%c0_101, %c0_102] : memref<80x32xf32, #tpu.memory_space<vmem>>, vector<80x32xf32>
    %cst_103 = arith.constant dense<0.000000e+00> : vector<127x32xf32>
    %80 = tpu.matmul %78, %79, %cst_103 {dimension_numbers = #tpu.dot_dimension_numbers<[1], [0], [0], [1], [0, 0, 1, 1], [], []>} : vector<127x80xf32>, vector<80x32xf32>, vector<127x32xf32> -> vector<127x32xf32>
    %c0_104 = arith.constant 0 : index
    %c0_105 = arith.constant 0 : index
    %81 = vector.load %arg7[%c0_104, %c0_105] : memref<1x32xf32, #tpu.memory_space<vmem>>, vector<1x32xf32>
    %82 = vector.broadcast %81 : vector<1x32xf32> to vector<127x32xf32>
    %83 = arith.addf %80, %82 : vector<127x32xf32>
    %cst_106 = arith.constant 0.000000e+00 : f32
    %84 = vector.broadcast %cst_106 : f32 to vector<127x32xf32>
    %85 = arith.cmpf oge, %83, %84 : vector<127x32xf32>
    %cst_107 = arith.constant 0.00999999977 : f32
    %86 = vector.broadcast %cst_107 : f32 to vector<127x32xf32>
    %87 = arith.mulf %86, %83 : vector<127x32xf32>
    %88 = arith.select %85, %83, %87 : vector<127x32xi1>, vector<127x32xf32>
    %c0_108 = arith.constant 0 : index
    %c0_109 = arith.constant 0 : index
    %89 = vector.load %arg36[%c0_108, %c0_109] : memref<127x32xf32, #tpu.memory_space<vmem>>, vector<127x32xf32>
    tpu.vector_store %arg36[%c0_108, %c0_109], %88 {strides = array<i32>} : memref<127x32xf32, #tpu.memory_space<vmem>>, vector<127x32xf32>,
    %c0_110 = arith.constant 0 : index
    %c0_111 = arith.constant 0 : index
    %90 = tpu.strided_load %arg36[%c0_110, %c0_111] {strides = array<i32: 2, 1>} : memref<127x32xf32, #tpu.memory_space<vmem>>, vector<63x32xf32>
    %c1_112 = arith.constant 1 : index
    %c0_113 = arith.constant 0 : index
    %91 = tpu.strided_load %arg36[%c1_112, %c0_113] {strides = array<i32: 2, 1>} : memref<127x32xf32, #tpu.memory_space<vmem>>, vector<63x32xf32>
    %c2_114 = arith.constant 2 : index
    %c0_115 = arith.constant 0 : index
    %92 = tpu.strided_load %arg36[%c2_114, %c0_115] {strides = array<i32: 2, 1>} : memref<127x32xf32, #tpu.memory_space<vmem>>, vector<63x32xf32>
    %93 = arith.maximumf %90, %91 : vector<63x32xf32>
    %94 = arith.maximumf %93, %92 : vector<63x32xf32>
    %cst_116 = arith.constant 0.000000e+00 : f32
    %95 = vector.broadcast %cst_116 : f32 to vector<10x32xf32>
    %c0_117 = arith.constant 0 : index
    %c0_118 = arith.constant 0 : index
    %96 = vector.load %arg27[%c0_117, %c0_118] : memref<83x32xf32, #tpu.memory_space<vmem>>, vector<10x32xf32>
    tpu.vector_store %arg27[%c0_117, %c0_118], %95 {strides = array<i32>} : memref<83x32xf32, #tpu.memory_space<vmem>>, vector<10x32xf32>,
    %c73 = arith.constant 73 : index
    %c0_119 = arith.constant 0 : index
    %97 = vector.load %arg27[%c73, %c0_119] : memref<83x32xf32, #tpu.memory_space<vmem>>, vector<10x32xf32>
    tpu.vector_store %arg27[%c73, %c0_119], %95 {strides = array<i32>} : memref<83x32xf32, #tpu.memory_space<vmem>>, vector<10x32xf32>,
    %c10_120 = arith.constant 10 : index
    %c0_121 = arith.constant 0 : index
    %98 = vector.load %arg27[%c10_120, %c0_121] : memref<83x32xf32, #tpu.memory_space<vmem>>, vector<63x32xf32>
    tpu.vector_store %arg27[%c10_120, %c0_121], %94 {strides = array<i32>} : memref<83x32xf32, #tpu.memory_space<vmem>>, vector<63x32xf32>,
    %c0_122 = arith.constant 0 : index
    %c0_123 = arith.constant 0 : index
    %99 = vector.load %arg27[%c0_122, %c0_123] : memref<83x32xf32, #tpu.memory_space<vmem>>, vector<63x32xf32>
    %c0_124 = arith.constant 0 : index
    %c0_125 = arith.constant 0 : index
    %100 = vector.load %arg32[%c0_124, %c0_125] : memref<63x160xf32, #tpu.memory_space<vmem>>, vector<63x32xf32>
    tpu.vector_store %arg32[%c0_124, %c0_125], %99 {strides = array<i32>} : memref<63x160xf32, #tpu.memory_space<vmem>>, vector<63x32xf32>,
    %c5_126 = arith.constant 5 : index
    %c0_127 = arith.constant 0 : index
    %101 = vector.load %arg27[%c5_126, %c0_127] : memref<83x32xf32, #tpu.memory_space<vmem>>, vector<63x32xf32>
    %c0_128 = arith.constant 0 : index
    %c32_129 = arith.constant 32 : index
    %102 = vector.load %arg32[%c0_128, %c32_129] : memref<63x160xf32, #tpu.memory_space<vmem>>, vector<63x32xf32>
    tpu.vector_store %arg32[%c0_128, %c32_129], %101 {strides = array<i32>} : memref<63x160xf32, #tpu.memory_space<vmem>>, vector<63x32xf32>,
    %c10_130 = arith.constant 10 : index
    %c0_131 = arith.constant 0 : index
    %103 = vector.load %arg27[%c10_130, %c0_131] : memref<83x32xf32, #tpu.memory_space<vmem>>, vector<63x32xf32>
    %c0_132 = arith.constant 0 : index
    %c64_133 = arith.constant 64 : index
    %104 = vector.load %arg32[%c0_132, %c64_133] : memref<63x160xf32, #tpu.memory_space<vmem>>, vector<63x32xf32>
    tpu.vector_store %arg32[%c0_132, %c64_133], %103 {strides = array<i32>} : memref<63x160xf32, #tpu.memory_space<vmem>>, vector<63x32xf32>,
    %c15_134 = arith.constant 15 : index
    %c0_135 = arith.constant 0 : index
    %105 = vector.load %arg27[%c15_134, %c0_135] : memref<83x32xf32, #tpu.memory_space<vmem>>, vector<63x32xf32>
    %c0_136 = arith.constant 0 : index
    %c96 = arith.constant 96 : index
    %106 = vector.load %arg32[%c0_136, %c96] : memref<63x160xf32, #tpu.memory_space<vmem>>, vector<63x32xf32>
    tpu.vector_store %arg32[%c0_136, %c96], %105 {strides = array<i32>} : memref<63x160xf32, #tpu.memory_space<vmem>>, vector<63x32xf32>,
    %c20_137 = arith.constant 20 : index
    %c0_138 = arith.constant 0 : index
    %107 = vector.load %arg27[%c20_137, %c0_138] : memref<83x32xf32, #tpu.memory_space<vmem>>, vector<63x32xf32>
    %c0_139 = arith.constant 0 : index
    %c128 = arith.constant 128 : index
    %108 = vector.load %arg32[%c0_139, %c128] : memref<63x160xf32, #tpu.memory_space<vmem>>, vector<63x32xf32>
    tpu.vector_store %arg32[%c0_139, %c128], %107 {strides = array<i32>} : memref<63x160xf32, #tpu.memory_space<vmem>>, vector<63x32xf32>,
    %c0_140 = arith.constant 0 : index
    %c0_141 = arith.constant 0 : index
    %109 = vector.load %arg32[%c0_140, %c0_141] : memref<63x160xf32, #tpu.memory_space<vmem>>, vector<63x160xf32>
    %c0_142 = arith.constant 0 : index
    %c0_143 = arith.constant 0 : index
    %110 = vector.load %arg8[%c0_142, %c0_143] : memref<160x32xf32, #tpu.memory_space<vmem>>, vector<160x32xf32>
    %cst_144 = arith.constant dense<0.000000e+00> : vector<63x32xf32>
    %111 = tpu.matmul %109, %110, %cst_144 {dimension_numbers = #tpu.dot_dimension_numbers<[1], [0], [0], [1], [0, 0, 1, 1], [], []>} : vector<63x160xf32>, vector<160x32xf32>, vector<63x32xf32> -> vector<63x32xf32>
    %c0_145 = arith.constant 0 : index
    %c0_146 = arith.constant 0 : index
    %112 = vector.load %arg9[%c0_145, %c0_146] : memref<1x32xf32, #tpu.memory_space<vmem>>, vector<1x32xf32>
    %113 = vector.broadcast %112 : vector<1x32xf32> to vector<63x32xf32>
    %114 = arith.addf %111, %113 : vector<63x32xf32>
    %cst_147 = arith.constant 0.000000e+00 : f32
    %115 = vector.broadcast %cst_147 : f32 to vector<63x32xf32>
    %116 = arith.cmpf oge, %114, %115 : vector<63x32xf32>
    %cst_148 = arith.constant 0.00999999977 : f32
    %117 = vector.broadcast %cst_148 : f32 to vector<63x32xf32>
    %118 = arith.mulf %117, %114 : vector<63x32xf32>
    %119 = arith.select %116, %114, %118 : vector<63x32xi1>, vector<63x32xf32>
    %c0_149 = arith.constant 0 : index
    %c0_150 = arith.constant 0 : index
    %120 = vector.load %arg37[%c0_149, %c0_150] : memref<63x32xf32, #tpu.memory_space<vmem>>, vector<63x32xf32>
    tpu.vector_store %arg37[%c0_149, %c0_150], %119 {strides = array<i32>} : memref<63x32xf32, #tpu.memory_space<vmem>>, vector<63x32xf32>,
    %c0_151 = arith.constant 0 : index
    %c0_152 = arith.constant 0 : index
    %121 = tpu.strided_load %arg37[%c0_151, %c0_152] {strides = array<i32: 2, 1>} : memref<63x32xf32, #tpu.memory_space<vmem>>, vector<31x32xf32>
    %c1_153 = arith.constant 1 : index
    %c0_154 = arith.constant 0 : index
    %122 = tpu.strided_load %arg37[%c1_153, %c0_154] {strides = array<i32: 2, 1>} : memref<63x32xf32, #tpu.memory_space<vmem>>, vector<31x32xf32>
    %c2_155 = arith.constant 2 : index
    %c0_156 = arith.constant 0 : index
    %123 = tpu.strided_load %arg37[%c2_155, %c0_156] {strides = array<i32: 2, 1>} : memref<63x32xf32, #tpu.memory_space<vmem>>, vector<31x32xf32>
    %124 = arith.maximumf %121, %122 : vector<31x32xf32>
    %125 = arith.maximumf %124, %123 : vector<31x32xf32>
    %c0_157 = arith.constant 0 : index
    %c0_158 = arith.constant 0 : index
    %c0_159 = arith.constant 0 : index
    %126 = vector.load %arg22[%c0_157, %c0_158, %c0_159] : memref<1x31x32xf32, #tpu.memory_space<vmem>>, vector<1x31x32xf32>
    %127 = vector.shape_cast %126 : vector<1x31x32xf32> to vector<31x32xf32>
    %128 = vector.shape_cast %125 : vector<31x32xf32> to vector<1x31x32xf32>
    tpu.vector_store %arg22[%c0_157, %c0_158, %c0_159], %128 {strides = array<i32>} : memref<1x31x32xf32, #tpu.memory_space<vmem>>, vector<1x31x32xf32>,
    %cst_160 = arith.constant 0.000000e+00 : f32
    %129 = vector.broadcast %cst_160 : f32 to vector<10x32xf32>
    %c0_161 = arith.constant 0 : index
    %c0_162 = arith.constant 0 : index
    %130 = vector.load %arg28[%c0_161, %c0_162] : memref<51x32xf32, #tpu.memory_space<vmem>>, vector<10x32xf32>
    tpu.vector_store %arg28[%c0_161, %c0_162], %129 {strides = array<i32>} : memref<51x32xf32, #tpu.memory_space<vmem>>, vector<10x32xf32>,
    %c41 = arith.constant 41 : index
    %c0_163 = arith.constant 0 : index
    %131 = vector.load %arg28[%c41, %c0_163] : memref<51x32xf32, #tpu.memory_space<vmem>>, vector<10x32xf32>
    tpu.vector_store %arg28[%c41, %c0_163], %129 {strides = array<i32>} : memref<51x32xf32, #tpu.memory_space<vmem>>, vector<10x32xf32>,
    %c10_164 = arith.constant 10 : index
    %c0_165 = arith.constant 0 : index
    %132 = vector.load %arg28[%c10_164, %c0_165] : memref<51x32xf32, #tpu.memory_space<vmem>>, vector<31x32xf32>
    tpu.vector_store %arg28[%c10_164, %c0_165], %125 {strides = array<i32>} : memref<51x32xf32, #tpu.memory_space<vmem>>, vector<31x32xf32>,
    %c0_166 = arith.constant 0 : index
    %c0_167 = arith.constant 0 : index
    %133 = vector.load %arg28[%c0_166, %c0_167] : memref<51x32xf32, #tpu.memory_space<vmem>>, vector<31x32xf32>
    %c0_168 = arith.constant 0 : index
    %c0_169 = arith.constant 0 : index
    %134 = vector.load %arg33[%c0_168, %c0_169] : memref<31x160xf32, #tpu.memory_space<vmem>>, vector<31x32xf32>
    tpu.vector_store %arg33[%c0_168, %c0_169], %133 {strides = array<i32>} : memref<31x160xf32, #tpu.memory_space<vmem>>, vector<31x32xf32>,
    %c5_170 = arith.constant 5 : index
    %c0_171 = arith.constant 0 : index
    %135 = vector.load %arg28[%c5_170, %c0_171] : memref<51x32xf32, #tpu.memory_space<vmem>>, vector<31x32xf32>
    %c0_172 = arith.constant 0 : index
    %c32_173 = arith.constant 32 : index
    %136 = vector.load %arg33[%c0_172, %c32_173] : memref<31x160xf32, #tpu.memory_space<vmem>>, vector<31x32xf32>
    tpu.vector_store %arg33[%c0_172, %c32_173], %135 {strides = array<i32>} : memref<31x160xf32, #tpu.memory_space<vmem>>, vector<31x32xf32>,
    %c10_174 = arith.constant 10 : index
    %c0_175 = arith.constant 0 : index
    %137 = vector.load %arg28[%c10_174, %c0_175] : memref<51x32xf32, #tpu.memory_space<vmem>>, vector<31x32xf32>
    %c0_176 = arith.constant 0 : index
    %c64_177 = arith.constant 64 : index
    %138 = vector.load %arg33[%c0_176, %c64_177] : memref<31x160xf32, #tpu.memory_space<vmem>>, vector<31x32xf32>
    tpu.vector_store %arg33[%c0_176, %c64_177], %137 {strides = array<i32>} : memref<31x160xf32, #tpu.memory_space<vmem>>, vector<31x32xf32>,
    %c15_178 = arith.constant 15 : index
    %c0_179 = arith.constant 0 : index
    %139 = vector.load %arg28[%c15_178, %c0_179] : memref<51x32xf32, #tpu.memory_space<vmem>>, vector<31x32xf32>
    %c0_180 = arith.constant 0 : index
    %c96_181 = arith.constant 96 : index
    %140 = vector.load %arg33[%c0_180, %c96_181] : memref<31x160xf32, #tpu.memory_space<vmem>>, vector<31x32xf32>
    tpu.vector_store %arg33[%c0_180, %c96_181], %139 {strides = array<i32>} : memref<31x160xf32, #tpu.memory_space<vmem>>, vector<31x32xf32>,
    %c20_182 = arith.constant 20 : index
    %c0_183 = arith.constant 0 : index
    %141 = vector.load %arg28[%c20_182, %c0_183] : memref<51x32xf32, #tpu.memory_space<vmem>>, vector<31x32xf32>
    %c0_184 = arith.constant 0 : index
    %c128_185 = arith.constant 128 : index
    %142 = vector.load %arg33[%c0_184, %c128_185] : memref<31x160xf32, #tpu.memory_space<vmem>>, vector<31x32xf32>
    tpu.vector_store %arg33[%c0_184, %c128_185], %141 {strides = array<i32>} : memref<31x160xf32, #tpu.memory_space<vmem>>, vector<31x32xf32>,
    %c0_186 = arith.constant 0 : index
    %c0_187 = arith.constant 0 : index
    %143 = vector.load %arg33[%c0_186, %c0_187] : memref<31x160xf32, #tpu.memory_space<vmem>>, vector<31x160xf32>
    %c0_188 = arith.constant 0 : index
    %c0_189 = arith.constant 0 : index
    %144 = vector.load %arg10[%c0_188, %c0_189] : memref<160x64xf32, #tpu.memory_space<vmem>>, vector<160x64xf32>
    %cst_190 = arith.constant dense<0.000000e+00> : vector<31x64xf32>
    %145 = tpu.matmul %143, %144, %cst_190 {dimension_numbers = #tpu.dot_dimension_numbers<[1], [0], [0], [1], [0, 0, 1, 1], [], []>} : vector<31x160xf32>, vector<160x64xf32>, vector<31x64xf32> -> vector<31x64xf32>
    %c0_191 = arith.constant 0 : index
    %c0_192 = arith.constant 0 : index
    %146 = vector.load %arg11[%c0_191, %c0_192] : memref<1x64xf32, #tpu.memory_space<vmem>>, vector<1x64xf32>
    %147 = vector.broadcast %146 : vector<1x64xf32> to vector<31x64xf32>
    %148 = arith.addf %145, %147 : vector<31x64xf32>
    %cst_193 = arith.constant 0.000000e+00 : f32
    %149 = vector.broadcast %cst_193 : f32 to vector<31x64xf32>
    %150 = arith.cmpf oge, %148, %149 : vector<31x64xf32>
    %cst_194 = arith.constant 0.00999999977 : f32
    %151 = vector.broadcast %cst_194 : f32 to vector<31x64xf32>
    %152 = arith.mulf %151, %148 : vector<31x64xf32>
    %153 = arith.select %150, %148, %152 : vector<31x64xi1>, vector<31x64xf32>
    %c0_195 = arith.constant 0 : index
    %c0_196 = arith.constant 0 : index
    %154 = vector.load %arg38[%c0_195, %c0_196] : memref<31x64xf32, #tpu.memory_space<vmem>>, vector<31x64xf32>
    tpu.vector_store %arg38[%c0_195, %c0_196], %153 {strides = array<i32>} : memref<31x64xf32, #tpu.memory_space<vmem>>, vector<31x64xf32>,
    %c0_197 = arith.constant 0 : index
    %c0_198 = arith.constant 0 : index
    %155 = tpu.strided_load %arg38[%c0_197, %c0_198] {strides = array<i32: 2, 1>} : memref<31x64xf32, #tpu.memory_space<vmem>>, vector<15x64xf32>
    %c1_199 = arith.constant 1 : index
    %c0_200 = arith.constant 0 : index
    %156 = tpu.strided_load %arg38[%c1_199, %c0_200] {strides = array<i32: 2, 1>} : memref<31x64xf32, #tpu.memory_space<vmem>>, vector<15x64xf32>
    %c2_201 = arith.constant 2 : index
    %c0_202 = arith.constant 0 : index
    %157 = tpu.strided_load %arg38[%c2_201, %c0_202] {strides = array<i32: 2, 1>} : memref<31x64xf32, #tpu.memory_space<vmem>>, vector<15x64xf32>
    %158 = arith.maximumf %155, %156 : vector<15x64xf32>
    %159 = arith.maximumf %158, %157 : vector<15x64xf32>
    %160 = vector.extract_strided_slice %159 {offsets = [0, 0], sizes = [1, 64], strides = [1, 1]} : vector<15x64xf32> to vector<1x64xf32>
    %c0_203 = arith.constant 0 : index
    %c0_204 = arith.constant 0 : index
    %161 = vector.load %arg39[%c0_203, %c0_204] : memref<1x960xf32, #tpu.memory_space<vmem>>, vector<1x64xf32>
    tpu.vector_store %arg39[%c0_203, %c0_204], %160 {strides = array<i32>} : memref<1x960xf32, #tpu.memory_space<vmem>>, vector<1x64xf32>,
    %162 = vector.extract_strided_slice %159 {offsets = [1, 0], sizes = [1, 64], strides = [1, 1]} : vector<15x64xf32> to vector<1x64xf32>
    %c0_205 = arith.constant 0 : index
    %c64_206 = arith.constant 64 : index
    %163 = vector.load %arg39[%c0_205, %c64_206] : memref<1x960xf32, #tpu.memory_space<vmem>>, vector<1x64xf32>
    tpu.vector_store %arg39[%c0_205, %c64_206], %162 {strides = array<i32>} : memref<1x960xf32, #tpu.memory_space<vmem>>, vector<1x64xf32>,
    %164 = vector.extract_strided_slice %159 {offsets = [2, 0], sizes = [1, 64], strides = [1, 1]} : vector<15x64xf32> to vector<1x64xf32>
    %c0_207 = arith.constant 0 : index
    %c128_208 = arith.constant 128 : index
    %165 = vector.load %arg39[%c0_207, %c128_208] : memref<1x960xf32, #tpu.memory_space<vmem>>, vector<1x64xf32>
    tpu.vector_store %arg39[%c0_207, %c128_208], %164 {strides = array<i32>} : memref<1x960xf32, #tpu.memory_space<vmem>>, vector<1x64xf32>,
    %166 = vector.extract_strided_slice %159 {offsets = [3, 0], sizes = [1, 64], strides = [1, 1]} : vector<15x64xf32> to vector<1x64xf32>
    %c0_209 = arith.constant 0 : index
    %c192 = arith.constant 192 : index
    %167 = vector.load %arg39[%c0_209, %c192] : memref<1x960xf32, #tpu.memory_space<vmem>>, vector<1x64xf32>
    tpu.vector_store %arg39[%c0_209, %c192], %166 {strides = array<i32>} : memref<1x960xf32, #tpu.memory_space<vmem>>, vector<1x64xf32>,
    %168 = vector.extract_strided_slice %159 {offsets = [4, 0], sizes = [1, 64], strides = [1, 1]} : vector<15x64xf32> to vector<1x64xf32>
    %c0_210 = arith.constant 0 : index
    %c256 = arith.constant 256 : index
    %169 = vector.load %arg39[%c0_210, %c256] : memref<1x960xf32, #tpu.memory_space<vmem>>, vector<1x64xf32>
    tpu.vector_store %arg39[%c0_210, %c256], %168 {strides = array<i32>} : memref<1x960xf32, #tpu.memory_space<vmem>>, vector<1x64xf32>,
    %170 = vector.extract_strided_slice %159 {offsets = [5, 0], sizes = [1, 64], strides = [1, 1]} : vector<15x64xf32> to vector<1x64xf32>
    %c0_211 = arith.constant 0 : index
    %c320 = arith.constant 320 : index
    %171 = vector.load %arg39[%c0_211, %c320] : memref<1x960xf32, #tpu.memory_space<vmem>>, vector<1x64xf32>
    tpu.vector_store %arg39[%c0_211, %c320], %170 {strides = array<i32>} : memref<1x960xf32, #tpu.memory_space<vmem>>, vector<1x64xf32>,
    %172 = vector.extract_strided_slice %159 {offsets = [6, 0], sizes = [1, 64], strides = [1, 1]} : vector<15x64xf32> to vector<1x64xf32>
    %c0_212 = arith.constant 0 : index
    %c384 = arith.constant 384 : index
    %173 = vector.load %arg39[%c0_212, %c384] : memref<1x960xf32, #tpu.memory_space<vmem>>, vector<1x64xf32>
    tpu.vector_store %arg39[%c0_212, %c384], %172 {strides = array<i32>} : memref<1x960xf32, #tpu.memory_space<vmem>>, vector<1x64xf32>,
    %174 = vector.extract_strided_slice %159 {offsets = [7, 0], sizes = [1, 64], strides = [1, 1]} : vector<15x64xf32> to vector<1x64xf32>
    %c0_213 = arith.constant 0 : index
    %c448 = arith.constant 448 : index
    %175 = vector.load %arg39[%c0_213, %c448] : memref<1x960xf32, #tpu.memory_space<vmem>>, vector<1x64xf32>
    tpu.vector_store %arg39[%c0_213, %c448], %174 {strides = array<i32>} : memref<1x960xf32, #tpu.memory_space<vmem>>, vector<1x64xf32>,
    %176 = vector.extract_strided_slice %159 {offsets = [8, 0], sizes = [1, 64], strides = [1, 1]} : vector<15x64xf32> to vector<1x64xf32>
    %c0_214 = arith.constant 0 : index
    %c512 = arith.constant 512 : index
    %177 = vector.load %arg39[%c0_214, %c512] : memref<1x960xf32, #tpu.memory_space<vmem>>, vector<1x64xf32>
    tpu.vector_store %arg39[%c0_214, %c512], %176 {strides = array<i32>} : memref<1x960xf32, #tpu.memory_space<vmem>>, vector<1x64xf32>,
    %178 = vector.extract_strided_slice %159 {offsets = [9, 0], sizes = [1, 64], strides = [1, 1]} : vector<15x64xf32> to vector<1x64xf32>
    %c0_215 = arith.constant 0 : index
    %c576 = arith.constant 576 : index
    %179 = vector.load %arg39[%c0_215, %c576] : memref<1x960xf32, #tpu.memory_space<vmem>>, vector<1x64xf32>
    tpu.vector_store %arg39[%c0_215, %c576], %178 {strides = array<i32>} : memref<1x960xf32, #tpu.memory_space<vmem>>, vector<1x64xf32>,
    %180 = vector.extract_strided_slice %159 {offsets = [10, 0], sizes = [1, 64], strides = [1, 1]} : vector<15x64xf32> to vector<1x64xf32>
    %c0_216 = arith.constant 0 : index
    %c640 = arith.constant 640 : index
    %181 = vector.load %arg39[%c0_216, %c640] : memref<1x960xf32, #tpu.memory_space<vmem>>, vector<1x64xf32>
    tpu.vector_store %arg39[%c0_216, %c640], %180 {strides = array<i32>} : memref<1x960xf32, #tpu.memory_space<vmem>>, vector<1x64xf32>,
    %182 = vector.extract_strided_slice %159 {offsets = [11, 0], sizes = [1, 64], strides = [1, 1]} : vector<15x64xf32> to vector<1x64xf32>
    %c0_217 = arith.constant 0 : index
    %c704 = arith.constant 704 : index
    %183 = vector.load %arg39[%c0_217, %c704] : memref<1x960xf32, #tpu.memory_space<vmem>>, vector<1x64xf32>
    tpu.vector_store %arg39[%c0_217, %c704], %182 {strides = array<i32>} : memref<1x960xf32, #tpu.memory_space<vmem>>, vector<1x64xf32>,
    %184 = vector.extract_strided_slice %159 {offsets = [12, 0], sizes = [1, 64], strides = [1, 1]} : vector<15x64xf32> to vector<1x64xf32>
    %c0_218 = arith.constant 0 : index
    %c768 = arith.constant 768 : index
    %185 = vector.load %arg39[%c0_218, %c768] : memref<1x960xf32, #tpu.memory_space<vmem>>, vector<1x64xf32>
    tpu.vector_store %arg39[%c0_218, %c768], %184 {strides = array<i32>} : memref<1x960xf32, #tpu.memory_space<vmem>>, vector<1x64xf32>,
    %186 = vector.extract_strided_slice %159 {offsets = [13, 0], sizes = [1, 64], strides = [1, 1]} : vector<15x64xf32> to vector<1x64xf32>
    %c0_219 = arith.constant 0 : index
    %c832 = arith.constant 832 : index
    %187 = vector.load %arg39[%c0_219, %c832] : memref<1x960xf32, #tpu.memory_space<vmem>>, vector<1x64xf32>
    tpu.vector_store %arg39[%c0_219, %c832], %186 {strides = array<i32>} : memref<1x960xf32, #tpu.memory_space<vmem>>, vector<1x64xf32>,
    %188 = vector.extract_strided_slice %159 {offsets = [14, 0], sizes = [1, 64], strides = [1, 1]} : vector<15x64xf32> to vector<1x64xf32>
    %c0_220 = arith.constant 0 : index
    %c896 = arith.constant 896 : index
    %189 = vector.load %arg39[%c0_220, %c896] : memref<1x960xf32, #tpu.memory_space<vmem>>, vector<1x64xf32>
    tpu.vector_store %arg39[%c0_220, %c896], %188 {strides = array<i32>} : memref<1x960xf32, #tpu.memory_space<vmem>>, vector<1x64xf32>,
    %c0_221 = arith.constant 0 : index
    %c0_222 = arith.constant 0 : index
    %190 = vector.load %arg39[%c0_221, %c0_222] : memref<1x960xf32, #tpu.memory_space<vmem>>, vector<1x960xf32>
    %c0_223 = arith.constant 0 : index
    %c0_224 = arith.constant 0 : index
    %191 = vector.load %arg12[%c0_223, %c0_224] : memref<960x480xf32, #tpu.memory_space<vmem>>, vector<960x480xf32>
    %cst_225 = arith.constant dense<0.000000e+00> : vector<1x480xf32>
    %192 = tpu.matmul %190, %191, %cst_225 {dimension_numbers = #tpu.dot_dimension_numbers<[1], [0], [0], [1], [0, 0, 1, 1], [], []>} : vector<1x960xf32>, vector<960x480xf32>, vector<1x480xf32> -> vector<1x480xf32>
    %c0_226 = arith.constant 0 : index
    %c0_227 = arith.constant 0 : index
    %193 = vector.load %arg13[%c0_226, %c0_227] : memref<1x480xf32, #tpu.memory_space<vmem>>, vector<1x480xf32>
    %194 = arith.addf %192, %193 : vector<1x480xf32>
    %cst_228 = arith.constant 0.000000e+00 : f32
    %195 = vector.broadcast %cst_228 : f32 to vector<1x480xf32>
    %196 = arith.maximumf %194, %195 : vector<1x480xf32>
    %c0_229 = arith.constant 0 : index
    %c0_230 = arith.constant 0 : index
    %197 = vector.load %arg14[%c0_229, %c0_230] : memref<480x240xf32, #tpu.memory_space<vmem>>, vector<480x240xf32>
    %cst_231 = arith.constant dense<0.000000e+00> : vector<1x240xf32>
    %198 = tpu.matmul %196, %197, %cst_231 {dimension_numbers = #tpu.dot_dimension_numbers<[1], [0], [0], [1], [0, 0, 1, 1], [], []>} : vector<1x480xf32>, vector<480x240xf32>, vector<1x240xf32> -> vector<1x240xf32>
    %c0_232 = arith.constant 0 : index
    %c0_233 = arith.constant 0 : index
    %199 = vector.load %arg15[%c0_232, %c0_233] : memref<1x240xf32, #tpu.memory_space<vmem>>, vector<1x240xf32>
    %200 = arith.addf %198, %199 : vector<1x240xf32>
    %cst_234 = arith.constant 0.000000e+00 : f32
    %201 = vector.broadcast %cst_234 : f32 to vector<1x240xf32>
    %202 = arith.maximumf %200, %201 : vector<1x240xf32>
    %c0_235 = arith.constant 0 : index
    %c0_236 = arith.constant 0 : index
    %203 = vector.load %arg16[%c0_235, %c0_236] : memref<240x120xf32, #tpu.memory_space<vmem>>, vector<240x120xf32>
    %cst_237 = arith.constant dense<0.000000e+00> : vector<1x120xf32>
    %204 = tpu.matmul %202, %203, %cst_237 {dimension_numbers = #tpu.dot_dimension_numbers<[1], [0], [0], [1], [0, 0, 1, 1], [], []>} : vector<1x240xf32>, vector<240x120xf32>, vector<1x120xf32> -> vector<1x120xf32>
    %c0_238 = arith.constant 0 : index
    %c0_239 = arith.constant 0 : index
    %205 = vector.load %arg17[%c0_238, %c0_239] : memref<1x120xf32, #tpu.memory_space<vmem>>, vector<1x120xf32>
    %206 = arith.addf %204, %205 : vector<1x120xf32>
    %cst_240 = arith.constant 0.000000e+00 : f32
    %207 = vector.broadcast %cst_240 : f32 to vector<1x120xf32>
    %208 = arith.maximumf %206, %207 : vector<1x120xf32>
    %c0_241 = arith.constant 0 : index
    %c0_242 = arith.constant 0 : index
    %209 = vector.load %arg18[%c0_241, %c0_242] : memref<120x60xf32, #tpu.memory_space<vmem>>, vector<120x60xf32>
    %cst_243 = arith.constant dense<0.000000e+00> : vector<1x60xf32>
    %210 = tpu.matmul %208, %209, %cst_243 {dimension_numbers = #tpu.dot_dimension_numbers<[1], [0], [0], [1], [0, 0, 1, 1], [], []>} : vector<1x120xf32>, vector<120x60xf32>, vector<1x60xf32> -> vector<1x60xf32>
    %c0_244 = arith.constant 0 : index
    %c0_245 = arith.constant 0 : index
    %211 = vector.load %arg19[%c0_244, %c0_245] : memref<1x60xf32, #tpu.memory_space<vmem>>, vector<1x60xf32>
    %212 = arith.addf %210, %211 : vector<1x60xf32>
    %cst_246 = arith.constant 0.000000e+00 : f32
    %213 = vector.broadcast %cst_246 : f32 to vector<1x60xf32>
    %214 = arith.maximumf %212, %213 : vector<1x60xf32>
    %c0_247 = arith.constant 0 : index
    %c0_248 = arith.constant 0 : index
    %215 = vector.load %arg20[%c0_247, %c0_248] : memref<60x1xf32, #tpu.memory_space<vmem>>, vector<60x1xf32>
    %cst_249 = arith.constant dense<0.000000e+00> : vector<1x1xf32>
    %216 = tpu.matmul %214, %215, %cst_249 {dimension_numbers = #tpu.dot_dimension_numbers<[1], [0], [0], [1], [0, 0, 1, 1], [], []>} : vector<1x60xf32>, vector<60x1xf32>, vector<1x1xf32> -> vector<1x1xf32>
    %c0_250 = arith.constant 0 : index
    %c0_251 = arith.constant 0 : index
    %217 = vector.load %arg21[%c0_250, %c0_251] : memref<1x1xf32, #tpu.memory_space<vmem>>, vector<1x1xf32>
    %218 = arith.addf %216, %217 : vector<1x1xf32>
    %c0_252 = arith.constant 0 : index
    %c0_253 = arith.constant 0 : index
    %c0_254 = arith.constant 0 : index
    %219 = vector.load %arg23[%c0_252, %c0_253, %c0_254] : memref<1x1x1xf32, #tpu.memory_space<vmem>>, vector<1x1x1xf32>
    %220 = vector.shape_cast %219 : vector<1x1x1xf32> to vector<1x1xf32>
    %221 = vector.shape_cast %218 : vector<1x1xf32> to vector<1x1x1xf32>
    tpu.vector_store %arg23[%c0_252, %c0_253, %c0_254], %221 {strides = array<i32>} : memref<1x1x1xf32, #tpu.memory_space<vmem>>, vector<1x1x1xf32>,
    return
  }
  func.func @transform_0(%arg0: i32) -> (i32, i32, i32) {
    %c0_i32 = arith.constant 0 : i32
    %c0_i32_0 = arith.constant 0 : i32
    %c0_i32_1 = arith.constant 0 : i32
    return %arg0, %c0_i32, %c0_i32_0 : i32, i32, i32
  }
  func.func @transform_1(%arg0: i32) -> (i32, i32) {
    %c0_i32 = arith.constant 0 : i32
    %c0_i32_0 = arith.constant 0 : i32
    %c0_i32_1 = arith.constant 0 : i32
    return %c0_i32, %c0_i32_0 : i32, i32
  }
  func.func @transform_2(%arg0: i32) -> (i32, i32) {
    %c0_i32 = arith.constant 0 : i32
    %c0_i32_0 = arith.constant 0 : i32
    %c0_i32_1 = arith.constant 0 : i32
    return %c0_i32, %c0_i32_0 : i32, i32
  }
  func.func @transform_3(%arg0: i32) -> (i32, i32) {
    %c0_i32 = arith.constant 0 : i32
    %c0_i32_0 = arith.constant 0 : i32
    %c0_i32_1 = arith.constant 0 : i32
    return %c0_i32, %c0_i32_0 : i32, i32
  }
  func.func @transform_4(%arg0: i32) -> (i32, i32) {
    %c0_i32 = arith.constant 0 : i32
    %c0_i32_0 = arith.constant 0 : i32
    %c0_i32_1 = arith.constant 0 : i32
    return %c0_i32, %c0_i32_0 : i32, i32
  }
  func.func @transform_5(%arg0: i32) -> (i32, i32) {
    %c0_i32 = arith.constant 0 : i32
    %c0_i32_0 = arith.constant 0 : i32
    %c0_i32_1 = arith.constant 0 : i32
    return %c0_i32, %c0_i32_0 : i32, i32
  }
  func.func @transform_6(%arg0: i32) -> (i32, i32) {
    %c0_i32 = arith.constant 0 : i32
    %c0_i32_0 = arith.constant 0 : i32
    %c0_i32_1 = arith.constant 0 : i32
    return %c0_i32, %c0_i32_0 : i32, i32
  }
  func.func @transform_7(%arg0: i32) -> (i32, i32) {
    %c0_i32 = arith.constant 0 : i32
    %c0_i32_0 = arith.constant 0 : i32
    %c0_i32_1 = arith.constant 0 : i32
    return %c0_i32, %c0_i32_0 : i32, i32
  }
  func.func @transform_8(%arg0: i32) -> (i32, i32) {
    %c0_i32 = arith.constant 0 : i32
    %c0_i32_0 = arith.constant 0 : i32
    %c0_i32_1 = arith.constant 0 : i32
    return %c0_i32, %c0_i32_0 : i32, i32
  }
  func.func @transform_9(%arg0: i32) -> (i32, i32) {
    %c0_i32 = arith.constant 0 : i32
    %c0_i32_0 = arith.constant 0 : i32
    %c0_i32_1 = arith.constant 0 : i32
    return %c0_i32, %c0_i32_0 : i32, i32
  }
  func.func @transform_10(%arg0: i32) -> (i32, i32) {
    %c0_i32 = arith.constant 0 : i32
    %c0_i32_0 = arith.constant 0 : i32
    %c0_i32_1 = arith.constant 0 : i32
    return %c0_i32, %c0_i32_0 : i32, i32
  }
  func.func @transform_11(%arg0: i32) -> (i32, i32) {
    %c0_i32 = arith.constant 0 : i32
    %c0_i32_0 = arith.constant 0 : i32
    %c0_i32_1 = arith.constant 0 : i32
    return %c0_i32, %c0_i32_0 : i32, i32
  }
  func.func @transform_12(%arg0: i32) -> (i32, i32) {
    %c0_i32 = arith.constant 0 : i32
    %c0_i32_0 = arith.constant 0 : i32
    %c0_i32_1 = arith.constant 0 : i32
    return %c0_i32, %c0_i32_0 : i32, i32
  }
  func.func @transform_13(%arg0: i32) -> (i32, i32) {
    %c0_i32 = arith.constant 0 : i32
    %c0_i32_0 = arith.constant 0 : i32
    %c0_i32_1 = arith.constant 0 : i32
    return %c0_i32, %c0_i32_0 : i32, i32
  }
  func.func @transform_14(%arg0: i32) -> (i32, i32) {
    %c0_i32 = arith.constant 0 : i32
    %c0_i32_0 = arith.constant 0 : i32
    %c0_i32_1 = arith.constant 0 : i32
    return %c0_i32, %c0_i32_0 : i32, i32
  }
  func.func @transform_15(%arg0: i32) -> (i32, i32) {
    %c0_i32 = arith.constant 0 : i32
    %c0_i32_0 = arith.constant 0 : i32
    %c0_i32_1 = arith.constant 0 : i32
    return %c0_i32, %c0_i32_0 : i32, i32
  }
  func.func @transform_16(%arg0: i32) -> (i32, i32) {
    %c0_i32 = arith.constant 0 : i32
    %c0_i32_0 = arith.constant 0 : i32
    %c0_i32_1 = arith.constant 0 : i32
    return %c0_i32, %c0_i32_0 : i32, i32
  }
  func.func @transform_17(%arg0: i32) -> (i32, i32) {
    %c0_i32 = arith.constant 0 : i32
    %c0_i32_0 = arith.constant 0 : i32
    %c0_i32_1 = arith.constant 0 : i32
    return %c0_i32, %c0_i32_0 : i32, i32
  }
  func.func @transform_18(%arg0: i32) -> (i32, i32) {
    %c0_i32 = arith.constant 0 : i32
    %c0_i32_0 = arith.constant 0 : i32
    %c0_i32_1 = arith.constant 0 : i32
    return %c0_i32, %c0_i32_0 : i32, i32
  }
  func.func @transform_19(%arg0: i32) -> (i32, i32) {
    %c0_i32 = arith.constant 0 : i32
    %c0_i32_0 = arith.constant 0 : i32
    %c0_i32_1 = arith.constant 0 : i32
    return %c0_i32, %c0_i32_0 : i32, i32
  }
  func.func @transform_20(%arg0: i32) -> (i32, i32) {
    %c0_i32 = arith.constant 0 : i32
    %c0_i32_0 = arith.constant 0 : i32
    %c0_i32_1 = arith.constant 0 : i32
    return %c0_i32, %c0_i32_0 : i32, i32
  }
  func.func @transform_21(%arg0: i32) -> (i32, i32, i32) {
    %c0_i32 = arith.constant 0 : i32
    %c0_i32_0 = arith.constant 0 : i32
    %c0_i32_1 = arith.constant 0 : i32
    return %arg0, %c0_i32, %c0_i32_0 : i32, i32, i32
  }
  func.func @transform_22(%arg0: i32) -> (i32, i32, i32) {
    %c0_i32 = arith.constant 0 : i32
    %c0_i32_0 = arith.constant 0 : i32
    %c0_i32_1 = arith.constant 0 : i32
    return %arg0, %c0_i32, %c0_i32_0 : i32, i32, i32
  }
}

</mosaic_0001>

<bundles_post_ra>
// kernel: tpu_custom_call.1
= control target key start
LH: loop header
LB: loop body
LE: loop exit
PB: predicated region body
PF: predicated region fallthrough
CT: control target
= control target key end

     0   :  { %s11649_s0 = inlined_call_operand.vmem [shape: f32[2,512,1], index: 0, kind: input, shape index: {}]   ;;  %s11650_s1 = inlined_call_operand.hbm [shape: f32[5,8], index: 1, kind: input, shape index: {}]   ;;  %s11651_s2 = inlined_call_operand.hbm [shape: f32[1,8], index: 2, kind: input, shape index: {}]   ;;  %s11652_s3 = inlined_call_operand.vmem [shape: f32[40,16], index: 3, kind: input, shape index: {}]   ;;  %s11653_s4 = inlined_call_operand.hbm [shape: f32[1,16], index: 4, kind: input, shape index: {}]   ;;  %s11654_s5 = inlined_call_operand.vmem [shape: f32[80,32], index: 5, kind: input, shape index: {}]   ;;  %s11655_s6 = inlined_call_operand.hbm [shape: f32[1,32], index: 6, kind: input, shape index: {}]   ;;  %s11656_s7 = inlined_call_operand.vmem [shape: f32[160,32], index: 7, kind: input, shape index: {}]   ;;  %s11657_s8 = inlined_call_operand.hbm [shape: f32[1,32], index: 8, kind: input, shape index: {}]   ;;  %s11658_s9 = inlined_call_operand.vmem [shape: f32[160,64], index: 9, kind: input, shape index: {}]   ;;  %s11659_s10 = inlined_call_operand.hbm [shape: f32[1,64], index: 10, kind: input, shape index: {}]   ;;  %s11660_s11 = inlined_call_operand.hbm [shape: f32[960,480], index: 11, kind: input, shape index: {}]   ;;  %s11661_s12 = inlined_call_operand.hbm [shape: f32[1,480], index: 12, kind: input, shape index: {}]   ;;  %s11662_s13 = inlined_call_operand.hbm [shape: f32[480,240], index: 13, kind: input, shape index: {}]   ;;  %s11663_s14 = inlined_call_operand.hbm [shape: f32[1,240], index: 14, kind: input, shape index: {}]   ;;  %s11664_s15 = inlined_call_operand.hbm [shape: f32[240,120], index: 15, kind: input, shape index: {}]   ;;  %s11665_s16 = inlined_call_operand.hbm [shape: f32[1,120], index: 16, kind: input, shape index: {}]   ;;  %s11666_s17 = inlined_call_operand.vmem [shape: f32[120,60], index: 17, kind: input, shape index: {}]   ;;  %s11667_s18 = inlined_call_operand.hbm [shape: f32[1,60], index: 18, kind: input, shape index: {}]   ;;  %s11668_s19 = inlined_call_operand.vmem [shape: f32[60,1], index: 19, kind: input, shape index: {}]   ;;  %s11669_s20 = inlined_call_operand.<no memory space> [shape: f32[1,1], index: 20, kind: input, shape index: {}]   ;;  %s11670_s21 = inlined_call_operand.vmem [shape: f32[2,31,32], index: 21, kind: output, shape index: {0}]   ;;  %s11671_s22 = inlined_call_operand.vmem [shape: f32[2,1,1], index: 22, kind: output, shape index: {1}]  }
   0x1   :  { %11675 = sst [smem:[#allocation47_spill]] %s11649_s0  ;;  %v28_v0 = vstv %s11669_s20 }
   0x2   :  { %11676 = sst [smem:[#allocation48_spill]] %s11650_s1  ;;  %29 = vst [vmem:[#allocation18] sm:$0x1] %v28_v0 }
   0x3   :  { %11677 = sst [smem:[#allocation49_spill]] %s11651_s2 }
   0x4   :  { %11678 = sst [smem:[#allocation50_spill]] %s11652_s3 }
   0x5   :  { %11679 = sst [smem:[#allocation51_spill]] %s11653_s4 }
   0x6   :  { %11680 = sst [smem:[#allocation52_spill]] %s11654_s5 }
   0x7   :  { %11681 = sst [smem:[#allocation53_spill]] %s11655_s6 }
   0x8   :  { %11682 = sst [smem:[#allocation54_spill]] %s11657_s8 }
   0x9   :  { %11683 = sst [smem:[#allocation55_spill]] %s11659_s10 }
   0xa   :  { %11684 = sst [smem:[#allocation56_spill]] %s11661_s12 }
   0xb   :  { %30 = vsyncpa [#allocation20], 0 }
   0xc   :  { %31 = vsyncpa [#allocation22], 0 }
   0xd   :  { %32 = vsyncpa [#allocation25], 0 }
   0xe   :  { %33 = vsyncpa [#allocation28], 0 }
   0xf   :  { %34 = vsyncpa [#allocation31], 0 }
  0x10   :  { %35 = vsyncpa [#allocation34], 0 }
  0x11   :  { %36 = vsyncpa [#allocation37], 0  ;;  %s9235_s29 = smov 0  }
  0x12 LB: > { %11685 = sst [smem:[#allocation46_spill]] %s9084_s29  ;;  %s9244_s23 = sadd.s32 4294967295, %s9084_s29   ;;  %s9084_s29 = sphi %s9235_s29, %s42_s29  }
  0x13   : > { %s11686_s0 = sld [smem:[#allocation49_spill]]  ;;  %p8321_p0 = scmp.ge.s32.totalorder %s9084_s29, 1 }
  0x14   : > { %p545_p1 = scmp.lt.s32.totalorder %s9084_s29, 3  ;;  %p8585_p2 = scmp.eq.s32.totalorder %s9244_s23, 0 }
  0x15   : > { %s9086_s5 = smov [#allocation21]   ;;  %s11688_s26 = sld [smem:[#allocation53_spill]] }
  0x16   : > { %p9249_p3 = pnand %p8321_p0, %p545_p1  ;;  %s571_s24 = sshll.u32 %s9086_s5, 4  ;;  %s572_s24 = int_to_ptr.vmem [resolvable:$true] %s571_s24 }
  0x17   : > { %s11689_s10 = sld [smem:[#allocation55_spill]]  ;;  %s9087_s4 = smov [#allocation24]  }
  0x18   : > { %p8545_p4 = pneg %p9249_p3  ;;  %s9088_s5 = smov [#allocation27]  }
  0x19   : > { %s569_s20 = sshll.u32 %s11686_s0, 4  ;;  %s601_s0 = sshll.u32 %s9087_s4, 4  ;;  %s570_s20 = int_to_ptr.hbm [resolvable:$true] %s569_s20  ;;  %s602_s0 = int_to_ptr.vmem [resolvable:$true] %s601_s0 }
  0x1a   : > { %p9263_p5 = pnand %p8585_p2, %p8545_p4  ;;  %s631_s6 = sshll.u32 %s9088_s5, 4  ;;  %s632_s6 = int_to_ptr.vmem [resolvable:$true] %s631_s6 }
  0x1b   : > { %s599_s2 = sshll.u32 %s11688_s26, 4  ;;  %s11691_s12 = sld [smem:[#allocation56_spill]]  ;;  %s600_s2 = int_to_ptr.hbm [resolvable:$true] %s599_s2 }
  0x1c   : > { %8551 = dma.hbm_to_vmem [thread:$0]  (!%p9263_p5), %s570_s20, 16, %s572_s24, [#allocation22]  }
  0x1d   : > { %s629_s28 = sshll.u32 %s11689_s10, 4  ;;  %s681_s10 = sshll.u32 %s11663_s14, 4  ;;  %s630_s28 = int_to_ptr.hbm [resolvable:$true] %s629_s28  ;;  %s682_s10 = int_to_ptr.hbm [resolvable:$true] %s681_s10 }
  0x1e   : > { %8557 = dma.hbm_to_vmem [thread:$0]  (!%p9263_p5), %s600_s2, 16, %s602_s0, [#allocation25]  }
  0x1f   : > { %8563 = dma.hbm_to_vmem [thread:$0]  (!%p9263_p5), %s630_s28, 16, %s632_s6, [#allocation28]  }
  0x20   : > { %s9089_s29 = smov [#allocation30]   ;;  %s9090_s24 = smov [#allocation33]  }
  0x21   : > { %s655_s27 = sshll.u32 %s11691_s12, 4  ;;  %s657_s20 = sshll.u32 %s9089_s29, 4  ;;  %s656_s27 = int_to_ptr.hbm [resolvable:$true] %s655_s27  ;;  %s658_s20 = int_to_ptr.vmem [resolvable:$true] %s657_s20 }
  0x22   : > { %8569 = dma.hbm_to_vmem [thread:$0]  (!%p9263_p5), %s656_s27, 64, %s658_s20, [#allocation31]  }
  0x23   : > { %s683_s2 = sshll.u32 %s9090_s24, 4  ;;  %s707_s25 = sshll.u32 %s11665_s16, 4  ;;  %s684_s2 = int_to_ptr.vmem [resolvable:$true] %s683_s2  ;;  %s708_s25 = int_to_ptr.hbm [resolvable:$true] %s707_s25 }
  0x24   : > { %8575 = dma.hbm_to_vmem [thread:$0]  (!%p9263_p5), %s682_s10, 32, %s684_s2, [#allocation34]  }
  0x25   : > { %s11692_s26 = sld [smem:[#allocation48_spill]]  ;;  %s9091_s29 = smov [#allocation36]  }
  0x26   : > { %s709_s4 = sshll.u32 %s9091_s29, 4  ;;  %s9092_s27 = smov [#allocation19]   ;;  %s710_s4 = int_to_ptr.vmem [resolvable:$true] %s709_s4 }
  0x27   : > { %8581 = dma.hbm_to_vmem [thread:$0]  (!%p9263_p5), %s708_s25, 16, %s710_s4, [#allocation37]  }
  0x28   : > { %s559_s20 = sshll.u32 %s9092_s27, 4  ;;  %s11693_s5 = sld [smem:[#allocation51_spill]]  ;;  %s560_s20 = int_to_ptr.vmem [resolvable:$true] %s559_s20 }
  0x29   : > { %s11694_s8 = sld [smem:[#allocation54_spill]]  ;;  %s9093_s6 = smov [#allocation23]  }
  0x2a   : > { %s9094_s25 = smov [#allocation26]   ;;  %s640_s24 = sshll.u32 %s11660_s11, 4  ;;  %s641_s24 = int_to_ptr.hbm [resolvable:$true] %s640_s24 }
  0x2b   : > { %s557_s3 = sshll.u32 %s11692_s26, 4  ;;  %s586_s26 = sshll.u32 %s9093_s6, 4  ;;  %s558_s3 = int_to_ptr.hbm [resolvable:$true] %s557_s3  ;;  %s587_s26 = int_to_ptr.vmem [resolvable:$true] %s586_s26 }
  0x2c   : > { %8548 = dma.hbm_to_vmem [thread:$0]  (!%p9263_p5), %s558_s3, 128, %s560_s20, [#allocation20]  }
  0x2d   : > { %s616_s29 = sshll.u32 %s9094_s25, 4  ;;  %s9095_s3 = smov [#allocation29]   ;;  %s617_s29 = int_to_ptr.vmem [resolvable:$true] %s616_s29 }
  0x2e   : > { %s584_s12 = sshll.u32 %s11693_s5, 4  ;;  %s642_s20 = sshll.u32 %s9095_s3, 4  ;;  %s585_s12 = int_to_ptr.hbm [resolvable:$true] %s584_s12  ;;  %s643_s20 = int_to_ptr.vmem [resolvable:$true] %s642_s20 }
  0x2f   : > { %s614_s28 = sshll.u32 %s11694_s8, 4  ;;  %s666_s10 = sshll.u32 %s11662_s13, 4  ;;  %s615_s28 = int_to_ptr.hbm [resolvable:$true] %s614_s28  ;;  %s667_s10 = int_to_ptr.hbm [resolvable:$true] %s666_s10 }
  0x30   : > { %8554 = dma.hbm_to_vmem [thread:$0]  (!%p9263_p5), %s585_s12, 16, %s587_s26, [#allocation22]  }
  0x31   : > { %8560 = dma.hbm_to_vmem [thread:$0]  (!%p9263_p5), %s615_s28, 16, %s617_s29, [#allocation25]  }
  0x32   : > { %s9096_s2 = smov 512   ;;  %s9097_s12 = smov 32  }
  0x33   : > { %8566 = dma.hbm_to_vmem [thread:$0]  (!%p9263_p5), %s641_s24, 61440, %s643_s20, [#allocation28], %s9096_s2, %s9096_s2, %s9097_s12  }
  0x34   : > { %s9098_s6 = smov [#allocation32]   ;;  %s9099_s25 = smov 256  }
  0x35   : > { %s668_s26 = sshll.u32 %s9098_s6, 4  ;;  %s9100_s4 = smov 16   ;;  %s669_s26 = int_to_ptr.vmem [resolvable:$true] %s668_s26 }
  0x36   : > { %8572 = dma.hbm_to_vmem [thread:$0]  (!%p9263_p5), %s667_s10, 15360, %s669_s26, [#allocation31], %s9099_s25, %s9099_s25, %s9100_s4  }
  0x37   : > { %s692_s27 = sshll.u32 %s11664_s15, 4  ;;  %s9101_s3 = smov [#allocation35]   ;;  %s693_s27 = int_to_ptr.hbm [resolvable:$true] %s692_s27 }
  0x38   : > { %s694_s0 = sshll.u32 %s9101_s3, 4  ;;  %s722_s20 = sshll.u32 %s11667_s18, 4  ;;  %s695_s0 = int_to_ptr.vmem [resolvable:$true] %s694_s0  ;;  %s723_s20 = int_to_ptr.hbm [resolvable:$true] %s722_s20 }
  0x39   : > { %s9102_s2 = smov 128   ;;  %s9103_s12 = smov 8  }
  0x3a   : > { %8578 = dma.hbm_to_vmem [thread:$0]  (!%p9263_p5), %s693_s27, 3840, %s695_s0, [#allocation34], %s9102_s2, %s9102_s2, %s9103_s12  }
  0x3b   : > { %s9104_s6 = smov [#allocation38]   ;;  %751 = sbr.rel (%p9249_p3) target bundleno = 3519 (0xdbf), region = 104 }
  0x3c   : > { %s724_s8 = sshll.u32 %s9104_s6, 4  ;;  %s725_s8 = int_to_ptr.vmem [resolvable:$true] %s724_s8 }
  0x3d   : > { %8584 = dma.hbm_to_vmem [thread:$0]  (!%p9263_p5), %s723_s20, 16, %s725_s8, [#allocation37]  }
  0x40   : > { %9055 = dma.done.wait (%p8585_p2), [#allocation20], 128  }
  0x41   : > { %9057 = vsyncadd (%p8585_p2), [#allocation20], 4294967168 }
  0x42   : > { %9059 = dma.done.wait (%p8585_p2), [#allocation22], 32  }
  0x43   : > { %9061 = vsyncadd (%p8585_p2), [#allocation22], 4294967264 }
  0x44   : > { %9063 = dma.done.wait (%p8585_p2), [#allocation25], 32  }
  0x45   : > { %9065 = vsyncadd (%p8585_p2), [#allocation25], 4294967264 }
  0x46   : > { %9067 = dma.done.wait (%p8585_p2), [#allocation28], 61456  }
  0x47   : > { %9069 = vsyncadd (%p8585_p2), [#allocation28], 4294905840 }
  0x48   : > { %9071 = dma.done.wait (%p8585_p2), [#allocation31], 15424  }
  0x49   : > { %9073 = vsyncadd (%p8585_p2), [#allocation31], 4294951872 }
  0x4a   : > { %9075 = dma.done.wait (%p8585_p2), [#allocation34], 3872  }
  0x4b   : > { %9077 = vsyncadd (%p8585_p2), [#allocation34], 4294963424 }
  0x4c   : > { %9079 = dma.done.wait (%p8585_p2), [#allocation37], 32  }
  0x4d   : > { %9081 = vsyncadd (%p8585_p2), [#allocation37], 4294967264  ;;  %p877_p6 = scmp.lt.s32.totalorder %s9244_s23, 1  ;;  %vm954_vm0 = vcmask 7168   ;;  %v9105_v1 = vmov 0.0   ;;  %vm956_vm1 = vcmask 1024  }
  0x4e   : > { %955 = vst.msk [vmem:[#allocation2] sm:$0xff] %vm954_vm0, %v9105_v1  ;;  %s11695_s10 = sld [smem:[#allocation47_spill]]  ;;  %s9106_s25 = smov 1   ;;  %vm1472_vm2 = vcmask 15368   ;;  %vm1857_vm3 = vcmask 23568   ;;  %vm2954_vm4 = vcmask 1044480  }
  0x4f   : > { %s11704_s23 = smov (!%p877_p6, %s9244_s23), 1  ;;  %957 = vst.msk [vmem:[#allocation2 + $0x8] sm:$0x3] %vm956_vm1, %v9105_v1  ;;  %s9107_s4 = smov 3   ;;  %v2756_v61 = vld [vmem:[#allocation19] sm:$0x1f] }
  0x50   : > { %958 = vst.msk [vmem:[#allocation2 + $0x20a] sm:$0xff] %vm954_vm0, %v9105_v1  ;;  %s8491_s8 = sshll.u32 %s11704_s23, 9  ;;  %s9108_s28 = smov 2   ;;  %8354 = vmatpush.msk.msra.mxu0 %vm2954_vm4, %v2756_v61  ;;  %vm2242_vm5 = vcmask 31768   ;;  %vm2627_vm6 = vcmask 39968   ;;  %vm2761_vm7 = vcmask 39936  }
  0x51   : > { %959 = vst.msk [vmem:[#allocation2 + $0x212] sm:$0x3] %vm956_vm1, %v9105_v1  ;;  %s9109_s29 = smov 4   ;;  %vm3359_vm8 = vcmask 64512   ;;  %vm3680_vm9 = vcmask 58368   ;;  %s9110_s27 = smov 8  }
  0x52   : > { %3679 = vst.msk [vmem:[#allocation3] sm:$0xff] %vm3359_vm8, %v9105_v1  ;;  %s9111_s3 = smov 16   ;;  %s9112_s0 = smov 24  }
  0x53   : > { %3682 = vst.msk [vmem:[#allocation3 + $0x109] sm:$0xff] %vm3359_vm8, %v9105_v1  ;;  %s9113_s5 = smov 32   ;;  %s11696_s2 = sld [smem:[#allocation50_spill]] }
  0x54   : > { %s9367_s26 = scalar_lea.vmem %s11695_s10, %s8491_s8  ;;  %3681 = vst.msk [vmem:[#allocation3 + $0x8] sm:$0x3] %vm3680_vm9, %v9105_v1  ;;  %s8492_s30 = sshll.u32 %s11704_s23, 5 }
  0x55   : > { %v890_v2 = vld [vmem:[%s9367_s26] sm:$0xff]  ;;  %v891_v3 = vld [vmem:[%s9367_s26 + $0x8] sm:$0xff]  ;;  %v892_v4 = vld [vmem:[%s9367_s26 + $0x10] sm:$0xff]  ;;  %3683 = vst.msk [vmem:[#allocation3 + $0x111] sm:$0x3] %vm3680_vm9, %v9105_v1 }
  0x56   : > { %960 = vst.msk [vmem:[#allocation2 + $0xa] sm:$0xff] %vm954_vm0, %v890_v2  ;;  %v893_v5 = vld [vmem:[%s9367_s26 + $0x18] sm:$0xff]  ;;  %v894_v6 = vld [vmem:[%s9367_s26 + $0x20] sm:$0xff]  ;;  %v895_v10 = vld [vmem:[%s9367_s26 + $0x28] sm:$0xff] }
  0x57   : > { %961 = vst.msk [vmem:[#allocation2 + $0x12] sm:$0xff] %vm954_vm0, %v891_v3  ;;  %v896_v14 = vld [vmem:[%s9367_s26 + $0x30] sm:$0xff]  ;;  %v897_v18 = vld [vmem:[%s9367_s26 + $0x38] sm:$0xff]  ;;  %v898_v25 = vld [vmem:[%s9367_s26 + $0x40] sm:$0xff] }
  0x58   : > { %962 = vst.msk [vmem:[#allocation2 + $0x1a] sm:$0xff] %vm954_vm0, %v892_v4  ;;  %v899_v29 = vld [vmem:[%s9367_s26 + $0x48] sm:$0xff]  ;;  %v900_v33 = vld [vmem:[%s9367_s26 + $0x50] sm:$0xff]  ;;  %v901_v41 = vld [vmem:[%s9367_s26 + $0x58] sm:$0xff] }
  0x59   : > { %963 = vst.msk [vmem:[#allocation2 + $0x22] sm:$0xff] %vm954_vm0, %v893_v5  ;;  %v902_v45 = vld [vmem:[%s9367_s26 + $0x60] sm:$0xff]  ;;  %v903_v50 = vld [vmem:[%s9367_s26 + $0x68] sm:$0xff]  ;;  %v904_v59 = vld [vmem:[%s9367_s26 + $0x70] sm:$0xff] }
  0x5a   : > { %964 = vst.msk [vmem:[#allocation2 + $0x2a] sm:$0xff] %vm954_vm0, %v894_v6  ;;  %v1024_v51 = vld [vmem:[#allocation2] sm:$0xff]  ;;  %v905_v2 = vld [vmem:[%s9367_s26 + $0x78] sm:$0xff] }
  0x5b   : > { %965 = vst.msk [vmem:[#allocation2 + $0x32] sm:$0xff] %vm954_vm0, %v895_v10 }
  0x5c   : > { %966 = vst.msk [vmem:[#allocation2 + $0x3a] sm:$0xff] %vm954_vm0, %v896_v14 }
  0x5d   : > { %v1152_v7 = vld [vmem:[#allocation2 + $0x5] sm:$0xff]  ;;  %967 = vst.msk [vmem:[#allocation2 + $0x42] sm:$0xff] %vm954_vm0, %v897_v18 }
  0x5e   : > { %v1922_v8 = vld [vmem:[#allocation2 + $0xf] sm:$0xff]  ;;  %1280 = vrot.lane.b32.xlu0 %v1152_v7, %s9106_s25  ;;  %968 = vst.msk [vmem:[#allocation2 + $0x4a] sm:$0xff] %vm954_vm0, %v898_v25 }
  0x5f   : > { %v1153_v9 = vld [vmem:[#allocation2 + $0xd] sm:$0xff]  ;;  %2050 = vrot.lane.b32.xlu1 %v1922_v8, %s9107_s4  ;;  %v1923_v15 = vld [vmem:[#allocation2 + $0x17] sm:$0xff]  ;;  %969 = vst.msk [vmem:[#allocation2 + $0x52] sm:$0xff] %vm954_vm0, %v899_v29 }
  0x60   : > { %1282 = vrot.lane.b32.xlu2 %v1153_v9, %s9106_s25  ;;  %v1537_v11 = vld [vmem:[#allocation2 + $0xa] sm:$0xff]  ;;  %v2307_v12 = vld [vmem:[#allocation2 + $0x14] sm:$0xff]  ;;  %v2308_v16 = vld [vmem:[#allocation2 + $0x1c] sm:$0xff]  ;;  %970 = vst.msk [vmem:[#allocation2 + $0x5a] sm:$0xff] %vm954_vm0, %v900_v33 }
  0x61   : > { %v1538_v13 = vld [vmem:[#allocation2 + $0x12] sm:$0xff]  ;;  %v1539_v19 = vld [vmem:[#allocation2 + $0x1a] sm:$0xff]  ;;  %v2309_v21 = vld [vmem:[#allocation2 + $0x24] sm:$0xff]  ;;  %971 = vst.msk [vmem:[#allocation2 + $0x62] sm:$0xff] %vm954_vm0, %v901_v41 }
  0x62   : > { %v1154_v17 = vld [vmem:[#allocation2 + $0x15] sm:$0xff]  ;;  %v1924_v20 = vld [vmem:[#allocation2 + $0x1f] sm:$0xff]  ;;  %v1925_v24 = vld [vmem:[#allocation2 + $0x27] sm:$0xff]  ;;  %972 = vst.msk [vmem:[#allocation2 + $0x6a] sm:$0xff] %vm954_vm0, %v902_v45 }
  0x63   : > { %v1155_v22 = vld [vmem:[#allocation2 + $0x1d] sm:$0xff]  ;;  %v2310_v26 = vld [vmem:[#allocation2 + $0x2c] sm:$0xff]  ;;  %v2311_v31 = vld [vmem:[#allocation2 + $0x34] sm:$0xff]  ;;  %973 = vst.msk [vmem:[#allocation2 + $0x72] sm:$0xff] %vm954_vm0, %v903_v50 }
  0x64   : > { %v1540_v23 = vld [vmem:[#allocation2 + $0x22] sm:$0xff]  ;;  %v1541_v28 = vld [vmem:[#allocation2 + $0x2a] sm:$0xff]  ;;  %v1542_v34 = vld [vmem:[#allocation2 + $0x32] sm:$0xff]  ;;  %1088 = vst.msk [vmem:[#allocation7] sm:$0xff] %vm954_vm0, %v1024_v51 }
  0x65   : > { %v1156_v27 = vld [vmem:[#allocation2 + $0x25] sm:$0xff]  ;;  %v1926_v30 = vld [vmem:[#allocation2 + $0x2f] sm:$0xff]  ;;  %v1927_v35 = vld [vmem:[#allocation2 + $0x37] sm:$0xff]  ;;  %974 = vst.msk [vmem:[#allocation2 + $0x7a] sm:$0xff] %vm954_vm0, %v904_v59 }
  0x66   : > { %1665 = vrot.lane.b32.xlu0 %v1537_v11, %s9108_s28  ;;  %v1157_v32 = vld [vmem:[#allocation2 + $0x2d] sm:$0xff]  ;;  %v2312_v36 = vld [vmem:[#allocation2 + $0x3c] sm:$0xff]  ;;  %v2313_v42 = vld [vmem:[#allocation2 + $0x44] sm:$0xff]  ;;  %975 = vst.msk [vmem:[#allocation2 + $0x82] sm:$0xff] %vm954_vm0, %v905_v2 }
  0x67   : > { %2435 = vrot.lane.b32.xlu1 %v2307_v12, %s9109_s29  ;;  %v1025_v37 = vld [vmem:[#allocation2 + $0x8] sm:$0xff]  ;;  %v1158_v38 = vld [vmem:[#allocation2 + $0x35] sm:$0xff]  ;;  %v1928_v40 = vld [vmem:[#allocation2 + $0x3f] sm:$0xff] }
  0x68   : > { %1667 = vrot.lane.b32.xlu2 %v1538_v13, %s9108_s28  ;;  %1089 = vst.msk [vmem:[#allocation7 + $0x8] sm:$0xff] %vm954_vm0, %v1025_v37  ;;  %v1543_v39 = vld [vmem:[#allocation2 + $0x3a] sm:$0xff]  ;;  %v1544_v44 = vld [vmem:[#allocation2 + $0x42] sm:$0xff]  ;;  %v1026_v46 = vld [vmem:[#allocation2 + $0x10] sm:$0xff] }
  0x69   : > { %v1159_v43 = vld [vmem:[#allocation2 + $0x3d] sm:$0xff]  ;;  %1090 = vst.msk [vmem:[#allocation7 + $0x10] sm:$0xff] %vm954_vm0, %v1026_v46  ;;  %v1929_v47 = vld [vmem:[#allocation2 + $0x47] sm:$0xff]  ;;  %v1930_v53 = vld [vmem:[#allocation2 + $0x4f] sm:$0xff] }
  0x6a   : > { %v2314_v48 = vld [vmem:[#allocation2 + $0x4c] sm:$0xff]  ;;  %v2315_v54 = vld [vmem:[#allocation2 + $0x54] sm:$0xff]  ;;  %v2316_v62 = vld [vmem:[#allocation2 + $0x5c] sm:$0xff] }
  0x6b   : > { %v1160_v49 = vld [vmem:[#allocation2 + $0x45] sm:$0xff]  ;;  %v1161_v56 = vld [vmem:[#allocation2 + $0x4d] sm:$0xff]  ;;  %v1931_v58 = vld [vmem:[#allocation2 + $0x57] sm:$0xff] }
  0x6c   : > { %v1545_v52 = vld [vmem:[#allocation2 + $0x4a] sm:$0xff]  ;;  %v1546_v57 = vld [vmem:[#allocation2 + $0x52] sm:$0xff]  ;;  %v1547_v0 = vld [vmem:[#allocation2 + $0x5a] sm:$0xff] }
  0x6d   : > { %v1162_v63 = vld [vmem:[#allocation2 + $0x55] sm:$0xff]  ;;  %v1029_v4 = vld [vmem:[#allocation2 + $0x28] sm:$0xff]  ;;  %v1932_v5 = vld [vmem:[#allocation2 + $0x5f] sm:$0xff] }
  0x6e   : > { %2052 = vrot.lane.b32.xlu0 %v1923_v15, %s9107_s4  ;;  %1093 = vst.msk [vmem:[#allocation7 + $0x28] sm:$0xff] %vm954_vm0, %v1029_v4  ;;  %v2317_v6 = vld [vmem:[#allocation2 + $0x64] sm:$0xff]  ;;  %v906_v8 = vld [vmem:[%s9367_s26 + $0x80] sm:$0xff]  ;;  %v2318_v15 = vld [vmem:[#allocation2 + $0x6c] sm:$0xff] }
  0x6f   : > { %2437 = vrot.lane.b32.xlu1 %v2308_v16, %s9109_s29  ;;  %v1163_v7 = vld [vmem:[#allocation2 + $0x5d] sm:$0xff]  ;;  %976 = vst.msk [vmem:[#allocation2 + $0x8a] sm:$0xff] %vm954_vm0, %v906_v8  ;;  %v1933_v14 = vld [vmem:[#allocation2 + $0x67] sm:$0xff] }
  0x70   : > { %1284 = vrot.lane.b32.xlu2 %v1154_v17, %s9106_s25  ;;  %v1027_v10 = vld [vmem:[#allocation2 + $0x18] sm:$0xff]  ;;  %v1548_v13 = vld [vmem:[#allocation2 + $0x62] sm:$0xff]  ;;  %v1165_v29 = vld [vmem:[#allocation2 + $0x6d] sm:$0xff] }
  0x71   : > { %1091 = vst.msk [vmem:[#allocation7 + $0x18] sm:$0xff] %vm954_vm0, %v1027_v10  ;;  %v1028_v16 = vld [vmem:[#allocation2 + $0x20] sm:$0xff]  ;;  %v1935_v37 = vld [vmem:[#allocation2 + $0x77] sm:$0xff]  ;;  %v912_v10 = vld [vmem:[%s9367_s26 + $0xb0] sm:$0xff] }
  0x72   : > { %1092 = vst.msk [vmem:[#allocation7 + $0x20] sm:$0xff] %vm954_vm0, %v1028_v16  ;;  %v1551_v46 = vld [vmem:[#allocation2 + $0x7a] sm:$0xff] }
  0x73   : > { %982 = vst.msk [vmem:[#allocation2 + $0xba] sm:$0xff] %vm954_vm0, %v912_v10 }
  0x76   : > { %1669 = vrot.lane.b32.xlu0 %v1539_v19, %s9108_s28 }
  0x77   : > { %2054 = vrot.lane.b32.xlu1 %v1924_v20, %s9107_s4  ;;  %v1164_v20 = vld [vmem:[#allocation2 + $0x65] sm:$0xff] }
  0x78   : > { %2439 = vrot.lane.b32.xlu2 %v2309_v21, %s9109_s29  ;;  %v1549_v21 = vld [vmem:[#allocation2 + $0x6a] sm:$0xff] }
  0x7e   : > { %1286 = vrot.lane.b32.xlu0 %v1155_v22, %s9106_s25  ;;  %v1934_v22 = vld [vmem:[#allocation2 + $0x6f] sm:$0xff] }
  0x7f   : > { %1671 = vrot.lane.b32.xlu1 %v1540_v23, %s9108_s28  ;;  %v907_v23 = vld [vmem:[%s9367_s26 + $0x88] sm:$0xff] }
  0x80   : > { %2056 = vrot.lane.b32.xlu2 %v1925_v24, %s9107_s4  ;;  %977 = vst.msk [vmem:[#allocation2 + $0x92] sm:$0xff] %vm954_vm0, %v907_v23 }
  0x86   : > { %2441 = vrot.lane.b32.xlu0 %v2310_v26, %s9109_s29 }
  0x87   : > { %1288 = vrot.lane.b32.xlu1 %v1156_v27, %s9106_s25  ;;  %v2322_v61 = vld [vmem:[#allocation2 + $0x8c] sm:$0xff] }
  0x88   : > { %1673 = vrot.lane.b32.xlu2 %v1541_v28, %s9108_s28  ;;  %v2319_v28 = vld [vmem:[#allocation2 + $0x74] sm:$0xff] }
  0x89   : > { %v1554_v16 = vld [vmem:[#allocation2 + $0x92] sm:$0xff] }
  0x8e   : > { %2058 = vrot.lane.b32.xlu0 %v1926_v30, %s9107_s4  ;;  %v1550_v30 = vld [vmem:[#allocation2 + $0x72] sm:$0xff] }
  0x8f   : > { %2443 = vrot.lane.b32.xlu1 %v2311_v31, %s9109_s29  ;;  %v908_v31 = vld [vmem:[%s9367_s26 + $0x90] sm:$0xff] }
  0x90   : > { %1290 = vrot.lane.b32.xlu2 %v1157_v32, %s9106_s25  ;;  %978 = vst.msk [vmem:[#allocation2 + $0x9a] sm:$0xff] %vm954_vm0, %v908_v31 }
  0x96   : > { %1675 = vrot.lane.b32.xlu0 %v1542_v34, %s9108_s28 }
  0x97   : > { %2060 = vrot.lane.b32.xlu1 %v1927_v35, %s9107_s4  ;;  %v2323_v8 = vld [vmem:[#allocation2 + $0x94] sm:$0xff] }
  0x98   : > { %2445 = vrot.lane.b32.xlu2 %v2312_v36, %s9109_s29  ;;  %v1032_v36 = vld [vmem:[#allocation2 + $0x40] sm:$0xff]  ;;  %v1170_v23 = vld [vmem:[#allocation2 + $0x95] sm:$0xff] }
  0x99   : > { %1096 = vst.msk [vmem:[#allocation7 + $0x40] sm:$0xff] %vm954_vm0, %v1032_v36 }
  0x9e   : > { %1292 = vrot.lane.b32.xlu0 %v1158_v38, %s9106_s25  ;;  %v2320_v38 = vld [vmem:[#allocation2 + $0x7c] sm:$0xff] }
  0x9f   : > { %1677 = vrot.lane.b32.xlu1 %v1543_v39, %s9108_s28  ;;  %v1166_v39 = vld [vmem:[#allocation2 + $0x75] sm:$0xff] }
  0xa0   : > { %2062 = vrot.lane.b32.xlu2 %v1928_v40, %s9107_s4  ;;  %v909_v40 = vld [vmem:[%s9367_s26 + $0x98] sm:$0xff] }
  0xa1   : > { %979 = vst.msk [vmem:[#allocation2 + $0xa2] sm:$0xff] %vm954_vm0, %v909_v40 }
  0xa6   : > { %2447 = vrot.lane.b32.xlu0 %v2313_v42, %s9109_s29 }
  0xa7   : > { %1294 = vrot.lane.b32.xlu1 %v1159_v43, %s9106_s25 }
  0xa8   : > { %1679 = vrot.lane.b32.xlu2 %v1544_v44, %s9108_s28  ;;  %v1030_v44 = vld [vmem:[#allocation2 + $0x30] sm:$0xff] }
  0xa9   : > { %1094 = vst.msk [vmem:[#allocation7 + $0x30] sm:$0xff] %vm954_vm0, %v1030_v44 }
  0xae   : > { %2064 = vrot.lane.b32.xlu0 %v1929_v47, %s9107_s4  ;;  %v1936_v47 = vld [vmem:[#allocation2 + $0x7f] sm:$0xff] }
  0xaf   : > { %2449 = vrot.lane.b32.xlu1 %v2314_v48, %s9109_s29  ;;  %v2321_v48 = vld [vmem:[#allocation2 + $0x84] sm:$0xff] }
  0xb0   : > { %1296 = vrot.lane.b32.xlu2 %v1160_v49, %s9106_s25  ;;  %v1031_v49 = vld [vmem:[#allocation2 + $0x38] sm:$0xff] }
  0xb1   : > { %1095 = vst.msk [vmem:[#allocation7 + $0x38] sm:$0xff] %vm954_vm0, %v1031_v49 }
  0xb6   : > { %1681 = vrot.lane.b32.xlu0 %v1545_v52, %s9108_s28 }
  0xb7   : > { %2066 = vrot.lane.b32.xlu1 %v1930_v53, %s9107_s4  ;;  %v1167_v53 = vld [vmem:[#allocation2 + $0x7d] sm:$0xff] }
  0xb8   : > { %2451 = vrot.lane.b32.xlu2 %v2315_v54, %s9109_s29  ;;  %v1552_v54 = vld [vmem:[#allocation2 + $0x82] sm:$0xff] }
  0xba   : > { %v1283_v55 = vpop.permute.xlu2 %1282 }
  0xbb   : > { %1474 = vst.msk [vmem:[#allocation7 + $0x8] sm:$0xff] %vm1472_vm2, %v1283_v55  ;;  %v1937_v55 = vld [vmem:[#allocation2 + $0x87] sm:$0xff] }
  0xbe   : > { %1298 = vrot.lane.b32.xlu0 %v1161_v56, %s9106_s25  ;;  %v910_v56 = vld [vmem:[%s9367_s26 + $0xa0] sm:$0xff] }
  0xbf   : > { %1683 = vrot.lane.b32.xlu1 %v1546_v57, %s9108_s28  ;;  %980 = vst.msk [vmem:[#allocation2 + $0xaa] sm:$0xff] %vm954_vm0, %v910_v56 }
  0xc0   : > { %2068 = vrot.lane.b32.xlu2 %v1931_v58, %s9107_s4 }
  0xc2   : > { %v1668_v60 = vpop.permute.xlu2 %1667 }
  0xc3   : > { %1859 = vst.msk [vmem:[#allocation7 + $0x8] sm:$0xff] %vm1857_vm3, %v1668_v60 }
  0xc6   : > { %2453 = vrot.lane.b32.xlu0 %v2316_v62, %s9109_s29  ;;  %v1168_v62 = vld [vmem:[#allocation2 + $0x85] sm:$0xff] }
  0xc7   : > { %1300 = vrot.lane.b32.xlu1 %v1162_v63, %s9106_s25  ;;  %v1553_v63 = vld [vmem:[#allocation2 + $0x8a] sm:$0xff] }
  0xc8   : > { %1685 = vrot.lane.b32.xlu2 %v1547_v0, %s9108_s28  ;;  %v911_v0 = vld [vmem:[%s9367_s26 + $0xa8] sm:$0xff]  ;;  %v1557_v49 = vld [vmem:[#allocation2 + $0xaa] sm:$0xff] }
  0xc9   : > { %981 = vst.msk [vmem:[#allocation2 + $0xb2] sm:$0xff] %vm954_vm0, %v911_v0  ;;  %v2325_v31 = vld [vmem:[#allocation2 + $0xa4] sm:$0xff] }
  0xca   : > { %v1285_v3 = vpop.permute.xlu2 %1284  ;;  %v1941_v40 = vld [vmem:[#allocation2 + $0xa7] sm:$0xff] }
  0xcb   : > { %1475 = vst.msk [vmem:[#allocation7 + $0x10] sm:$0xff] %vm1472_vm2, %v1285_v3 }
  0xce   : > { %2070 = vrot.lane.b32.xlu0 %v1932_v5, %s9107_s4 }
  0xcf   : > { %2455 = vrot.lane.b32.xlu1 %v2317_v6, %s9109_s29  ;;  %v1035_v6 = vld [vmem:[#allocation2 + $0x58] sm:$0xff] }
  0xd0   : > { %1302 = vrot.lane.b32.xlu2 %v1163_v7, %s9106_s25  ;;  %v1281_v9 = vpop.permute.xlu0 %1280  ;;  %v1938_v7 = vld [vmem:[#allocation2 + $0x8f] sm:$0xff]  ;;  %1099 = vst.msk [vmem:[#allocation7 + $0x58] sm:$0xff] %vm954_vm0, %v1035_v6 }
  0xd1   : > { %v2051_v11 = vpop.permute.xlu1 %2050  ;;  %1473 = vst.msk [vmem:[#allocation7] sm:$0xff] %vm1472_vm2, %v1281_v9  ;;  %v1169_v9 = vld [vmem:[#allocation2 + $0x8d] sm:$0xff] }
  0xd2   : > { %v2440_v12 = vpop.permute.xlu2 %2439  ;;  %v1173_v56 = vld [vmem:[#allocation2 + $0xad] sm:$0xff] }
  0xd6   : > { %1687 = vrot.lane.b32.xlu0 %v1548_v13, %s9108_s28 }
  0xd7   : > { %2072 = vrot.lane.b32.xlu1 %v1933_v14, %s9107_s4  ;;  %v1033_v14 = vld [vmem:[#allocation2 + $0x48] sm:$0xff] }
  0xd8   : > { %2457 = vrot.lane.b32.xlu2 %v2318_v15, %s9109_s29  ;;  %v1666_v17 = vpop.permute.xlu0 %1665  ;;  %1097 = vst.msk [vmem:[#allocation7 + $0x48] sm:$0xff] %vm954_vm0, %v1033_v14 }
  0xd9   : > { %v2436_v18 = vpop.permute.xlu1 %2435  ;;  %1858 = vst.msk [vmem:[#allocation7] sm:$0xff] %vm1857_vm3, %v1666_v17  ;;  %v1939_v17 = vld [vmem:[#allocation2 + $0x97] sm:$0xff] }
  0xda   : > { %v2057_v19 = vpop.permute.xlu2 %2056  ;;  %2243 = vst.msk [vmem:[#allocation7] sm:$0xff] %vm2242_vm5, %v2051_v11 }
  0xdb   : > { %2628 = vst.msk [vmem:[#allocation7] sm:$0xff] %vm2627_vm6, %v2436_v18  ;;  %v2324_v18 = vld [vmem:[#allocation2 + $0x9c] sm:$0xff] }
  0xde   : > { %1304 = vrot.lane.b32.xlu0 %v1164_v20, %s9106_s25 }
  0xdf   : > { %1689 = vrot.lane.b32.xlu1 %v1549_v21, %s9108_s28 }
  0xe0   : > { %2074 = vrot.lane.b32.xlu2 %v1934_v22, %s9107_s4  ;;  %v2053_v24 = vpop.permute.xlu0 %2052 }
  0xe1   : > { %v2438_v25 = vpop.permute.xlu1 %2437  ;;  %2244 = vst.msk [vmem:[#allocation7 + $0x8] sm:$0xff] %vm2242_vm5, %v2053_v24  ;;  %v1555_v24 = vld [vmem:[#allocation2 + $0x9a] sm:$0xff] }
  0xe2   : > { %v1674_v26 = vpop.permute.xlu2 %1673  ;;  %2629 = vst.msk [vmem:[#allocation7 + $0x8] sm:$0xff] %vm2627_vm6, %v2438_v25  ;;  %v2692_v27 = vld [vmem:[#allocation7] sm:$0xff] }
  0xe3   : > { %8355 = vmatmul.msk.f32.vlgmr.msra.gmra.mxu0 %vm2761_vm7, %v2692_v27  ;;  %v1940_v25 = vld [vmem:[#allocation2 + $0x9f] sm:$0xff] }
  0xe6   : > { %2459 = vrot.lane.b32.xlu0 %v2319_v28, %s9109_s29 }
  0xe7   : > { %1306 = vrot.lane.b32.xlu1 %v1165_v29, %s9106_s25 }
  0xe8   : > { %1691 = vrot.lane.b32.xlu2 %v1550_v30, %s9108_s28  ;;  %v1670_v32 = vpop.permute.xlu0 %1669 }
  0xe9   : > { %v2055_v33 = vpop.permute.xlu1 %2054  ;;  %1860 = vst.msk [vmem:[#allocation7 + $0x10] sm:$0xff] %vm1857_vm3, %v1670_v32  ;;  %v2693_v35 = vld [vmem:[#allocation7 + $0x8] sm:$0xff] }
  0xea   : > { %v1291_v34 = vpop.permute.xlu2 %1290  ;;  %2245 = vst.msk [vmem:[#allocation7 + $0x10] sm:$0xff] %vm2242_vm5, %v2055_v33  ;;  %v1171_v32 = vld [vmem:[#allocation2 + $0x9d] sm:$0xff] }
  0xeb   : > { %1478 = vst.msk [vmem:[#allocation7 + $0x28] sm:$0xff] %vm1472_vm2, %v1291_v34  ;;  %8356 = vmatmul.msk.f32.gmra.mxu0 %vm2761_vm7, %v2693_v35  ;;  %v1556_v33 = vld [vmem:[#allocation2 + $0xa2] sm:$0xff]  ;;  %v914_v34 = vld [vmem:[%s9367_s26 + $0xc0] sm:$0xff] }
  0xec   : > { %2630 = vst.msk [vmem:[#allocation7 + $0x10] sm:$0xff] %vm2627_vm6, %v2440_v12 }
  0xed   : > { %984 = vst.msk [vmem:[#allocation2 + $0xca] sm:$0xff] %vm954_vm0, %v914_v34 }
  0xee   : > { %2076 = vrot.lane.b32.xlu0 %v1935_v37, %s9107_s4 }
  0xef   : > { %2461 = vrot.lane.b32.xlu1 %v2320_v38, %s9109_s29 }
  0xf0   : > { %1308 = vrot.lane.b32.xlu2 %v1166_v39, %s9106_s25  ;;  %v1287_v41 = vpop.permute.xlu0 %1286  ;;  %v1038_v39 = vld [vmem:[#allocation2 + $0x70] sm:$0xff] }
  0xf1   : > { %v1672_v42 = vpop.permute.xlu1 %1671  ;;  %1476 = vst.msk [vmem:[#allocation7 + $0x18] sm:$0xff] %vm1472_vm2, %v1287_v41  ;;  %v2326_v41 = vld [vmem:[#allocation2 + $0xac] sm:$0xff] }
  0xf2   : > { %v2446_v43 = vpop.permute.xlu2 %2445  ;;  %1861 = vst.msk [vmem:[#allocation7 + $0x18] sm:$0xff] %vm1857_vm3, %v1672_v42  ;;  %v1172_v42 = vld [vmem:[#allocation2 + $0xa5] sm:$0xff] }
  0xf3   : > { %2246 = vst.msk [vmem:[#allocation7 + $0x18] sm:$0xff] %vm2242_vm5, %v2057_v19  ;;  %v2694_v45 = vld [vmem:[#allocation7 + $0x10] sm:$0xff]  ;;  %v1034_v19 = vld [vmem:[#allocation2 + $0x50] sm:$0xff] }
  0xf4   : > { %8357 = vmatmul.msk.f32.gmra.mxu0 %vm2761_vm7, %v2694_v45  ;;  %1098 = vst.msk [vmem:[#allocation7 + $0x50] sm:$0xff] %vm954_vm0, %v1034_v19 }
  0xf5   : > { %1102 = vst.msk [vmem:[#allocation7 + $0x70] sm:$0xff] %vm954_vm0, %v1038_v39 }
  0xf6   : > { %1693 = vrot.lane.b32.xlu0 %v1551_v46, %s9108_s28 }
  0xf7   : > { %2078 = vrot.lane.b32.xlu1 %v1936_v47, %s9107_s4  ;;  %v1036_v47 = vld [vmem:[#allocation2 + $0x60] sm:$0xff] }
  0xf8   : > { %2463 = vrot.lane.b32.xlu2 %v2321_v48, %s9109_s29  ;;  %v2442_v50 = vpop.permute.xlu0 %2441  ;;  %1100 = vst.msk [vmem:[#allocation7 + $0x60] sm:$0xff] %vm954_vm0, %v1036_v47 }
  0xf9   : > { %v1289_v51 = vpop.permute.xlu1 %1288  ;;  %2631 = vst.msk [vmem:[#allocation7 + $0x18] sm:$0xff] %vm2627_vm6, %v2442_v50  ;;  %v1942_v50 = vld [vmem:[#allocation2 + $0xaf] sm:$0xff] }
  0xfa   : > { %v2063_v52 = vpop.permute.xlu2 %2062  ;;  %1477 = vst.msk [vmem:[#allocation7 + $0x20] sm:$0xff] %vm1472_vm2, %v1289_v51  ;;  %v2327_v51 = vld [vmem:[#allocation2 + $0xb4] sm:$0xff] }
  0xfb   : > { %1862 = vst.msk [vmem:[#allocation7 + $0x20] sm:$0xff] %vm1857_vm3, %v1674_v26  ;;  %v913_v26 = vld [vmem:[%s9367_s26 + $0xb8] sm:$0xff] }
  0xfc   : > { %983 = vst.msk [vmem:[#allocation2 + $0xc2] sm:$0xff] %vm954_vm0, %v913_v26 }
  0xfe   : > { %1310 = vrot.lane.b32.xlu0 %v1167_v53, %s9106_s25 }
  0xff   : > { %1695 = vrot.lane.b32.xlu1 %v1552_v54, %s9108_s28 }
 0x100   : > { %2080 = vrot.lane.b32.xlu2 %v1937_v55, %s9107_s4  ;;  %v2059_v57 = vpop.permute.xlu0 %2058  ;;  %v2695_v58 = vld [vmem:[#allocation7 + $0x18] sm:$0xff] }
 0x101   : > { %v2444_v59 = vpop.permute.xlu1 %2443  ;;  %2247 = vst.msk [vmem:[#allocation7 + $0x20] sm:$0xff] %vm2242_vm5, %v2059_v57  ;;  %8358 = vmatmul.msk.f32.gmra.mxu0 %vm2761_vm7, %v2695_v58  ;;  %v1558_v57 = vld [vmem:[#allocation2 + $0xb2] sm:$0xff] }
 0x102   : > { %v1680_v60 = vpop.permute.xlu2 %1679  ;;  %2632 = vst.msk [vmem:[#allocation7 + $0x20] sm:$0xff] %vm2627_vm6, %v2444_v59  ;;  %v1943_v58 = vld [vmem:[#allocation2 + $0xb7] sm:$0xff]  ;;  %v916_v59 = vld [vmem:[%s9367_s26 + $0xd0] sm:$0xff] }
 0x103   : > { %986 = vst.msk [vmem:[#allocation2 + $0xda] sm:$0xff] %vm954_vm0, %v916_v59  ;;  %v2328_v0 = vld [vmem:[#allocation2 + $0xbc] sm:$0xff]  ;;  %v1176_v26 = vld [vmem:[#allocation2 + $0xc5] sm:$0xff] }
 0x104   : > { %v1944_v10 = vld [vmem:[#allocation2 + $0xbf] sm:$0xff] }
 0x105   : > { %v1560_v19 = vld [vmem:[#allocation2 + $0xc2] sm:$0xff] }
 0x106   : > { %2465 = vrot.lane.b32.xlu0 %v2322_v61, %s9109_s29 }
 0x107   : > { %1312 = vrot.lane.b32.xlu1 %v1168_v62, %s9106_s25 }
 0x108   : > { %1697 = vrot.lane.b32.xlu2 %v1553_v63, %s9108_s28  ;;  %v1676_v2 = vpop.permute.xlu0 %1675 }
 0x109   : > { %v2061_v3 = vpop.permute.xlu1 %2060  ;;  %1863 = vst.msk [vmem:[#allocation7 + $0x28] sm:$0xff] %vm1857_vm3, %v1676_v2  ;;  %v2696_v5 = vld [vmem:[#allocation7 + $0x20] sm:$0xff] }
 0x10a   : > { %v1297_v4 = vpop.permute.xlu2 %1296  ;;  %8359 = vmatmul.msk.f32.gmra.mxu0 %vm2761_vm7, %v2696_v5  ;;  %2248 = vst.msk [vmem:[#allocation7 + $0x28] sm:$0xff] %vm2242_vm5, %v2061_v3  ;;  %v1174_v2 = vld [vmem:[#allocation2 + $0xb5] sm:$0xff] }
 0x10b   : > { %1481 = vst.msk [vmem:[#allocation7 + $0x40] sm:$0xff] %vm1472_vm2, %v1297_v4  ;;  %v1559_v3 = vld [vmem:[#allocation2 + $0xba] sm:$0xff]  ;;  %v917_v4 = vld [vmem:[%s9367_s26 + $0xd8] sm:$0xff] }
 0x10c   : > { %2633 = vst.msk [vmem:[#allocation7 + $0x28] sm:$0xff] %vm2627_vm6, %v2446_v43  ;;  %v915_v43 = vld [vmem:[%s9367_s26 + $0xc8] sm:$0xff] }
 0x10d   : > { %985 = vst.msk [vmem:[#allocation2 + $0xd2] sm:$0xff] %vm954_vm0, %v915_v43 }
 0x10e   : > { %2082 = vrot.lane.b32.xlu0 %v1938_v7, %s9107_s4  ;;  %987 = vst.msk [vmem:[#allocation2 + $0xe2] sm:$0xff] %vm954_vm0, %v917_v4 }
 0x10f   : > { %2467 = vrot.lane.b32.xlu1 %v2323_v8, %s9109_s29 }
 0x110   : > { %1314 = vrot.lane.b32.xlu2 %v1169_v9, %s9106_s25  ;;  %v1293_v11 = vpop.permute.xlu0 %1292  ;;  %v1041_v9 = vld [vmem:[#allocation2 + $0x88] sm:$0xff] }
 0x111   : > { %v1678_v12 = vpop.permute.xlu1 %1677  ;;  %1479 = vst.msk [vmem:[#allocation7 + $0x30] sm:$0xff] %vm1472_vm2, %v1293_v11  ;;  %v2329_v11 = vld [vmem:[#allocation2 + $0xc4] sm:$0xff] }
 0x112   : > { %v2452_v13 = vpop.permute.xlu2 %2451  ;;  %1864 = vst.msk [vmem:[#allocation7 + $0x30] sm:$0xff] %vm1857_vm3, %v1678_v12  ;;  %v1175_v12 = vld [vmem:[#allocation2 + $0xbd] sm:$0xff] }
 0x113   : > { %2249 = vst.msk [vmem:[#allocation7 + $0x30] sm:$0xff] %vm2242_vm5, %v2063_v52  ;;  %v2697_v15 = vld [vmem:[#allocation7 + $0x28] sm:$0xff]  ;;  %v1037_v52 = vld [vmem:[#allocation2 + $0x68] sm:$0xff] }
 0x114   : > { %8360 = vmatmul.msk.f32.gmra.mxu0 %vm2761_vm7, %v2697_v15  ;;  %1101 = vst.msk [vmem:[#allocation7 + $0x68] sm:$0xff] %vm954_vm0, %v1037_v52  ;;  %v1177_v39 = vld [vmem:[#allocation2 + $0xcd] sm:$0xff]  ;;  %v1178_v52 = vld [vmem:[#allocation2 + $0xd5] sm:$0xff] }
 0x115   : > { %1105 = vst.msk [vmem:[#allocation7 + $0x88] sm:$0xff] %vm954_vm0, %v1041_v9  ;;  %v1564_v9 = vld [vmem:[#allocation2 + $0xe2] sm:$0xff] }
 0x116   : > { %1699 = vrot.lane.b32.xlu0 %v1554_v16, %s9108_s28  ;;  %v1039_v16 = vld [vmem:[#allocation2 + $0x78] sm:$0xff] }
 0x117   : > { %2084 = vrot.lane.b32.xlu1 %v1939_v17, %s9107_s4  ;;  %v918_v17 = vld [vmem:[%s9367_s26 + $0xe0] sm:$0xff]  ;;  %1103 = vst.msk [vmem:[#allocation7 + $0x78] sm:$0xff] %vm954_vm0, %v1039_v16 }
 0x118   : > { %2469 = vrot.lane.b32.xlu2 %v2324_v18, %s9109_s29  ;;  %v2448_v20 = vpop.permute.xlu0 %2447  ;;  %988 = vst.msk [vmem:[#allocation2 + $0xea] sm:$0xff] %vm954_vm0, %v918_v17 }
 0x119   : > { %v1295_v21 = vpop.permute.xlu1 %1294  ;;  %2634 = vst.msk [vmem:[#allocation7 + $0x30] sm:$0xff] %vm2627_vm6, %v2448_v20  ;;  %v1945_v20 = vld [vmem:[#allocation2 + $0xc7] sm:$0xff] }
 0x11a   : > { %v2069_v22 = vpop.permute.xlu2 %2068  ;;  %1480 = vst.msk [vmem:[#allocation7 + $0x38] sm:$0xff] %vm1472_vm2, %v1295_v21  ;;  %v2330_v21 = vld [vmem:[#allocation2 + $0xcc] sm:$0xff] }
 0x11b   : > { %1865 = vst.msk [vmem:[#allocation7 + $0x38] sm:$0xff] %vm1857_vm3, %v1680_v60 }
 0x11e   : > { %1316 = vrot.lane.b32.xlu0 %v1170_v23, %s9106_s25 }
 0x11f   : > { %1701 = vrot.lane.b32.xlu1 %v1555_v24, %s9108_s28 }
 0x120   : > { %2086 = vrot.lane.b32.xlu2 %v1940_v25, %s9107_s4  ;;  %v2065_v27 = vpop.permute.xlu0 %2064  ;;  %v2698_v28 = vld [vmem:[#allocation7 + $0x30] sm:$0xff]  ;;  %v1040_v25 = vld [vmem:[#allocation2 + $0x80] sm:$0xff] }
 0x121   : > { %v2450_v29 = vpop.permute.xlu1 %2449  ;;  %2250 = vst.msk [vmem:[#allocation7 + $0x38] sm:$0xff] %vm2242_vm5, %v2065_v27  ;;  %8361 = vmatmul.msk.f32.gmra.mxu0 %vm2761_vm7, %v2698_v28  ;;  %v1561_v27 = vld [vmem:[#allocation2 + $0xca] sm:$0xff] }
 0x122   : > { %v1686_v30 = vpop.permute.xlu2 %1685  ;;  %2635 = vst.msk [vmem:[#allocation7 + $0x38] sm:$0xff] %vm2627_vm6, %v2450_v29  ;;  %v1946_v28 = vld [vmem:[#allocation2 + $0xcf] sm:$0xff]  ;;  %v9616_v29 = vld [vmem:[#allocation21] ss:$0 sm:$0xff] }
 0x123   : > { %1104 = vst.msk [vmem:[#allocation7 + $0x80] sm:$0xff] %vm954_vm0, %v1040_v25 }
 0x126   : > { %2471 = vrot.lane.b32.xlu0 %v2325_v31, %s9109_s29 }
 0x127   : > { %1318 = vrot.lane.b32.xlu1 %v1171_v32, %s9106_s25 }
 0x128   : > { %1703 = vrot.lane.b32.xlu2 %v1556_v33, %s9108_s28  ;;  %v1682_v35 = vpop.permute.xlu0 %1681 }
 0x129   : > { %v2067_v36 = vpop.permute.xlu1 %2066  ;;  %1866 = vst.msk [vmem:[#allocation7 + $0x40] sm:$0xff] %vm1857_vm3, %v1682_v35  ;;  %v2699_v38 = vld [vmem:[#allocation7 + $0x38] sm:$0xff] }
 0x12a   : > { %v1303_v37 = vpop.permute.xlu2 %1302  ;;  %8362 = vmatmul.msk.f32.gmra.mxu0 %vm2761_vm7, %v2699_v38  ;;  %2251 = vst.msk [vmem:[#allocation7 + $0x40] sm:$0xff] %vm2242_vm5, %v2067_v36  ;;  %v919_v36 = vld [vmem:[%s9367_s26 + $0xe8] sm:$0xff]  ;;  %v2331_v38 = vld [vmem:[#allocation2 + $0xd4] sm:$0xff] }
 0x12b   : > { %1484 = vst.msk [vmem:[#allocation7 + $0x58] sm:$0xff] %vm1472_vm2, %v1303_v37 }
 0x12c   : > { %2636 = vst.msk [vmem:[#allocation7 + $0x40] sm:$0xff] %vm2627_vm6, %v2452_v13 }
 0x12d   : > { %989 = vst.msk [vmem:[#allocation2 + $0xf2] sm:$0xff] %vm954_vm0, %v919_v36 }
 0x12e   : > { %2088 = vrot.lane.b32.xlu0 %v1941_v40, %s9107_s4  ;;  %v1562_v40 = vld [vmem:[#allocation2 + $0xd2] sm:$0xff] }
 0x12f   : > { %2473 = vrot.lane.b32.xlu1 %v2326_v41, %s9109_s29 }
 0x130   : > { %1320 = vrot.lane.b32.xlu2 %v1172_v42, %s9106_s25  ;;  %v1299_v44 = vpop.permute.xlu0 %1298 }
 0x131   : > { %v1684_v45 = vpop.permute.xlu1 %1683  ;;  %1482 = vst.msk [vmem:[#allocation7 + $0x48] sm:$0xff] %vm1472_vm2, %v1299_v44 }
 0x132   : > { %v2458_v46 = vpop.permute.xlu2 %2457  ;;  %1867 = vst.msk [vmem:[#allocation7 + $0x48] sm:$0xff] %vm1857_vm3, %v1684_v45 }
 0x133   : > { %2252 = vst.msk [vmem:[#allocation7 + $0x48] sm:$0xff] %vm2242_vm5, %v2069_v22  ;;  %v2700_v48 = vld [vmem:[#allocation7 + $0x40] sm:$0xff] }
 0x134   : > { %8363 = vmatmul.msk.f32.gmra.mxu0 %vm2761_vm7, %v2700_v48  ;;  %v920_v48 = vld [vmem:[%s9367_s26 + $0xf0] sm:$0xff] }
 0x135   : > { %990 = vst.msk [vmem:[#allocation2 + $0xfa] sm:$0xff] %vm954_vm0, %v920_v48 }
 0x136   : > { %1705 = vrot.lane.b32.xlu0 %v1557_v49, %s9108_s28 }
 0x137   : > { %2090 = vrot.lane.b32.xlu1 %v1942_v50, %s9107_s4  ;;  %v1947_v50 = vld [vmem:[#allocation2 + $0xd7] sm:$0xff] }
 0x138   : > { %2475 = vrot.lane.b32.xlu2 %v2327_v51, %s9109_s29  ;;  %v2454_v53 = vpop.permute.xlu0 %2453  ;;  %v2332_v51 = vld [vmem:[#allocation2 + $0xdc] sm:$0xff] }
 0x139   : > { %v1301_v54 = vpop.permute.xlu1 %1300  ;;  %2637 = vst.msk [vmem:[#allocation7 + $0x48] sm:$0xff] %vm2627_vm6, %v2454_v53 }
 0x13a   : > { %v2075_v55 = vpop.permute.xlu2 %2074  ;;  %1483 = vst.msk [vmem:[#allocation7 + $0x50] sm:$0xff] %vm1472_vm2, %v1301_v54 }
 0x13b   : > { %1868 = vst.msk [vmem:[#allocation7 + $0x50] sm:$0xff] %vm1857_vm3, %v1686_v30 }
 0x13e   : > { %1322 = vrot.lane.b32.xlu0 %v1173_v56, %s9106_s25 }
 0x13f   : > { %1707 = vrot.lane.b32.xlu1 %v1558_v57, %s9108_s28 }
 0x140   : > { %2092 = vrot.lane.b32.xlu2 %v1943_v58, %s9107_s4  ;;  %v2071_v60 = vpop.permute.xlu0 %2070  ;;  %v2701_v61 = vld [vmem:[#allocation7 + $0x48] sm:$0xff]  ;;  %v1042_v58 = vld [vmem:[#allocation2 + $0x90] sm:$0xff] }
 0x141   : > { %v2456_v62 = vpop.permute.xlu1 %2455  ;;  %2253 = vst.msk [vmem:[#allocation7 + $0x50] sm:$0xff] %vm2242_vm5, %v2071_v60  ;;  %8364 = vmatmul.msk.f32.gmra.mxu0 %vm2761_vm7, %v2701_v61  ;;  %v1563_v61 = vld [vmem:[#allocation2 + $0xda] sm:$0xff] }
 0x142   : > { %v1692_v63 = vpop.permute.xlu2 %1691  ;;  %2638 = vst.msk [vmem:[#allocation7 + $0x50] sm:$0xff] %vm2627_vm6, %v2456_v62  ;;  %v921_v62 = vld [vmem:[%s9367_s26 + $0xf8] sm:$0xff] }
 0x143   : > { %1106 = vst.msk [vmem:[#allocation7 + $0x90] sm:$0xff] %vm954_vm0, %v1042_v58 }
 0x144   : > { %991 = vst.msk [vmem:[#allocation2 + $0x102] sm:$0xff] %vm954_vm0, %v921_v62 }
 0x146   : > { %2477 = vrot.lane.b32.xlu0 %v2328_v0, %s9109_s29  ;;  %v2333_v0 = vld [vmem:[#allocation2 + $0xe4] sm:$0xff] }
 0x147   : > { %1324 = vrot.lane.b32.xlu1 %v1174_v2, %s9106_s25  ;;  %v1044_v2 = vld [vmem:[#allocation2 + $0xa0] sm:$0xff] }
 0x148   : > { %1709 = vrot.lane.b32.xlu2 %v1559_v3, %s9108_s28  ;;  %v1688_v5 = vpop.permute.xlu0 %1687  ;;  %1108 = vst.msk [vmem:[#allocation7 + $0xa0] sm:$0xff] %vm954_vm0, %v1044_v2  ;;  %v1046_v2 = vld [vmem:[#allocation2 + $0xb0] sm:$0xff] }
 0x149   : > { %v2073_v6 = vpop.permute.xlu1 %2072  ;;  %1869 = vst.msk [vmem:[#allocation7 + $0x58] sm:$0xff] %vm1857_vm3, %v1688_v5  ;;  %v2702_v8 = vld [vmem:[#allocation7 + $0x50] sm:$0xff] }
 0x14a   : > { %v1309_v7 = vpop.permute.xlu2 %1308  ;;  %8365 = vmatmul.msk.f32.gmra.mxu0 %vm2761_vm7, %v2702_v8  ;;  %2254 = vst.msk [vmem:[#allocation7 + $0x58] sm:$0xff] %vm2242_vm5, %v2073_v6  ;;  %v1043_v8 = vld [vmem:[#allocation2 + $0x98] sm:$0xff] }
 0x14b   : > { %1487 = vst.msk [vmem:[#allocation7 + $0x70] sm:$0xff] %vm1472_vm2, %v1309_v7 }
 0x14c   : > { %2639 = vst.msk [vmem:[#allocation7 + $0x58] sm:$0xff] %vm2627_vm6, %v2458_v46 }
 0x14d   : > { %1107 = vst.msk [vmem:[#allocation7 + $0x98] sm:$0xff] %vm954_vm0, %v1043_v8 }
 0x14e   : > { %2094 = vrot.lane.b32.xlu0 %v1944_v10, %s9107_s4  ;;  %v1179_v10 = vld [vmem:[#allocation2 + $0xdd] sm:$0xff]  ;;  %1110 = vst.msk [vmem:[#allocation7 + $0xb0] sm:$0xff] %vm954_vm0, %v1046_v2 }
 0x14f   : > { %2479 = vrot.lane.b32.xlu1 %v2329_v11, %s9109_s29 }
 0x150   : > { %1326 = vrot.lane.b32.xlu2 %v1175_v12, %s9106_s25  ;;  %v1305_v13 = vpop.permute.xlu0 %1304 }
 0x151   : > { %v1690_v14 = vpop.permute.xlu1 %1689  ;;  %1485 = vst.msk [vmem:[#allocation7 + $0x60] sm:$0xff] %vm1472_vm2, %v1305_v13  ;;  %v1949_v13 = vld [vmem:[#allocation2 + $0xe7] sm:$0xff] }
 0x152   : > { %v9598_v15 = vpop.permute.xlu2 %2463  ;;  %1870 = vst.msk [vmem:[#allocation7 + $0x60] sm:$0xff] %vm1857_vm3, %v1690_v14 }
 0x153   : > { %2255 = vst.msk [vmem:[#allocation7 + $0x60] sm:$0xff] %vm2242_vm5, %v2075_v55  ;;  %v2703_v18 = vld [vmem:[#allocation7 + $0x58] sm:$0xff] }
 0x154   : > { %8366 = vmatmul.msk.f32.gmra.mxu0 %vm2761_vm7, %v2703_v18 }
 0x156   : > { %1711 = vrot.lane.b32.xlu0 %v1560_v19, %s9108_s28 }
 0x157   : > { %2096 = vrot.lane.b32.xlu1 %v1945_v20, %s9107_s4 }
 0x158   : > { %2481 = vrot.lane.b32.xlu2 %v2330_v21, %s9109_s29  ;;  %v2460_v22 = vpop.permute.xlu0 %2459 }
 0x159   : > { %v1307_v23 = vpop.permute.xlu1 %1306  ;;  %2640 = vst.msk [vmem:[#allocation7 + $0x60] sm:$0xff] %vm2627_vm6, %v2460_v22  ;;  %v922_v22 = vld [vmem:[%s9367_s26 + $0x100] sm:$0xff] }
 0x15a   : > { %v9610_v24 = vpop.permute.xlu2 %2080  ;;  %1486 = vst.msk [vmem:[#allocation7 + $0x68] sm:$0xff] %vm1472_vm2, %v1307_v23 }
 0x15b   : > { %1871 = vst.msk [vmem:[#allocation7 + $0x68] sm:$0xff] %vm1857_vm3, %v1692_v63  ;;  %v1948_v63 = vld [vmem:[#allocation2 + $0xdf] sm:$0xff] }
 0x15c   : > { %992 = vst.msk [vmem:[#allocation2 + $0x10a] sm:$0xff] %vm954_vm0, %v922_v22 }
 0x15e   : > { %1328 = vrot.lane.b32.xlu0 %v1176_v26, %s9106_s25  ;;  %v2334_v26 = vld [vmem:[#allocation2 + $0xec] sm:$0xff] }
 0x15f   : > { %1713 = vrot.lane.b32.xlu1 %v1561_v27, %s9108_s28  ;;  %v1180_v27 = vld [vmem:[#allocation2 + $0xe5] sm:$0xff] }
 0x160   : > { %2098 = vrot.lane.b32.xlu2 %v1946_v28, %s9107_s4  ;;  %v2975_v30 = vpop.f32.mrf.mxu0  ;;  %v2077_v31 = vpop.permute.xlu0 %2076  ;;  %v2704_v32 = vld [vmem:[#allocation7 + $0x60] sm:$0xff]  ;;  %v1565_v28 = vld [vmem:[#allocation2 + $0xea] sm:$0xff] }
 0x161   : > { %v2462_v33 = vpop.permute.xlu1 %2461  ;;  %v2976_v35 = vadd.f32 %v9616_v29, %v2975_v30  ;;  %2256 = vst.msk [vmem:[#allocation7 + $0x68] sm:$0xff] %vm2242_vm5, %v2077_v31  ;;  %8367 = vmatmul.msk.f32.gmra.mxu0 %vm2761_vm7, %v2704_v32 }
 0x162   : > { %v9621_v34 = vpop.permute.xlu2 %1697  ;;  %2641 = vst.msk [vmem:[#allocation7 + $0x68] sm:$0xff] %vm2627_vm6, %v2462_v33 }
 0x163   : > { %vm3167_vm10 = vcmp.ge.f32.partialorder %v2976_v35, 0.0  ;;  %v3231_v37 = vmul.f32 0.01, %v2976_v35 }
 0x165   : > { %v3295_v41 = vsel %vm3167_vm10, %v2976_v35, %v3231_v37  ;;  %v1950_v37 = vld [vmem:[#allocation2 + $0xef] sm:$0xff] }
 0x166   : > { %3360 = vst.msk [vmem:[#allocation12] sm:$0xff] %vm3359_vm8, %v3295_v41  ;;  %2483 = vrot.lane.b32.xlu0 %v2331_v38, %s9109_s29  ;;  %v923_v38 = vld [vmem:[%s9367_s26 + $0x108] sm:$0xff]  ;;  %v1181_v41 = vld [vmem:[#allocation2 + $0xed] sm:$0xff] }
 0x167   : > { %1330 = vrot.lane.b32.xlu1 %v1177_v39, %s9106_s25  ;;  %993 = vst.msk [vmem:[#allocation2 + $0x112] sm:$0xff] %vm954_vm0, %v923_v38 }
 0x168   : > { %1715 = vrot.lane.b32.xlu2 %v1562_v40, %s9108_s28  ;;  %v1694_v42 = vpop.permute.xlu0 %1693  ;;  %v2978_v43 = vpop.f32.mrf.mxu0  ;;  %v2335_v40 = vld [vmem:[#allocation2 + $0xf4] sm:$0xff] }
 0x169   : > { %v2079_v44 = vpop.permute.xlu1 %2078  ;;  %1872 = vst.msk [vmem:[#allocation7 + $0x70] sm:$0xff] %vm1857_vm3, %v1694_v42  ;;  %v2979_v46 = vadd.f32 %v9616_v29, %v2978_v43  ;;  %v2705_v47 = vld [vmem:[#allocation7 + $0x68] sm:$0xff] }
 0x16a   : > { %v1315_v45 = vpop.permute.xlu2 %1314  ;;  %8368 = vmatmul.msk.f32.gmra.mxu0 %vm2761_vm7, %v2705_v47  ;;  %2257 = vst.msk [vmem:[#allocation7 + $0x70] sm:$0xff] %vm2242_vm5, %v2079_v44 }
 0x16b   : > { %1490 = vst.msk [vmem:[#allocation7 + $0x88] sm:$0xff] %vm1472_vm2, %v1315_v45  ;;  %vm3168_vm11 = vcmp.ge.f32.partialorder %v2979_v46, 0.0  ;;  %v3232_v49 = vmul.f32 0.01, %v2979_v46 }
 0x16c   : > { %2642 = vst.msk [vmem:[#allocation7 + $0x70] sm:$0xff] %vm2627_vm6, %v9598_v15 }
 0x16d   : > { %v3296_v53 = vsel %vm3168_vm11, %v2979_v46, %v3232_v49  ;;  %v1045_v49 = vld [vmem:[#allocation2 + $0xa8] sm:$0xff] }
 0x16e   : > { %3361 = vst.msk [vmem:[#allocation12 + $0x8] sm:$0xff] %vm3359_vm8, %v3296_v53  ;;  %2100 = vrot.lane.b32.xlu0 %v1947_v50, %s9107_s4  ;;  %v924_v50 = vld [vmem:[%s9367_s26 + $0x110] sm:$0xff] }
 0x16f   : > { %2485 = vrot.lane.b32.xlu1 %v2332_v51, %s9109_s29  ;;  %1109 = vst.msk [vmem:[#allocation7 + $0xa8] sm:$0xff] %vm954_vm0, %v1045_v49 }
 0x170   : > { %1332 = vrot.lane.b32.xlu2 %v1178_v52, %s9106_s25  ;;  %v1311_v54 = vpop.permute.xlu0 %1310  ;;  %994 = vst.msk [vmem:[#allocation2 + $0x11a] sm:$0xff] %vm954_vm0, %v924_v50 }
 0x171   : > { %v1696_v55 = vpop.permute.xlu1 %1695  ;;  %1488 = vst.msk [vmem:[#allocation7 + $0x78] sm:$0xff] %vm1472_vm2, %v1311_v54  ;;  %v2981_v57 = vpop.f32.mrf.mxu0  ;;  %v1566_v54 = vld [vmem:[#allocation2 + $0xf2] sm:$0xff] }
 0x172   : > { %v9648_v56 = vpop.permute.xlu2 %2469  ;;  %1873 = vst.msk [vmem:[#allocation7 + $0x78] sm:$0xff] %vm1857_vm3, %v1696_v55  ;;  %v2982_v59 = vadd.f32 %v9616_v29, %v2981_v57  ;;  %v2336_v57 = vld [vmem:[#allocation2 + $0xfc] sm:$0xff] }
 0x173   : > { %2258 = vst.msk [vmem:[#allocation7 + $0x78] sm:$0xff] %vm2242_vm5, %v9610_v24  ;;  %v2706_v60 = vld [vmem:[#allocation7 + $0x70] sm:$0xff] }
 0x174   : > { %8369 = vmatmul.msk.f32.gmra.mxu0 %vm2761_vm7, %v2706_v60  ;;  %vm3169_vm12 = vcmp.ge.f32.partialorder %v2982_v59, 0.0  ;;  %v3233_v3 = vmul.f32 0.01, %v2982_v59 }
 0x175   : > { %v3424_v11 = vld [vmem:[#allocation12] ss:$2 sm:$0xff]  ;;  %v3488_v12 = vld [vmem:[#allocation12 + $0x1] ss:$2 sm:$0xff] }
 0x176   : > { %1717 = vrot.lane.b32.xlu0 %v1563_v61, %s9108_s28  ;;  %v3297_v4 = vsel %vm3169_vm12, %v2982_v59, %v3233_v3  ;;  %v3615_v15 = vmax.f32 %v3424_v11, %v3488_v12  ;;  %v1047_v59 = vld [vmem:[#allocation2 + $0xb8] sm:$0xff] }
 0x177   : > { %2102 = vrot.lane.b32.xlu1 %v1948_v63, %s9107_s4  ;;  %3362 = vst.msk [vmem:[#allocation12 + $0x10] sm:$0xff] %vm3359_vm8, %v3297_v4  ;;  %v1182_v3 = vld [vmem:[#allocation2 + $0xf5] sm:$0xff] }
 0x178   : > { %2487 = vrot.lane.b32.xlu2 %v2333_v0, %s9109_s29  ;;  %v2466_v5 = vpop.permute.xlu0 %2465  ;;  %1111 = vst.msk [vmem:[#allocation7 + $0xb8] sm:$0xff] %vm954_vm0, %v1047_v59  ;;  %v1567_v4 = vld [vmem:[#allocation2 + $0xfa] sm:$0xff] }
 0x179   : > { %v1313_v6 = vpop.permute.xlu1 %1312  ;;  %2643 = vst.msk [vmem:[#allocation7 + $0x78] sm:$0xff] %vm2627_vm6, %v2466_v5  ;;  %v1952_v5 = vld [vmem:[#allocation2 + $0xff] sm:$0xff] }
 0x17a   : > { %v9664_v7 = vpop.permute.xlu2 %2086  ;;  %1489 = vst.msk [vmem:[#allocation7 + $0x80] sm:$0xff] %vm1472_vm2, %v1313_v6 }
 0x17b   : > { %1874 = vst.msk [vmem:[#allocation7 + $0x80] sm:$0xff] %vm1857_vm3, %v9621_v34 }
 0x17e   : > { %1334 = vrot.lane.b32.xlu0 %v1179_v10, %s9106_s25  ;;  %v2984_v14 = vpop.f32.mrf.mxu0  ;;  %v3552_v17 = vld [vmem:[#allocation12 + $0x2] ss:$2 sm:$0xff] }
 0x17f   : > { %1719 = vrot.lane.b32.xlu1 %v1564_v9, %s9108_s28  ;;  %v2985_v16 = vadd.f32 %v9616_v29, %v2984_v14  ;;  %v3647_v23 = vmax.f32 %v3615_v15, %v3552_v17  ;;  %v1183_v17 = vld [vmem:[#allocation2 + $0xfd] sm:$0xff] }
 0x180   : > { %2104 = vrot.lane.b32.xlu2 %v1949_v13, %s9107_s4  ;;  %v2083_v18 = vpop.permute.xlu0 %2082  ;;  %v2707_v25 = vld [vmem:[#allocation7 + $0x78] sm:$0xff] }
 0x181   : > { %vm3170_vm13 = vcmp.ge.f32.partialorder %v2985_v16, 0.0  ;;  %v3234_v19 = vmul.f32 0.01, %v2985_v16  ;;  %v2468_v20 = vpop.permute.xlu1 %2467  ;;  %2259 = vst.msk [vmem:[#allocation7 + $0x80] sm:$0xff] %vm2242_vm5, %v2083_v18  ;;  %8370 = vmatmul.msk.f32.gmra.mxu0 %vm2761_vm7, %v2707_v25  ;;  %v925_v13 = vld [vmem:[%s9367_s26 + $0x118] sm:$0xff]  ;;  %v1568_v18 = vld [vmem:[#allocation2 + $0x102] sm:$0xff] }
 0x182   : > { %v9675_v21 = vpop.permute.xlu2 %1703  ;;  %2644 = vst.msk [vmem:[#allocation7 + $0x80] sm:$0xff] %vm2627_vm6, %v2468_v20 }
 0x183   : > { %v3298_v24 = vsel %vm3170_vm13, %v2985_v16, %v3234_v19  ;;  %3684 = vst.msk [vmem:[#allocation3 + $0xa] sm:$0xff] %vm3359_vm8, %v3647_v23  ;;  %v2337_v16 = vld [vmem:[#allocation2 + $0x104] sm:$0xff] }
 0x184   : > { %3363 = vst.msk [vmem:[#allocation12 + $0x18] sm:$0xff] %vm3359_vm8, %v3298_v24 }
 0x185   : > { %995 = vst.msk [vmem:[#allocation2 + $0x122] sm:$0xff] %vm954_vm0, %v925_v13 }
 0x186   : > { %2489 = vrot.lane.b32.xlu0 %v2334_v26, %s9109_s29 }
 0x187   : > { %1336 = vrot.lane.b32.xlu1 %v1180_v27, %s9106_s25  ;;  %v2987_v30 = vpop.f32.mrf.mxu0 }
 0x188   : > { %1721 = vrot.lane.b32.xlu2 %v1565_v28, %s9108_s28  ;;  %v2988_v31 = vadd.f32 %v9616_v29, %v2987_v30  ;;  %v1700_v32 = vpop.permute.xlu0 %1699 }
 0x189   : > { %v2085_v33 = vpop.permute.xlu1 %2084  ;;  %1875 = vst.msk [vmem:[#allocation7 + $0x88] sm:$0xff] %vm1857_vm3, %v1700_v32  ;;  %v2708_v35 = vld [vmem:[#allocation7 + $0x80] sm:$0xff] }
 0x18a   : > { %v1321_v34 = vpop.permute.xlu2 %1320  ;;  %vm3171_vm14 = vcmp.ge.f32.partialorder %v2988_v31, 0.0  ;;  %v3235_v36 = vmul.f32 0.01, %v2988_v31  ;;  %2260 = vst.msk [vmem:[#allocation7 + $0x88] sm:$0xff] %vm2242_vm5, %v2085_v33  ;;  %8371 = vmatmul.msk.f32.gmra.mxu0 %vm2761_vm7, %v2708_v35  ;;  %v3718_v42 = vld [vmem:[#allocation3 + $0x8] sm:$0xff]  ;;  %v926_v32 = vld [vmem:[%s9367_s26 + $0x120] sm:$0xff] }
 0x18b   : > { %1493 = vst.msk [vmem:[#allocation7 + $0xa0] sm:$0xff] %vm1472_vm2, %v1321_v34  ;;  %v3426_v43 = vld [vmem:[#allocation12 + $0x10] ss:$2 sm:$0xff]  ;;  %v3490_v44 = vld [vmem:[#allocation12 + $0x11] ss:$2 sm:$0xff] }
 0x18c   : > { %v3299_v39 = vsel %vm3171_vm14, %v2988_v31, %v3235_v36  ;;  %2645 = vst.msk [vmem:[#allocation7 + $0x88] sm:$0xff] %vm2627_vm6, %v9648_v56  ;;  %v3616_v51 = vmax.f32 %v3426_v43, %v3490_v44  ;;  %v1951_v56 = vld [vmem:[#allocation2 + $0xf7] sm:$0xff]  ;;  %v1953_v31 = vld [vmem:[#allocation2 + $0x107] sm:$0xff] }
 0x18d   : > { %3364 = vst.msk [vmem:[#allocation12 + $0x20] sm:$0xff] %vm3359_vm8, %v3299_v39  ;;  %v2338_v34 = vld [vmem:[#allocation2 + $0x10c] sm:$0xff] }
 0x18e   : > { %2106 = vrot.lane.b32.xlu0 %v1950_v37, %s9107_s4  ;;  %3750 = vst.msk [vmem:[#allocation8 + $0x8] sm:$0xff] %vm3359_vm8, %v3718_v42  ;;  %v1184_v35 = vld [vmem:[#allocation2 + $0x105] sm:$0xff] }
 0x18f   : > { %2491 = vrot.lane.b32.xlu1 %v2335_v40, %s9109_s29  ;;  %996 = vst.msk [vmem:[#allocation2 + $0x12a] sm:$0xff] %vm954_vm0, %v926_v32  ;;  %v1569_v44 = vld [vmem:[#allocation2 + $0x10a] sm:$0xff] }
 0x190   : > { %1338 = vrot.lane.b32.xlu2 %v1181_v41, %s9106_s25  ;;  %v1317_v45 = vpop.permute.xlu0 %1316  ;;  %v1048_v41 = vld [vmem:[#allocation2 + $0xc0] sm:$0xff] }
 0x191   : > { %v1702_v46 = vpop.permute.xlu1 %1701  ;;  %1491 = vst.msk [vmem:[#allocation7 + $0x90] sm:$0xff] %vm1472_vm2, %v1317_v45  ;;  %v2990_v48 = vpop.f32.mrf.mxu0  ;;  %v927_v45 = vld [vmem:[%s9367_s26 + $0x128] sm:$0xff] }
 0x192   : > { %v9701_v47 = vpop.permute.xlu2 %2475  ;;  %1876 = vst.msk [vmem:[#allocation7 + $0x90] sm:$0xff] %vm1857_vm3, %v1702_v46  ;;  %v2991_v52 = vadd.f32 %v9616_v29, %v2990_v48  ;;  %v1954_v46 = vld [vmem:[#allocation2 + $0x10f] sm:$0xff] }
 0x193   : > { %2261 = vst.msk [vmem:[#allocation7 + $0x90] sm:$0xff] %vm2242_vm5, %v9664_v7  ;;  %v2709_v53 = vld [vmem:[#allocation7 + $0x88] sm:$0xff]  ;;  %v1050_v48 = vld [vmem:[#allocation2 + $0xd0] sm:$0xff] }
 0x194   : > { %v3554_v55 = vld [vmem:[#allocation12 + $0x12] ss:$2 sm:$0xff]  ;;  %8372 = vmatmul.msk.f32.gmra.mxu0 %vm2761_vm7, %v2709_v53  ;;  %vm3172_vm15 = vcmp.ge.f32.partialorder %v2991_v52, 0.0  ;;  %v3236_v58 = vmul.f32 0.01, %v2991_v52  ;;  %1112 = vst.msk [vmem:[#allocation7 + $0xc0] sm:$0xff] %vm954_vm0, %v1048_v41 }
 0x195   : > { %v3648_v60 = vmax.f32 %v3616_v51, %v3554_v55  ;;  %1114 = vst.msk [vmem:[#allocation7 + $0xd0] sm:$0xff] %vm954_vm0, %v1050_v48 }
 0x196   : > { %1723 = vrot.lane.b32.xlu0 %v1566_v54, %s9108_s28  ;;  %v3300_v61 = vsel %vm3172_vm15, %v2991_v52, %v3236_v58  ;;  %997 = vst.msk [vmem:[#allocation2 + $0x132] sm:$0xff] %vm954_vm0, %v927_v45  ;;  %v1049_v54 = vld [vmem:[#allocation2 + $0xc8] sm:$0xff] }
 0x197   : > { %2108 = vrot.lane.b32.xlu1 %v1951_v56, %s9107_s4  ;;  %3685 = vst.msk [vmem:[#allocation3 + $0x12] sm:$0xff] %vm3359_vm8, %v3648_v60  ;;  %v1570_v56 = vld [vmem:[#allocation2 + $0x112] sm:$0xff] }
 0x198   : > { %2493 = vrot.lane.b32.xlu2 %v2336_v57, %s9109_s29  ;;  %3365 = vst.msk [vmem:[#allocation12 + $0x28] sm:$0xff] %vm3359_vm8, %v3300_v61  ;;  %v2472_v62 = vpop.permute.xlu0 %2471  ;;  %v1185_v57 = vld [vmem:[#allocation2 + $0x10d] sm:$0xff]  ;;  %v1955_v60 = vld [vmem:[#allocation2 + $0x117] sm:$0xff] }
 0x199   : > { %v1319_v63 = vpop.permute.xlu1 %1318  ;;  %2646 = vst.msk [vmem:[#allocation7 + $0x90] sm:$0xff] %vm2627_vm6, %v2472_v62 }
 0x19a   : > { %v9718_v0 = vpop.permute.xlu2 %2092  ;;  %1492 = vst.msk [vmem:[#allocation7 + $0x98] sm:$0xff] %vm1472_vm2, %v1319_v63 }
 0x19b   : > { %1877 = vst.msk [vmem:[#allocation7 + $0x98] sm:$0xff] %vm1857_vm3, %v9675_v21 }
 0x19c   : > { %1113 = vst.msk [vmem:[#allocation7 + $0xc8] sm:$0xff] %vm954_vm0, %v1049_v54 }
 0x19d   : > { %v2342_v41 = vld [vmem:[#allocation2 + $0x12c] sm:$0xff] }
 0x19e   : > { %1340 = vrot.lane.b32.xlu0 %v1182_v3, %s9106_s25  ;;  %v2993_v6 = vpop.f32.mrf.mxu0  ;;  %v3719_v14 = vld [vmem:[#allocation3 + $0x10] sm:$0xff] }
 0x19f   : > { %1725 = vrot.lane.b32.xlu1 %v1567_v4, %s9108_s28  ;;  %v2994_v7 = vadd.f32 %v9616_v29, %v2993_v6  ;;  %3751 = vst.msk [vmem:[#allocation8 + $0x10] sm:$0xff] %vm3359_vm8, %v3719_v14  ;;  %v3428_v19 = vld [vmem:[#allocation12 + $0x20] ss:$2 sm:$0xff]  ;;  %v3492_v20 = vld [vmem:[#allocation12 + $0x21] ss:$2 sm:$0xff] }
 0x1a0   : > { %2110 = vrot.lane.b32.xlu2 %v1952_v5, %s9107_s4  ;;  %v2089_v8 = vpop.permute.xlu0 %2088  ;;  %v2710_v9 = vld [vmem:[#allocation7 + $0x90] sm:$0xff]  ;;  %v3617_v27 = vmax.f32 %v3428_v19, %v3492_v20  ;;  %v1956_v20 = vld [vmem:[#allocation2 + $0x11f] sm:$0xff] }
 0x1a1   : > { %vm3173_vm1 = vcmp.ge.f32.partialorder %v2994_v7, 0.0  ;;  %v3237_v10 = vmul.f32 0.01, %v2994_v7  ;;  %v2474_v11 = vpop.permute.xlu1 %2473  ;;  %2262 = vst.msk [vmem:[#allocation7 + $0x98] sm:$0xff] %vm2242_vm5, %v2089_v8  ;;  %8373 = vmatmul.msk.f32.gmra.mxu0 %vm2761_vm7, %v2710_v9 }
 0x1a2   : > { %v9729_v12 = vpop.permute.xlu2 %1709  ;;  %2647 = vst.msk [vmem:[#allocation7 + $0x98] sm:$0xff] %vm2627_vm6, %v2474_v11  ;;  %v1186_v11 = vld [vmem:[#allocation2 + $0x115] sm:$0xff] }
 0x1a3   : > { %v3301_v15 = vsel %vm3173_vm1, %v2994_v7, %v3237_v10  ;;  %v928_v7 = vld [vmem:[%s9367_s26 + $0x130] sm:$0xff]  ;;  %v2340_v10 = vld [vmem:[#allocation2 + $0x11c] sm:$0xff] }
 0x1a4   : > { %3366 = vst.msk [vmem:[#allocation12 + $0x30] sm:$0xff] %vm3359_vm8, %v3301_v15 }
 0x1a5   : > { %998 = vst.msk [vmem:[#allocation2 + $0x13a] sm:$0xff] %vm954_vm0, %v928_v7 }
 0x1a6   : > { %2495 = vrot.lane.b32.xlu0 %v2337_v16, %s9109_s29 }
 0x1a7   : > { %1342 = vrot.lane.b32.xlu1 %v1183_v17, %s9106_s25  ;;  %v2996_v21 = vpop.f32.mrf.mxu0 }
 0x1a8   : > { %1727 = vrot.lane.b32.xlu2 %v1568_v18, %s9108_s28  ;;  %v2997_v22 = vadd.f32 %v9616_v29, %v2996_v21  ;;  %v1706_v23 = vpop.permute.xlu0 %1705  ;;  %v929_v21 = vld [vmem:[%s9367_s26 + $0x138] sm:$0xff] }
 0x1a9   : > { %v2091_v24 = vpop.permute.xlu1 %2090  ;;  %1878 = vst.msk [vmem:[#allocation7 + $0xa0] sm:$0xff] %vm1857_vm3, %v1706_v23  ;;  %v2711_v26 = vld [vmem:[#allocation7 + $0x98] sm:$0xff]  ;;  %v2341_v23 = vld [vmem:[#allocation2 + $0x124] sm:$0xff] }
 0x1aa   : > { %v1327_v25 = vpop.permute.xlu2 %1326  ;;  %vm3174_vm4 = vcmp.ge.f32.partialorder %v2997_v22, 0.0  ;;  %v3238_v28 = vmul.f32 0.01, %v2997_v22  ;;  %8374 = vmatmul.msk.f32.gmra.mxu0 %vm2761_vm7, %v2711_v26  ;;  %2263 = vst.msk [vmem:[#allocation7 + $0xa0] sm:$0xff] %vm2242_vm5, %v2091_v24  ;;  %v1187_v24 = vld [vmem:[#allocation2 + $0x11d] sm:$0xff] }
 0x1ab   : > { %1496 = vst.msk [vmem:[#allocation7 + $0xb8] sm:$0xff] %vm1472_vm2, %v1327_v25  ;;  %v3556_v30 = vld [vmem:[#allocation12 + $0x22] ss:$2 sm:$0xff] }
 0x1ac   : > { %v3302_v33 = vsel %vm3174_vm4, %v2997_v22, %v3238_v28  ;;  %2648 = vst.msk [vmem:[#allocation7 + $0xa0] sm:$0xff] %vm2627_vm6, %v9701_v47  ;;  %v3649_v36 = vmax.f32 %v3617_v27, %v3556_v30  ;;  %v2339_v47 = vld [vmem:[#allocation2 + $0x114] sm:$0xff] }
 0x1ad   : > { %3367 = vst.msk [vmem:[#allocation12 + $0x38] sm:$0xff] %vm3359_vm8, %v3302_v33  ;;  %v1051_v33 = vld [vmem:[#allocation2 + $0xd8] sm:$0xff] }
 0x1ae   : > { %2112 = vrot.lane.b32.xlu0 %v1953_v31, %s9107_s4  ;;  %3686 = vst.msk [vmem:[#allocation3 + $0x1a] sm:$0xff] %vm3359_vm8, %v3649_v36 }
 0x1af   : > { %2497 = vrot.lane.b32.xlu1 %v2338_v34, %s9109_s29  ;;  %999 = vst.msk [vmem:[#allocation2 + $0x142] sm:$0xff] %vm954_vm0, %v929_v21  ;;  %v930_v34 = vld [vmem:[%s9367_s26 + $0x140] sm:$0xff] }
 0x1b0   : > { %1344 = vrot.lane.b32.xlu2 %v1184_v35, %s9106_s25  ;;  %v1323_v37 = vpop.permute.xlu0 %1322  ;;  %1115 = vst.msk [vmem:[#allocation7 + $0xd8] sm:$0xff] %vm954_vm0, %v1051_v33  ;;  %v1056_v33 = vld [vmem:[#allocation2 + $0x100] sm:$0xff] }
 0x1b1   : > { %v1708_v38 = vpop.permute.xlu1 %1707  ;;  %1494 = vst.msk [vmem:[#allocation7 + $0xa8] sm:$0xff] %vm1472_vm2, %v1323_v37  ;;  %v2999_v40 = vpop.f32.mrf.mxu0 }
 0x1b2   : > { %v9755_v39 = vpop.permute.xlu2 %2481  ;;  %1879 = vst.msk [vmem:[#allocation7 + $0xa8] sm:$0xff] %vm1857_vm3, %v1708_v38  ;;  %v3000_v42 = vadd.f32 %v9616_v29, %v2999_v40  ;;  %v1572_v38 = vld [vmem:[#allocation2 + $0x122] sm:$0xff] }
 0x1b3   : > { %2264 = vst.msk [vmem:[#allocation7 + $0xa8] sm:$0xff] %vm2242_vm5, %v9718_v0  ;;  %v2712_v43 = vld [vmem:[#allocation7 + $0xa0] sm:$0xff]  ;;  %v1957_v40 = vld [vmem:[#allocation2 + $0x127] sm:$0xff] }
 0x1b4   : > { %8375 = vmatmul.msk.f32.gmra.mxu0 %vm2761_vm7, %v2712_v43  ;;  %vm3175_vm9 = vcmp.ge.f32.partialorder %v3000_v42, 0.0  ;;  %v3239_v49 = vmul.f32 0.01, %v3000_v42  ;;  %v3430_v58 = vld [vmem:[#allocation12 + $0x30] ss:$2 sm:$0xff]  ;;  %1000 = vst.msk [vmem:[#allocation2 + $0x14a] sm:$0xff] %vm954_vm0, %v930_v34 }
 0x1b5   : > { %v3720_v55 = vld [vmem:[#allocation3 + $0x18] sm:$0xff]  ;;  %v1053_v43 = vld [vmem:[#allocation2 + $0xe8] sm:$0xff]  ;;  %1120 = vst.msk [vmem:[#allocation7 + $0x100] sm:$0xff] %vm954_vm0, %v1056_v33 }
 0x1b6   : > { %1729 = vrot.lane.b32.xlu0 %v1569_v44, %s9108_s28  ;;  %v3303_v50 = vsel %vm3175_vm9, %v3000_v42, %v3239_v49  ;;  %v3494_v59 = vld [vmem:[#allocation12 + $0x31] ss:$2 sm:$0xff]  ;;  %3752 = vst.msk [vmem:[#allocation8 + $0x18] sm:$0xff] %vm3359_vm8, %v3720_v55  ;;  %v1052_v49 = vld [vmem:[#allocation2 + $0xe0] sm:$0xff] }
 0x1b7   : > { %2114 = vrot.lane.b32.xlu1 %v1954_v46, %s9107_s4  ;;  %3368 = vst.msk [vmem:[#allocation12 + $0x40] sm:$0xff] %vm3359_vm8, %v3303_v50  ;;  %v3618_v62 = vmax.f32 %v3430_v58, %v3494_v59  ;;  %v1188_v50 = vld [vmem:[#allocation2 + $0x125] sm:$0xff]  ;;  %v1058_v33 = vld [vmem:[#allocation2 + $0x110] sm:$0xff] }
 0x1b8   : > { %2499 = vrot.lane.b32.xlu2 %v2339_v47, %s9109_s29  ;;  %v2478_v51 = vpop.permute.xlu0 %2477  ;;  %1117 = vst.msk [vmem:[#allocation7 + $0xe8] sm:$0xff] %vm954_vm0, %v1053_v43  ;;  %v1576_v43 = vld [vmem:[#allocation2 + $0x142] sm:$0xff] }
 0x1b9   : > { %v1325_v52 = vpop.permute.xlu1 %1324  ;;  %2649 = vst.msk [vmem:[#allocation7 + $0xa8] sm:$0xff] %vm2627_vm6, %v2478_v51  ;;  %v1573_v51 = vld [vmem:[#allocation2 + $0x12a] sm:$0xff] }
 0x1ba   : > { %v9771_v53 = vpop.permute.xlu2 %2098  ;;  %1495 = vst.msk [vmem:[#allocation7 + $0xb0] sm:$0xff] %vm1472_vm2, %v1325_v52  ;;  %v1958_v52 = vld [vmem:[#allocation2 + $0x12f] sm:$0xff] }
 0x1bb   : > { %1880 = vst.msk [vmem:[#allocation7 + $0xb0] sm:$0xff] %vm1857_vm3, %v9729_v12  ;;  %v1571_v12 = vld [vmem:[#allocation2 + $0x11a] sm:$0xff] }
 0x1bc   : > { %1116 = vst.msk [vmem:[#allocation7 + $0xe0] sm:$0xff] %vm954_vm0, %v1052_v49  ;;  %v934_v49 = vld [vmem:[%s9367_s26 + $0x160] sm:$0xff] }
 0x1bd   : > { %1004 = vst.msk [vmem:[#allocation2 + $0x16a] sm:$0xff] %vm954_vm0, %v934_v49 }
 0x1be   : > { %1346 = vrot.lane.b32.xlu0 %v1185_v57, %s9106_s25  ;;  %v3002_v61 = vpop.f32.mrf.mxu0  ;;  %v3558_v63 = vld [vmem:[#allocation12 + $0x32] ss:$2 sm:$0xff]  ;;  %1122 = vst.msk [vmem:[#allocation7 + $0x110] sm:$0xff] %vm954_vm0, %v1058_v33 }
 0x1bf   : > { %1731 = vrot.lane.b32.xlu1 %v1570_v56, %s9108_s28  ;;  %v3003_v0 = vadd.f32 %v9616_v29, %v3002_v61  ;;  %v3650_v8 = vmax.f32 %v3618_v62, %v3558_v63  ;;  %v2343_v63 = vld [vmem:[#allocation2 + $0x134] sm:$0xff] }
 0x1c0   : > { %2116 = vrot.lane.b32.xlu2 %v1955_v60, %s9107_s4  ;;  %v2095_v2 = vpop.permute.xlu0 %2094  ;;  %v2713_v3 = vld [vmem:[#allocation7 + $0xa8] sm:$0xff] }
 0x1c1   : > { %vm3176_vm10 = vcmp.ge.f32.partialorder %v3003_v0, 0.0  ;;  %v3240_v4 = vmul.f32 0.01, %v3003_v0  ;;  %v2480_v5 = vpop.permute.xlu1 %2479  ;;  %2265 = vst.msk [vmem:[#allocation7 + $0xb0] sm:$0xff] %vm2242_vm5, %v2095_v2  ;;  %8376 = vmatmul.msk.f32.gmra.mxu0 %vm2761_vm7, %v2713_v3  ;;  %v931_v60 = vld [vmem:[%s9367_s26 + $0x148] sm:$0xff]  ;;  %v1574_v2 = vld [vmem:[#allocation2 + $0x132] sm:$0xff] }
 0x1c2   : > { %v9783_v6 = vpop.permute.xlu2 %1715  ;;  %2650 = vst.msk [vmem:[#allocation7 + $0xb0] sm:$0xff] %vm2627_vm6, %v2480_v5 }
 0x1c3   : > { %v3304_v9 = vsel %vm3176_vm10, %v3003_v0, %v3240_v4  ;;  %3687 = vst.msk [vmem:[#allocation3 + $0x22] sm:$0xff] %vm3359_vm8, %v3650_v8  ;;  %v1189_v0 = vld [vmem:[#allocation2 + $0x12d] sm:$0xff] }
 0x1c4   : > { %3369 = vst.msk [vmem:[#allocation12 + $0x48] sm:$0xff] %vm3359_vm8, %v3304_v9 }
 0x1c5   : > { %1001 = vst.msk [vmem:[#allocation2 + $0x152] sm:$0xff] %vm954_vm0, %v931_v60 }
 0x1c6   : > { %2501 = vrot.lane.b32.xlu0 %v2340_v10, %s9109_s29 }
 0x1c7   : > { %1348 = vrot.lane.b32.xlu1 %v1186_v11, %s9106_s25  ;;  %v3005_v13 = vpop.f32.mrf.mxu0 }
 0x1c8   : > { %1733 = vrot.lane.b32.xlu2 %v1571_v12, %s9108_s28  ;;  %v3006_v14 = vadd.f32 %v9616_v29, %v3005_v13  ;;  %v1712_v15 = vpop.permute.xlu0 %1711 }
 0x1c9   : > { %v2097_v16 = vpop.permute.xlu1 %2096  ;;  %1881 = vst.msk [vmem:[#allocation7 + $0xb8] sm:$0xff] %vm1857_vm3, %v1712_v15  ;;  %v2714_v18 = vld [vmem:[#allocation7 + $0xb0] sm:$0xff] }
 0x1ca   : > { %v1333_v17 = vpop.permute.xlu2 %1332  ;;  %vm3177_vm11 = vcmp.ge.f32.partialorder %v3006_v14, 0.0  ;;  %v3241_v19 = vmul.f32 0.01, %v3006_v14  ;;  %8377 = vmatmul.msk.f32.gmra.mxu0 %vm2761_vm7, %v2714_v18  ;;  %2266 = vst.msk [vmem:[#allocation7 + $0xb8] sm:$0xff] %vm2242_vm5, %v2097_v16  ;;  %v3721_v25 = vld [vmem:[#allocation3 + $0x20] sm:$0xff]  ;;  %v932_v15 = vld [vmem:[%s9367_s26 + $0x150] sm:$0xff] }
 0x1cb   : > { %1499 = vst.msk [vmem:[#allocation7 + $0xd0] sm:$0xff] %vm1472_vm2, %v1333_v17  ;;  %v3432_v26 = vld [vmem:[#allocation12 + $0x40] ss:$2 sm:$0xff]  ;;  %v3496_v27 = vld [vmem:[#allocation12 + $0x41] ss:$2 sm:$0xff] }
 0x1cc   : > { %v3305_v22 = vsel %vm3177_vm11, %v3006_v14, %v3241_v19  ;;  %2651 = vst.msk [vmem:[#allocation7 + $0xb8] sm:$0xff] %vm2627_vm6, %v9755_v39  ;;  %v3619_v35 = vmax.f32 %v3432_v26, %v3496_v27  ;;  %v1959_v14 = vld [vmem:[#allocation2 + $0x137] sm:$0xff] }
 0x1cd   : > { %3370 = vst.msk [vmem:[#allocation12 + $0x50] sm:$0xff] %vm3359_vm8, %v3305_v22  ;;  %v2344_v17 = vld [vmem:[#allocation2 + $0x13c] sm:$0xff] }
 0x1ce   : > { %2118 = vrot.lane.b32.xlu0 %v1956_v20, %s9107_s4  ;;  %3753 = vst.msk [vmem:[#allocation8 + $0x20] sm:$0xff] %vm3359_vm8, %v3721_v25  ;;  %v1190_v18 = vld [vmem:[#allocation2 + $0x135] sm:$0xff] }
 0x1cf   : > { %2503 = vrot.lane.b32.xlu1 %v2341_v23, %s9109_s29  ;;  %1002 = vst.msk [vmem:[#allocation2 + $0x15a] sm:$0xff] %vm954_vm0, %v932_v15  ;;  %v933_v25 = vld [vmem:[%s9367_s26 + $0x158] sm:$0xff] }
 0x1d0   : > { %1350 = vrot.lane.b32.xlu2 %v1187_v24, %s9106_s25  ;;  %v1329_v28 = vpop.permute.xlu0 %1328  ;;  %v1054_v24 = vld [vmem:[#allocation2 + $0xf0] sm:$0xff]  ;;  %1003 = vst.msk [vmem:[#allocation2 + $0x162] sm:$0xff] %vm954_vm0, %v933_v25 }
 0x1d1   : > { %v1714_v30 = vpop.permute.xlu1 %1713  ;;  %1497 = vst.msk [vmem:[#allocation7 + $0xc0] sm:$0xff] %vm1472_vm2, %v1329_v28  ;;  %v3008_v32 = vpop.f32.mrf.mxu0  ;;  %v1575_v28 = vld [vmem:[#allocation2 + $0x13a] sm:$0xff] }
 0x1d2   : > { %v9809_v31 = vpop.permute.xlu2 %2487  ;;  %1882 = vst.msk [vmem:[#allocation7 + $0xc0] sm:$0xff] %vm1857_vm3, %v1714_v30  ;;  %v3009_v36 = vadd.f32 %v9616_v29, %v3008_v32  ;;  %v1960_v30 = vld [vmem:[#allocation2 + $0x13f] sm:$0xff] }
 0x1d3   : > { %2267 = vst.msk [vmem:[#allocation7 + $0xc0] sm:$0xff] %vm2242_vm5, %v9771_v53  ;;  %v2715_v37 = vld [vmem:[#allocation7 + $0xb8] sm:$0xff] }
 0x1d4   : > { %v3560_v39 = vld [vmem:[#allocation12 + $0x42] ss:$2 sm:$0xff]  ;;  %8378 = vmatmul.msk.f32.gmra.mxu0 %vm2761_vm7, %v2715_v37  ;;  %vm3178_vm12 = vcmp.ge.f32.partialorder %v3009_v36, 0.0  ;;  %v3242_v42 = vmul.f32 0.01, %v3009_v36  ;;  %1118 = vst.msk [vmem:[#allocation7 + $0xf0] sm:$0xff] %vm954_vm0, %v1054_v24 }
 0x1d5   : > { %v3651_v44 = vmax.f32 %v3619_v35, %v3560_v39  ;;  %v1059_v24 = vld [vmem:[#allocation2 + $0x118] sm:$0xff] }
 0x1d6   : > { %1735 = vrot.lane.b32.xlu0 %v1572_v38, %s9108_s28  ;;  %v3306_v45 = vsel %vm3178_vm12, %v3009_v36, %v3242_v42  ;;  %v1055_v38 = vld [vmem:[#allocation2 + $0xf8] sm:$0xff]  ;;  %1123 = vst.msk [vmem:[#allocation7 + $0x118] sm:$0xff] %vm954_vm0, %v1059_v24 }
 0x1d7   : > { %2120 = vrot.lane.b32.xlu1 %v1957_v40, %s9107_s4  ;;  %3688 = vst.msk [vmem:[#allocation3 + $0x2a] sm:$0xff] %vm3359_vm8, %v3651_v44  ;;  %v1191_v42 = vld [vmem:[#allocation2 + $0x13d] sm:$0xff]  ;;  %v1961_v44 = vld [vmem:[#allocation2 + $0x147] sm:$0xff] }
 0x1d8   : > { %2505 = vrot.lane.b32.xlu2 %v2342_v41, %s9109_s29  ;;  %3371 = vst.msk [vmem:[#allocation12 + $0x58] sm:$0xff] %vm3359_vm8, %v3306_v45  ;;  %v2484_v46 = vpop.permute.xlu0 %2483  ;;  %v1963_v15 = vld [vmem:[#allocation2 + $0x157] sm:$0xff] }
 0x1d9   : > { %v1331_v47 = vpop.permute.xlu1 %1330  ;;  %2652 = vst.msk [vmem:[#allocation7 + $0xc0] sm:$0xff] %vm2627_vm6, %v2484_v46 }
 0x1da   : > { %v9826_v48 = vpop.permute.xlu2 %2104  ;;  %1498 = vst.msk [vmem:[#allocation7 + $0xc8] sm:$0xff] %vm1472_vm2, %v1331_v47 }
 0x1db   : > { %1883 = vst.msk [vmem:[#allocation7 + $0xc8] sm:$0xff] %vm1857_vm3, %v9783_v6 }
 0x1dc   : > { %1119 = vst.msk [vmem:[#allocation7 + $0xf8] sm:$0xff] %vm954_vm0, %v1055_v38 }
 0x1de   : > { %1352 = vrot.lane.b32.xlu0 %v1188_v50, %s9106_s25  ;;  %v3011_v53 = vpop.f32.mrf.mxu0  ;;  %v3722_v61 = vld [vmem:[#allocation3 + $0x28] sm:$0xff] }
 0x1df   : > { %1737 = vrot.lane.b32.xlu1 %v1573_v51, %s9108_s28  ;;  %v3012_v54 = vadd.f32 %v9616_v29, %v3011_v53  ;;  %3754 = vst.msk [vmem:[#allocation8 + $0x28] sm:$0xff] %vm3359_vm8, %v3722_v61  ;;  %v3434_v3 = vld [vmem:[#allocation12 + $0x50] ss:$2 sm:$0xff]  ;;  %v3498_v4 = vld [vmem:[#allocation12 + $0x51] ss:$2 sm:$0xff] }
 0x1e0   : > { %2122 = vrot.lane.b32.xlu2 %v1958_v52, %s9107_s4  ;;  %v2101_v55 = vpop.permute.xlu0 %2100  ;;  %v2716_v56 = vld [vmem:[#allocation7 + $0xc0] sm:$0xff]  ;;  %v3620_v11 = vmax.f32 %v3434_v3, %v3498_v4  ;;  %v935_v3 = vld [vmem:[%s9367_s26 + $0x168] sm:$0xff]  ;;  %v1193_v4 = vld [vmem:[#allocation2 + $0x14d] sm:$0xff] }
 0x1e1   : > { %vm3179_vm13 = vcmp.ge.f32.partialorder %v3012_v54, 0.0  ;;  %v3243_v57 = vmul.f32 0.01, %v3012_v54  ;;  %v2486_v58 = vpop.permute.xlu1 %2485  ;;  %2268 = vst.msk [vmem:[#allocation7 + $0xc8] sm:$0xff] %vm2242_vm5, %v2101_v55  ;;  %8379 = vmatmul.msk.f32.gmra.mxu0 %vm2761_vm7, %v2716_v56  ;;  %v2346_v55 = vld [vmem:[#allocation2 + $0x14c] sm:$0xff] }
 0x1e2   : > { %v9837_v59 = vpop.permute.xlu2 %1721  ;;  %2653 = vst.msk [vmem:[#allocation7 + $0xc8] sm:$0xff] %vm2627_vm6, %v2486_v58  ;;  %v1577_v58 = vld [vmem:[#allocation2 + $0x14a] sm:$0xff] }
 0x1e3   : > { %v3307_v62 = vsel %vm3179_vm13, %v3012_v54, %v3243_v57  ;;  %v1192_v57 = vld [vmem:[#allocation2 + $0x145] sm:$0xff]  ;;  %1005 = vst.msk [vmem:[#allocation2 + $0x172] sm:$0xff] %vm954_vm0, %v935_v3 }
 0x1e4   : > { %3372 = vst.msk [vmem:[#allocation12 + $0x60] sm:$0xff] %vm3359_vm8, %v3307_v62 }
 0x1e6   : > { %2507 = vrot.lane.b32.xlu0 %v2343_v63, %s9109_s29 }
 0x1e7   : > { %1354 = vrot.lane.b32.xlu1 %v1189_v0, %s9106_s25  ;;  %v3014_v5 = vpop.f32.mrf.mxu0 }
 0x1e8   : > { %1739 = vrot.lane.b32.xlu2 %v1574_v2, %s9108_s28  ;;  %v3015_v6 = vadd.f32 %v9616_v29, %v3014_v5  ;;  %v1718_v7 = vpop.permute.xlu0 %1717  ;;  %v1962_v5 = vld [vmem:[#allocation2 + $0x14f] sm:$0xff] }
 0x1e9   : > { %v2103_v8 = vpop.permute.xlu1 %2102  ;;  %1884 = vst.msk [vmem:[#allocation7 + $0xd0] sm:$0xff] %vm1857_vm3, %v1718_v7  ;;  %v2717_v10 = vld [vmem:[#allocation7 + $0xc8] sm:$0xff]  ;;  %v2347_v7 = vld [vmem:[#allocation2 + $0x154] sm:$0xff] }
 0x1ea   : > { %v1339_v9 = vpop.permute.xlu2 %1338  ;;  %vm3180_vm14 = vcmp.ge.f32.partialorder %v3015_v6, 0.0  ;;  %v3244_v12 = vmul.f32 0.01, %v3015_v6  ;;  %8380 = vmatmul.msk.f32.gmra.mxu0 %vm2761_vm7, %v2717_v10  ;;  %2269 = vst.msk [vmem:[#allocation7 + $0xd0] sm:$0xff] %vm2242_vm5, %v2103_v8  ;;  %v1197_v24 = vld [vmem:[#allocation2 + $0x16d] sm:$0xff] }
 0x1eb   : > { %1502 = vst.msk [vmem:[#allocation7 + $0xe8] sm:$0xff] %vm1472_vm2, %v1339_v9  ;;  %v3562_v13 = vld [vmem:[#allocation12 + $0x52] ss:$2 sm:$0xff] }
 0x1ec   : > { %v3308_v16 = vsel %vm3180_vm14, %v3015_v6, %v3244_v12  ;;  %2654 = vst.msk [vmem:[#allocation7 + $0xd0] sm:$0xff] %vm2627_vm6, %v9809_v31  ;;  %v3652_v19 = vmax.f32 %v3620_v11, %v3562_v13  ;;  %v2345_v31 = vld [vmem:[#allocation2 + $0x144] sm:$0xff] }
 0x1ed   : > { %3373 = vst.msk [vmem:[#allocation12 + $0x68] sm:$0xff] %vm3359_vm8, %v3308_v16  ;;  %v9921_v13 = vld [vmem:[#allocation21] ss:$0 sm:$0xff]  ;;  %v1578_v16 = vld [vmem:[#allocation2 + $0x152] sm:$0xff] }
 0x1ee   : > { %2124 = vrot.lane.b32.xlu0 %v1959_v14, %s9107_s4  ;;  %3689 = vst.msk [vmem:[#allocation3 + $0x32] sm:$0xff] %vm3359_vm8, %v3652_v19 }
 0x1ef   : > { %2509 = vrot.lane.b32.xlu1 %v2344_v17, %s9109_s29  ;;  %v1057_v17 = vld [vmem:[#allocation2 + $0x108] sm:$0xff] }
 0x1f0   : > { %1356 = vrot.lane.b32.xlu2 %v1190_v18, %s9106_s25  ;;  %v1335_v20 = vpop.permute.xlu0 %1334  ;;  %v936_v18 = vld [vmem:[%s9367_s26 + $0x170] sm:$0xff]  ;;  %1121 = vst.msk [vmem:[#allocation7 + $0x108] sm:$0xff] %vm954_vm0, %v1057_v17 }
 0x1f1   : > { %v1720_v21 = vpop.permute.xlu1 %1719  ;;  %1500 = vst.msk [vmem:[#allocation7 + $0xd8] sm:$0xff] %vm1472_vm2, %v1335_v20  ;;  %v3017_v23 = vpop.f32.mrf.mxu0 }
 0x1f2   : > { %v9863_v22 = vpop.permute.xlu2 %2493  ;;  %1885 = vst.msk [vmem:[#allocation7 + $0xd8] sm:$0xff] %vm1857_vm3, %v1720_v21  ;;  %v3018_v26 = vadd.f32 %v9616_v29, %v3017_v23  ;;  %v2348_v21 = vld [vmem:[#allocation2 + $0x15c] sm:$0xff] }
 0x1f3   : > { %2270 = vst.msk [vmem:[#allocation7 + $0xd8] sm:$0xff] %vm2242_vm5, %v9826_v48  ;;  %v2718_v27 = vld [vmem:[#allocation7 + $0xd0] sm:$0xff] }
 0x1f4   : > { %8381 = vmatmul.msk.f32.gmra.mxu0 %vm2761_vm7, %v2718_v27  ;;  %vm3181_vm15 = vcmp.ge.f32.partialorder %v3018_v26, 0.0  ;;  %v3245_v32 = vmul.f32 0.01, %v3018_v26  ;;  %v3436_v40 = vld [vmem:[#allocation12 + $0x60] ss:$2 sm:$0xff]  ;;  %1006 = vst.msk [vmem:[#allocation2 + $0x17a] sm:$0xff] %vm954_vm0, %v936_v18 }
 0x1f5   : > { %v3723_v39 = vld [vmem:[#allocation3 + $0x30] sm:$0xff]  ;;  %v3500_v41 = vld [vmem:[#allocation12 + $0x61] ss:$2 sm:$0xff] }
 0x1f6   : > { %1741 = vrot.lane.b32.xlu0 %v1575_v28, %s9108_s28  ;;  %v3309_v34 = vsel %vm3181_vm15, %v3018_v26, %v3245_v32  ;;  %3755 = vst.msk [vmem:[#allocation8 + $0x30] sm:$0xff] %vm3359_vm8, %v3723_v39  ;;  %v3621_v45 = vmax.f32 %v3436_v40, %v3500_v41  ;;  %v937_v41 = vld [vmem:[%s9367_s26 + $0x178] sm:$0xff] }
 0x1f7   : > { %2126 = vrot.lane.b32.xlu1 %v1960_v30, %s9107_s4  ;;  %3374 = vst.msk [vmem:[#allocation12 + $0x70] sm:$0xff] %vm3359_vm8, %v3309_v34  ;;  %v1194_v34 = vld [vmem:[#allocation2 + $0x155] sm:$0xff] }
 0x1f8   : > { %2511 = vrot.lane.b32.xlu2 %v2345_v31, %s9109_s29  ;;  %v2490_v35 = vpop.permute.xlu0 %2489  ;;  %1007 = vst.msk [vmem:[#allocation2 + $0x182] sm:$0xff] %vm954_vm0, %v937_v41 }
 0x1f9   : > { %v1337_v36 = vpop.permute.xlu1 %1336  ;;  %2655 = vst.msk [vmem:[#allocation7 + $0xd8] sm:$0xff] %vm2627_vm6, %v2490_v35  ;;  %v1579_v35 = vld [vmem:[#allocation2 + $0x15a] sm:$0xff] }
 0x1fa   : > { %v9879_v37 = vpop.permute.xlu2 %2110  ;;  %1501 = vst.msk [vmem:[#allocation7 + $0xe0] sm:$0xff] %vm1472_vm2, %v1337_v36  ;;  %v1964_v36 = vld [vmem:[#allocation2 + $0x15f] sm:$0xff] }
 0x1fb   : > { %1886 = vst.msk [vmem:[#allocation7 + $0xe0] sm:$0xff] %vm1857_vm3, %v9837_v59 }
 0x1fe   : > { %1358 = vrot.lane.b32.xlu0 %v1191_v42, %s9106_s25  ;;  %v3564_v46 = vld [vmem:[#allocation12 + $0x62] ss:$2 sm:$0xff]  ;;  %v3020_v51 = vpop.f32.mrf.mxu0 }
 0x1ff   : > { %1743 = vrot.lane.b32.xlu1 %v1576_v43, %s9108_s28  ;;  %v3653_v50 = vmax.f32 %v3621_v45, %v3564_v46  ;;  %v3021_v53 = vadd.f32 %v9616_v29, %v3020_v51  ;;  %v2349_v46 = vld [vmem:[#allocation2 + $0x164] sm:$0xff]  ;;  %v2352_v41 = vld [vmem:[#allocation2 + $0x17c] sm:$0xff] }
 0x200   : > { %2128 = vrot.lane.b32.xlu2 %v1961_v44, %s9107_s4  ;;  %v2107_v47 = vpop.permute.xlu0 %2106  ;;  %v2719_v48 = vld [vmem:[#allocation7 + $0xd8] sm:$0xff] }
 0x201   : > { %v2492_v52 = vpop.permute.xlu1 %2491  ;;  %2271 = vst.msk [vmem:[#allocation7 + $0xe0] sm:$0xff] %vm2242_vm5, %v2107_v47  ;;  %8382 = vmatmul.msk.f32.gmra.mxu0 %vm2761_vm7, %v2719_v48  ;;  %vm3182_vm1 = vcmp.ge.f32.partialorder %v3021_v53, 0.0  ;;  %v3246_v56 = vmul.f32 0.01, %v3021_v53  ;;  %v1195_v47 = vld [vmem:[#allocation2 + $0x15d] sm:$0xff] }
 0x202   : > { %v9894_v54 = vpop.permute.xlu2 %1727  ;;  %2656 = vst.msk [vmem:[#allocation7 + $0xe0] sm:$0xff] %vm2627_vm6, %v2492_v52  ;;  %v1580_v48 = vld [vmem:[#allocation2 + $0x162] sm:$0xff] }
 0x203   : > { %3690 = vst.msk [vmem:[#allocation3 + $0x3a] sm:$0xff] %vm3359_vm8, %v3653_v50  ;;  %v3310_v59 = vsel %vm3182_vm1, %v3021_v53, %v3246_v56 }
 0x204   : > { %3375 = vst.msk [vmem:[#allocation12 + $0x78] sm:$0xff] %vm3359_vm8, %v3310_v59 }
 0x206   : > { %2513 = vrot.lane.b32.xlu0 %v2346_v55, %s9109_s29 }
 0x207   : > { %1360 = vrot.lane.b32.xlu1 %v1192_v57, %s9106_s25  ;;  %v3023_v61 = vpop.f32.mrf.mxu0 }
 0x208   : > { %1745 = vrot.lane.b32.xlu2 %v1577_v58, %s9108_s28  ;;  %v1724_v60 = vpop.permute.xlu0 %1723  ;;  %v3024_v0 = vadd.f32 %v9616_v29, %v3023_v61  ;;  %v1965_v61 = vld [vmem:[#allocation2 + $0x167] sm:$0xff] }
 0x209   : > { %v2109_v62 = vpop.permute.xlu1 %2108  ;;  %1887 = vst.msk [vmem:[#allocation7 + $0xe8] sm:$0xff] %vm1857_vm3, %v1724_v60  ;;  %v2720_v63 = vld [vmem:[#allocation7 + $0xe0] sm:$0xff] }
 0x20a   : > { %v1345_v2 = vpop.permute.xlu2 %1344  ;;  %2272 = vst.msk [vmem:[#allocation7 + $0xe8] sm:$0xff] %vm2242_vm5, %v2109_v62  ;;  %8383 = vmatmul.msk.f32.gmra.mxu0 %vm2761_vm7, %v2720_v63  ;;  %vm3183_vm4 = vcmp.ge.f32.partialorder %v3024_v0, 0.0  ;;  %v3247_v6 = vmul.f32 0.01, %v3024_v0  ;;  %v3724_v8 = vld [vmem:[#allocation3 + $0x38] sm:$0xff]  ;;  %v938_v62 = vld [vmem:[%s9367_s26 + $0x180] sm:$0xff] }
 0x20b   : > { %1505 = vst.msk [vmem:[#allocation7 + $0x100] sm:$0xff] %vm1472_vm2, %v1345_v2  ;;  %v3438_v19 = vld [vmem:[#allocation12 + $0x70] ss:$2 sm:$0xff] }
 0x20c   : > { %2657 = vst.msk [vmem:[#allocation7 + $0xe8] sm:$0xff] %vm2627_vm6, %v9863_v22  ;;  %v3311_v29 = vsel %vm3183_vm4, %v3024_v0, %v3247_v6  ;;  %v3502_v22 = vld [vmem:[#allocation12 + $0x71] ss:$2 sm:$0xff] }
 0x20d   : > { %3756 = vst.msk [vmem:[#allocation8 + $0x38] sm:$0xff] %vm3359_vm8, %v3724_v8  ;;  %v3622_v27 = vmax.f32 %v3438_v19, %v3502_v22  ;;  %v2350_v0 = vld [vmem:[#allocation2 + $0x16c] sm:$0xff] }
 0x20e   : > { %2130 = vrot.lane.b32.xlu0 %v1962_v5, %s9107_s4  ;;  %3376 = vst.msk [vmem:[#allocation12 + $0x80] sm:$0xff] %vm3359_vm8, %v3311_v29  ;;  %v1196_v2 = vld [vmem:[#allocation2 + $0x165] sm:$0xff]  ;;  %v1966_v29 = vld [vmem:[#allocation2 + $0x16f] sm:$0xff] }
 0x20f   : > { %2515 = vrot.lane.b32.xlu1 %v2347_v7, %s9109_s29  ;;  %1008 = vst.msk [vmem:[#allocation2 + $0x18a] sm:$0xff] %vm954_vm0, %v938_v62 }
 0x210   : > { %1362 = vrot.lane.b32.xlu2 %v1193_v4, %s9106_s25  ;;  %v1341_v9 = vpop.permute.xlu0 %1340 }
 0x211   : > { %v1726_v10 = vpop.permute.xlu1 %1725  ;;  %1503 = vst.msk [vmem:[#allocation7 + $0xf0] sm:$0xff] %vm1472_vm2, %v1341_v9  ;;  %v3026_v11 = vpop.f32.mrf.mxu0 }
 0x212   : > { %v9918_v12 = vpop.permute.xlu2 %2499  ;;  %1888 = vst.msk [vmem:[#allocation7 + $0xf0] sm:$0xff] %vm1857_vm3, %v1726_v10  ;;  %v3027_v14 = vadd.f32 %v9921_v13, %v3026_v11  ;;  %v1581_v10 = vld [vmem:[#allocation2 + $0x16a] sm:$0xff]  ;;  %v1060_v11 = vld [vmem:[#allocation2 + $0x120] sm:$0xff] }
 0x213   : > { %2273 = vst.msk [vmem:[#allocation7 + $0xf0] sm:$0xff] %vm2242_vm5, %v9879_v37  ;;  %v2721_v20 = vld [vmem:[#allocation7 + $0xe8] sm:$0xff] }
 0x214   : > { %vm3184_vm9 = vcmp.ge.f32.partialorder %v3027_v14, 0.0  ;;  %v3248_v23 = vmul.f32 0.01, %v3027_v14  ;;  %8384 = vmatmul.msk.f32.gmra.mxu0 %vm2761_vm7, %v2721_v20  ;;  %1124 = vst.msk [vmem:[#allocation7 + $0x120] sm:$0xff] %vm954_vm0, %v1060_v11 }
 0x215   : > { %v3566_v25 = vld [vmem:[#allocation12 + $0x72] ss:$2 sm:$0xff] }
 0x216   : > { %v3312_v26 = vsel %vm3184_vm9, %v3027_v14, %v3248_v23  ;;  %1747 = vrot.lane.b32.xlu0 %v1578_v16, %s9108_s28  ;;  %v3654_v31 = vmax.f32 %v3622_v27, %v3566_v25  ;;  %v1062_v14 = vld [vmem:[#allocation2 + $0x130] sm:$0xff] }
 0x217   : > { %3377 = vst.msk [vmem:[#allocation12 + $0x88] sm:$0xff] %vm3359_vm8, %v3312_v26  ;;  %2132 = vrot.lane.b32.xlu1 %v1963_v15, %s9107_s4  ;;  %v939_v15 = vld [vmem:[%s9367_s26 + $0x188] sm:$0xff]  ;;  %v1582_v23 = vld [vmem:[#allocation2 + $0x172] sm:$0xff] }
 0x218   : > { %2517 = vrot.lane.b32.xlu2 %v2348_v21, %s9109_s29  ;;  %v2496_v28 = vpop.permute.xlu0 %2495  ;;  %3691 = vst.msk [vmem:[#allocation3 + $0x42] sm:$0xff] %vm3359_vm8, %v3654_v31  ;;  %v1061_v21 = vld [vmem:[#allocation2 + $0x128] sm:$0xff]  ;;  %v1967_v27 = vld [vmem:[#allocation2 + $0x177] sm:$0xff] }
 0x219   : > { %v1343_v30 = vpop.permute.xlu1 %1342  ;;  %2658 = vst.msk [vmem:[#allocation7 + $0xf0] sm:$0xff] %vm2627_vm6, %v2496_v28 }
 0x21a   : > { %1504 = vst.msk [vmem:[#allocation7 + $0xf8] sm:$0xff] %vm1472_vm2, %v1343_v30  ;;  %v9937_v32 = vpop.permute.xlu2 %2116 }
 0x21b   : > { %1889 = vst.msk [vmem:[#allocation7 + $0xf8] sm:$0xff] %vm1857_vm3, %v9894_v54 }
 0x21c   : > { %1126 = vst.msk [vmem:[#allocation7 + $0x130] sm:$0xff] %vm954_vm0, %v1062_v14 }
 0x21d   : > { %1009 = vst.msk [vmem:[#allocation2 + $0x192] sm:$0xff] %vm954_vm0, %v939_v15 }
 0x21e   : > { %1364 = vrot.lane.b32.xlu0 %v1194_v34, %s9106_s25  ;;  %v3029_v37 = vpop.f32.mrf.mxu0  ;;  %v3440_v50 = vld [vmem:[#allocation12 + $0x80] ss:$2 sm:$0xff]  ;;  %v3504_v51 = vld [vmem:[#allocation12 + $0x81] ss:$2 sm:$0xff]  ;;  %1125 = vst.msk [vmem:[#allocation7 + $0x128] sm:$0xff] %vm954_vm0, %v1061_v21 }
 0x21f   : > { %1749 = vrot.lane.b32.xlu1 %v1579_v35, %s9108_s28  ;;  %v3030_v38 = vadd.f32 %v9921_v13, %v3029_v37  ;;  %v3725_v49 = vld [vmem:[#allocation3 + $0x40] sm:$0xff]  ;;  %v3623_v57 = vmax.f32 %v3440_v50, %v3504_v51  ;;  %v940_v35 = vld [vmem:[%s9367_s26 + $0x190] sm:$0xff] }
 0x220   : > { %2134 = vrot.lane.b32.xlu2 %v1964_v36, %s9107_s4  ;;  %v2113_v39 = vpop.permute.xlu0 %2112  ;;  %v2722_v40 = vld [vmem:[#allocation7 + $0xf0] sm:$0xff]  ;;  %3757 = vst.msk [vmem:[#allocation8 + $0x40] sm:$0xff] %vm3359_vm8, %v3725_v49  ;;  %v1968_v51 = vld [vmem:[#allocation2 + $0x17f] sm:$0xff] }
 0x221   : > { %vm3185_vm10 = vcmp.ge.f32.partialorder %v3030_v38, 0.0  ;;  %v3249_v42 = vmul.f32 0.01, %v3030_v38  ;;  %v2498_v43 = vpop.permute.xlu1 %2497  ;;  %2274 = vst.msk [vmem:[#allocation7 + $0xf8] sm:$0xff] %vm2242_vm5, %v2113_v39  ;;  %8385 = vmatmul.msk.f32.gmra.mxu0 %vm2761_vm7, %v2722_v40 }
 0x222   : > { %v9950_v44 = vpop.permute.xlu2 %1733  ;;  %2659 = vst.msk [vmem:[#allocation7 + $0xf8] sm:$0xff] %vm2627_vm6, %v2498_v43  ;;  %v1583_v43 = vld [vmem:[#allocation2 + $0x17a] sm:$0xff] }
 0x223   : > { %v3313_v45 = vsel %vm3185_vm10, %v3030_v38, %v3249_v42  ;;  %1010 = vst.msk [vmem:[#allocation2 + $0x19a] sm:$0xff] %vm954_vm0, %v940_v35  ;;  %v1198_v42 = vld [vmem:[#allocation2 + $0x175] sm:$0xff] }
 0x224   : > { %3378 = vst.msk [vmem:[#allocation12 + $0x90] sm:$0xff] %vm3359_vm8, %v3313_v45 }
 0x226   : > { %2519 = vrot.lane.b32.xlu0 %v2349_v46, %s9109_s29 }
 0x227   : > { %1366 = vrot.lane.b32.xlu1 %v1195_v47, %s9106_s25  ;;  %v3032_v52 = vpop.f32.mrf.mxu0 }
 0x228   : > { %1751 = vrot.lane.b32.xlu2 %v1580_v48, %s9108_s28  ;;  %v3033_v53 = vadd.f32 %v9921_v13, %v3032_v52  ;;  %v1730_v54 = vpop.permute.xlu0 %1729  ;;  %v941_v52 = vld [vmem:[%s9367_s26 + $0x198] sm:$0xff] }
 0x229   : > { %v2115_v55 = vpop.permute.xlu1 %2114  ;;  %1890 = vst.msk [vmem:[#allocation7 + $0x100] sm:$0xff] %vm1857_vm3, %v1730_v54  ;;  %v2723_v56 = vld [vmem:[#allocation7 + $0xf8] sm:$0xff]  ;;  %v2353_v54 = vld [vmem:[#allocation2 + $0x184] sm:$0xff] }
 0x22a   : > { %vm3186_vm11 = vcmp.ge.f32.partialorder %v3033_v53, 0.0  ;;  %v3250_v58 = vmul.f32 0.01, %v3033_v53  ;;  %v1351_v59 = vpop.permute.xlu2 %1350  ;;  %2275 = vst.msk [vmem:[#allocation7 + $0x100] sm:$0xff] %vm2242_vm5, %v2115_v55  ;;  %8386 = vmatmul.msk.f32.gmra.mxu0 %vm2761_vm7, %v2723_v56  ;;  %v1199_v55 = vld [vmem:[#allocation2 + $0x17d] sm:$0xff] }
 0x22b   : > { %v3568_v60 = vld [vmem:[#allocation12 + $0x82] ss:$2 sm:$0xff]  ;;  %1508 = vst.msk [vmem:[#allocation7 + $0x118] sm:$0xff] %vm1472_vm2, %v1351_v59 }
 0x22c   : > { %v3314_v63 = vsel %vm3186_vm11, %v3033_v53, %v3250_v58  ;;  %2660 = vst.msk [vmem:[#allocation7 + $0x100] sm:$0xff] %vm2627_vm6, %v9918_v12  ;;  %v3655_v3 = vmax.f32 %v3623_v57, %v3568_v60  ;;  %v2351_v12 = vld [vmem:[#allocation2 + $0x174] sm:$0xff] }
 0x22d   : > { %3379 = vst.msk [vmem:[#allocation12 + $0x98] sm:$0xff] %vm3359_vm8, %v3314_v63 }
 0x22e   : > { %2136 = vrot.lane.b32.xlu0 %v1965_v61, %s9107_s4  ;;  %3692 = vst.msk [vmem:[#allocation3 + $0x4a] sm:$0xff] %vm3359_vm8, %v3655_v3  ;;  %v942_v3 = vld [vmem:[%s9367_s26 + $0x1a0] sm:$0xff] }
 0x22f   : > { %2521 = vrot.lane.b32.xlu1 %v2350_v0, %s9109_s29  ;;  %1011 = vst.msk [vmem:[#allocation2 + $0x1a2] sm:$0xff] %vm954_vm0, %v941_v52  ;;  %v1969_v0 = vld [vmem:[#allocation2 + $0x187] sm:$0xff] }
 0x230   : > { %1368 = vrot.lane.b32.xlu2 %v1196_v2, %s9106_s25  ;;  %v1347_v4 = vpop.permute.xlu0 %1346  ;;  %v1063_v2 = vld [vmem:[#allocation2 + $0x138] sm:$0xff]  ;;  %1012 = vst.msk [vmem:[#allocation2 + $0x1aa] sm:$0xff] %vm954_vm0, %v942_v3 }
 0x231   : > { %v1732_v5 = vpop.permute.xlu1 %1731  ;;  %1506 = vst.msk [vmem:[#allocation7 + $0x108] sm:$0xff] %vm1472_vm2, %v1347_v4  ;;  %v3035_v6 = vpop.f32.mrf.mxu0 }
 0x232   : > { %v9974_v7 = vpop.permute.xlu2 %2505  ;;  %1891 = vst.msk [vmem:[#allocation7 + $0x108] sm:$0xff] %vm1857_vm3, %v1732_v5  ;;  %v3036_v8 = vadd.f32 %v9921_v13, %v3035_v6  ;;  %v2354_v6 = vld [vmem:[#allocation2 + $0x18c] sm:$0xff] }
 0x233   : > { %2276 = vst.msk [vmem:[#allocation7 + $0x108] sm:$0xff] %vm2242_vm5, %v9937_v32  ;;  %v2724_v9 = vld [vmem:[#allocation7 + $0x100] sm:$0xff] }
 0x234   : > { %vm3187_vm12 = vcmp.ge.f32.partialorder %v3036_v8, 0.0  ;;  %8387 = vmatmul.msk.f32.gmra.mxu0 %vm2761_vm7, %v2724_v9  ;;  %v3251_v16 = vmul.f32 0.01, %v3036_v8  ;;  %v3442_v25 = vld [vmem:[#allocation12 + $0x90] ss:$2 sm:$0xff]  ;;  %1127 = vst.msk [vmem:[#allocation7 + $0x138] sm:$0xff] %vm954_vm0, %v1063_v2 }
 0x235   : > { %v3726_v22 = vld [vmem:[#allocation3 + $0x48] sm:$0xff]  ;;  %v3506_v26 = vld [vmem:[#allocation12 + $0x91] ss:$2 sm:$0xff] }
 0x236   : > { %1753 = vrot.lane.b32.xlu0 %v1581_v10, %s9108_s28  ;;  %v3315_v17 = vsel %vm3187_vm12, %v3036_v8, %v3251_v16  ;;  %3758 = vst.msk [vmem:[#allocation8 + $0x48] sm:$0xff] %vm3359_vm8, %v3726_v22  ;;  %v3624_v30 = vmax.f32 %v3442_v25, %v3506_v26  ;;  %v1065_v9 = vld [vmem:[#allocation2 + $0x148] sm:$0xff]  ;;  %v1064_v16 = vld [vmem:[#allocation2 + $0x140] sm:$0xff] }
 0x237   : > { %2138 = vrot.lane.b32.xlu1 %v1966_v29, %s9107_s4  ;;  %3380 = vst.msk [vmem:[#allocation12 + $0xa0] sm:$0xff] %vm3359_vm8, %v3315_v17  ;;  %v1200_v17 = vld [vmem:[#allocation2 + $0x185] sm:$0xff] }
 0x238   : > { %2523 = vrot.lane.b32.xlu2 %v2351_v12, %s9109_s29  ;;  %v2502_v18 = vpop.permute.xlu0 %2501  ;;  %1129 = vst.msk [vmem:[#allocation7 + $0x148] sm:$0xff] %vm954_vm0, %v1065_v9 }
 0x239   : > { %v1349_v19 = vpop.permute.xlu1 %1348  ;;  %2661 = vst.msk [vmem:[#allocation7 + $0x108] sm:$0xff] %vm2627_vm6, %v2502_v18  ;;  %v1585_v18 = vld [vmem:[#allocation2 + $0x18a] sm:$0xff] }
 0x23a   : > { %1507 = vst.msk [vmem:[#allocation7 + $0x110] sm:$0xff] %vm1472_vm2, %v1349_v19  ;;  %v9991_v20 = vpop.permute.xlu2 %2122  ;;  %v1970_v19 = vld [vmem:[#allocation2 + $0x18f] sm:$0xff] }
 0x23b   : > { %1892 = vst.msk [vmem:[#allocation7 + $0x110] sm:$0xff] %vm1857_vm3, %v9950_v44 }
 0x23c   : > { %1128 = vst.msk [vmem:[#allocation7 + $0x140] sm:$0xff] %vm954_vm0, %v1064_v16 }
 0x23e   : > { %1370 = vrot.lane.b32.xlu0 %v1197_v24, %s9106_s25  ;;  %v3038_v28 = vpop.f32.mrf.mxu0  ;;  %v3570_v31 = vld [vmem:[#allocation12 + $0x92] ss:$2 sm:$0xff]  ;;  %v943_v24 = vld [vmem:[%s9367_s26 + $0x1a8] sm:$0xff] }
 0x23f   : > { %1755 = vrot.lane.b32.xlu1 %v1582_v23, %s9108_s28  ;;  %v3039_v32 = vadd.f32 %v9921_v13, %v3038_v28  ;;  %v3656_v38 = vmax.f32 %v3624_v30, %v3570_v31  ;;  %v2355_v31 = vld [vmem:[#allocation2 + $0x194] sm:$0xff]  ;;  %1013 = vst.msk [vmem:[#allocation2 + $0x1b2] sm:$0xff] %vm954_vm0, %v943_v24 }
 0x240   : > { %2140 = vrot.lane.b32.xlu2 %v1967_v27, %s9107_s4  ;;  %v2119_v33 = vpop.permute.xlu0 %2118  ;;  %v2725_v34 = vld [vmem:[#allocation7 + $0x108] sm:$0xff] }
 0x241   : > { %vm3188_vm13 = vcmp.ge.f32.partialorder %v3039_v32, 0.0  ;;  %v3252_v36 = vmul.f32 0.01, %v3039_v32  ;;  %v2504_v37 = vpop.permute.xlu1 %2503  ;;  %2277 = vst.msk [vmem:[#allocation7 + $0x110] sm:$0xff] %vm2242_vm5, %v2119_v33  ;;  %8388 = vmatmul.msk.f32.gmra.mxu0 %vm2761_vm7, %v2725_v34  ;;  %v1586_v33 = vld [vmem:[#allocation2 + $0x192] sm:$0xff] }
 0x242   : > { %v10004_v39 = vpop.permute.xlu2 %1739  ;;  %2662 = vst.msk [vmem:[#allocation7 + $0x110] sm:$0xff] %vm2627_vm6, %v2504_v37 }
 0x243   : > { %v3316_v40 = vsel %vm3188_vm13, %v3039_v32, %v3252_v36  ;;  %3693 = vst.msk [vmem:[#allocation3 + $0x52] sm:$0xff] %vm3359_vm8, %v3656_v38  ;;  %v1201_v32 = vld [vmem:[#allocation2 + $0x18d] sm:$0xff] }
 0x244   : > { %3381 = vst.msk [vmem:[#allocation12 + $0xa8] sm:$0xff] %vm3359_vm8, %v3316_v40 }
 0x246   : > { %2525 = vrot.lane.b32.xlu0 %v2352_v41, %s9109_s29  ;;  %v2358_v24 = vld [vmem:[#allocation2 + $0x1ac] sm:$0xff] }
 0x247   : > { %1372 = vrot.lane.b32.xlu1 %v1198_v42, %s9106_s25  ;;  %v3041_v44 = vpop.f32.mrf.mxu0 }
 0x248   : > { %1757 = vrot.lane.b32.xlu2 %v1583_v43, %s9108_s28  ;;  %v3042_v45 = vadd.f32 %v9921_v13, %v3041_v44  ;;  %v1736_v46 = vpop.permute.xlu0 %1735 }
 0x249   : > { %v2121_v47 = vpop.permute.xlu1 %2120  ;;  %1893 = vst.msk [vmem:[#allocation7 + $0x118] sm:$0xff] %vm1857_vm3, %v1736_v46  ;;  %v2726_v48 = vld [vmem:[#allocation7 + $0x110] sm:$0xff] }
 0x24a   : > { %vm3189_vm14 = vcmp.ge.f32.partialorder %v3042_v45, 0.0  ;;  %v3253_v49 = vmul.f32 0.01, %v3042_v45  ;;  %v1357_v50 = vpop.permute.xlu2 %1356  ;;  %2278 = vst.msk [vmem:[#allocation7 + $0x118] sm:$0xff] %vm2242_vm5, %v2121_v47  ;;  %8389 = vmatmul.msk.f32.gmra.mxu0 %vm2761_vm7, %v2726_v48  ;;  %v3727_v56 = vld [vmem:[#allocation3 + $0x50] sm:$0xff]  ;;  %v2356_v48 = vld [vmem:[#allocation2 + $0x19c] sm:$0xff] }
 0x24b   : > { %1511 = vst.msk [vmem:[#allocation7 + $0x130] sm:$0xff] %vm1472_vm2, %v1357_v50  ;;  %v3444_v57 = vld [vmem:[#allocation12 + $0xa0] ss:$2 sm:$0xff]  ;;  %v3508_v58 = vld [vmem:[#allocation12 + $0xa1] ss:$2 sm:$0xff]  ;;  %v944_v46 = vld [vmem:[%s9367_s26 + $0x1b0] sm:$0xff] }
 0x24c   : > { %v3317_v53 = vsel %vm3189_vm14, %v3042_v45, %v3253_v49  ;;  %2663 = vst.msk [vmem:[#allocation7 + $0x118] sm:$0xff] %vm2627_vm6, %v9974_v7  ;;  %v3625_v4 = vmax.f32 %v3444_v57, %v3508_v58  ;;  %v1584_v7 = vld [vmem:[#allocation2 + $0x182] sm:$0xff]  ;;  %v1971_v45 = vld [vmem:[#allocation2 + $0x197] sm:$0xff] }
 0x24d   : > { %3382 = vst.msk [vmem:[#allocation12 + $0xb0] sm:$0xff] %vm3359_vm8, %v3317_v53  ;;  %v1202_v49 = vld [vmem:[#allocation2 + $0x195] sm:$0xff] }
 0x24e   : > { %2142 = vrot.lane.b32.xlu0 %v1968_v51, %s9107_s4  ;;  %3759 = vst.msk [vmem:[#allocation8 + $0x50] sm:$0xff] %vm3359_vm8, %v3727_v56  ;;  %v1972_v56 = vld [vmem:[#allocation2 + $0x19f] sm:$0xff] }
 0x24f   : > { %2527 = vrot.lane.b32.xlu1 %v2353_v54, %s9109_s29  ;;  %1014 = vst.msk [vmem:[#allocation2 + $0x1ba] sm:$0xff] %vm954_vm0, %v944_v46  ;;  %v1587_v58 = vld [vmem:[#allocation2 + $0x19a] sm:$0xff] }
 0x250   : > { %1374 = vrot.lane.b32.xlu2 %v1199_v55, %s9106_s25  ;;  %v1353_v59 = vpop.permute.xlu0 %1352 }
 0x251   : > { %v1738_v60 = vpop.permute.xlu1 %1737  ;;  %1509 = vst.msk [vmem:[#allocation7 + $0x120] sm:$0xff] %vm1472_vm2, %v1353_v59  ;;  %v3044_v61 = vpop.f32.mrf.mxu0  ;;  %v1066_v59 = vld [vmem:[#allocation2 + $0x150] sm:$0xff] }
 0x252   : > { %v10028_v62 = vpop.permute.xlu2 %2511  ;;  %1894 = vst.msk [vmem:[#allocation7 + $0x120] sm:$0xff] %vm1857_vm3, %v1738_v60  ;;  %v3045_v63 = vadd.f32 %v9921_v13, %v3044_v61  ;;  %v2357_v60 = vld [vmem:[#allocation2 + $0x1a4] sm:$0xff] }
 0x253   : > { %2279 = vst.msk [vmem:[#allocation7 + $0x120] sm:$0xff] %vm2242_vm5, %v9991_v20  ;;  %v2727_v5 = vld [vmem:[#allocation7 + $0x118] sm:$0xff]  ;;  %v1068_v61 = vld [vmem:[#allocation2 + $0x160] sm:$0xff] }
 0x254   : > { %v3572_v8 = vld [vmem:[#allocation12 + $0xa2] ss:$2 sm:$0xff]  ;;  %vm3190_vm15 = vcmp.ge.f32.partialorder %v3045_v63, 0.0  ;;  %v3254_v29 = vmul.f32 0.01, %v3045_v63  ;;  %8390 = vmatmul.msk.f32.gmra.mxu0 %vm2761_vm7, %v2727_v5  ;;  %1132 = vst.msk [vmem:[#allocation7 + $0x160] sm:$0xff] %vm954_vm0, %v1068_v61 }
 0x255   : > { %v3657_v10 = vmax.f32 %v3625_v4, %v3572_v8  ;;  %1130 = vst.msk [vmem:[#allocation7 + $0x150] sm:$0xff] %vm954_vm0, %v1066_v59  ;;  %v1067_v5 = vld [vmem:[#allocation2 + $0x158] sm:$0xff] }
 0x256   : > { %v3318_v11 = vsel %vm3190_vm15, %v3045_v63, %v3254_v29  ;;  %1759 = vrot.lane.b32.xlu0 %v1584_v7, %s9108_s28  ;;  %v1588_v7 = vld [vmem:[#allocation2 + $0x1a2] sm:$0xff]  ;;  %1131 = vst.msk [vmem:[#allocation7 + $0x158] sm:$0xff] %vm954_vm0, %v1067_v5 }
 0x257   : > { %3383 = vst.msk [vmem:[#allocation12 + $0xb8] sm:$0xff] %vm3359_vm8, %v3318_v11  ;;  %2144 = vrot.lane.b32.xlu1 %v1969_v0, %s9107_s4  ;;  %v1203_v8 = vld [vmem:[#allocation2 + $0x19d] sm:$0xff] }
 0x258   : > { %2529 = vrot.lane.b32.xlu2 %v2354_v6, %s9109_s29  ;;  %v2508_v12 = vpop.permute.xlu0 %2507  ;;  %3694 = vst.msk [vmem:[#allocation3 + $0x5a] sm:$0xff] %vm3359_vm8, %v3657_v10  ;;  %v1973_v10 = vld [vmem:[#allocation2 + $0x1a7] sm:$0xff] }
 0x259   : > { %v1355_v14 = vpop.permute.xlu1 %1354  ;;  %2664 = vst.msk [vmem:[#allocation7 + $0x120] sm:$0xff] %vm2627_vm6, %v2508_v12 }
 0x25a   : > { %1510 = vst.msk [vmem:[#allocation7 + $0x128] sm:$0xff] %vm1472_vm2, %v1355_v14  ;;  %v10046_v15 = vpop.permute.xlu2 %2128 }
 0x25b   : > { %1895 = vst.msk [vmem:[#allocation7 + $0x128] sm:$0xff] %vm1857_vm3, %v10004_v39 }
 0x25e   : > { %1376 = vrot.lane.b32.xlu0 %v1200_v17, %s9106_s25  ;;  %v3047_v20 = vpop.f32.mrf.mxu0  ;;  %v3446_v34 = vld [vmem:[#allocation12 + $0xb0] ss:$2 sm:$0xff]  ;;  %v3510_v35 = vld [vmem:[#allocation12 + $0xb1] ss:$2 sm:$0xff] }
 0x25f   : > { %1761 = vrot.lane.b32.xlu1 %v1585_v18, %s9108_s28  ;;  %v3048_v21 = vadd.f32 %v9921_v13, %v3047_v20  ;;  %v3728_v28 = vld [vmem:[#allocation3 + $0x58] sm:$0xff]  ;;  %v3626_v41 = vmax.f32 %v3446_v34, %v3510_v35  ;;  %v946_v18 = vld [vmem:[%s9367_s26 + $0x1c0] sm:$0xff] }
 0x260   : > { %2146 = vrot.lane.b32.xlu2 %v1970_v19, %s9107_s4  ;;  %v2125_v22 = vpop.permute.xlu0 %2124  ;;  %v2728_v23 = vld [vmem:[#allocation7 + $0x120] sm:$0xff]  ;;  %3760 = vst.msk [vmem:[#allocation8 + $0x58] sm:$0xff] %vm3359_vm8, %v3728_v28  ;;  %v1974_v35 = vld [vmem:[#allocation2 + $0x1af] sm:$0xff] }
 0x261   : > { %vm3191_vm1 = vcmp.ge.f32.partialorder %v3048_v21, 0.0  ;;  %v3255_v25 = vmul.f32 0.01, %v3048_v21  ;;  %v2510_v26 = vpop.permute.xlu1 %2509  ;;  %2280 = vst.msk [vmem:[#allocation7 + $0x128] sm:$0xff] %vm2242_vm5, %v2125_v22  ;;  %8391 = vmatmul.msk.f32.gmra.mxu0 %vm2761_vm7, %v2728_v23 }
 0x262   : > { %v10058_v27 = vpop.permute.xlu2 %1745  ;;  %2665 = vst.msk [vmem:[#allocation7 + $0x128] sm:$0xff] %vm2627_vm6, %v2510_v26  ;;  %v1589_v26 = vld [vmem:[#allocation2 + $0x1aa] sm:$0xff] }
 0x263   : > { %v3319_v30 = vsel %vm3191_vm1, %v3048_v21, %v3255_v25  ;;  %1016 = vst.msk [vmem:[#allocation2 + $0x1ca] sm:$0xff] %vm954_vm0, %v946_v18  ;;  %v1204_v25 = vld [vmem:[#allocation2 + $0x1a5] sm:$0xff] }
 0x264   : > { %3384 = vst.msk [vmem:[#allocation12 + $0xc0] sm:$0xff] %vm3359_vm8, %v3319_v30 }
 0x266   : > { %2531 = vrot.lane.b32.xlu0 %v2355_v31, %s9109_s29 }
 0x267   : > { %1378 = vrot.lane.b32.xlu1 %v1201_v32, %s9106_s25  ;;  %v3050_v36 = vpop.f32.mrf.mxu0 }
 0x268   : > { %1763 = vrot.lane.b32.xlu2 %v1586_v33, %s9108_s28  ;;  %v3051_v37 = vadd.f32 %v9921_v13, %v3050_v36  ;;  %v1742_v38 = vpop.permute.xlu0 %1741  ;;  %v947_v36 = vld [vmem:[%s9367_s26 + $0x1c8] sm:$0xff] }
 0x269   : > { %v2127_v39 = vpop.permute.xlu1 %2126  ;;  %1896 = vst.msk [vmem:[#allocation7 + $0x130] sm:$0xff] %vm1857_vm3, %v1742_v38  ;;  %v2729_v40 = vld [vmem:[#allocation7 + $0x128] sm:$0xff]  ;;  %v2359_v38 = vld [vmem:[#allocation2 + $0x1b4] sm:$0xff] }
 0x26a   : > { %vm3192_vm4 = vcmp.ge.f32.partialorder %v3051_v37, 0.0  ;;  %v3256_v42 = vmul.f32 0.01, %v3051_v37  ;;  %v1363_v43 = vpop.permute.xlu2 %1362  ;;  %2281 = vst.msk [vmem:[#allocation7 + $0x130] sm:$0xff] %vm2242_vm5, %v2127_v39  ;;  %8392 = vmatmul.msk.f32.gmra.mxu0 %vm2761_vm7, %v2729_v40  ;;  %v1205_v39 = vld [vmem:[#allocation2 + $0x1ad] sm:$0xff] }
 0x26b   : > { %v3574_v44 = vld [vmem:[#allocation12 + $0xb2] ss:$2 sm:$0xff]  ;;  %1514 = vst.msk [vmem:[#allocation7 + $0x148] sm:$0xff] %vm1472_vm2, %v1363_v43 }
 0x26c   : > { %v3320_v47 = vsel %vm3192_vm4, %v3051_v37, %v3256_v42  ;;  %2666 = vst.msk [vmem:[#allocation7 + $0x130] sm:$0xff] %vm2627_vm6, %v10028_v62  ;;  %v3658_v50 = vmax.f32 %v3626_v41, %v3574_v44  ;;  %v945_v62 = vld [vmem:[%s9367_s26 + $0x1b8] sm:$0xff] }
 0x26d   : > { %3385 = vst.msk [vmem:[#allocation12 + $0xc8] sm:$0xff] %vm3359_vm8, %v3320_v47 }
 0x26e   : > { %2148 = vrot.lane.b32.xlu0 %v1971_v45, %s9107_s4  ;;  %3695 = vst.msk [vmem:[#allocation3 + $0x62] sm:$0xff] %vm3359_vm8, %v3658_v50  ;;  %v948_v50 = vld [vmem:[%s9367_s26 + $0x1d0] sm:$0xff] }
 0x26f   : > { %2533 = vrot.lane.b32.xlu1 %v2356_v48, %s9109_s29  ;;  %1015 = vst.msk [vmem:[#allocation2 + $0x1c2] sm:$0xff] %vm954_vm0, %v945_v62  ;;  %v1975_v48 = vld [vmem:[#allocation2 + $0x1b7] sm:$0xff] }
 0x270   : > { %1380 = vrot.lane.b32.xlu2 %v1202_v49, %s9106_s25  ;;  %v1359_v51 = vpop.permute.xlu0 %1358  ;;  %1017 = vst.msk [vmem:[#allocation2 + $0x1d2] sm:$0xff] %vm954_vm0, %v947_v36  ;;  %v1069_v49 = vld [vmem:[#allocation2 + $0x168] sm:$0xff] }
 0x271   : > { %v1744_v52 = vpop.permute.xlu1 %1743  ;;  %1512 = vst.msk [vmem:[#allocation7 + $0x138] sm:$0xff] %vm1472_vm2, %v1359_v51  ;;  %v3053_v53 = vpop.f32.mrf.mxu0 }
 0x272   : > { %v10082_v54 = vpop.permute.xlu2 %2517  ;;  %1897 = vst.msk [vmem:[#allocation7 + $0x138] sm:$0xff] %vm1857_vm3, %v1744_v52  ;;  %v3054_v55 = vadd.f32 %v9921_v13, %v3053_v53 }
 0x273   : > { %2282 = vst.msk [vmem:[#allocation7 + $0x138] sm:$0xff] %vm2242_vm5, %v10046_v15  ;;  %v2730_v57 = vld [vmem:[#allocation7 + $0x130] sm:$0xff] }
 0x274   : > { %vm3193_vm9 = vcmp.ge.f32.partialorder %v3054_v55, 0.0  ;;  %8393 = vmatmul.msk.f32.gmra.mxu0 %vm2761_vm7, %v2730_v57  ;;  %v3257_v63 = vmul.f32 0.01, %v3054_v55  ;;  %v3448_v29 = vld [vmem:[#allocation12 + $0xc0] ss:$2 sm:$0xff]  ;;  %1133 = vst.msk [vmem:[#allocation7 + $0x168] sm:$0xff] %vm954_vm0, %v1069_v49 }
 0x275   : > { %v3729_v6 = vld [vmem:[#allocation3 + $0x60] sm:$0xff]  ;;  %1018 = vst.msk [vmem:[#allocation2 + $0x1da] sm:$0xff] %vm954_vm0, %v948_v50 }
 0x276   : > { %1765 = vrot.lane.b32.xlu0 %v1587_v58, %s9108_s28  ;;  %v3321_v0 = vsel %vm3193_vm9, %v3054_v55, %v3257_v63  ;;  %v3512_v9 = vld [vmem:[#allocation12 + $0xc1] ss:$2 sm:$0xff]  ;;  %3761 = vst.msk [vmem:[#allocation8 + $0x60] sm:$0xff] %vm3359_vm8, %v3729_v6  ;;  %v1070_v63 = vld [vmem:[#allocation2 + $0x170] sm:$0xff] }
 0x277   : > { %2150 = vrot.lane.b32.xlu1 %v1972_v56, %s9107_s4  ;;  %3386 = vst.msk [vmem:[#allocation12 + $0xd0] sm:$0xff] %vm3359_vm8, %v3321_v0  ;;  %v3627_v12 = vmax.f32 %v3448_v29, %v3512_v9  ;;  %v2360_v53 = vld [vmem:[#allocation2 + $0x1bc] sm:$0xff] }
 0x278   : > { %2535 = vrot.lane.b32.xlu2 %v2357_v60, %s9109_s29  ;;  %v2514_v2 = vpop.permute.xlu0 %2513  ;;  %v1071_v57 = vld [vmem:[#allocation2 + $0x178] sm:$0xff]  ;;  %1134 = vst.msk [vmem:[#allocation7 + $0x170] sm:$0xff] %vm954_vm0, %v1070_v63 }
 0x279   : > { %v1361_v3 = vpop.permute.xlu1 %1360  ;;  %2667 = vst.msk [vmem:[#allocation7 + $0x138] sm:$0xff] %vm2627_vm6, %v2514_v2  ;;  %v1206_v0 = vld [vmem:[#allocation2 + $0x1b5] sm:$0xff] }
 0x27a   : > { %1513 = vst.msk [vmem:[#allocation7 + $0x140] sm:$0xff] %vm1472_vm2, %v1361_v3  ;;  %v10099_v4 = vpop.permute.xlu2 %2134  ;;  %v1591_v2 = vld [vmem:[#allocation2 + $0x1ba] sm:$0xff] }
 0x27b   : > { %1898 = vst.msk [vmem:[#allocation7 + $0x140] sm:$0xff] %vm1857_vm3, %v10058_v27  ;;  %v1976_v3 = vld [vmem:[#allocation2 + $0x1bf] sm:$0xff] }
 0x27c   : > { %1135 = vst.msk [vmem:[#allocation7 + $0x178] sm:$0xff] %vm954_vm0, %v1071_v57 }
 0x27e   : > { %1382 = vrot.lane.b32.xlu0 %v1203_v8, %s9106_s25  ;;  %v3056_v11 = vpop.f32.mrf.mxu0  ;;  %v3576_v14 = vld [vmem:[#allocation12 + $0xc2] ss:$2 sm:$0xff]  ;;  %v949_v8 = vld [vmem:[%s9367_s26 + $0x1d8] sm:$0xff] }
 0x27f   : > { %1767 = vrot.lane.b32.xlu1 %v1588_v7, %s9108_s28  ;;  %v3057_v15 = vadd.f32 %v9921_v13, %v3056_v11  ;;  %v3659_v21 = vmax.f32 %v3627_v12, %v3576_v14  ;;  %v2361_v14 = vld [vmem:[#allocation2 + $0x1c4] sm:$0xff]  ;;  %1019 = vst.msk [vmem:[#allocation2 + $0x1e2] sm:$0xff] %vm954_vm0, %v949_v8  ;;  %v1210_v8 = vld [vmem:[#allocation2 + $0x1d5] sm:$0xff] }
 0x280   : > { %2152 = vrot.lane.b32.xlu2 %v1973_v10, %s9107_s4  ;;  %v2131_v16 = vpop.permute.xlu0 %2130  ;;  %v2731_v17 = vld [vmem:[#allocation7 + $0x138] sm:$0xff] }
 0x281   : > { %vm3194_vm10 = vcmp.ge.f32.partialorder %v3057_v15, 0.0  ;;  %v3258_v19 = vmul.f32 0.01, %v3057_v15  ;;  %v2516_v20 = vpop.permute.xlu1 %2515  ;;  %2283 = vst.msk [vmem:[#allocation7 + $0x140] sm:$0xff] %vm2242_vm5, %v2131_v16  ;;  %8394 = vmatmul.msk.f32.gmra.mxu0 %vm2761_vm7, %v2731_v17  ;;  %v1592_v16 = vld [vmem:[#allocation2 + $0x1c2] sm:$0xff] }
 0x282   : > { %v10112_v22 = vpop.permute.xlu2 %1751  ;;  %2668 = vst.msk [vmem:[#allocation7 + $0x140] sm:$0xff] %vm2627_vm6, %v2516_v20 }
 0x283   : > { %v3322_v23 = vsel %vm3194_vm10, %v3057_v15, %v3258_v19  ;;  %3696 = vst.msk [vmem:[#allocation3 + $0x6a] sm:$0xff] %vm3359_vm8, %v3659_v21  ;;  %v1207_v15 = vld [vmem:[#allocation2 + $0x1bd] sm:$0xff] }
 0x284   : > { %3387 = vst.msk [vmem:[#allocation12 + $0xd8] sm:$0xff] %vm3359_vm8, %v3322_v23 }
 0x286   : > { %2537 = vrot.lane.b32.xlu0 %v2358_v24, %s9109_s29 }
 0x287   : > { %1384 = vrot.lane.b32.xlu1 %v1204_v25, %s9106_s25  ;;  %v3059_v27 = vpop.f32.mrf.mxu0 }
 0x288   : > { %1769 = vrot.lane.b32.xlu2 %v1589_v26, %s9108_s28  ;;  %v3060_v28 = vadd.f32 %v9921_v13, %v3059_v27  ;;  %v1748_v30 = vpop.permute.xlu0 %1747 }
 0x289   : > { %v2133_v31 = vpop.permute.xlu1 %2132  ;;  %1899 = vst.msk [vmem:[#allocation7 + $0x148] sm:$0xff] %vm1857_vm3, %v1748_v30  ;;  %v2732_v32 = vld [vmem:[#allocation7 + $0x140] sm:$0xff] }
 0x28a   : > { %vm3195_vm11 = vcmp.ge.f32.partialorder %v3060_v28, 0.0  ;;  %v3259_v33 = vmul.f32 0.01, %v3060_v28  ;;  %v1369_v34 = vpop.permute.xlu2 %1368  ;;  %2284 = vst.msk [vmem:[#allocation7 + $0x148] sm:$0xff] %vm2242_vm5, %v2133_v31  ;;  %8395 = vmatmul.msk.f32.gmra.mxu0 %vm2761_vm7, %v2732_v32  ;;  %v3730_v40 = vld [vmem:[#allocation3 + $0x68] sm:$0xff]  ;;  %v950_v30 = vld [vmem:[%s9367_s26 + $0x1e0] sm:$0xff] }
 0x28b   : > { %1517 = vst.msk [vmem:[#allocation7 + $0x160] sm:$0xff] %vm1472_vm2, %v1369_v34  ;;  %v3450_v41 = vld [vmem:[#allocation12 + $0xd0] ss:$2 sm:$0xff]  ;;  %v3514_v42 = vld [vmem:[#allocation12 + $0xd1] ss:$2 sm:$0xff] }
 0x28c   : > { %v3323_v37 = vsel %vm3195_vm11, %v3060_v28, %v3259_v33  ;;  %2669 = vst.msk [vmem:[#allocation7 + $0x148] sm:$0xff] %vm2627_vm6, %v10082_v54  ;;  %v3628_v51 = vmax.f32 %v3450_v41, %v3514_v42  ;;  %v1590_v54 = vld [vmem:[#allocation2 + $0x1b2] sm:$0xff]  ;;  %v1977_v28 = vld [vmem:[#allocation2 + $0x1c7] sm:$0xff] }
 0x28d   : > { %3388 = vst.msk [vmem:[#allocation12 + $0xe0] sm:$0xff] %vm3359_vm8, %v3323_v37  ;;  %v2362_v32 = vld [vmem:[#allocation2 + $0x1cc] sm:$0xff] }
 0x28e   : > { %2154 = vrot.lane.b32.xlu0 %v1974_v35, %s9107_s4  ;;  %3762 = vst.msk [vmem:[#allocation8 + $0x68] sm:$0xff] %vm3359_vm8, %v3730_v40  ;;  %v1208_v33 = vld [vmem:[#allocation2 + $0x1c5] sm:$0xff]  ;;  %v1978_v42 = vld [vmem:[#allocation2 + $0x1cf] sm:$0xff] }
 0x28f   : > { %2539 = vrot.lane.b32.xlu1 %v2359_v38, %s9109_s29  ;;  %1020 = vst.msk [vmem:[#allocation2 + $0x1ea] sm:$0xff] %vm954_vm0, %v950_v30  ;;  %v1593_v41 = vld [vmem:[#allocation2 + $0x1ca] sm:$0xff] }
 0x290   : > { %1386 = vrot.lane.b32.xlu2 %v1205_v39, %s9106_s25  ;;  %v1365_v43 = vpop.permute.xlu0 %1364 }
 0x291   : > { %v1750_v44 = vpop.permute.xlu1 %1749  ;;  %1515 = vst.msk [vmem:[#allocation7 + $0x150] sm:$0xff] %vm1472_vm2, %v1365_v43  ;;  %v3062_v45 = vpop.f32.mrf.mxu0  ;;  %v2363_v43 = vld [vmem:[#allocation2 + $0x1d4] sm:$0xff] }
 0x292   : > { %v10136_v46 = vpop.permute.xlu2 %2523  ;;  %1900 = vst.msk [vmem:[#allocation7 + $0x150] sm:$0xff] %vm1857_vm3, %v1750_v44  ;;  %v3063_v47 = vadd.f32 %v9921_v13, %v3062_v45  ;;  %v1074_v44 = vld [vmem:[#allocation2 + $0x190] sm:$0xff] }
 0x293   : > { %2285 = vst.msk [vmem:[#allocation7 + $0x150] sm:$0xff] %vm2242_vm5, %v10099_v4  ;;  %v2733_v52 = vld [vmem:[#allocation7 + $0x148] sm:$0xff] }
 0x294   : > { %v3578_v55 = vld [vmem:[#allocation12 + $0xd2] ss:$2 sm:$0xff]  ;;  %vm3196_vm12 = vcmp.ge.f32.partialorder %v3063_v47, 0.0  ;;  %v3260_v56 = vmul.f32 0.01, %v3063_v47  ;;  %8396 = vmatmul.msk.f32.gmra.mxu0 %vm2761_vm7, %v2733_v52  ;;  %1138 = vst.msk [vmem:[#allocation7 + $0x190] sm:$0xff] %vm954_vm0, %v1074_v44 }
 0x295   : > { %v3660_v58 = vmax.f32 %v3628_v51, %v3578_v55  ;;  %v1594_v51 = vld [vmem:[#allocation2 + $0x1d2] sm:$0xff] }
 0x296   : > { %v3324_v59 = vsel %vm3196_vm12, %v3063_v47, %v3260_v56  ;;  %1771 = vrot.lane.b32.xlu0 %v1590_v54, %s9108_s28  ;;  %v1979_v52 = vld [vmem:[#allocation2 + $0x1d7] sm:$0xff]  ;;  %v1073_v56 = vld [vmem:[#allocation2 + $0x188] sm:$0xff] }
 0x297   : > { %3389 = vst.msk [vmem:[#allocation12 + $0xe8] sm:$0xff] %vm3359_vm8, %v3324_v59  ;;  %2156 = vrot.lane.b32.xlu1 %v1975_v48, %s9107_s4 }
 0x298   : > { %2541 = vrot.lane.b32.xlu2 %v2360_v53, %s9109_s29  ;;  %v2520_v60 = vpop.permute.xlu0 %2519  ;;  %3697 = vst.msk [vmem:[#allocation3 + $0x72] sm:$0xff] %vm3359_vm8, %v3660_v58  ;;  %v1209_v53 = vld [vmem:[#allocation2 + $0x1cd] sm:$0xff] }
 0x299   : > { %v1367_v61 = vpop.permute.xlu1 %1366  ;;  %2670 = vst.msk [vmem:[#allocation7 + $0x150] sm:$0xff] %vm2627_vm6, %v2520_v60  ;;  %v10214_v60 = vld [vmem:[#allocation21] ss:$0 sm:$0xff] }
 0x29a   : > { %1516 = vst.msk [vmem:[#allocation7 + $0x158] sm:$0xff] %vm1472_vm2, %v1367_v61  ;;  %v10154_v62 = vpop.permute.xlu2 %2140 }
 0x29b   : > { %1901 = vst.msk [vmem:[#allocation7 + $0x158] sm:$0xff] %vm1857_vm3, %v10112_v22 }
 0x29c   : > { %1137 = vst.msk [vmem:[#allocation7 + $0x188] sm:$0xff] %vm954_vm0, %v1073_v56 }
 0x29e   : > { %1388 = vrot.lane.b32.xlu0 %v1206_v0, %s9106_s25  ;;  %v3065_v4 = vpop.f32.mrf.mxu0  ;;  %v3452_v17 = vld [vmem:[#allocation12 + $0xe0] ss:$2 sm:$0xff]  ;;  %v3516_v18 = vld [vmem:[#allocation12 + $0xe1] ss:$2 sm:$0xff] }
 0x29f   : > { %1773 = vrot.lane.b32.xlu1 %v1591_v2, %s9108_s28  ;;  %v3066_v5 = vadd.f32 %v9921_v13, %v3065_v4  ;;  %v3731_v11 = vld [vmem:[#allocation3 + $0x70] sm:$0xff]  ;;  %v3629_v24 = vmax.f32 %v3452_v17, %v3516_v18  ;;  %v1980_v17 = vld [vmem:[#allocation2 + $0x1df] sm:$0xff] }
 0x2a0   : > { %2158 = vrot.lane.b32.xlu2 %v1976_v3, %s9107_s4  ;;  %v2137_v6 = vpop.permute.xlu0 %2136  ;;  %v2734_v7 = vld [vmem:[#allocation7 + $0x150] sm:$0xff]  ;;  %3763 = vst.msk [vmem:[#allocation8 + $0x70] sm:$0xff] %vm3359_vm8, %v3731_v11 }
 0x2a1   : > { %vm3197_vm13 = vcmp.ge.f32.partialorder %v3066_v5, 0.0  ;;  %v3261_v29 = vmul.f32 0.01, %v3066_v5  ;;  %v2522_v9 = vpop.permute.xlu1 %2521  ;;  %2286 = vst.msk [vmem:[#allocation7 + $0x158] sm:$0xff] %vm2242_vm5, %v2137_v6  ;;  %8397 = vmatmul.msk.f32.gmra.mxu0 %vm2761_vm7, %v2734_v7  ;;  %v2364_v7 = vld [vmem:[#allocation2 + $0x1dc] sm:$0xff] }
 0x2a2   : > { %v10166_v10 = vpop.permute.xlu2 %1757  ;;  %2671 = vst.msk [vmem:[#allocation7 + $0x158] sm:$0xff] %vm2627_vm6, %v2522_v9 }
 0x2a3   : > { %v3325_v12 = vsel %vm3197_vm13, %v3066_v5, %v3261_v29  ;;  %v951_v5 = vld [vmem:[%s9367_s26 + $0x1e8] sm:$0xff] }
 0x2a4   : > { %3390 = vst.msk [vmem:[#allocation12 + $0xf0] sm:$0xff] %vm3359_vm8, %v3325_v12  ;;  %v1595_v29 = vld [vmem:[#allocation2 + $0x1da] sm:$0xff] }
 0x2a5   : > { %1021 = vst.msk [vmem:[#allocation2 + $0x1f2] sm:$0xff] %vm954_vm0, %v951_v5 }
 0x2a6   : > { %2543 = vrot.lane.b32.xlu0 %v2361_v14, %s9109_s29 }
 0x2a7   : > { %1390 = vrot.lane.b32.xlu1 %v1207_v15, %s9106_s25  ;;  %v3068_v19 = vpop.f32.mrf.mxu0 }
 0x2a8   : > { %1775 = vrot.lane.b32.xlu2 %v1592_v16, %s9108_s28  ;;  %v3069_v20 = vadd.f32 %v9921_v13, %v3068_v19  ;;  %v1754_v21 = vpop.permute.xlu0 %1753  ;;  %v2365_v19 = vld [vmem:[#allocation2 + $0x1e4] sm:$0xff] }
 0x2a9   : > { %v2139_v22 = vpop.permute.xlu1 %2138  ;;  %1902 = vst.msk [vmem:[#allocation7 + $0x160] sm:$0xff] %vm1857_vm3, %v1754_v21  ;;  %v2735_v23 = vld [vmem:[#allocation7 + $0x158] sm:$0xff]  ;;  %v3781_v21 = vld [vmem:[#allocation3 + $0x5] sm:$0xff] }
 0x2aa   : > { %vm3198_vm14 = vcmp.ge.f32.partialorder %v3069_v20, 0.0  ;;  %v3262_v25 = vmul.f32 0.01, %v3069_v20  ;;  %v1375_v26 = vpop.permute.xlu2 %1374  ;;  %2287 = vst.msk [vmem:[#allocation7 + $0x160] sm:$0xff] %vm2242_vm5, %v2139_v22  ;;  %8398 = vmatmul.msk.f32.gmra.mxu0 %vm2761_vm7, %v2735_v23 }
 0x2ab   : > { %v3580_v27 = vld [vmem:[#allocation12 + $0xe2] ss:$2 sm:$0xff]  ;;  %1520 = vst.msk [vmem:[#allocation7 + $0x178] sm:$0xff] %vm1472_vm2, %v1375_v26 }
 0x2ac   : > { %v3326_v31 = vsel %vm3198_vm14, %v3069_v20, %v3262_v25  ;;  %2672 = vst.msk [vmem:[#allocation7 + $0x160] sm:$0xff] %vm2627_vm6, %v10136_v46  ;;  %v3661_v34 = vmax.f32 %v3629_v24, %v3580_v27  ;;  %v1072_v46 = vld [vmem:[#allocation2 + $0x180] sm:$0xff]  ;;  %v2366_v56 = vld [vmem:[#allocation2 + $0x1ec] sm:$0xff] }
 0x2ad   : > { %3391 = vst.msk [vmem:[#allocation12 + $0xf8] sm:$0xff] %vm3359_vm8, %v3326_v31  ;;  %v3975_v31 = vld [vmem:[#allocation3 + $0xa] sm:$0xff] }
 0x2ae   : > { %2160 = vrot.lane.b32.xlu0 %v1977_v28, %s9107_s4  ;;  %3698 = vst.msk [vmem:[#allocation3 + $0x7a] sm:$0xff] %vm3359_vm8, %v3661_v34  ;;  %v1075_v34 = vld [vmem:[#allocation2 + $0x198] sm:$0xff] }
 0x2af   : > { %2545 = vrot.lane.b32.xlu1 %v2362_v32, %s9109_s29  ;;  %1136 = vst.msk [vmem:[#allocation7 + $0x180] sm:$0xff] %vm954_vm0, %v1072_v46  ;;  %v1981_v46 = vld [vmem:[#allocation2 + $0x1e7] sm:$0xff] }
 0x2b0   : > { %1392 = vrot.lane.b32.xlu2 %v1208_v33, %s9106_s25  ;;  %v1371_v35 = vpop.permute.xlu0 %1370  ;;  %v1211_v33 = vld [vmem:[#allocation2 + $0x1dd] sm:$0xff]  ;;  %1139 = vst.msk [vmem:[#allocation7 + $0x198] sm:$0xff] %vm954_vm0, %v1075_v34 }
 0x2b1   : > { %v1756_v36 = vpop.permute.xlu1 %1755  ;;  %1518 = vst.msk [vmem:[#allocation7 + $0x168] sm:$0xff] %vm1472_vm2, %v1371_v35  ;;  %v3071_v37 = vpop.f32.mrf.mxu0 }
 0x2b2   : > { %v10190_v38 = vpop.permute.xlu2 %2529  ;;  %1903 = vst.msk [vmem:[#allocation7 + $0x168] sm:$0xff] %vm1857_vm3, %v1756_v36  ;;  %v3072_v39 = vadd.f32 %v9921_v13, %v3071_v37  ;;  %v1077_v36 = vld [vmem:[#allocation2 + $0x1a8] sm:$0xff] }
 0x2b3   : > { %2288 = vst.msk [vmem:[#allocation7 + $0x168] sm:$0xff] %vm2242_vm5, %v10154_v62  ;;  %v2736_v40 = vld [vmem:[#allocation7 + $0x160] sm:$0xff]  ;;  %v952_v37 = vld [vmem:[%s9367_s26 + $0x1f0] sm:$0xff] }
 0x2b4   : > { %vm3199_vm15 = vcmp.ge.f32.partialorder %v3072_v39, 0.0  ;;  %8399 = vmatmul.msk.f32.gmra.mxu0 %vm2761_vm7, %v2736_v40  ;;  %v3263_v45 = vmul.f32 0.01, %v3072_v39  ;;  %v3454_v54 = vld [vmem:[#allocation12 + $0xf0] ss:$2 sm:$0xff]  ;;  %1141 = vst.msk [vmem:[#allocation7 + $0x1a8] sm:$0xff] %vm954_vm0, %v1077_v36 }
 0x2b5   : > { %v3732_v49 = vld [vmem:[#allocation3 + $0x78] sm:$0xff]  ;;  %v4169_v40 = vld [vmem:[#allocation3 + $0xf] sm:$0xff]  ;;  %1022 = vst.msk [vmem:[#allocation2 + $0x1fa] sm:$0xff] %vm954_vm0, %v952_v37  ;;  %v1079_v37 = vld [vmem:[#allocation2 + $0x1b8] sm:$0xff] }
 0x2b6   : > { %1777 = vrot.lane.b32.xlu0 %v1593_v41, %s9108_s28  ;;  %v3327_v13 = vsel %vm3199_vm15, %v3072_v39, %v3263_v45  ;;  %v3518_v55 = vld [vmem:[#allocation12 + $0xf1] ss:$2 sm:$0xff]  ;;  %3764 = vst.msk [vmem:[#allocation8 + $0x78] sm:$0xff] %vm3359_vm8, %v3732_v49 }
 0x2b7   : > { %2162 = vrot.lane.b32.xlu1 %v1978_v42, %s9107_s4  ;;  %3392 = vst.msk [vmem:[#allocation12 + $0x100] sm:$0xff] %vm3359_vm8, %v3327_v13  ;;  %v3630_v58 = vmax.f32 %v3454_v54, %v3518_v55  ;;  %v1596_v45 = vld [vmem:[#allocation2 + $0x1e2] sm:$0xff]  ;;  %v3783_v36 = vld [vmem:[#allocation3 + $0x15] sm:$0xff] }
 0x2b8   : > { %2547 = vrot.lane.b32.xlu2 %v2363_v43, %s9109_s29  ;;  %v2526_v47 = vpop.permute.xlu0 %2525  ;;  %v1076_v13 = vld [vmem:[#allocation2 + $0x1a0] sm:$0xff]  ;;  %1143 = vst.msk [vmem:[#allocation7 + $0x1b8] sm:$0xff] %vm954_vm0, %v1079_v37 }
 0x2b9   : > { %v1373_v48 = vpop.permute.xlu1 %1372  ;;  %2673 = vst.msk [vmem:[#allocation7 + $0x168] sm:$0xff] %vm2627_vm6, %v2526_v47 }
 0x2ba   : > { %1519 = vst.msk [vmem:[#allocation7 + $0x170] sm:$0xff] %vm1472_vm2, %v1373_v48  ;;  %v10205_v50 = vpop.permute.xlu2 %2146  ;;  %v4363_v48 = vld [vmem:[#allocation3 + $0x14] sm:$0xff] }
 0x2bb   : > { %1904 = vst.msk [vmem:[#allocation7 + $0x170] sm:$0xff] %vm1857_vm3, %v10166_v10 }
 0x2bc   : > { %1140 = vst.msk [vmem:[#allocation7 + $0x1a0] sm:$0xff] %vm954_vm0, %v1076_v13 }
 0x2be   : > { %1394 = vrot.lane.b32.xlu0 %v1209_v53, %s9106_s25  ;;  %v3074_v57 = vpop.f32.mrf.mxu0  ;;  %v3582_v59 = vld [vmem:[#allocation12 + $0xf2] ss:$2 sm:$0xff] }
 0x2bf   : > { %1779 = vrot.lane.b32.xlu1 %v1594_v51, %s9108_s28  ;;  %v3075_v61 = vadd.f32 %v10214_v60, %v3074_v57  ;;  %v3662_v3 = vmax.f32 %v3630_v58, %v3582_v59  ;;  %v3782_v58 = vld [vmem:[#allocation3 + $0xd] sm:$0xff] }
 0x2c0   : > { %2164 = vrot.lane.b32.xlu2 %v1979_v52, %s9107_s4  ;;  %v2143_v62 = vpop.permute.xlu0 %2142  ;;  %v2737_v63 = vld [vmem:[#allocation7 + $0x168] sm:$0xff]  ;;  %v3976_v59 = vld [vmem:[#allocation3 + $0x12] sm:$0xff] }
 0x2c1   : > { %vm3200_vm1 = vcmp.ge.f32.partialorder %v3075_v61, 0.0  ;;  %v3264_v0 = vmul.f32 0.01, %v3075_v61  ;;  %v2528_v2 = vpop.permute.xlu1 %2527  ;;  %2289 = vst.msk [vmem:[#allocation7 + $0x170] sm:$0xff] %vm2242_vm5, %v2143_v62  ;;  %8400 = vmatmul.msk.f32.gmra.mxu0 %vm2761_vm7, %v2737_v63 }
 0x2c2   : > { %v10219_v4 = vpop.permute.xlu2 %1763  ;;  %2674 = vst.msk [vmem:[#allocation7 + $0x170] sm:$0xff] %vm2627_vm6, %v2528_v2 }
 0x2c3   : > { %v3328_v6 = vsel %vm3200_vm1, %v3075_v61, %v3264_v0  ;;  %3699 = vst.msk [vmem:[#allocation3 + $0x82] sm:$0xff] %vm3359_vm8, %v3662_v3 }
 0x2c4   : > { %3393 = vst.msk [vmem:[#allocation12 + $0x108] sm:$0xff] %vm3359_vm8, %v3328_v6 }
 0x2c6   : > { %2549 = vrot.lane.b32.xlu0 %v2364_v7, %s9109_s29 }
 0x2c7   : > { %1396 = vrot.lane.b32.xlu1 %v1210_v8, %s9106_s25  ;;  %v3077_v9 = vpop.f32.mrf.mxu0 }
 0x2c8   : > { %1781 = vrot.lane.b32.xlu2 %v1595_v29, %s9108_s28  ;;  %v3078_v10 = vadd.f32 %v10214_v60, %v3077_v9  ;;  %v1760_v11 = vpop.permute.xlu0 %1759  ;;  %v1212_v29 = vld [vmem:[#allocation2 + $0x1e5] sm:$0xff]  ;;  %v953_v9 = vld [vmem:[%s9367_s26 + $0x1f8] sm:$0xff] }
 0x2c9   : > { %v2145_v12 = vpop.permute.xlu1 %2144  ;;  %1905 = vst.msk [vmem:[#allocation7 + $0x178] sm:$0xff] %vm1857_vm3, %v1760_v11  ;;  %v2738_v14 = vld [vmem:[#allocation7 + $0x170] sm:$0xff] }
 0x2ca   : > { %vm3201_vm4 = vcmp.ge.f32.partialorder %v3078_v10, 0.0  ;;  %v3265_v15 = vmul.f32 0.01, %v3078_v10  ;;  %v1381_v16 = vpop.permute.xlu2 %1380  ;;  %2290 = vst.msk [vmem:[#allocation7 + $0x178] sm:$0xff] %vm2242_vm5, %v2145_v12  ;;  %8401 = vmatmul.msk.f32.gmra.mxu0 %vm2761_vm7, %v2738_v14  ;;  %v3733_v20 = vld [vmem:[#allocation3 + $0x80] sm:$0xff]  ;;  %v1597_v11 = vld [vmem:[#allocation2 + $0x1ea] sm:$0xff] }
 0x2cb   : > { %1523 = vst.msk [vmem:[#allocation7 + $0x190] sm:$0xff] %vm1472_vm2, %v1381_v16  ;;  %v3456_v27 = vld [vmem:[#allocation12 + $0x100] ss:$2 sm:$0xff]  ;;  %v3520_v28 = vld [vmem:[#allocation12 + $0x101] ss:$2 sm:$0xff]  ;;  %v4170_v14 = vld [vmem:[#allocation3 + $0x17] sm:$0xff] }
 0x2cc   : > { %v3329_v18 = vsel %vm3201_vm4, %v3078_v10, %v3265_v15  ;;  %2675 = vst.msk [vmem:[#allocation7 + $0x178] sm:$0xff] %vm2627_vm6, %v10190_v38  ;;  %v3631_v38 = vmax.f32 %v3456_v27, %v3520_v28  ;;  %vm3941_vm4 = vcmask 130112  }
 0x2cd   : > { %3394 = vst.msk [vmem:[#allocation12 + $0x110] sm:$0xff] %vm3359_vm8, %v3329_v18 }
 0x2ce   : > { %2166 = vrot.lane.b32.xlu0 %v1980_v17, %s9107_s4  ;;  %3765 = vst.msk [vmem:[#allocation8 + $0x80] sm:$0xff] %vm3359_vm8, %v3733_v20 }
 0x2cf   : > { %2551 = vrot.lane.b32.xlu1 %v2365_v19, %s9109_s29  ;;  %1023 = vst.msk [vmem:[#allocation2 + $0x202] sm:$0xff] %vm954_vm0, %v953_v9 }
 0x2d0   : > { %3845 = vrot.lane.b32.xlu2 %v3781_v21, %s9110_s27  ;;  %v1377_v22 = vpop.permute.xlu0 %1376  ;;  %v1982_v21 = vld [vmem:[#allocation2 + $0x1ef] sm:$0xff] }
 0x2d1   : > { %v1762_v23 = vpop.permute.xlu1 %1761  ;;  %1521 = vst.msk [vmem:[#allocation7 + $0x180] sm:$0xff] %vm1472_vm2, %v1377_v22  ;;  %v3080_v24 = vpop.f32.mrf.mxu0  ;;  %v2367_v22 = vld [vmem:[#allocation2 + $0x1f4] sm:$0xff] }
 0x2d2   : > { %v10242_v25 = vpop.permute.xlu2 %2535  ;;  %1906 = vst.msk [vmem:[#allocation7 + $0x180] sm:$0xff] %vm1857_vm3, %v1762_v23  ;;  %v3081_v26 = vadd.f32 %v10214_v60, %v3080_v24  ;;  %v1080_v23 = vld [vmem:[#allocation2 + $0x1c0] sm:$0xff] }
 0x2d3   : > { %2291 = vst.msk [vmem:[#allocation7 + $0x180] sm:$0xff] %vm2242_vm5, %v10205_v50  ;;  %v2739_v30 = vld [vmem:[#allocation7 + $0x178] sm:$0xff] }
 0x2d4   : > { %vm3202_vm9 = vcmp.ge.f32.partialorder %v3081_v26, 0.0  ;;  %v3266_v32 = vmul.f32 0.01, %v3081_v26  ;;  %8402 = vmatmul.msk.f32.gmra.mxu0 %vm2761_vm7, %v2739_v30  ;;  %v3584_v35 = vld [vmem:[#allocation12 + $0x102] ss:$2 sm:$0xff]  ;;  %1144 = vst.msk [vmem:[#allocation7 + $0x1c0] sm:$0xff] %vm954_vm0, %v1080_v23 }
 0x2d5   : > { %v3663_v42 = vmax.f32 %v3631_v38, %v3584_v35  ;;  %v1213_v35 = vld [vmem:[#allocation2 + $0x1ed] sm:$0xff]  ;;  %v1599_v23 = vld [vmem:[#allocation2 + $0x1fa] sm:$0xff] }
 0x2d6   : > { %v3330_v39 = vsel %vm3202_vm9, %v3081_v26, %v3266_v32  ;;  %4039 = vrot.lane.b32.xlu0 %v3975_v31, %s9111_s3  ;;  %v1078_v26 = vld [vmem:[#allocation2 + $0x1b0] sm:$0xff]  ;;  %v2369_v37 = vld [vmem:[#allocation2 + $0x204] sm:$0xff] }
 0x2d7   : > { %3395 = vst.msk [vmem:[#allocation12 + $0x118] sm:$0xff] %vm3359_vm8, %v3330_v39  ;;  %1398 = vrot.lane.b32.xlu1 %v1211_v33, %s9106_s25 }
 0x2d8   : > { %4233 = vrot.lane.b32.xlu2 %v4169_v40, %s9112_s0  ;;  %v2532_v41 = vpop.permute.xlu0 %2531  ;;  %3700 = vst.msk [vmem:[#allocation3 + $0x8a] sm:$0xff] %vm3359_vm8, %v3663_v42  ;;  %v3977_v40 = vld [vmem:[#allocation3 + $0x1a] sm:$0xff] }
 0x2d9   : > { %v1379_v43 = vpop.permute.xlu1 %1378  ;;  %2676 = vst.msk [vmem:[#allocation7 + $0x180] sm:$0xff] %vm2627_vm6, %v2532_v41 }
 0x2da   : > { %1522 = vst.msk [vmem:[#allocation7 + $0x188] sm:$0xff] %vm1472_vm2, %v1379_v43  ;;  %v10259_v44 = vpop.permute.xlu2 %2152 }
 0x2db   : > { %1907 = vst.msk [vmem:[#allocation7 + $0x188] sm:$0xff] %vm1857_vm3, %v10219_v4 }
 0x2dc   : > { %1142 = vst.msk [vmem:[#allocation7 + $0x1b0] sm:$0xff] %vm954_vm0, %v1078_v26 }
 0x2de   : > { %v3083_v47 = vpop.f32.mrf.mxu0  ;;  %1783 = vrot.lane.b32.xlu0 %v1596_v45, %s9108_s28  ;;  %v3458_v61 = vld [vmem:[#allocation12 + $0x110] ss:$2 sm:$0xff]  ;;  %v3522_v62 = vld [vmem:[#allocation12 + $0x111] ss:$2 sm:$0xff] }
 0x2df   : > { %v3084_v49 = vadd.f32 %v10214_v60, %v3083_v47  ;;  %4427 = vrot.lane.b32.xlu1 %v4363_v48, %s9113_s5  ;;  %v3734_v57 = vld [vmem:[#allocation3 + $0x88] sm:$0xff]  ;;  %v3632_v5 = vmax.f32 %v3458_v61, %v3522_v62 }
 0x2e0   : > { %2168 = vrot.lane.b32.xlu2 %v1981_v46, %s9107_s4  ;;  %v2149_v50 = vpop.permute.xlu0 %2148  ;;  %v2740_v51 = vld [vmem:[#allocation7 + $0x180] sm:$0xff]  ;;  %3766 = vst.msk [vmem:[#allocation8 + $0x88] sm:$0xff] %vm3359_vm8, %v3734_v57 }
 0x2e1   : > { %vm3203_vm10 = vcmp.ge.f32.partialorder %v3084_v49, 0.0  ;;  %v3267_v52 = vmul.f32 0.01, %v3084_v49  ;;  %v2534_v53 = vpop.permute.xlu1 %2533  ;;  %2292 = vst.msk [vmem:[#allocation7 + $0x188] sm:$0xff] %vm2242_vm5, %v2149_v50  ;;  %8403 = vmatmul.msk.f32.gmra.mxu0 %vm2761_vm7, %v2740_v51  ;;  %v4171_v50 = vld [vmem:[#allocation3 + $0x1f] sm:$0xff] }
 0x2e2   : > { %v10271_v54 = vpop.permute.xlu2 %1769  ;;  %2677 = vst.msk [vmem:[#allocation7 + $0x188] sm:$0xff] %vm2627_vm6, %v2534_v53  ;;  %v4365_v51 = vld [vmem:[#allocation3 + $0x24] sm:$0xff] }
 0x2e3   : > { %v3331_v55 = vsel %vm3203_vm10, %v3084_v49, %v3267_v52  ;;  %v1598_v49 = vld [vmem:[#allocation2 + $0x1f2] sm:$0xff]  ;;  %v2368_v62 = vld [vmem:[#allocation2 + $0x1fc] sm:$0xff] }
 0x2e4   : > { %3396 = vst.msk [vmem:[#allocation12 + $0x120] sm:$0xff] %vm3359_vm8, %v3331_v55 }
 0x2e6   : > { %2553 = vrot.lane.b32.xlu0 %v2366_v56, %s9109_s29 }
 0x2e7   : > { %3847 = vrot.lane.b32.xlu1 %v3782_v58, %s9110_s27  ;;  %v3086_v63 = vpop.f32.mrf.mxu0 }
 0x2e8   : > { %4041 = vrot.lane.b32.xlu2 %v3976_v59, %s9111_s3  ;;  %v3087_v0 = vadd.f32 %v10214_v60, %v3086_v63  ;;  %v1766_v2 = vpop.permute.xlu0 %1765  ;;  %v1983_v59 = vld [vmem:[#allocation2 + $0x1f7] sm:$0xff] }
 0x2e9   : > { %v2151_v3 = vpop.permute.xlu1 %2150  ;;  %1908 = vst.msk [vmem:[#allocation7 + $0x190] sm:$0xff] %vm1857_vm3, %v1766_v2  ;;  %v2741_v4 = vld [vmem:[#allocation7 + $0x188] sm:$0xff]  ;;  %v3784_v2 = vld [vmem:[#allocation3 + $0x1d] sm:$0xff] }
 0x2ea   : > { %vm3204_vm11 = vcmp.ge.f32.partialorder %v3087_v0, 0.0  ;;  %v3268_v6 = vmul.f32 0.01, %v3087_v0  ;;  %v1387_v7 = vpop.permute.xlu2 %1386  ;;  %2293 = vst.msk [vmem:[#allocation7 + $0x190] sm:$0xff] %vm2242_vm5, %v2151_v3  ;;  %8404 = vmatmul.msk.f32.gmra.mxu0 %vm2761_vm7, %v2741_v4 }
 0x2eb   : > { %v3586_v8 = vld [vmem:[#allocation12 + $0x112] ss:$2 sm:$0xff]  ;;  %1526 = vst.msk [vmem:[#allocation7 + $0x1a8] sm:$0xff] %vm1472_vm2, %v1387_v7 }
 0x2ec   : > { %v3332_v10 = vsel %vm3204_vm11, %v3087_v0, %v3268_v6  ;;  %2678 = vst.msk [vmem:[#allocation7 + $0x190] sm:$0xff] %vm2627_vm6, %v10242_v25  ;;  %v3664_v12 = vmax.f32 %v3632_v5, %v3586_v8  ;;  %v4364_v25 = vld [vmem:[#allocation3 + $0x1c] sm:$0xff] }
 0x2ed   : > { %3397 = vst.msk [vmem:[#allocation12 + $0x128] sm:$0xff] %vm3359_vm8, %v3332_v10  ;;  %v3717_v0 = vld [vmem:[#allocation3] sm:$0xff] }
 0x2ee   : > { %1400 = vrot.lane.b32.xlu0 %v1212_v29, %s9106_s25  ;;  %3701 = vst.msk [vmem:[#allocation3 + $0x92] sm:$0xff] %vm3359_vm8, %v3664_v12 }
 0x2ef   : > { %4235 = vrot.lane.b32.xlu1 %v4170_v14, %s9112_s0  ;;  %3749 = vst.msk [vmem:[#allocation8] sm:$0xff] %vm3359_vm8, %v3717_v0  ;;  %v1214_v14 = vld [vmem:[#allocation2 + $0x1f5] sm:$0xff]  ;;  %v2370_v0 = vld [vmem:[#allocation2 + $0x20c] sm:$0xff] }
 0x2f0   : > { %1785 = vrot.lane.b32.xlu2 %v1597_v11, %s9108_s28  ;;  %v1383_v15 = vpop.permute.xlu0 %1382 }
 0x2f1   : > { %v1768_v16 = vpop.permute.xlu1 %1767  ;;  %1524 = vst.msk [vmem:[#allocation7 + $0x198] sm:$0xff] %vm1472_vm2, %v1383_v15  ;;  %v3089_v17 = vpop.f32.mrf.mxu0  ;;  %v3978_v15 = vld [vmem:[#allocation3 + $0x22] sm:$0xff] }
 0x2f2   : > { %v10294_v18 = vpop.permute.xlu2 %2541  ;;  %1909 = vst.msk [vmem:[#allocation7 + $0x198] sm:$0xff] %vm1857_vm3, %v1768_v16  ;;  %v3090_v19 = vadd.f32 %v10214_v60, %v3089_v17  ;;  %v1081_v16 = vld [vmem:[#allocation2 + $0x1c8] sm:$0xff] }
 0x2f3   : > { %2294 = vst.msk [vmem:[#allocation7 + $0x198] sm:$0xff] %vm2242_vm5, %v10259_v44  ;;  %v2742_v20 = vld [vmem:[#allocation7 + $0x190] sm:$0xff] }
 0x2f4   : > { %vm3205_vm12 = vcmp.ge.f32.partialorder %v3090_v19, 0.0  ;;  %8405 = vmatmul.msk.f32.gmra.mxu0 %vm2761_vm7, %v2742_v20  ;;  %v3269_v24 = vmul.f32 0.01, %v3090_v19  ;;  %v3460_v33 = vld [vmem:[#allocation12 + $0x120] ss:$2 sm:$0xff]  ;;  %1145 = vst.msk [vmem:[#allocation7 + $0x1c8] sm:$0xff] %vm954_vm0, %v1081_v16 }
 0x2f5   : > { %v3735_v31 = vld [vmem:[#allocation3 + $0x90] sm:$0xff]  ;;  %v3524_v34 = vld [vmem:[#allocation12 + $0x121] ss:$2 sm:$0xff] }
 0x2f6   : > { %4429 = vrot.lane.b32.xlu0 %v4364_v25, %s9113_s5  ;;  %v3333_v27 = vsel %vm3205_vm12, %v3090_v19, %v3269_v24  ;;  %3767 = vst.msk [vmem:[#allocation8 + $0x90] sm:$0xff] %vm3359_vm8, %v3735_v31  ;;  %v3633_v38 = vmax.f32 %v3460_v33, %v3524_v34  ;;  %v4172_v19 = vld [vmem:[#allocation3 + $0x27] sm:$0xff]  ;;  %v1082_v25 = vld [vmem:[#allocation2 + $0x1d0] sm:$0xff]  ;;  %vm4135_vm12 = vcmask 195712  }
 0x2f7   : > { %2170 = vrot.lane.b32.xlu1 %v1982_v21, %s9107_s4  ;;  %3398 = vst.msk [vmem:[#allocation12 + $0x130] sm:$0xff] %vm3359_vm8, %v3333_v27  ;;  %v1984_v24 = vld [vmem:[#allocation2 + $0x1ff] sm:$0xff] }
 0x2f8   : > { %2555 = vrot.lane.b32.xlu2 %v2367_v22, %s9109_s29  ;;  %v2538_v28 = vpop.permute.xlu0 %2537  ;;  %v4366_v27 = vld [vmem:[#allocation3 + $0x2c] sm:$0xff]  ;;  %1146 = vst.msk [vmem:[#allocation7 + $0x1d0] sm:$0xff] %vm954_vm0, %v1082_v25 }
 0x2f9   : > { %v1385_v30 = vpop.permute.xlu1 %1384  ;;  %2679 = vst.msk [vmem:[#allocation7 + $0x198] sm:$0xff] %vm2627_vm6, %v2538_v28 }
 0x2fa   : > { %1525 = vst.msk [vmem:[#allocation7 + $0x1a0] sm:$0xff] %vm1472_vm2, %v1385_v30  ;;  %v10309_v32 = vpop.permute.xlu2 %2158 }
 0x2fb   : > { %1910 = vst.msk [vmem:[#allocation7 + $0x1a0] sm:$0xff] %vm1857_vm3, %v10271_v54 }
 0x2fe   : > { %v3092_v39 = vpop.f32.mrf.mxu0  ;;  %3849 = vrot.lane.b32.xlu0 %v3783_v36, %s9110_s27  ;;  %v3588_v41 = vld [vmem:[#allocation12 + $0x122] ss:$2 sm:$0xff] }
 0x2ff   : > { %v3093_v42 = vadd.f32 %v10214_v60, %v3092_v39  ;;  %4043 = vrot.lane.b32.xlu1 %v3977_v40, %s9111_s3  ;;  %v3665_v45 = vmax.f32 %v3633_v38, %v3588_v41  ;;  %v3785_v38 = vld [vmem:[#allocation3 + $0x25] sm:$0xff] }
 0x300   : > { %1402 = vrot.lane.b32.xlu2 %v1213_v35, %s9106_s25  ;;  %v2155_v43 = vpop.permute.xlu0 %2154  ;;  %v2743_v44 = vld [vmem:[#allocation7 + $0x198] sm:$0xff]  ;;  %v3979_v39 = vld [vmem:[#allocation3 + $0x2a] sm:$0xff] }
 0x301   : > { %vm3206_vm13 = vcmp.ge.f32.partialorder %v3093_v42, 0.0  ;;  %v3270_v46 = vmul.f32 0.01, %v3093_v42  ;;  %v2540_v13 = vpop.permute.xlu1 %2539  ;;  %2295 = vst.msk [vmem:[#allocation7 + $0x1a0] sm:$0xff] %vm2242_vm5, %v2155_v43  ;;  %8406 = vmatmul.msk.f32.gmra.mxu0 %vm2761_vm7, %v2743_v44 }
 0x302   : > { %v10321_v47 = vpop.permute.xlu2 %1775  ;;  %2680 = vst.msk [vmem:[#allocation7 + $0x1a0] sm:$0xff] %vm2627_vm6, %v2540_v13 }
 0x303   : > { %v3334_v48 = vsel %vm3206_vm13, %v3093_v42, %v3270_v46  ;;  %3702 = vst.msk [vmem:[#allocation3 + $0x9a] sm:$0xff] %vm3359_vm8, %v3665_v45  ;;  %vm4329_vm13 = vcmask 261312  }
 0x304   : > { %3399 = vst.msk [vmem:[#allocation12 + $0x138] sm:$0xff] %vm3359_vm8, %v3334_v48 }
 0x306   : > { %4237 = vrot.lane.b32.xlu0 %v4171_v50, %s9112_s0  ;;  %v1215_v50 = vld [vmem:[#allocation2 + $0x1fd] sm:$0xff] }
 0x307   : > { %1787 = vrot.lane.b32.xlu1 %v1598_v49, %s9108_s28  ;;  %v3095_v52 = vpop.f32.mrf.mxu0 }
 0x308   : > { %4431 = vrot.lane.b32.xlu2 %v4365_v51, %s9113_s5  ;;  %v3096_v53 = vadd.f32 %v10214_v60, %v3095_v52  ;;  %v1772_v54 = vpop.permute.xlu0 %1771  ;;  %v1600_v52 = vld [vmem:[#allocation2 + $0x202] sm:$0xff] }
 0x309   : > { %v2157_v55 = vpop.permute.xlu1 %2156  ;;  %1911 = vst.msk [vmem:[#allocation7 + $0x1a8] sm:$0xff] %vm1857_vm3, %v1772_v54  ;;  %v2744_v56 = vld [vmem:[#allocation7 + $0x1a0] sm:$0xff] }
 0x30a   : > { %vm3207_vm14 = vcmp.ge.f32.partialorder %v3096_v53, 0.0  ;;  %v3271_v57 = vmul.f32 0.01, %v3096_v53  ;;  %v1393_v58 = vpop.permute.xlu2 %1392  ;;  %2296 = vst.msk [vmem:[#allocation7 + $0x1a8] sm:$0xff] %vm2242_vm5, %v2157_v55  ;;  %8407 = vmatmul.msk.f32.gmra.mxu0 %vm2761_vm7, %v2744_v56  ;;  %v3736_v63 = vld [vmem:[#allocation3 + $0x98] sm:$0xff]  ;;  %v1083_v54 = vld [vmem:[#allocation2 + $0x1d8] sm:$0xff] }
 0x30b   : > { %1529 = vst.msk [vmem:[#allocation7 + $0x1c0] sm:$0xff] %vm1472_vm2, %v1393_v58  ;;  %v3462_v3 = vld [vmem:[#allocation12 + $0x130] ss:$2 sm:$0xff]  ;;  %v3526_v4 = vld [vmem:[#allocation12 + $0x131] ss:$2 sm:$0xff] }
 0x30c   : > { %v3335_v61 = vsel %vm3207_vm14, %v3096_v53, %v3271_v57  ;;  %2681 = vst.msk [vmem:[#allocation7 + $0x1a8] sm:$0xff] %vm2627_vm6, %v10294_v18  ;;  %v3634_v9 = vmax.f32 %v3462_v3, %v3526_v4  ;;  %v4173_v55 = vld [vmem:[#allocation3 + $0x2f] sm:$0xff]  ;;  %v4593_v4 = vld [vmem:[%s11696_s2 + $0x20] sm:$0xff] }
 0x30d   : > { %3400 = vst.msk [vmem:[#allocation12 + $0x140] sm:$0xff] %vm3359_vm8, %v3335_v61  ;;  %v4367_v3 = vld [vmem:[#allocation3 + $0x34] sm:$0xff]  ;;  %4706 = vmatpush.msra.mxu1 %v4593_v4  ;;  %v3789_v4 = vld [vmem:[#allocation3 + $0x45] sm:$0xff] }
 0x30e   : > { %2172 = vrot.lane.b32.xlu0 %v1983_v59, %s9107_s4  ;;  %3768 = vst.msk [vmem:[#allocation8 + $0x98] sm:$0xff] %vm3359_vm8, %v3736_v63  ;;  %v1985_v63 = vld [vmem:[#allocation2 + $0x207] sm:$0xff] }
 0x30f   : > { %2557 = vrot.lane.b32.xlu1 %v2368_v62, %s9109_s29  ;;  %1147 = vst.msk [vmem:[#allocation7 + $0x1d8] sm:$0xff] %vm954_vm0, %v1083_v54 }
 0x310   : > { %3851 = vrot.lane.b32.xlu2 %v3784_v2, %s9110_s27  ;;  %v1389_v5 = vpop.permute.xlu0 %1388 }
 0x311   : > { %v1774_v6 = vpop.permute.xlu1 %1773  ;;  %1527 = vst.msk [vmem:[#allocation7 + $0x1b0] sm:$0xff] %vm1472_vm2, %v1389_v5  ;;  %v3098_v7 = vpop.f32.mrf.mxu0 }
 0x312   : > { %v10343_v8 = vpop.permute.xlu2 %2547  ;;  %1912 = vst.msk [vmem:[#allocation7 + $0x1b0] sm:$0xff] %vm1857_vm3, %v1774_v6  ;;  %v3099_v29 = vadd.f32 %v10214_v60, %v3098_v7  ;;  %v4592_v6 = vld [vmem:[%s11696_s2 + $0x18] sm:$0xff] }
 0x313   : > { %2297 = vst.msk [vmem:[#allocation7 + $0x1b0] sm:$0xff] %vm2242_vm5, %v10309_v32  ;;  %v2745_v10 = vld [vmem:[#allocation7 + $0x1a8] sm:$0xff]  ;;  %4707 = vmatpush.msra.mxu1 %v4592_v6 }
 0x314   : > { %v3590_v11 = vld [vmem:[#allocation12 + $0x132] ss:$2 sm:$0xff]  ;;  %vm3208_vm15 = vcmp.ge.f32.partialorder %v3099_v29, 0.0  ;;  %v3272_v12 = vmul.f32 0.01, %v3099_v29  ;;  %8408 = vmatmul.msk.f32.gmra.mxu0 %vm2761_vm7, %v2745_v10  ;;  %v3983_v6 = vld [vmem:[#allocation3 + $0x4a] sm:$0xff] }
 0x315   : > { %v3666_v17 = vmax.f32 %v3634_v9, %v3590_v11 }
 0x316   : > { %v3336_v18 = vsel %vm3208_vm15, %v3099_v29, %v3272_v12  ;;  %4045 = vrot.lane.b32.xlu0 %v3978_v15, %s9111_s3  ;;  %v4591_v29 = vld [vmem:[%s11696_s2 + $0x10] sm:$0xff]  ;;  %vm4523_vm15 = vcmask 326912  }
 0x317   : > { %3401 = vst.msk [vmem:[#allocation12 + $0x148] sm:$0xff] %vm3359_vm8, %v3336_v18  ;;  %1404 = vrot.lane.b32.xlu1 %v1214_v14, %s9106_s25  ;;  %4708 = vmatpush.msra.mxu1 %v4591_v29  ;;  %v4590_v14 = vld [vmem:[%s11696_s2 + $0x8] sm:$0xff]  ;;  %v3980_v18 = vld [vmem:[#allocation3 + $0x32] sm:$0xff] }
 0x318   : > { %4239 = vrot.lane.b32.xlu2 %v4172_v19, %s9112_s0  ;;  %v2544_v20 = vpop.permute.xlu0 %2543  ;;  %3703 = vst.msk [vmem:[#allocation3 + $0xa2] sm:$0xff] %vm3359_vm8, %v3666_v17  ;;  %v3786_v15 = vld [vmem:[#allocation3 + $0x2d] sm:$0xff]  ;;  %v4174_v19 = vld [vmem:[#allocation3 + $0x37] sm:$0xff] }
 0x319   : > { %v1391_v21 = vpop.permute.xlu1 %1390  ;;  %2682 = vst.msk [vmem:[#allocation7 + $0x1b0] sm:$0xff] %vm2627_vm6, %v2544_v20  ;;  %4709 = vmatpush.msra.mxu1 %v4590_v14  ;;  %v4589_v20 = vld [vmem:[%s11696_s2] sm:$0xff] }
 0x31a   : > { %1528 = vst.msk [vmem:[#allocation7 + $0x1b8] sm:$0xff] %vm1472_vm2, %v1391_v21  ;;  %v10358_v22 = vpop.permute.xlu2 %2164 }
 0x31b   : > { %1913 = vst.msk [vmem:[#allocation7 + $0x1b8] sm:$0xff] %vm1857_vm3, %v10321_v47  ;;  %4710 = vmatpush.msra.mxu1 %v4589_v20 }
 0x31e   : > { %v3101_v26 = vpop.f32.mrf.mxu0  ;;  %1789 = vrot.lane.b32.xlu0 %v1599_v23, %s9108_s28  ;;  %v3464_v40 = vld [vmem:[#allocation12 + $0x140] ss:$2 sm:$0xff]  ;;  %v3528_v41 = vld [vmem:[#allocation12 + $0x141] ss:$2 sm:$0xff]  ;;  %v1085_v23 = vld [vmem:[#allocation2 + $0x1e8] sm:$0xff] }
 0x31f   : > { %v3102_v28 = vadd.f32 %v10214_v60, %v3101_v26  ;;  %4433 = vrot.lane.b32.xlu1 %v4366_v27, %s9113_s5  ;;  %v3737_v32 = vld [vmem:[#allocation3 + $0xa0] sm:$0xff]  ;;  %v3635_v13 = vmax.f32 %v3464_v40, %v3528_v41  ;;  %1149 = vst.msk [vmem:[#allocation7 + $0x1e8] sm:$0xff] %vm954_vm0, %v1085_v23 }
 0x320   : > { %2174 = vrot.lane.b32.xlu2 %v1984_v24, %s9107_s4  ;;  %v2161_v30 = vpop.permute.xlu0 %2160  ;;  %v2746_v31 = vld [vmem:[#allocation7 + $0x1b0] sm:$0xff]  ;;  %3769 = vst.msk [vmem:[#allocation8 + $0xa0] sm:$0xff] %vm3359_vm8, %v3737_v32  ;;  %v4368_v32 = vld [vmem:[#allocation3 + $0x3c] sm:$0xff] }
 0x321   : > { %vm3209_vm1 = vcmp.ge.f32.partialorder %v3102_v28, 0.0  ;;  %v3273_v33 = vmul.f32 0.01, %v3102_v28  ;;  %v2546_v34 = vpop.permute.xlu1 %2545  ;;  %2298 = vst.msk [vmem:[#allocation7 + $0x1b8] sm:$0xff] %vm2242_vm5, %v2161_v30  ;;  %8409 = vmatmul.msk.f32.gmra.mxu0 %vm2761_vm7, %v2746_v31 }
 0x322   : > { %v10369_v35 = vpop.permute.xlu2 %1781  ;;  %2683 = vst.msk [vmem:[#allocation7 + $0x1b8] sm:$0xff] %vm2627_vm6, %v2546_v34  ;;  %v3981_v34 = vld [vmem:[#allocation3 + $0x3a] sm:$0xff] }
 0x323   : > { %v3337_v36 = vsel %vm3209_vm1, %v3102_v28, %v3273_v33  ;;  %v3787_v33 = vld [vmem:[#allocation3 + $0x35] sm:$0xff] }
 0x324   : > { %3402 = vst.msk [vmem:[#allocation12 + $0x150] sm:$0xff] %vm3359_vm8, %v3337_v36 }
 0x326   : > { %2559 = vrot.lane.b32.xlu0 %v2369_v37, %s9109_s29 }
 0x327   : > { %3853 = vrot.lane.b32.xlu1 %v3785_v38, %s9110_s27  ;;  %v3104_v42 = vpop.f32.mrf.mxu0 }
 0x328   : > { %4047 = vrot.lane.b32.xlu2 %v3979_v39, %s9111_s3  ;;  %v3105_v43 = vadd.f32 %v10214_v60, %v3104_v42  ;;  %v1778_v44 = vpop.permute.xlu0 %1777 }
 0x329   : > { %v2163_v45 = vpop.permute.xlu1 %2162  ;;  %1914 = vst.msk [vmem:[#allocation7 + $0x1c0] sm:$0xff] %vm1857_vm3, %v1778_v44  ;;  %v2747_v46 = vld [vmem:[#allocation7 + $0x1b8] sm:$0xff] }
 0x32a   : > { %vm3210_vm9 = vcmp.ge.f32.partialorder %v3105_v43, 0.0  ;;  %v3274_v47 = vmul.f32 0.01, %v3105_v43  ;;  %2299 = vst.msk [vmem:[#allocation7 + $0x1c0] sm:$0xff] %vm2242_vm5, %v2163_v45  ;;  %v3846_v48 = vpop.permute.xlu2 %3845  ;;  %8410 = vmatmul.msk.f32.gmra.mxu0 %vm2761_vm7, %v2747_v46  ;;  %v4175_v45 = vld [vmem:[#allocation3 + $0x3f] sm:$0xff] }
 0x32b   : > { %v3592_v49 = vld [vmem:[#allocation12 + $0x142] ss:$2 sm:$0xff]  ;;  %2684 = vst.msk [vmem:[#allocation7 + $0x1c0] sm:$0xff] %vm2627_vm6, %v10343_v8 }
 0x32c   : > { %v3338_v51 = vsel %vm3210_vm9, %v3105_v43, %v3274_v47  ;;  %3942 = vst.msk [vmem:[#allocation8] sm:$0xff] %vm3941_vm4, %v3846_v48  ;;  %v3667_v53 = vmax.f32 %v3635_v13, %v3592_v49  ;;  %v4369_v46 = vld [vmem:[#allocation3 + $0x44] sm:$0xff]  ;;  %vm4598_vm9 = vcmask 326656  }
 0x32d   : > { %3403 = vst.msk [vmem:[#allocation12 + $0x158] sm:$0xff] %vm3359_vm8, %v3338_v51  ;;  %v3788_v13 = vld [vmem:[#allocation3 + $0x3d] sm:$0xff] }
 0x32e   : > { %1406 = vrot.lane.b32.xlu0 %v1215_v50, %s9106_s25  ;;  %3704 = vst.msk [vmem:[#allocation3 + $0xaa] sm:$0xff] %vm3359_vm8, %v3667_v53  ;;  %s11338_s25 = scalar_lea.vmem %s11670_s21, %s8492_s30 }
 0x32f   : > { %4241 = vrot.lane.b32.xlu1 %v4173_v55, %s9112_s0 }
 0x330   : > { %1791 = vrot.lane.b32.xlu2 %v1600_v52, %s9108_s28  ;;  %v1395_v56 = vpop.permute.xlu0 %1394  ;;  %s9115_s28 = smov 64  }
 0x331   : > { %v1780_v57 = vpop.permute.xlu1 %1779  ;;  %1530 = vst.msk [vmem:[#allocation7 + $0x1c8] sm:$0xff] %vm1472_vm2, %v1395_v56  ;;  %v3107_v58 = vpop.f32.mrf.mxu0 }
 0x332   : > { %1915 = vst.msk [vmem:[#allocation7 + $0x1c8] sm:$0xff] %vm1857_vm3, %v1780_v57  ;;  %v3108_v59 = vadd.f32 %v10214_v60, %v3107_v58  ;;  %v10393_v61 = vpop.permute.xlu2 %4233  ;;  %v2748_v62 = vld [vmem:[#allocation7 + $0x1c0] sm:$0xff] }
 0x333   : > { %2300 = vst.msk [vmem:[#allocation7 + $0x1c8] sm:$0xff] %vm2242_vm5, %v10358_v22  ;;  %8411 = vmatmul.msk.f32.gmra.mxu0 %vm2761_vm7, %v2748_v62  ;;  %v3982_v57 = vld [vmem:[#allocation3 + $0x42] sm:$0xff]  ;;  %v4370_v62 = vld [vmem:[#allocation3 + $0x4c] sm:$0xff] }
 0x334   : > { %vm3211_vm10 = vcmp.ge.f32.partialorder %v3108_v59, 0.0  ;;  %v3275_v2 = vmul.f32 0.01, %v3108_v59  ;;  %v3466_v11 = vld [vmem:[#allocation12 + $0x150] ss:$2 sm:$0xff] }
 0x335   : > { %v3738_v9 = vld [vmem:[#allocation3 + $0xa8] sm:$0xff]  ;;  %v3530_v12 = vld [vmem:[#allocation12 + $0x151] ss:$2 sm:$0xff] }
 0x336   : > { %4435 = vrot.lane.b32.xlu0 %v4367_v3, %s9113_s5  ;;  %v3339_v5 = vsel %vm3211_vm10, %v3108_v59, %v3275_v2  ;;  %3770 = vst.msk [vmem:[#allocation8 + $0xa8] sm:$0xff] %vm3359_vm8, %v3738_v9  ;;  %v3636_v16 = vmax.f32 %v3466_v11, %v3530_v12 }
 0x337   : > { %2176 = vrot.lane.b32.xlu1 %v1985_v63, %s9107_s4  ;;  %3404 = vst.msk [vmem:[#allocation12 + $0x160] sm:$0xff] %vm3359_vm8, %v3339_v5  ;;  %s9114_s4 = smov 48  }
 0x338   : > { %2561 = vrot.lane.b32.xlu2 %v2370_v0, %s9109_s29  ;;  %v2550_v7 = vpop.permute.xlu0 %2549 }
 0x339   : > { %v1397_v8 = vpop.permute.xlu1 %1396  ;;  %2685 = vst.msk [vmem:[#allocation7 + $0x1c8] sm:$0xff] %vm2627_vm6, %v2550_v7  ;;  %v4177_v7 = vld [vmem:[#allocation3 + $0x4f] sm:$0xff] }
 0x33a   : > { %1531 = vst.msk [vmem:[#allocation7 + $0x1d0] sm:$0xff] %vm1472_vm2, %v1397_v8  ;;  %v10413_v10 = vpop.permute.xlu2 %2168 }
 0x33b   : > { %1916 = vst.msk [vmem:[#allocation7 + $0x1d0] sm:$0xff] %vm1857_vm3, %v10369_v35  ;;  %v1084_v35 = vld [vmem:[#allocation2 + $0x1e0] sm:$0xff] }
 0x33c   : > { %1148 = vst.msk [vmem:[#allocation7 + $0x1e0] sm:$0xff] %vm954_vm0, %v1084_v35 }
 0x33e   : > { %v3110_v17 = vpop.f32.mrf.mxu0  ;;  %3855 = vrot.lane.b32.xlu0 %v3786_v15, %s9110_s27  ;;  %v3594_v21 = vld [vmem:[#allocation12 + $0x152] ss:$2 sm:$0xff] }
 0x33f   : > { %v3111_v22 = vadd.f32 %v10214_v60, %v3110_v17  ;;  %4049 = vrot.lane.b32.xlu1 %v3980_v18, %s9111_s3  ;;  %v3668_v26 = vmax.f32 %v3636_v16, %v3594_v21  ;;  %v4371_v16 = vld [vmem:[#allocation3 + $0x54] sm:$0xff] }
 0x340   : > { %4243 = vrot.lane.b32.xlu2 %v4174_v19, %s9112_s0  ;;  %v2167_v24 = vpop.permute.xlu0 %2166  ;;  %v2749_v25 = vld [vmem:[#allocation7 + $0x1c8] sm:$0xff]  ;;  %v3984_v18 = vld [vmem:[#allocation3 + $0x52] sm:$0xff] }
 0x341   : > { %vm3212_vm11 = vcmp.ge.f32.partialorder %v3111_v22, 0.0  ;;  %v3276_v27 = vmul.f32 0.01, %v3111_v22  ;;  %v2552_v28 = vpop.permute.xlu1 %2551  ;;  %2301 = vst.msk [vmem:[#allocation7 + $0x1d0] sm:$0xff] %vm2242_vm5, %v2167_v24  ;;  %8412 = vmatmul.msk.f32.gmra.mxu0 %vm2761_vm7, %v2749_v25  ;;  %v3790_v17 = vld [vmem:[#allocation3 + $0x4d] sm:$0xff] }
 0x342   : > { %2686 = vst.msk [vmem:[#allocation7 + $0x1d0] sm:$0xff] %vm2627_vm6, %v2552_v28  ;;  %v10432_v30 = vpop.permute.xlu2 %4041 }
 0x343   : > { %v3340_v31 = vsel %vm3212_vm11, %v3111_v22, %v3276_v27  ;;  %3705 = vst.msk [vmem:[#allocation3 + $0xb2] sm:$0xff] %vm3359_vm8, %v3668_v26 }
 0x344   : > { %3405 = vst.msk [vmem:[#allocation12 + $0x168] sm:$0xff] %vm3359_vm8, %v3340_v31 }
 0x346   : > { %4437 = vrot.lane.b32.xlu0 %v4368_v32, %s9113_s5  ;;  %v4372_v32 = vld [vmem:[#allocation3 + $0x5c] sm:$0xff] }
 0x347   : > { %3857 = vrot.lane.b32.xlu1 %v3787_v33, %s9110_s27  ;;  %v3113_v36 = vpop.f32.mrf.mxu0  ;;  %v3791_v33 = vld [vmem:[#allocation3 + $0x55] sm:$0xff] }
 0x348   : > { %4051 = vrot.lane.b32.xlu2 %v3981_v34, %s9111_s3  ;;  %v3114_v37 = vadd.f32 %v10214_v60, %v3113_v36  ;;  %v4040_v38 = vpop.permute.xlu0 %4039  ;;  %v1086_v34 = vld [vmem:[#allocation2 + $0x1f0] sm:$0xff] }
 0x349   : > { %v1399_v39 = vpop.permute.xlu1 %1398  ;;  %4136 = vst.msk [vmem:[#allocation8] sm:$0xff] %vm4135_vm12, %v4040_v38  ;;  %v2750_v40 = vld [vmem:[#allocation7 + $0x1d0] sm:$0xff] }
 0x34a   : > { %vm3213_vm14 = vcmp.ge.f32.partialorder %v3114_v37, 0.0  ;;  %v3277_v41 = vmul.f32 0.01, %v3114_v37  ;;  %1532 = vst.msk [vmem:[#allocation7 + $0x1d8] sm:$0xff] %vm1472_vm2, %v1399_v39  ;;  %v10443_v42 = vpop.permute.xlu2 %1785  ;;  %8413 = vmatmul.msk.f32.gmra.mxu0 %vm2761_vm7, %v2750_v40  ;;  %v3739_v44 = vld [vmem:[#allocation3 + $0xb0] sm:$0xff] }
 0x34b   : > { %4330 = vst.msk [vmem:[#allocation8] sm:$0xff] %vm4329_vm13, %v10393_v61  ;;  %v3468_v47 = vld [vmem:[#allocation12 + $0x160] ss:$2 sm:$0xff]  ;;  %v3532_v48 = vld [vmem:[#allocation12 + $0x161] ss:$2 sm:$0xff] }
 0x34c   : > { %v3341_v43 = vsel %vm3213_vm14, %v3114_v37, %v3277_v41  ;;  %3771 = vst.msk [vmem:[#allocation8 + $0xb0] sm:$0xff] %vm3359_vm8, %v3739_v44  ;;  %v3637_v54 = vmax.f32 %v3468_v47, %v3532_v48  ;;  %v4176_v61 = vld [vmem:[#allocation3 + $0x47] sm:$0xff]  ;;  %v10501_v39 = vld [vmem:[#allocation21] ss:$0 sm:$0xff]  ;;  %v3985_v44 = vld [vmem:[#allocation3 + $0x5a] sm:$0xff] }
 0x34d   : > { %3406 = vst.msk [vmem:[#allocation12 + $0x170] sm:$0xff] %vm3359_vm8, %v3341_v43 }
 0x34e   : > { %4245 = vrot.lane.b32.xlu0 %v4175_v45, %s9112_s0  ;;  %1150 = vst.msk [vmem:[#allocation7 + $0x1f0] sm:$0xff] %vm954_vm0, %v1086_v34  ;;  %v4179_v45 = vld [vmem:[#allocation3 + $0x5f] sm:$0xff]  ;;  %v4182_v34 = vld [vmem:[#allocation3 + $0x77] sm:$0xff] }
 0x34f   : > { %4439 = vrot.lane.b32.xlu1 %v4369_v46, %s9113_s5  ;;  %v4373_v46 = vld [vmem:[#allocation3 + $0x64] sm:$0xff] }
 0x350   : > { %3859 = vrot.lane.b32.xlu2 %v3788_v13, %s9110_s27  ;;  %v1784_v49 = vpop.permute.xlu0 %1783 }
 0x351   : > { %v3116_v50 = vpop.f32.mrf.mxu0  ;;  %v4428_v51 = vpop.permute.xlu1 %4427  ;;  %1917 = vst.msk [vmem:[#allocation7 + $0x1d8] sm:$0xff] %vm1857_vm3, %v1784_v49 }
 0x352   : > { %v3117_v52 = vadd.f32 %v10214_v60, %v3116_v50  ;;  %4524 = vst.msk [vmem:[#allocation8] sm:$0xff] %vm4523_vm15, %v4428_v51  ;;  %v10456_v53 = vpop.permute.xlu2 %2555 }
 0x353   : > { %2302 = vst.msk [vmem:[#allocation7 + $0x1d8] sm:$0xff] %vm2242_vm5, %v10413_v10 }
 0x354   : > { %v3596_v55 = vld [vmem:[#allocation12 + $0x162] ss:$2 sm:$0xff]  ;;  %vm3214_vm1 = vcmp.ge.f32.partialorder %v3117_v52, 0.0  ;;  %v3278_v56 = vmul.f32 0.01, %v3117_v52 }
 0x355   : > { %v3669_v58 = vmax.f32 %v3637_v54, %v3596_v55 }
 0x356   : > { %v3342_v59 = vsel %vm3214_vm1, %v3117_v52, %v3278_v56  ;;  %4053 = vrot.lane.b32.xlu0 %v3982_v57, %s9111_s3  ;;  %v3986_v56 = vld [vmem:[#allocation3 + $0x62] sm:$0xff] }
 0x357   : > { %3407 = vst.msk [vmem:[#allocation12 + $0x178] sm:$0xff] %vm3359_vm8, %v3342_v59  ;;  %4247 = vrot.lane.b32.xlu1 %v4176_v61, %s9112_s0  ;;  %v4180_v57 = vld [vmem:[#allocation3 + $0x67] sm:$0xff] }
 0x358   : > { %4441 = vrot.lane.b32.xlu2 %v4370_v62, %s9113_s5  ;;  %v2554_v63 = vpop.permute.xlu0 %2553  ;;  %3706 = vst.msk [vmem:[#allocation3 + $0xba] sm:$0xff] %vm3359_vm8, %v3669_v58 }
 0x359   : > { %2687 = vst.msk [vmem:[#allocation7 + $0x1d8] sm:$0xff] %vm2627_vm6, %v2554_v63  ;;  %v3848_v0 = vpop.permute.xlu1 %3847  ;;  %v4557_v2 = vld [vmem:[#allocation8] sm:$0xff] }
 0x35a   : > { %3943 = vst.msk [vmem:[#allocation8 + $0x8] sm:$0xff] %vm3941_vm4, %v3848_v0  ;;  %v1403_v3 = vpop.permute.xlu2 %1402  ;;  %8419 = vmatmul.msk.f32.vlgmr.msra.gmra.mxu1 %vm4598_vm9, %v4557_v2 }
 0x35b   : > { %4137 = vst.msk [vmem:[#allocation8 + $0x8] sm:$0xff] %vm4135_vm12, %v10432_v30 }
 0x35c   : > { %1534 = vst.msk [vmem:[#allocation7 + $0x1e8] sm:$0xff] %vm1472_vm2, %v1403_v3 }
 0x35e   : > { %v3119_v5 = vpop.f32.mrf.mxu0  ;;  %3861 = vrot.lane.b32.xlu0 %v3789_v4, %s9110_s27  ;;  %v3470_v19 = vld [vmem:[#allocation12 + $0x170] ss:$2 sm:$0xff]  ;;  %v3534_v20 = vld [vmem:[#allocation12 + $0x171] ss:$2 sm:$0xff] }
 0x35f   : > { %v3120_v8 = vadd.f32 %v10214_v60, %v3119_v5  ;;  %4055 = vrot.lane.b32.xlu1 %v3983_v6, %s9111_s3  ;;  %v3740_v14 = vld [vmem:[#allocation3 + $0xb8] sm:$0xff]  ;;  %v3638_v25 = vmax.f32 %v3470_v19, %v3534_v20  ;;  %v4374_v5 = vld [vmem:[#allocation3 + $0x6c] sm:$0xff] }
 0x360   : > { %4249 = vrot.lane.b32.xlu2 %v4177_v7, %s9112_s0  ;;  %v1401_v29 = vpop.permute.xlu0 %1400  ;;  %v2751_v9 = vld [vmem:[#allocation7 + $0x1d8] sm:$0xff]  ;;  %3772 = vst.msk [vmem:[#allocation8 + $0xb8] sm:$0xff] %vm3359_vm8, %v3740_v14  ;;  %v3793_v6 = vld [vmem:[#allocation3 + $0x65] sm:$0xff]  ;;  %v3794_v20 = vld [vmem:[#allocation3 + $0x6d] sm:$0xff] }
 0x361   : > { %vm3215_vm10 = vcmp.ge.f32.partialorder %v3120_v8, 0.0  ;;  %v3279_v10 = vmul.f32 0.01, %v3120_v8  ;;  %1533 = vst.msk [vmem:[#allocation7 + $0x1e0] sm:$0xff] %vm1472_vm2, %v1401_v29  ;;  %v4236_v11 = vpop.permute.xlu1 %4235  ;;  %8414 = vmatmul.msk.f32.gmra.mxu0 %vm2761_vm7, %v2751_v9  ;;  %v3987_v7 = vld [vmem:[#allocation3 + $0x6a] sm:$0xff]  ;;  %v4375_v19 = vld [vmem:[#allocation3 + $0x74] sm:$0xff] }
 0x362   : > { %1918 = vst.msk [vmem:[#allocation7 + $0x1e0] sm:$0xff] %vm1857_vm3, %v10443_v42  ;;  %v10479_v12 = vpop.permute.xlu2 %4431 }
 0x363   : > { %v3343_v15 = vsel %vm3215_vm10, %v3120_v8, %v3279_v10  ;;  %4331 = vst.msk [vmem:[#allocation8 + $0x8] sm:$0xff] %vm4329_vm13, %v4236_v11  ;;  %v1087_v8 = vld [vmem:[#allocation2 + $0x1f8] sm:$0xff] }
 0x364   : > { %3408 = vst.msk [vmem:[#allocation12 + $0x180] sm:$0xff] %vm3359_vm8, %v3343_v15 }
 0x365   : > { %1151 = vst.msk [vmem:[#allocation7 + $0x1f8] sm:$0xff] %vm954_vm0, %v1087_v8 }
 0x366   : > { %4443 = vrot.lane.b32.xlu0 %v4371_v16, %s9113_s5 }
 0x367   : > { %3863 = vrot.lane.b32.xlu1 %v3790_v17, %s9110_s27  ;;  %v3122_v21 = vpop.f32.mrf.mxu0 }
 0x368   : > { %4057 = vrot.lane.b32.xlu2 %v3984_v18, %s9111_s3  ;;  %v3123_v22 = vadd.f32 %v10214_v60, %v3122_v21  ;;  %v4430_v23 = vpop.permute.xlu0 %4429  ;;  %v4178_v60 = vld [vmem:[#allocation3 + $0x57] sm:$0xff]  ;;  %v4181_v18 = vld [vmem:[#allocation3 + $0x6f] sm:$0xff] }
 0x369   : > { %4525 = vst.msk [vmem:[#allocation8 + $0x8] sm:$0xff] %vm4523_vm15, %v4430_v23  ;;  %v2171_v24 = vpop.permute.xlu1 %2170 }
 0x36a   : > { %vm3216_vm11 = vcmp.ge.f32.partialorder %v3123_v22, 0.0  ;;  %v3280_v26 = vmul.f32 0.01, %v3123_v22  ;;  %2303 = vst.msk [vmem:[#allocation7 + $0x1e0] sm:$0xff] %vm2242_vm5, %v2171_v24  ;;  %v3852_v27 = vpop.permute.xlu2 %3851 }
 0x36b   : > { %v3598_v28 = vld [vmem:[#allocation12 + $0x172] ss:$2 sm:$0xff]  ;;  %2688 = vst.msk [vmem:[#allocation7 + $0x1e0] sm:$0xff] %vm2627_vm6, %v10456_v53 }
 0x36c   : > { %v3344_v30 = vsel %vm3216_vm11, %v3123_v22, %v3280_v26  ;;  %3945 = vst.msk [vmem:[#allocation8 + $0x18] sm:$0xff] %vm3941_vm4, %v3852_v27  ;;  %v3670_v31 = vmax.f32 %v3638_v25, %v3598_v28  ;;  %v3792_v53 = vld [vmem:[#allocation3 + $0x5d] sm:$0xff] }
 0x36d   : > { %3409 = vst.msk [vmem:[#allocation12 + $0x188] sm:$0xff] %vm3359_vm8, %v3344_v30 }
 0x36e   : > { %4251 = vrot.lane.b32.xlu0 %v4178_v60, %s9112_s0  ;;  %3707 = vst.msk [vmem:[#allocation3 + $0xc2] sm:$0xff] %vm3359_vm8, %v3670_v31  ;;  %v3988_v60 = vld [vmem:[#allocation3 + $0x72] sm:$0xff] }
 0x36f   : > { %4445 = vrot.lane.b32.xlu1 %v4372_v32, %s9113_s5 }
 0x370   : > { %3865 = vrot.lane.b32.xlu2 %v3791_v33, %s9110_s27  ;;  %v3850_v35 = vpop.permute.xlu0 %3849  ;;  %v4558_v36 = vld [vmem:[#allocation8 + $0x8] sm:$0xff] }
 0x371   : > { %v3125_v37 = vpop.f32.mrf.mxu0  ;;  %3944 = vst.msk [vmem:[#allocation8 + $0x10] sm:$0xff] %vm3941_vm4, %v3850_v35  ;;  %v4044_v38 = vpop.permute.xlu1 %4043  ;;  %8420 = vmatmul.msk.f32.gmra.mxu1 %vm4598_vm9, %v4558_v36  ;;  %v4376_v35 = vld [vmem:[#allocation3 + $0x7c] sm:$0xff] }
 0x372   : > { %v3126_v40 = vadd.f32 %v10501_v39, %v3125_v37  ;;  %4138 = vst.msk [vmem:[#allocation8 + $0x10] sm:$0xff] %vm4135_vm12, %v4044_v38  ;;  %v4240_v41 = vpop.permute.xlu2 %4239  ;;  %v2752_v42 = vld [vmem:[#allocation7 + $0x1e0] sm:$0xff] }
 0x373   : > { %8415 = vmatmul.msk.f32.gmra.mxu0 %vm2761_vm7, %v2752_v42 }
 0x374   : > { %vm3217_vm14 = vcmp.ge.f32.partialorder %v3126_v40, 0.0  ;;  %v3281_v43 = vmul.f32 0.01, %v3126_v40  ;;  %v3472_v51 = vld [vmem:[#allocation12 + $0x180] ss:$2 sm:$0xff] }
 0x375   : > { %v3741_v13 = vld [vmem:[#allocation3 + $0xc0] sm:$0xff] }
 0x376   : > { %4059 = vrot.lane.b32.xlu0 %v3985_v44, %s9111_s3  ;;  %v3345_v47 = vsel %vm3217_vm14, %v3126_v40, %v3281_v43  ;;  %3773 = vst.msk [vmem:[#allocation8 + $0xc0] sm:$0xff] %vm3359_vm8, %v3741_v13  ;;  %v3536_v52 = vld [vmem:[#allocation12 + $0x181] ss:$2 sm:$0xff] }
 0x377   : > { %4253 = vrot.lane.b32.xlu1 %v4179_v45, %s9112_s0  ;;  %3410 = vst.msk [vmem:[#allocation12 + $0x190] sm:$0xff] %vm3359_vm8, %v3345_v47  ;;  %v3639_v54 = vmax.f32 %v3472_v51, %v3536_v52  ;;  %v3989_v43 = vld [vmem:[#allocation3 + $0x7a] sm:$0xff]  ;;  %v4377_v52 = vld [vmem:[#allocation3 + $0x84] sm:$0xff] }
 0x378   : > { %4447 = vrot.lane.b32.xlu2 %v4373_v46, %s9113_s5  ;;  %v4238_v48 = vpop.permute.xlu0 %4237  ;;  %v4183_v44 = vld [vmem:[#allocation3 + $0x7f] sm:$0xff] }
 0x379   : > { %4332 = vst.msk [vmem:[#allocation8 + $0x10] sm:$0xff] %vm4329_vm13, %v4238_v48  ;;  %v1788_v49 = vpop.permute.xlu1 %1787 }
 0x37a   : > { %4526 = vst.msk [vmem:[#allocation8 + $0x10] sm:$0xff] %vm4523_vm15, %v10479_v12  ;;  %v10514_v50 = vpop.permute.xlu2 %2174 }
 0x37b   : > { %1919 = vst.msk [vmem:[#allocation7 + $0x1e8] sm:$0xff] %vm1857_vm3, %v1788_v49 }
 0x37e   : > { %v3128_v55 = vpop.f32.mrf.mxu0  ;;  %3867 = vrot.lane.b32.xlu0 %v3792_v53, %s9110_s27  ;;  %v3600_v58 = vld [vmem:[#allocation12 + $0x182] ss:$2 sm:$0xff] }
 0x37f   : > { %v3129_v59 = vadd.f32 %v10501_v39, %v3128_v55  ;;  %4061 = vrot.lane.b32.xlu1 %v3986_v56, %s9111_s3  ;;  %v3671_v62 = vmax.f32 %v3639_v54, %v3600_v58  ;;  %v3796_v53 = vld [vmem:[#allocation3 + $0x7d] sm:$0xff] }
 0x380   : > { %4255 = vrot.lane.b32.xlu2 %v4180_v57, %s9112_s0  ;;  %v2173_v61 = vpop.permute.xlu0 %2172  ;;  %v3990_v54 = vld [vmem:[#allocation3 + $0x82] sm:$0xff] }
 0x381   : > { %vm3218_vm1 = vcmp.ge.f32.partialorder %v3129_v59, 0.0  ;;  %v3282_v63 = vmul.f32 0.01, %v3129_v59  ;;  %2304 = vst.msk [vmem:[#allocation7 + $0x1e8] sm:$0xff] %vm2242_vm5, %v2173_v61  ;;  %v2558_v0 = vpop.permute.xlu1 %2557  ;;  %v4559_v2 = vld [vmem:[#allocation8 + $0x10] sm:$0xff] }
 0x382   : > { %2689 = vst.msk [vmem:[#allocation7 + $0x1e8] sm:$0xff] %vm2627_vm6, %v2558_v0  ;;  %v10523_v3 = vpop.permute.xlu2 %4047  ;;  %8421 = vmatmul.msk.f32.gmra.mxu1 %vm4598_vm9, %v4559_v2 }
 0x383   : > { %v3346_v4 = vsel %vm3218_vm1, %v3129_v59, %v3282_v63  ;;  %3708 = vst.msk [vmem:[#allocation3 + $0xca] sm:$0xff] %vm3359_vm8, %v3671_v62 }
 0x384   : > { %3411 = vst.msk [vmem:[#allocation12 + $0x198] sm:$0xff] %vm3359_vm8, %v3346_v4 }
 0x386   : > { %4449 = vrot.lane.b32.xlu0 %v4374_v5, %s9113_s5  ;;  %v4184_v5 = vld [vmem:[#allocation3 + $0x87] sm:$0xff] }
 0x387   : > { %3869 = vrot.lane.b32.xlu1 %v3793_v6, %s9110_s27  ;;  %v3131_v29 = vpop.f32.mrf.mxu0  ;;  %v4378_v6 = vld [vmem:[#allocation3 + $0x8c] sm:$0xff] }
 0x388   : > { %4063 = vrot.lane.b32.xlu2 %v3987_v7, %s9111_s3  ;;  %v3132_v9 = vadd.f32 %v10501_v39, %v3131_v29  ;;  %v4046_v10 = vpop.permute.xlu0 %4045  ;;  %v3797_v7 = vld [vmem:[#allocation3 + $0x85] sm:$0xff] }
 0x389   : > { %4139 = vst.msk [vmem:[#allocation8 + $0x18] sm:$0xff] %vm4135_vm12, %v4046_v10  ;;  %v1405_v11 = vpop.permute.xlu1 %1404  ;;  %v2753_v12 = vld [vmem:[#allocation7 + $0x1e8] sm:$0xff] }
 0x38a   : > { %vm3219_vm10 = vcmp.ge.f32.partialorder %v3132_v9, 0.0  ;;  %v3283_v14 = vmul.f32 0.01, %v3132_v9  ;;  %4333 = vst.msk [vmem:[#allocation8 + $0x18] sm:$0xff] %vm4329_vm13, %v4240_v41  ;;  %v1792_v15 = vpop.permute.xlu2 %1791  ;;  %8416 = vmatmul.msk.f32.gmra.mxu0 %vm2761_vm7, %v2753_v12  ;;  %v3742_v17 = vld [vmem:[#allocation3 + $0xc8] sm:$0xff]  ;;  %v3795_v41 = vld [vmem:[#allocation3 + $0x75] sm:$0xff] }
 0x38b   : > { %1535 = vst.msk [vmem:[#allocation7 + $0x1f0] sm:$0xff] %vm1472_vm2, %v1405_v11  ;;  %v3474_v21 = vld [vmem:[#allocation12 + $0x190] ss:$2 sm:$0xff]  ;;  %v3538_v22 = vld [vmem:[#allocation12 + $0x191] ss:$2 sm:$0xff] }
 0x38c   : > { %v3347_v16 = vsel %vm3219_vm10, %v3132_v9, %v3283_v14  ;;  %3774 = vst.msk [vmem:[#allocation8 + $0xc8] sm:$0xff] %vm3359_vm8, %v3742_v17  ;;  %v3640_v28 = vmax.f32 %v3474_v21, %v3538_v22  ;;  %v3991_v17 = vld [vmem:[#allocation3 + $0x8a] sm:$0xff] }
 0x38d   : > { %3412 = vst.msk [vmem:[#allocation12 + $0x1a0] sm:$0xff] %vm3359_vm8, %v3347_v16 }
 0x38e   : > { %4257 = vrot.lane.b32.xlu0 %v4181_v18, %s9112_s0  ;;  %v4185_v18 = vld [vmem:[#allocation3 + $0x8f] sm:$0xff] }
 0x38f   : > { %4451 = vrot.lane.b32.xlu1 %v4375_v19, %s9113_s5  ;;  %v4379_v19 = vld [vmem:[#allocation3 + $0x94] sm:$0xff] }
 0x390   : > { %3871 = vrot.lane.b32.xlu2 %v3794_v20, %s9110_s27  ;;  %v1790_v23 = vpop.permute.xlu0 %1789 }
 0x391   : > { %v3134_v24 = vpop.f32.mrf.mxu0  ;;  %1920 = vst.msk [vmem:[#allocation7 + $0x1f0] sm:$0xff] %vm1857_vm3, %v1790_v23  ;;  %v4434_v25 = vpop.permute.xlu1 %4433 }
 0x392   : > { %v3135_v26 = vadd.f32 %v10501_v39, %v3134_v24  ;;  %2305 = vst.msk [vmem:[#allocation7 + $0x1f0] sm:$0xff] %vm2242_vm5, %v10514_v50  ;;  %v10546_v27 = vpop.permute.xlu2 %2561 }
 0x393   : > { %4527 = vst.msk [vmem:[#allocation8 + $0x18] sm:$0xff] %vm4523_vm15, %v4434_v25 }
 0x394   : > { %v3602_v30 = vld [vmem:[#allocation12 + $0x192] ss:$2 sm:$0xff]  ;;  %vm3220_vm0 = vcmp.ge.f32.partialorder %v3135_v26, 0.0  ;;  %v3284_v31 = vmul.f32 0.01, %v3135_v26 }
 0x395   : > { %v3672_v32 = vmax.f32 %v3640_v28, %v3602_v30  ;;  %v3798_v28 = vld [vmem:[#allocation3 + $0x8d] sm:$0xff] }
 0x396   : > { %v3348_v33 = vsel %vm3220_vm0, %v3135_v26, %v3284_v31  ;;  %4065 = vrot.lane.b32.xlu0 %v3988_v60, %s9111_s3  ;;  %v3992_v31 = vld [vmem:[#allocation3 + $0x92] sm:$0xff] }
 0x397   : > { %3413 = vst.msk [vmem:[#allocation12 + $0x1a8] sm:$0xff] %vm3359_vm8, %v3348_v33  ;;  %4259 = vrot.lane.b32.xlu1 %v4182_v34, %s9112_s0  ;;  %v4186_v60 = vld [vmem:[#allocation3 + $0x97] sm:$0xff] }
 0x398   : > { %4453 = vrot.lane.b32.xlu2 %v4376_v35, %s9113_s5  ;;  %v2560_v36 = vpop.permute.xlu0 %2559  ;;  %3709 = vst.msk [vmem:[#allocation3 + $0xd2] sm:$0xff] %vm3359_vm8, %v3672_v32 }
 0x399   : > { %2690 = vst.msk [vmem:[#allocation7 + $0x1f0] sm:$0xff] %vm2627_vm6, %v2560_v36  ;;  %v3854_v37 = vpop.permute.xlu1 %3853 }
 0x39a   : > { %3946 = vst.msk [vmem:[#allocation8 + $0x20] sm:$0xff] %vm3941_vm4, %v3854_v37  ;;  %v10556_v38 = vpop.permute.xlu2 %4243  ;;  %v4560_v40 = vld [vmem:[#allocation8 + $0x18] sm:$0xff] }
 0x39b   : > { %4140 = vst.msk [vmem:[#allocation8 + $0x20] sm:$0xff] %vm4135_vm12, %v10523_v3  ;;  %8422 = vmatmul.msk.f32.gmra.mxu1 %vm4598_vm9, %v4560_v40 }
 0x39e   : > { %v3137_v42 = vpop.f32.mrf.mxu0  ;;  %3873 = vrot.lane.b32.xlu0 %v3795_v41, %s9110_s27  ;;  %v3476_v55 = vld [vmem:[#allocation12 + $0x1a0] ss:$2 sm:$0xff]  ;;  %v3540_v56 = vld [vmem:[#allocation12 + $0x1a1] ss:$2 sm:$0xff] }
 0x39f   : > { %v3138_v45 = vadd.f32 %v10501_v39, %v3137_v42  ;;  %4067 = vrot.lane.b32.xlu1 %v3989_v43, %s9111_s3  ;;  %v3743_v50 = vld [vmem:[#allocation3 + $0xd0] sm:$0xff]  ;;  %v3641_v62 = vmax.f32 %v3476_v55, %v3540_v56  ;;  %v4380_v41 = vld [vmem:[#allocation3 + $0x9c] sm:$0xff] }
 0x3a0   : > { %4261 = vrot.lane.b32.xlu2 %v4183_v44, %s9112_s0  ;;  %v1407_v46 = vpop.permute.xlu0 %1406  ;;  %v2754_v13 = vld [vmem:[#allocation7 + $0x1f0] sm:$0xff]  ;;  %3775 = vst.msk [vmem:[#allocation8 + $0xd0] sm:$0xff] %vm3359_vm8, %v3743_v50  ;;  %v3993_v43 = vld [vmem:[#allocation3 + $0x9a] sm:$0xff] }
 0x3a1   : > { %vm3221_vm11 = vcmp.ge.f32.partialorder %v3138_v45, 0.0  ;;  %v3285_v47 = vmul.f32 0.01, %v3138_v45  ;;  %1536 = vst.msk [vmem:[#allocation7 + $0x1f8] sm:$0xff] %vm1472_vm2, %v1407_v46  ;;  %v4242_v48 = vpop.permute.xlu1 %4241  ;;  %8417 = vmatmul.msk.f32.gmra.mxu0 %vm2761_vm7, %v2754_v13  ;;  %v3799_v42 = vld [vmem:[#allocation3 + $0x95] sm:$0xff] }
 0x3a2   : > { %1921 = vst.msk [vmem:[#allocation7 + $0x1f8] sm:$0xff] %vm1857_vm3, %v1792_v15  ;;  %v10568_v49 = vpop.permute.xlu2 %4051 }
 0x3a3   : > { %v3349_v51 = vsel %vm3221_vm11, %v3138_v45, %v3285_v47  ;;  %4334 = vst.msk [vmem:[#allocation8 + $0x20] sm:$0xff] %vm4329_vm13, %v4242_v48  ;;  %vm5066_vm11 = vcmask 123904  }
 0x3a4   : > { %3414 = vst.msk [vmem:[#allocation12 + $0x1b0] sm:$0xff] %vm3359_vm8, %v3349_v51 }
 0x3a5   : > { %5067 = vst.msk [vmem:[#allocation4 + $0x8] sm:$0x3] %vm5066_vm11, %v9105_v1 }
 0x3a6   : > { %4455 = vrot.lane.b32.xlu0 %v4377_v52, %s9113_s5  ;;  %v4187_v52 = vld [vmem:[#allocation3 + $0x9f] sm:$0xff]  ;;  %5069 = vst.msk [vmem:[#allocation4 + $0x91] sm:$0x3] %vm5066_vm11, %v9105_v1 }
 0x3a7   : > { %3875 = vrot.lane.b32.xlu1 %v3796_v53, %s9110_s27  ;;  %v3140_v57 = vpop.f32.mrf.mxu0  ;;  %v4381_v53 = vld [vmem:[#allocation3 + $0xa4] sm:$0xff] }
 0x3a8   : > { %4069 = vrot.lane.b32.xlu2 %v3990_v54, %s9111_s3  ;;  %v3141_v58 = vadd.f32 %v10501_v39, %v3140_v57  ;;  %v4436_v59 = vpop.permute.xlu0 %4435  ;;  %v3800_v54 = vld [vmem:[#allocation3 + $0x9d] sm:$0xff] }
 0x3a9   : > { %4528 = vst.msk [vmem:[#allocation8 + $0x20] sm:$0xff] %vm4523_vm15, %v4436_v59  ;;  %v2177_v61 = vpop.permute.xlu1 %2176 }
 0x3aa   : > { %vm3222_vm2 = vcmp.ge.f32.partialorder %v3141_v58, 0.0  ;;  %v3286_v63 = vmul.f32 0.01, %v3141_v58  ;;  %2306 = vst.msk [vmem:[#allocation7 + $0x1f8] sm:$0xff] %vm2242_vm5, %v2177_v61  ;;  %v3860_v0 = vpop.permute.xlu2 %3859  ;;  %vm4904_vm5 = vcmask 130048  }
 0x3ab   : > { %v3604_v2 = vld [vmem:[#allocation12 + $0x1a2] ss:$2 sm:$0xff]  ;;  %2691 = vst.msk [vmem:[#allocation7 + $0x1f8] sm:$0xff] %vm2627_vm6, %v10546_v27 }
 0x3ac   : > { %v3350_v3 = vsel %vm3222_vm2, %v3141_v58, %v3286_v63  ;;  %3949 = vst.msk [vmem:[#allocation8 + $0x38] sm:$0xff] %vm3941_vm4, %v3860_v0  ;;  %v3673_v4 = vmax.f32 %v3641_v62, %v3604_v2  ;;  %v10640_v0 = vld [vmem:[#allocation23] ss:$0 sm:$0xff]  ;;  %v3994_v2 = vld [vmem:[#allocation3 + $0xa2] sm:$0xff] }
 0x3ad   : > { %3415 = vst.msk [vmem:[#allocation12 + $0x1b8] sm:$0xff] %vm3359_vm8, %v3350_v3 }
 0x3ae   : > { %4263 = vrot.lane.b32.xlu0 %v4184_v5, %s9112_s0  ;;  %3710 = vst.msk [vmem:[#allocation3 + $0xda] sm:$0xff] %vm3359_vm8, %v3673_v4  ;;  %v4188_v4 = vld [vmem:[#allocation3 + $0xa7] sm:$0xff] }
 0x3af   : > { %4457 = vrot.lane.b32.xlu1 %v4378_v6, %s9113_s5  ;;  %5065 = vst.msk [vmem:[#allocation4] sm:$0xff] %vm4904_vm5, %v9105_v1  ;;  %v4382_v5 = vld [vmem:[#allocation3 + $0xac] sm:$0xff] }
 0x3b0   : > { %3877 = vrot.lane.b32.xlu2 %v3797_v7, %s9110_s27  ;;  %v3143_v8 = vpop.f32.mrf.mxu0  ;;  %v3856_v29 = vpop.permute.xlu0 %3855  ;;  %v4561_v9 = vld [vmem:[#allocation8 + $0x20] sm:$0xff]  ;;  %5068 = vst.msk [vmem:[#allocation4 + $0x89] sm:$0xff] %vm4904_vm5, %v9105_v1 }
 0x3b1   : > { %v3144_v10 = vadd.f32 %v10501_v39, %v3143_v8  ;;  %3947 = vst.msk [vmem:[#allocation8 + $0x28] sm:$0xff] %vm3941_vm4, %v3856_v29  ;;  %v4050_v11 = vpop.permute.xlu1 %4049  ;;  %8423 = vmatmul.msk.f32.gmra.mxu1 %vm4598_vm9, %v4561_v9 }
 0x3b2   : > { %4141 = vst.msk [vmem:[#allocation8 + $0x28] sm:$0xff] %vm4135_vm12, %v4050_v11  ;;  %v10591_v12 = vpop.permute.xlu2 %4441  ;;  %v2755_v14 = vld [vmem:[#allocation7 + $0x1f8] sm:$0xff] }
 0x3b3   : > { %vm3223_vm3 = vcmp.ge.f32.partialorder %v3144_v10, 0.0  ;;  %v3287_v15 = vmul.f32 0.01, %v3144_v10  ;;  %4335 = vst.msk [vmem:[#allocation8 + $0x28] sm:$0xff] %vm4329_vm13, %v10556_v38  ;;  %8418 = vmatmul.msk.f32.gmra.mxu0 %vm2761_vm7, %v2755_v14  ;;  %v3995_v14 = vld [vmem:[#allocation3 + $0xaa] sm:$0xff] }
 0x3b4   : > { %v3478_v22 = vld [vmem:[#allocation12 + $0x1b0] ss:$2 sm:$0xff]  ;;  %v3542_v23 = vld [vmem:[#allocation12 + $0x1b1] ss:$2 sm:$0xff] }
 0x3b5   : > { %v3351_v16 = vsel %vm3223_vm3, %v3144_v10, %v3287_v15  ;;  %v3744_v20 = vld [vmem:[#allocation3 + $0xd8] sm:$0xff]  ;;  %v3642_v26 = vmax.f32 %v3478_v22, %v3542_v23  ;;  %v4189_v15 = vld [vmem:[#allocation3 + $0xaf] sm:$0xff] }
 0x3b6   : > { %3416 = vst.msk [vmem:[#allocation12 + $0x1c0] sm:$0xff] %vm3359_vm8, %v3351_v16  ;;  %4071 = vrot.lane.b32.xlu0 %v3991_v17, %s9111_s3 }
 0x3b7   : > { %4265 = vrot.lane.b32.xlu1 %v4185_v18, %s9112_s0  ;;  %3776 = vst.msk [vmem:[#allocation8 + $0xd8] sm:$0xff] %vm3359_vm8, %v3744_v20 }
 0x3b8   : > { %4459 = vrot.lane.b32.xlu2 %v4379_v19, %s9113_s5  ;;  %v4438_v21 = vpop.permute.xlu0 %4437 }
 0x3b9   : > { %4529 = vst.msk [vmem:[#allocation8 + $0x28] sm:$0xff] %vm4523_vm15, %v4438_v21  ;;  %v3858_v24 = vpop.permute.xlu1 %3857 }
 0x3ba   : > { %3948 = vst.msk [vmem:[#allocation8 + $0x30] sm:$0xff] %vm3941_vm4, %v3858_v24  ;;  %v10603_v25 = vpop.permute.xlu2 %4249 }
 0x3bb   : > { %4142 = vst.msk [vmem:[#allocation8 + $0x30] sm:$0xff] %vm4135_vm12, %v10568_v49 }
 0x3bd   : > { %v3606_v27 = vld [vmem:[#allocation12 + $0x1b2] ss:$2 sm:$0xff] }
 0x3be   : > { %v3146_v30 = vpop.f32.mrf.mxu0  ;;  %3879 = vrot.lane.b32.xlu0 %v3798_v28, %s9110_s27  ;;  %v3674_v32 = vmax.f32 %v3642_v26, %v3606_v27  ;;  %v3802_v26 = vld [vmem:[#allocation3 + $0xad] sm:$0xff] }
 0x3bf   : > { %v3147_v33 = vadd.f32 %v10501_v39, %v3146_v30  ;;  %4073 = vrot.lane.b32.xlu1 %v3992_v31, %s9111_s3  ;;  %v3996_v27 = vld [vmem:[#allocation3 + $0xb2] sm:$0xff] }
 0x3c0   : > { %4267 = vrot.lane.b32.xlu2 %v4186_v60, %s9112_s0  ;;  %v4246_v34 = vpop.permute.xlu0 %4245  ;;  %v4562_v35 = vld [vmem:[#allocation8 + $0x28] sm:$0xff]  ;;  %3711 = vst.msk [vmem:[#allocation3 + $0xe2] sm:$0xff] %vm3359_vm8, %v3674_v32  ;;  %v4190_v32 = vld [vmem:[#allocation3 + $0xb7] sm:$0xff] }
 0x3c1   : > { %vm3224_vm6 = vcmp.ge.f32.partialorder %v3147_v33, 0.0  ;;  %v3288_v36 = vmul.f32 0.01, %v3147_v33  ;;  %4336 = vst.msk [vmem:[#allocation8 + $0x30] sm:$0xff] %vm4329_vm13, %v4246_v34  ;;  %v4440_v37 = vpop.permute.xlu1 %4439  ;;  %8424 = vmatmul.msk.f32.gmra.mxu1 %vm4598_vm9, %v4562_v35  ;;  %v3803_v34 = vld [vmem:[#allocation3 + $0xb5] sm:$0xff] }
 0x3c2   : > { %4530 = vst.msk [vmem:[#allocation8 + $0x30] sm:$0xff] %vm4523_vm15, %v4440_v37  ;;  %v4058_v38 = vpop.permute.xlu2 %4057 }
 0x3c3   : > { %v3352_v40 = vsel %vm3224_vm6, %v3147_v33, %v3288_v36  ;;  %v4384_v33 = vld [vmem:[#allocation3 + $0xbc] sm:$0xff] }
 0x3c4   : > { %3417 = vst.msk [vmem:[#allocation12 + $0x1c8] sm:$0xff] %vm3359_vm8, %v3352_v40 }
 0x3c6   : > { %4461 = vrot.lane.b32.xlu0 %v4380_v41, %s9113_s5 }
 0x3c7   : > { %3881 = vrot.lane.b32.xlu1 %v3799_v42, %s9110_s27  ;;  %v3149_v44 = vpop.f32.mrf.mxu0  ;;  %v3745_v50 = vld [vmem:[#allocation3 + $0xe0] sm:$0xff] }
 0x3c8   : > { %4075 = vrot.lane.b32.xlu2 %v3993_v43, %s9111_s3  ;;  %v3150_v45 = vadd.f32 %v10501_v39, %v3149_v44  ;;  %v4054_v46 = vpop.permute.xlu0 %4053  ;;  %3777 = vst.msk [vmem:[#allocation8 + $0xe0] sm:$0xff] %vm3359_vm8, %v3745_v50 }
 0x3c9   : > { %4143 = vst.msk [vmem:[#allocation8 + $0x38] sm:$0xff] %vm4135_vm12, %v4054_v46  ;;  %v4248_v13 = vpop.permute.xlu1 %4247  ;;  %v4563_v47 = vld [vmem:[#allocation8 + $0x30] sm:$0xff] }
 0x3ca   : > { %vm3225_vm7 = vcmp.ge.f32.partialorder %v3150_v45, 0.0  ;;  %v3289_v48 = vmul.f32 0.01, %v3150_v45  ;;  %4337 = vst.msk [vmem:[#allocation8 + $0x38] sm:$0xff] %vm4329_vm13, %v4248_v13  ;;  %v3866_v49 = vpop.permute.xlu2 %3865  ;;  %8425 = vmatmul.msk.f32.gmra.mxu1 %vm4598_vm9, %v4563_v47  ;;  %v3997_v47 = vld [vmem:[#allocation3 + $0xba] sm:$0xff] }
 0x3cb   : > { %4531 = vst.msk [vmem:[#allocation8 + $0x38] sm:$0xff] %vm4523_vm15, %v10591_v12  ;;  %v3480_v55 = vld [vmem:[#allocation12 + $0x1c0] ss:$2 sm:$0xff]  ;;  %v3544_v56 = vld [vmem:[#allocation12 + $0x1c1] ss:$2 sm:$0xff] }
 0x3cc   : > { %v3353_v51 = vsel %vm3225_vm7, %v3150_v45, %v3289_v48  ;;  %3952 = vst.msk [vmem:[#allocation8 + $0x50] sm:$0xff] %vm3941_vm4, %v3866_v49  ;;  %v3643_v62 = vmax.f32 %v3480_v55, %v3544_v56  ;;  %v3801_v12 = vld [vmem:[#allocation3 + $0xa5] sm:$0xff] }
 0x3cd   : > { %3418 = vst.msk [vmem:[#allocation12 + $0x1d0] sm:$0xff] %vm3359_vm8, %v3353_v51  ;;  %v4191_v48 = vld [vmem:[#allocation3 + $0xbf] sm:$0xff] }
 0x3ce   : > { %4269 = vrot.lane.b32.xlu0 %v4187_v52, %s9112_s0  ;;  %v4385_v49 = vld [vmem:[#allocation3 + $0xc4] sm:$0xff] }
 0x3cf   : > { %4463 = vrot.lane.b32.xlu1 %v4381_v53, %s9113_s5 }
 0x3d0   : > { %3883 = vrot.lane.b32.xlu2 %v3800_v54, %s9110_s27  ;;  %v3862_v57 = vpop.permute.xlu0 %3861 }
 0x3d1   : > { %3950 = vst.msk [vmem:[#allocation8 + $0x40] sm:$0xff] %vm3941_vm4, %v3862_v57  ;;  %v4056_v58 = vpop.permute.xlu1 %4055  ;;  %v3804_v57 = vld [vmem:[#allocation3 + $0xbd] sm:$0xff] }
 0x3d2   : > { %4144 = vst.msk [vmem:[#allocation8 + $0x40] sm:$0xff] %vm4135_vm12, %v4056_v58  ;;  %v4448_v59 = vpop.permute.xlu2 %4447  ;;  %v4564_v61 = vld [vmem:[#allocation8 + $0x38] sm:$0xff]  ;;  %v3998_v58 = vld [vmem:[#allocation3 + $0xc2] sm:$0xff] }
 0x3d3   : > { %4338 = vst.msk [vmem:[#allocation8 + $0x40] sm:$0xff] %vm4329_vm13, %v10603_v25  ;;  %8426 = vmatmul.msk.f32.gmra.mxu1 %vm4598_vm9, %v4564_v61  ;;  %v4383_v25 = vld [vmem:[#allocation3 + $0xb4] sm:$0xff] }
 0x3d4   : > { %v3608_v63 = vld [vmem:[#allocation12 + $0x1c2] ss:$2 sm:$0xff] }
 0x3d5   : > { %v3675_v3 = vmax.f32 %v3643_v62, %v3608_v63 }
 0x3d6   : > { %4077 = vrot.lane.b32.xlu0 %v3994_v2, %s9111_s3 }
 0x3d7   : > { %4271 = vrot.lane.b32.xlu1 %v4188_v4, %s9112_s0  ;;  %v4712_v6 = vpop.f32.mrf.mxu1  ;;  %3712 = vst.msk [vmem:[#allocation3 + $0xea] sm:$0xff] %vm3359_vm8, %v3675_v3 }
 0x3d8   : > { %4465 = vrot.lane.b32.xlu2 %v4382_v5, %s9113_s5  ;;  %v4713_v7 = vadd.f32 %v10640_v0, %v4712_v6  ;;  %v4444_v8 = vpop.permute.xlu0 %4443 }
 0x3d9   : > { %4532 = vst.msk [vmem:[#allocation8 + $0x40] sm:$0xff] %vm4523_vm15, %v4444_v8  ;;  %v3864_v29 = vpop.permute.xlu1 %3863  ;;  %v4386_v8 = vld [vmem:[#allocation3 + $0xcc] sm:$0xff] }
 0x3da   : > { %vm4808_vm14 = vcmp.ge.f32.partialorder %v4713_v7, 0.0  ;;  %v4840_v9 = vmul.f32 0.01, %v4713_v7  ;;  %3951 = vst.msk [vmem:[#allocation8 + $0x48] sm:$0xff] %vm3941_vm4, %v3864_v29  ;;  %v4256_v10 = vpop.permute.xlu2 %4255  ;;  %v3805_v29 = vld [vmem:[#allocation3 + $0xc5] sm:$0xff] }
 0x3db   : > { %4145 = vst.msk [vmem:[#allocation8 + $0x48] sm:$0xff] %vm4135_vm12, %v4058_v38 }
 0x3dc   : > { %v4872_v11 = vsel %vm4808_vm14, %v4713_v7, %v4840_v9  ;;  %v3999_v9 = vld [vmem:[#allocation3 + $0xca] sm:$0xff] }
 0x3dd   : > { %4905 = vst.msk [vmem:[#allocation13] sm:$0xff] %vm4904_vm5, %v4872_v11 }
 0x3de   : > { %3885 = vrot.lane.b32.xlu0 %v3801_v12, %s9110_s27  ;;  %v3152_v16 = vpop.f32.mrf.mxu0  ;;  %v3746_v18 = vld [vmem:[#allocation3 + $0xe8] sm:$0xff] }
 0x3df   : > { %4079 = vrot.lane.b32.xlu1 %v3995_v14, %s9111_s3  ;;  %v3153_v17 = vadd.f32 %v10501_v39, %v3152_v16  ;;  %3778 = vst.msk [vmem:[#allocation8 + $0xe8] sm:$0xff] %vm3359_vm8, %v3746_v18 }
 0x3e0   : > { %4273 = vrot.lane.b32.xlu2 %v4189_v15, %s9112_s0  ;;  %v4252_v19 = vpop.permute.xlu0 %4251  ;;  %v4565_v20 = vld [vmem:[#allocation8 + $0x40] sm:$0xff] }
 0x3e1   : > { %vm3226_vm1 = vcmp.ge.f32.partialorder %v3153_v17, 0.0  ;;  %v3290_v21 = vmul.f32 0.01, %v3153_v17  ;;  %4339 = vst.msk [vmem:[#allocation8 + $0x48] sm:$0xff] %vm4329_vm13, %v4252_v19  ;;  %v4446_v22 = vpop.permute.xlu1 %4445  ;;  %8427 = vmatmul.msk.f32.gmra.mxu1 %vm4598_vm9, %v4565_v20 }
 0x3e2   : > { %4533 = vst.msk [vmem:[#allocation8 + $0x48] sm:$0xff] %vm4523_vm15, %v4446_v22  ;;  %v4064_v23 = vpop.permute.xlu2 %4063 }
 0x3e3   : > { %v3354_v24 = vsel %vm3226_vm1, %v3153_v17, %v3290_v21 }
 0x3e4   : > { %3419 = vst.msk [vmem:[#allocation12 + $0x1d8] sm:$0xff] %vm3359_vm8, %v3354_v24  ;;  %v4193_v24 = vld [vmem:[#allocation3 + $0xcf] sm:$0xff] }
 0x3e6   : > { %4467 = vrot.lane.b32.xlu0 %v4383_v25, %s9113_s5 }
 0x3e7   : > { %3887 = vrot.lane.b32.xlu1 %v3802_v26, %s9110_s27  ;;  %v4387_v26 = vld [vmem:[#allocation3 + $0xd4] sm:$0xff] }
 0x3e8   : > { %4081 = vrot.lane.b32.xlu2 %v3996_v27, %s9111_s3  ;;  %v4060_v28 = vpop.permute.xlu0 %4059  ;;  %v3806_v27 = vld [vmem:[#allocation3 + $0xcd] sm:$0xff] }
 0x3e9   : > { %4146 = vst.msk [vmem:[#allocation8 + $0x50] sm:$0xff] %vm4135_vm12, %v4060_v28  ;;  %v4254_v30 = vpop.permute.xlu1 %4253  ;;  %v4566_v31 = vld [vmem:[#allocation8 + $0x48] sm:$0xff] }
 0x3ea   : > { %4340 = vst.msk [vmem:[#allocation8 + $0x50] sm:$0xff] %vm4329_vm13, %v4254_v30  ;;  %v3872_v60 = vpop.permute.xlu2 %3871  ;;  %8428 = vmatmul.msk.f32.gmra.mxu1 %vm4598_vm9, %v4566_v31 }
 0x3eb   : > { %4534 = vst.msk [vmem:[#allocation8 + $0x50] sm:$0xff] %vm4523_vm15, %v4448_v59  ;;  %v3482_v51 = vld [vmem:[#allocation12 + $0x1d0] ss:$2 sm:$0xff]  ;;  %v3546_v52 = vld [vmem:[#allocation12 + $0x1d1] ss:$2 sm:$0xff]  ;;  %v4192_v59 = vld [vmem:[#allocation3 + $0xc7] sm:$0xff] }
 0x3ec   : > { %3955 = vst.msk [vmem:[#allocation8 + $0x68] sm:$0xff] %vm3941_vm4, %v3872_v60  ;;  %v3644_v55 = vmax.f32 %v3482_v51, %v3546_v52 }
 0x3ee   : > { %4275 = vrot.lane.b32.xlu0 %v4190_v32, %s9112_s0  ;;  %v4715_v35 = vpop.f32.mrf.mxu1  ;;  %v4000_v32 = vld [vmem:[#allocation3 + $0xd2] sm:$0xff] }
 0x3ef   : > { %4469 = vrot.lane.b32.xlu1 %v4384_v33, %s9113_s5  ;;  %v4716_v36 = vadd.f32 %v10640_v0, %v4715_v35  ;;  %v4194_v33 = vld [vmem:[#allocation3 + $0xd7] sm:$0xff] }
 0x3f0   : > { %3889 = vrot.lane.b32.xlu2 %v3803_v34, %s9110_s27  ;;  %v3155_v37 = vpop.f32.mrf.mxu0  ;;  %v3868_v38 = vpop.permute.xlu0 %3867  ;;  %v4388_v34 = vld [vmem:[#allocation3 + $0xdc] sm:$0xff] }
 0x3f1   : > { %vm4809_vm10 = vcmp.ge.f32.partialorder %v4716_v36, 0.0  ;;  %v4841_v40 = vmul.f32 0.01, %v4716_v36  ;;  %v3156_v41 = vadd.f32 %v10501_v39, %v3155_v37  ;;  %3953 = vst.msk [vmem:[#allocation8 + $0x58] sm:$0xff] %vm3941_vm4, %v3868_v38  ;;  %v4062_v42 = vpop.permute.xlu1 %4061 }
 0x3f2   : > { %4147 = vst.msk [vmem:[#allocation8 + $0x58] sm:$0xff] %vm4135_vm12, %v4062_v42  ;;  %v10675_v43 = vpop.permute.xlu2 %4453  ;;  %v4567_v44 = vld [vmem:[#allocation8 + $0x50] sm:$0xff] }
 0x3f3   : > { %v4873_v45 = vsel %vm4809_vm10, %v4716_v36, %v4841_v40  ;;  %vm3227_vm0 = vcmp.ge.f32.partialorder %v3156_v41, 0.0  ;;  %v3291_v46 = vmul.f32 0.01, %v3156_v41  ;;  %4341 = vst.msk [vmem:[#allocation8 + $0x58] sm:$0xff] %vm4329_vm13, %v4256_v10  ;;  %8429 = vmatmul.msk.f32.gmra.mxu1 %vm4598_vm9, %v4567_v44  ;;  %v3807_v44 = vld [vmem:[#allocation3 + $0xd5] sm:$0xff]  ;;  %vm3715_vm10 = vcmask 63488  }
 0x3f4   : > { %4906 = vst.msk [vmem:[#allocation13 + $0x8] sm:$0xff] %vm4904_vm5, %v4873_v45  ;;  %v4001_v45 = vld [vmem:[#allocation3 + $0xda] sm:$0xff] }
 0x3f5   : > { %v3355_v13 = vsel %vm3227_vm0, %v3156_v41, %v3291_v46  ;;  %v4195_v46 = vld [vmem:[#allocation3 + $0xdf] sm:$0xff] }
 0x3f6   : > { %3420 = vst.msk [vmem:[#allocation12 + $0x1e0] sm:$0xff] %vm3359_vm8, %v3355_v13  ;;  %4083 = vrot.lane.b32.xlu0 %v3997_v47, %s9111_s3 }
 0x3f7   : > { %4277 = vrot.lane.b32.xlu1 %v4191_v48, %s9112_s0 }
 0x3f8   : > { %4471 = vrot.lane.b32.xlu2 %v4385_v49, %s9113_s5  ;;  %v4450_v50 = vpop.permute.xlu0 %4449 }
 0x3f9   : > { %4535 = vst.msk [vmem:[#allocation8 + $0x58] sm:$0xff] %vm4523_vm15, %v4450_v50  ;;  %v3870_v53 = vpop.permute.xlu1 %3869 }
 0x3fa   : > { %3954 = vst.msk [vmem:[#allocation8 + $0x60] sm:$0xff] %vm3941_vm4, %v3870_v53  ;;  %v10688_v54 = vpop.permute.xlu2 %4261 }
 0x3fb   : > { %4148 = vst.msk [vmem:[#allocation8 + $0x60] sm:$0xff] %vm4135_vm12, %v4064_v23  ;;  %v4938_v11 = vld [vmem:[#allocation13] ss:$2 sm:$0xff]  ;;  %v4970_v12 = vld [vmem:[#allocation13 + $0x1] ss:$2 sm:$0xff] }
 0x3fc   : > { %v5033_v20 = vmax.f32 %v4938_v11, %v4970_v12 }
 0x3fd   : > { %v3610_v56 = vld [vmem:[#allocation12 + $0x1d2] ss:$2 sm:$0xff] }
 0x3fe   : > { %3891 = vrot.lane.b32.xlu0 %v3804_v57, %s9110_s27  ;;  %v3676_v61 = vmax.f32 %v3644_v55, %v3610_v56  ;;  %v3808_v55 = vld [vmem:[#allocation3 + $0xdd] sm:$0xff] }
 0x3ff   : > { %4085 = vrot.lane.b32.xlu1 %v3998_v58, %s9111_s3  ;;  %v4718_v62 = vpop.f32.mrf.mxu1  ;;  %v4002_v56 = vld [vmem:[#allocation3 + $0xe2] sm:$0xff] }
 0x400   : > { %4279 = vrot.lane.b32.xlu2 %v4192_v59, %s9112_s0  ;;  %v4719_v63 = vadd.f32 %v10640_v0, %v4718_v62  ;;  %v4258_v2 = vpop.permute.xlu0 %4257  ;;  %v4568_v3 = vld [vmem:[#allocation8 + $0x58] sm:$0xff]  ;;  %3713 = vst.msk [vmem:[#allocation3 + $0xf2] sm:$0xff] %vm3359_vm8, %v3676_v61 }
 0x401   : > { %4342 = vst.msk [vmem:[#allocation8 + $0x60] sm:$0xff] %vm4329_vm13, %v4258_v2  ;;  %v4452_v4 = vpop.permute.xlu1 %4451  ;;  %8430 = vmatmul.msk.f32.gmra.mxu1 %vm4598_vm9, %v4568_v3 }
 0x402   : > { %vm4810_vm2 = vcmp.ge.f32.partialorder %v4719_v63, 0.0  ;;  %v4842_v5 = vmul.f32 0.01, %v4719_v63  ;;  %4536 = vst.msk [vmem:[#allocation8 + $0x60] sm:$0xff] %vm4523_vm15, %v4452_v4  ;;  %v10699_v6 = vpop.permute.xlu2 %4069 }
 0x404   : > { %v4874_v7 = vsel %vm4810_vm2, %v4719_v63, %v4842_v5  ;;  %v4196_v5 = vld [vmem:[#allocation3 + $0xe7] sm:$0xff] }
 0x405   : > { %4907 = vst.msk [vmem:[#allocation13 + $0x10] sm:$0xff] %vm4904_vm5, %v4874_v7 }
 0x406   : > { %4473 = vrot.lane.b32.xlu0 %v4386_v8, %s9113_s5 }
 0x407   : > { %3893 = vrot.lane.b32.xlu1 %v3805_v29, %s9110_s27  ;;  %v3158_v10 = vpop.f32.mrf.mxu0  ;;  %v3747_v21 = vld [vmem:[#allocation3 + $0xf0] sm:$0xff] }
 0x408   : > { %4087 = vrot.lane.b32.xlu2 %v3999_v9, %s9111_s3  ;;  %v3159_v14 = vadd.f32 %v10501_v39, %v3158_v10  ;;  %v4066_v15 = vpop.permute.xlu0 %4065  ;;  %3779 = vst.msk [vmem:[#allocation8 + $0xf0] sm:$0xff] %vm3359_vm8, %v3747_v21  ;;  %v4390_v7 = vld [vmem:[#allocation3 + $0xec] sm:$0xff] }
 0x409   : > { %4149 = vst.msk [vmem:[#allocation8 + $0x68] sm:$0xff] %vm4135_vm12, %v4066_v15  ;;  %v4260_v16 = vpop.permute.xlu1 %4259  ;;  %v4569_v17 = vld [vmem:[#allocation8 + $0x60] sm:$0xff]  ;;  %v4197_v21 = vld [vmem:[#allocation3 + $0xef] sm:$0xff] }
 0x40a   : > { %vm3228_vm3 = vcmp.ge.f32.partialorder %v3159_v14, 0.0  ;;  %v3292_v18 = vmul.f32 0.01, %v3159_v14  ;;  %4343 = vst.msk [vmem:[#allocation8 + $0x68] sm:$0xff] %vm4329_vm13, %v4260_v16  ;;  %v3878_v19 = vpop.permute.xlu2 %3877  ;;  %8431 = vmatmul.msk.f32.gmra.mxu1 %vm4598_vm9, %v4569_v17 }
 0x40b   : > { %4537 = vst.msk [vmem:[#allocation8 + $0x68] sm:$0xff] %vm4523_vm15, %v10675_v43 }
 0x40c   : > { %v5002_v22 = vld [vmem:[#allocation13 + $0x2] ss:$2 sm:$0xff]  ;;  %v3356_v23 = vsel %vm3228_vm3, %v3159_v14, %v3292_v18  ;;  %3958 = vst.msk [vmem:[#allocation8 + $0x80] sm:$0xff] %vm3941_vm4, %v3878_v19 }
 0x40d   : > { %3421 = vst.msk [vmem:[#allocation12 + $0x1e8] sm:$0xff] %vm3359_vm8, %v3356_v23  ;;  %v5049_v25 = vmax.f32 %v5033_v20, %v5002_v22  ;;  %v4003_v19 = vld [vmem:[#allocation3 + $0xea] sm:$0xff] }
 0x40e   : > { %4281 = vrot.lane.b32.xlu0 %v4193_v24, %s9112_s0 }
 0x40f   : > { %4475 = vrot.lane.b32.xlu1 %v4387_v26, %s9113_s5  ;;  %5070 = vst.msk [vmem:[#allocation4 + $0xa] sm:$0xff] %vm4904_vm5, %v5049_v25 }
 0x410   : > { %3895 = vrot.lane.b32.xlu2 %v3806_v27, %s9110_s27  ;;  %v3874_v28 = vpop.permute.xlu0 %3873 }
 0x411   : > { %3956 = vst.msk [vmem:[#allocation8 + $0x70] sm:$0xff] %vm3941_vm4, %v3874_v28  ;;  %v4068_v30 = vpop.permute.xlu1 %4067 }
 0x412   : > { %4150 = vst.msk [vmem:[#allocation8 + $0x70] sm:$0xff] %vm4135_vm12, %v4068_v30  ;;  %v4460_v31 = vpop.permute.xlu2 %4459  ;;  %v4570_v60 = vld [vmem:[#allocation8 + $0x68] sm:$0xff] }
 0x413   : > { %4344 = vst.msk [vmem:[#allocation8 + $0x70] sm:$0xff] %vm4329_vm13, %v10688_v54  ;;  %8432 = vmatmul.msk.f32.gmra.mxu1 %vm4598_vm9, %v4570_v60  ;;  %v4389_v54 = vld [vmem:[#allocation3 + $0xe4] sm:$0xff] }
 0x414   : > { %v3484_v57 = vld [vmem:[#allocation12 + $0x1e0] ss:$2 sm:$0xff]  ;;  %v3548_v58 = vld [vmem:[#allocation12 + $0x1e1] ss:$2 sm:$0xff] }
 0x415   : > { %v3645_v63 = vmax.f32 %v3484_v57, %v3548_v58 }
 0x416   : > { %4089 = vrot.lane.b32.xlu0 %v4000_v32, %s9111_s3  ;;  %v5087_v35 = vld [vmem:[#allocation4 + $0x8] sm:$0xff] }
 0x417   : > { %4283 = vrot.lane.b32.xlu1 %v4194_v33, %s9112_s0  ;;  %5103 = vst.msk [vmem:[#allocation9 + $0x8] sm:$0xff] %vm4904_vm5, %v5087_v35  ;;  %v4004_v35 = vld [vmem:[#allocation3 + $0xf2] sm:$0xff] }
 0x418   : > { %4477 = vrot.lane.b32.xlu2 %v4388_v34, %s9113_s5  ;;  %v4721_v36 = vpop.f32.mrf.mxu1  ;;  %v4456_v37 = vpop.permute.xlu0 %4455 }
 0x419   : > { %v4722_v38 = vadd.f32 %v10640_v0, %v4721_v36  ;;  %4538 = vst.msk [vmem:[#allocation8 + $0x70] sm:$0xff] %vm4523_vm15, %v4456_v37  ;;  %v3876_v40 = vpop.permute.xlu1 %3875 }
 0x41a   : > { %3957 = vst.msk [vmem:[#allocation8 + $0x78] sm:$0xff] %vm3941_vm4, %v3876_v40  ;;  %v10730_v41 = vpop.permute.xlu2 %4267 }
 0x41b   : > { %vm4811_vm6 = vcmp.ge.f32.partialorder %v4722_v38, 0.0  ;;  %v4843_v42 = vmul.f32 0.01, %v4722_v38  ;;  %4151 = vst.msk [vmem:[#allocation8 + $0x78] sm:$0xff] %vm4135_vm12, %v10699_v6  ;;  %v3809_v6 = vld [vmem:[#allocation3 + $0xe5] sm:$0xff] }
 0x41d   : > { %v4875_v43 = vsel %vm4811_vm6, %v4722_v38, %v4843_v42 }
 0x41e   : > { %4908 = vst.msk [vmem:[#allocation13 + $0x18] sm:$0xff] %vm4904_vm5, %v4875_v43  ;;  %3897 = vrot.lane.b32.xlu0 %v3807_v44, %s9110_s27  ;;  %v3161_v13 = vpop.f32.mrf.mxu0 }
 0x41f   : > { %4091 = vrot.lane.b32.xlu1 %v4001_v45, %s9111_s3  ;;  %v3162_v47 = vadd.f32 %v10501_v39, %v3161_v13 }
 0x420   : > { %4285 = vrot.lane.b32.xlu2 %v4195_v46, %s9112_s0  ;;  %v4264_v48 = vpop.permute.xlu0 %4263  ;;  %v4571_v49 = vld [vmem:[#allocation8 + $0x70] sm:$0xff] }
 0x421   : > { %vm3229_vm7 = vcmp.ge.f32.partialorder %v3162_v47, 0.0  ;;  %v3293_v50 = vmul.f32 0.01, %v3162_v47  ;;  %4345 = vst.msk [vmem:[#allocation8 + $0x78] sm:$0xff] %vm4329_vm13, %v4264_v48  ;;  %v4458_v51 = vpop.permute.xlu1 %4457  ;;  %8433 = vmatmul.msk.f32.gmra.mxu1 %vm4598_vm9, %v4571_v49 }
 0x422   : > { %4539 = vst.msk [vmem:[#allocation8 + $0x78] sm:$0xff] %vm4523_vm15, %v4458_v51  ;;  %v10742_v52 = vpop.permute.xlu2 %4075 }
 0x423   : > { %v3357_v53 = vsel %vm3229_vm7, %v3162_v47, %v3293_v50 }
 0x424   : > { %3422 = vst.msk [vmem:[#allocation12 + $0x1f0] sm:$0xff] %vm3359_vm8, %v3357_v53 }
 0x425   : > { %v4940_v23 = vld [vmem:[#allocation13 + $0x10] ss:$2 sm:$0xff]  ;;  %v4972_v24 = vld [vmem:[#allocation13 + $0x11] ss:$2 sm:$0xff] }
 0x426   : > { %4479 = vrot.lane.b32.xlu0 %v4389_v54, %s9113_s5  ;;  %v5034_v27 = vmax.f32 %v4940_v23, %v4972_v24 }
 0x427   : > { %3899 = vrot.lane.b32.xlu1 %v3808_v55, %s9110_s27 }
 0x428   : > { %4093 = vrot.lane.b32.xlu2 %v4002_v56, %s9111_s3  ;;  %v4072_v59 = vpop.permute.xlu0 %4071 }
 0x429   : > { %4152 = vst.msk [vmem:[#allocation8 + $0x80] sm:$0xff] %vm4135_vm12, %v4072_v59  ;;  %v4266_v61 = vpop.permute.xlu1 %4265  ;;  %v4572_v62 = vld [vmem:[#allocation8 + $0x78] sm:$0xff] }
 0x42a   : > { %4346 = vst.msk [vmem:[#allocation8 + $0x80] sm:$0xff] %vm4329_vm13, %v4266_v61  ;;  %v3884_v2 = vpop.permute.xlu2 %3883  ;;  %8434 = vmatmul.msk.f32.gmra.mxu1 %vm4598_vm9, %v4572_v62 }
 0x42b   : > { %v3612_v3 = vld [vmem:[#allocation12 + $0x1e2] ss:$2 sm:$0xff]  ;;  %4540 = vst.msk [vmem:[#allocation8 + $0x80] sm:$0xff] %vm4523_vm15, %v4460_v31 }
 0x42c   : > { %3961 = vst.msk [vmem:[#allocation8 + $0x98] sm:$0xff] %vm3941_vm4, %v3884_v2  ;;  %v3677_v4 = vmax.f32 %v3645_v63, %v3612_v3  ;;  %v3810_v31 = vld [vmem:[#allocation3 + $0xed] sm:$0xff] }
 0x42e   : > { %4287 = vrot.lane.b32.xlu0 %v4196_v5, %s9112_s0  ;;  %v4724_v8 = vpop.f32.mrf.mxu1  ;;  %3714 = vst.msk [vmem:[#allocation3 + $0xfa] sm:$0xff] %vm3359_vm8, %v3677_v4 }
 0x42f   : > { %4481 = vrot.lane.b32.xlu1 %v4390_v7, %s9113_s5  ;;  %v4725_v29 = vadd.f32 %v10640_v0, %v4724_v8 }
 0x430   : > { %3901 = vrot.lane.b32.xlu2 %v3809_v6, %s9110_s27  ;;  %v3164_v9 = vpop.f32.mrf.mxu0  ;;  %v3880_v10 = vpop.permute.xlu0 %3879 }
 0x431   : > { %vm4812_vm14 = vcmp.ge.f32.partialorder %v4725_v29, 0.0  ;;  %v4844_v11 = vmul.f32 0.01, %v4725_v29  ;;  %v3165_v12 = vadd.f32 %v10501_v39, %v3164_v9  ;;  %3959 = vst.msk [vmem:[#allocation8 + $0x88] sm:$0xff] %vm3941_vm4, %v3880_v10  ;;  %v4074_v14 = vpop.permute.xlu1 %4073 }
 0x432   : > { %4153 = vst.msk [vmem:[#allocation8 + $0x88] sm:$0xff] %vm4135_vm12, %v4074_v14  ;;  %v10761_v15 = vpop.permute.xlu2 %4465  ;;  %v4573_v16 = vld [vmem:[#allocation8 + $0x80] sm:$0xff] }
 0x433   : > { %v4876_v17 = vsel %vm4812_vm14, %v4725_v29, %v4844_v11  ;;  %vm3230_vm1 = vcmp.ge.f32.partialorder %v3165_v12, 0.0  ;;  %v3294_v18 = vmul.f32 0.01, %v3165_v12  ;;  %4347 = vst.msk [vmem:[#allocation8 + $0x88] sm:$0xff] %vm4329_vm13, %v10730_v41  ;;  %8435 = vmatmul.msk.f32.gmra.mxu1 %vm4598_vm9, %v4573_v16  ;;  %v4394_v11 = vld [vmem:[#allocation3 + $0x10c] sm:$0x7f] }
 0x434   : > { %4909 = vst.msk [vmem:[#allocation13 + $0x20] sm:$0xff] %vm4904_vm5, %v4876_v17 }
 0x435   : > { %v3358_v39 = vsel %vm3230_vm1, %v3165_v12, %v3294_v18  ;;  %v4391_v20 = vld [vmem:[#allocation3 + $0xf4] sm:$0xff] }
 0x436   : > { %3423 = vst.msk [vmem:[#allocation12 + $0x1f8] sm:$0xff] %vm3359_vm8, %v3358_v39  ;;  %4095 = vrot.lane.b32.xlu0 %v4003_v19, %s9111_s3  ;;  %v3748_v22 = vld [vmem:[#allocation3 + $0xf8] sm:$0x7f] }
 0x437   : > { %4289 = vrot.lane.b32.xlu1 %v4197_v21, %s9112_s0  ;;  %3780 = vst.msk [vmem:[#allocation8 + $0xf8] sm:$0x7f] %vm3715_vm10, %v3748_v22  ;;  %v4198_v36 = vld [vmem:[#allocation3 + $0xf7] sm:$0xff]  ;;  %v5216_v21 = vld [vmem:[#allocation4 + $0xa] sm:$0xff] }
 0x438   : > { %4483 = vrot.lane.b32.xlu2 %v4391_v20, %s9113_s5  ;;  %v4462_v25 = vpop.permute.xlu0 %4461  ;;  %v4005_v47 = vld [vmem:[#allocation3 + $0xfa] sm:$0xff] }
 0x439   : > { %4541 = vst.msk [vmem:[#allocation8 + $0x88] sm:$0xff] %vm4523_vm15, %v4462_v25  ;;  %v3882_v26 = vpop.permute.xlu1 %3881  ;;  %v3811_v48 = vld [vmem:[#allocation3 + $0xf5] sm:$0xff] }
 0x43a   : > { %3960 = vst.msk [vmem:[#allocation8 + $0x90] sm:$0xff] %vm3941_vm4, %v3882_v26  ;;  %v10774_v28 = vpop.permute.xlu2 %4273 }
 0x43b   : > { %v5004_v30 = vld [vmem:[#allocation13 + $0x12] ss:$2 sm:$0xff]  ;;  %4154 = vst.msk [vmem:[#allocation8 + $0x90] sm:$0xff] %vm4135_vm12, %v10742_v52 }
 0x43c   : > { %v5050_v60 = vmax.f32 %v5034_v27, %v5004_v30  ;;  %v5118_v30 = vld [vmem:[#allocation4 + $0x5] sm:$0xff] }
 0x43d   : > { %v3486_v32 = vld [vmem:[#allocation12 + $0x1f0] ss:$2 sm:$0x7f]  ;;  %v3550_v33 = vld [vmem:[#allocation12 + $0x1f1] ss:$2 sm:$0x7f] }
 0x43e   : > { %v3646_v34 = vmax.f32 %v3486_v32, %v3550_v33  ;;  %3903 = vrot.lane.b32.xlu0 %v3810_v31, %s9110_s27  ;;  %v4727_v37 = vpop.f32.mrf.mxu1  ;;  %5071 = vst.msk [vmem:[#allocation4 + $0x12] sm:$0xff] %vm4904_vm5, %v5050_v60  ;;  %v3614_v38 = vld [vmem:[#allocation12 + $0x1f2] ss:$2 sm:$0x7f] }
 0x43f   : > { %4097 = vrot.lane.b32.xlu1 %v4004_v35, %s9111_s3  ;;  %v4728_v40 = vadd.f32 %v10640_v0, %v4727_v37 }
 0x440   : > { %4291 = vrot.lane.b32.xlu2 %v4198_v36, %s9112_s0  ;;  %v4270_v41 = vpop.permute.xlu0 %4269  ;;  %v4574_v42 = vld [vmem:[#allocation8 + $0x88] sm:$0xff]  ;;  %v3678_v43 = vmax.f32 %v3646_v34, %v3614_v38 }
 0x441   : > { %vm4813_vm8 = vcmp.ge.f32.partialorder %v4728_v40, 0.0  ;;  %v4845_v44 = vmul.f32 0.01, %v4728_v40  ;;  %4348 = vst.msk [vmem:[#allocation8 + $0x90] sm:$0xff] %vm4329_vm13, %v4270_v41  ;;  %v4464_v45 = vpop.permute.xlu1 %4463  ;;  %8436 = vmatmul.msk.f32.gmra.mxu1 %vm4598_vm9, %v4574_v42 }
 0x442   : > { %4542 = vst.msk [vmem:[#allocation8 + $0x90] sm:$0xff] %vm4523_vm15, %v4464_v45  ;;  %v10786_v46 = vpop.permute.xlu2 %4081 }
 0x443   : > { %v4877_v13 = vsel %vm4813_vm8, %v4728_v40, %v4845_v44  ;;  %3716 = vst.msk [vmem:[#allocation3 + $0x102] sm:$0x7f] %vm3715_vm10, %v3678_v43  ;;  %vm3973_vm8 = vcmask 129088  }
 0x444   : > { %4910 = vst.msk [vmem:[#allocation13 + $0x28] sm:$0xff] %vm4904_vm5, %v4877_v13 }
 0x445   : > { %v5088_v49 = vld [vmem:[#allocation4 + $0x10] sm:$0xff] }
 0x446   : > { %5104 = vst.msk [vmem:[#allocation9 + $0x10] sm:$0xff] %vm4904_vm5, %v5088_v49  ;;  %v5314_v20 = vld [vmem:[#allocation4 + $0xf] sm:$0xff] }
 0x447   : > { %3905 = vrot.lane.b32.xlu1 %v3811_v48, %s9110_s27  ;;  %v4730_v50 = vpop.f32.mrf.mxu1  ;;  %v5217_v60 = vld [vmem:[#allocation4 + $0x12] sm:$0xff] }
 0x448   : > { %4099 = vrot.lane.b32.xlu2 %v4005_v47, %s9111_s3  ;;  %v4731_v51 = vadd.f32 %v10640_v0, %v4730_v50  ;;  %v4078_v52 = vpop.permute.xlu0 %4077  ;;  %v5119_v32 = vld [vmem:[#allocation4 + $0xd] sm:$0xff] }
 0x449   : > { %4155 = vst.msk [vmem:[#allocation8 + $0x98] sm:$0xff] %vm4135_vm12, %v4078_v52  ;;  %v4272_v53 = vpop.permute.xlu1 %4271  ;;  %v4575_v54 = vld [vmem:[#allocation8 + $0x90] sm:$0xff] }
 0x44a   : > { %vm4814_vm0 = vcmp.ge.f32.partialorder %v4731_v51, 0.0  ;;  %v4846_v55 = vmul.f32 0.01, %v4731_v51  ;;  %4349 = vst.msk [vmem:[#allocation8 + $0x98] sm:$0xff] %vm4329_vm13, %v4272_v53  ;;  %v3890_v56 = vpop.permute.xlu2 %3889  ;;  %v4392_v57 = vld [vmem:[#allocation3 + $0xfc] sm:$0xff]  ;;  %8437 = vmatmul.msk.f32.gmra.mxu1 %vm4598_vm9, %v4575_v54  ;;  %v4393_v59 = vld [vmem:[#allocation3 + $0x104] sm:$0xff] }
 0x44b   : > { %4543 = vst.msk [vmem:[#allocation8 + $0x98] sm:$0xff] %vm4523_vm15, %v10761_v15  ;;  %4485 = vrot.lane.b32.xlu0 %v4392_v57, %s9113_s5  ;;  %v3812_v61 = vld [vmem:[#allocation3 + $0xfd] sm:$0x7f]  ;;  %v4200_v15 = vld [vmem:[#allocation3 + $0x107] sm:$0x7f] }
 0x44c   : > { %v4878_v58 = vsel %vm4814_vm0, %v4731_v51, %v4846_v55  ;;  %3964 = vst.msk [vmem:[#allocation8 + $0xb0] sm:$0xff] %vm3941_vm4, %v3890_v56  ;;  %v4942_v62 = vld [vmem:[#allocation13 + $0x20] ss:$2 sm:$0xff]  ;;  %v4974_v63 = vld [vmem:[#allocation13 + $0x21] ss:$2 sm:$0xff] }
 0x44d   : > { %4911 = vst.msk [vmem:[#allocation13 + $0x30] sm:$0xff] %vm4904_vm5, %v4878_v58  ;;  %v4199_v7 = vld [vmem:[#allocation3 + $0xff] sm:$0xff]  ;;  %v5035_v29 = vmax.f32 %v4942_v62, %v4974_v63 }
 0x44e   : > { %v4006_v39 = vld [vmem:[#allocation3 + $0x102] sm:$0x7f] }
 0x44f   : > { %4487 = vrot.lane.b32.xlu1 %v4393_v59, %s9113_s5 }
 0x450   : > { %3907 = vrot.lane.b32.xlu2 %v3812_v61, %s9110_s27  ;;  %v3886_v2 = vpop.permute.xlu0 %3885  ;;  %v4733_v3 = vpop.f32.mrf.mxu1 }
 0x451   : > { %3962 = vst.msk [vmem:[#allocation8 + $0xa0] sm:$0xff] %vm3941_vm4, %v3886_v2  ;;  %v4080_v4 = vpop.permute.xlu1 %4079  ;;  %v4734_v5 = vadd.f32 %v10640_v0, %v4733_v3 }
 0x452   : > { %4156 = vst.msk [vmem:[#allocation8 + $0xa0] sm:$0xff] %vm4135_vm12, %v4080_v4  ;;  %v10807_v6 = vpop.permute.xlu2 %4471  ;;  %v4576_v8 = vld [vmem:[#allocation8 + $0x98] sm:$0xff] }
 0x453   : > { %4350 = vst.msk [vmem:[#allocation8 + $0xa0] sm:$0xff] %vm4329_vm13, %v10774_v28  ;;  %vm4815_vm11 = vcmp.ge.f32.partialorder %v4734_v5, 0.0  ;;  %v4847_v9 = vmul.f32 0.01, %v4734_v5  ;;  %4293 = vrot.lane.b32.xlu0 %v4199_v7, %s9112_s0  ;;  %8438 = vmatmul.msk.f32.gmra.mxu1 %vm4598_vm9, %v4576_v8 }
 0x454   : > { %v5006_v10 = vld [vmem:[#allocation13 + $0x22] ss:$2 sm:$0xff] }
 0x455   : > { %v4879_v12 = vsel %vm4815_vm11, %v4734_v5, %v4847_v9  ;;  %v5051_v14 = vmax.f32 %v5035_v29, %v5006_v10 }
 0x456   : > { %4912 = vst.msk [vmem:[#allocation13 + $0x38] sm:$0xff] %vm4904_vm5, %v4879_v12 }
 0x457   : > { %4295 = vrot.lane.b32.xlu1 %v4200_v15, %s9112_s0  ;;  %5072 = vst.msk [vmem:[#allocation4 + $0x1a] sm:$0xff] %vm4904_vm5, %v5051_v14  ;;  %s11697_s0 = sld [smem:[#allocation52_spill]] }
 0x458   : > { %4489 = vrot.lane.b32.xlu2 %v4394_v11, %s9113_s5  ;;  %v4468_v16 = vpop.permute.xlu0 %4467 }
 0x459   : > { %4544 = vst.msk [vmem:[#allocation8 + $0xa0] sm:$0xff] %vm4523_vm15, %v4468_v16  ;;  %v3888_v17 = vpop.permute.xlu1 %3887 }
 0x45a   : > { %3963 = vst.msk [vmem:[#allocation8 + $0xa8] sm:$0xff] %vm3941_vm4, %v3888_v17  ;;  %v10819_v18 = vpop.permute.xlu2 %4279 }
 0x45b   : > { %4157 = vst.msk [vmem:[#allocation8 + $0xa8] sm:$0xff] %vm4135_vm12, %v10786_v46  ;;  %4101 = vrot.lane.b32.xlu0 %v4006_v39, %s9111_s3 }
 0x45d   : > { %v4944_v33 = vld [vmem:[#allocation13 + $0x30] ss:$2 sm:$0xff]  ;;  %v4976_v34 = vld [vmem:[#allocation13 + $0x31] ss:$2 sm:$0xff] }
 0x45e   : > { %v4736_v19 = vpop.f32.mrf.mxu1  ;;  %v5089_v23 = vld [vmem:[#allocation4 + $0x18] sm:$0xff]  ;;  %v5036_v41 = vmax.f32 %v4944_v33, %v4976_v34 }
 0x45f   : > { %v4737_v22 = vadd.f32 %v10640_v0, %v4736_v19  ;;  %5248 = vrot.lane.b32.xlu1 %v5216_v21, %s9113_s5  ;;  %5105 = vst.msk [vmem:[#allocation9 + $0x18] sm:$0xff] %vm4904_vm5, %v5089_v23  ;;  %v5412_v44 = vld [vmem:[#allocation4 + $0x14] sm:$0xff] }
 0x460   : > { %5346 = vrot.lane.b32.xlu2 %v5314_v20, %s9114_s4  ;;  %v4276_v24 = vpop.permute.xlu0 %4275  ;;  %v4577_v25 = vld [vmem:[#allocation8 + $0xa0] sm:$0xff]  ;;  %v5120_v47 = vld [vmem:[#allocation4 + $0x15] sm:$0xff] }
 0x461   : > { %vm4816_vm2 = vcmp.ge.f32.partialorder %v4737_v22, 0.0  ;;  %v4848_v26 = vmul.f32 0.01, %v4737_v22  ;;  %4351 = vst.msk [vmem:[#allocation8 + $0xa8] sm:$0xff] %vm4329_vm13, %v4276_v24  ;;  %v4470_v27 = vpop.permute.xlu1 %4469  ;;  %8439 = vmatmul.msk.f32.gmra.mxu1 %vm4598_vm9, %v4577_v25  ;;  %v5315_v53 = vld [vmem:[#allocation4 + $0x17] sm:$0xff] }
 0x462   : > { %4545 = vst.msk [vmem:[#allocation8 + $0xa8] sm:$0xff] %vm4523_vm15, %v4470_v27  ;;  %v10831_v28 = vpop.permute.xlu2 %4087  ;;  %v5218_v3 = vld [vmem:[#allocation4 + $0x1a] sm:$0xff] }
 0x463   : > { %v4880_v31 = vsel %vm4816_vm2, %v4737_v22, %v4848_v26  ;;  %5150 = vrot.lane.b32.xlu0 %v5118_v30, %s9111_s3  ;;  %vm4361_vm2 = vcmask 260288  }
 0x464   : > { %4913 = vst.msk [vmem:[#allocation13 + $0x40] sm:$0xff] %vm4904_vm5, %v4880_v31 }
 0x467   : > { %5152 = vrot.lane.b32.xlu1 %v5119_v32, %s9111_s3  ;;  %v4739_v35 = vpop.f32.mrf.mxu1 }
 0x468   : > { %5250 = vrot.lane.b32.xlu2 %v5217_v60, %s9113_s5  ;;  %v4740_v36 = vadd.f32 %v10640_v0, %v4739_v35  ;;  %v4084_v37 = vpop.permute.xlu0 %4083 }
 0x469   : > { %4158 = vst.msk [vmem:[#allocation8 + $0xb0] sm:$0xff] %vm4135_vm12, %v4084_v37  ;;  %v4278_v38 = vpop.permute.xlu1 %4277  ;;  %v4578_v40 = vld [vmem:[#allocation8 + $0xa8] sm:$0xff] }
 0x46a   : > { %vm4817_vm3 = vcmp.ge.f32.partialorder %v4740_v36, 0.0  ;;  %v4849_v42 = vmul.f32 0.01, %v4740_v36  ;;  %4352 = vst.msk [vmem:[#allocation8 + $0xb0] sm:$0xff] %vm4329_vm13, %v4278_v38  ;;  %v3896_v43 = vpop.permute.xlu2 %3895  ;;  %8440 = vmatmul.msk.f32.gmra.mxu1 %vm4598_vm9, %v4578_v40 }
 0x46b   : > { %v5008_v45 = vld [vmem:[#allocation13 + $0x32] ss:$2 sm:$0xff]  ;;  %4546 = vst.msk [vmem:[#allocation8 + $0xb0] sm:$0xff] %vm4523_vm15, %v10807_v6  ;;  %5444 = vrot.lane.b32.xlu0 %v5412_v44, %s9115_s28 }
 0x46c   : > { %v4881_v46 = vsel %vm4817_vm3, %v4740_v36, %v4849_v42  ;;  %3967 = vst.msk [vmem:[#allocation8 + $0xc8] sm:$0xff] %vm3941_vm4, %v3896_v43  ;;  %v5052_v13 = vmax.f32 %v5036_v41, %v5008_v45  ;;  %vm4555_vm3 = vcmask 325888  }
 0x46d   : > { %4914 = vst.msk [vmem:[#allocation13 + $0x48] sm:$0xff] %vm4904_vm5, %v4881_v46 }
 0x46e   : > { %5073 = vst.msk [vmem:[#allocation4 + $0x22] sm:$0xff] %vm4904_vm5, %v5052_v13 }
 0x470   : > { %5154 = vrot.lane.b32.xlu2 %v5120_v47, %s9111_s3  ;;  %v3892_v48 = vpop.permute.xlu0 %3891  ;;  %v4742_v49 = vpop.f32.mrf.mxu1 }
 0x471   : > { %3965 = vst.msk [vmem:[#allocation8 + $0xb8] sm:$0xff] %vm3941_vm4, %v3892_v48  ;;  %v4086_v50 = vpop.permute.xlu1 %4085  ;;  %v4743_v51 = vadd.f32 %v10640_v0, %v4742_v49  ;;  %v10894_v48 = vld [vmem:[#allocation23] ss:$0 sm:$0xff] }
 0x472   : > { %4159 = vst.msk [vmem:[#allocation8 + $0xb8] sm:$0xff] %vm4135_vm12, %v4086_v50  ;;  %v4478_v52 = vpop.permute.xlu2 %4477  ;;  %v4579_v54 = vld [vmem:[#allocation8 + $0xb0] sm:$0xff] }
 0x473   : > { %4353 = vst.msk [vmem:[#allocation8 + $0xb8] sm:$0xff] %vm4329_vm13, %v10819_v18  ;;  %vm4818_vm6 = vcmp.ge.f32.partialorder %v4743_v51, 0.0  ;;  %v4850_v55 = vmul.f32 0.01, %v4743_v51  ;;  %5348 = vrot.lane.b32.xlu0 %v5315_v53, %s9114_s4  ;;  %8441 = vmatmul.msk.f32.gmra.mxu1 %vm4598_vm9, %v4579_v54 }
 0x474   : > { %v4946_v61 = vld [vmem:[#allocation13 + $0x40] ss:$2 sm:$0xff]  ;;  %v4978_v62 = vld [vmem:[#allocation13 + $0x41] ss:$2 sm:$0xff] }
 0x475   : > { %v4882_v56 = vsel %vm4818_vm6, %v4743_v51, %v4850_v55  ;;  %v5413_v57 = vld [vmem:[#allocation4 + $0x1c] sm:$0xff]  ;;  %v5037_v4 = vmax.f32 %v4946_v61, %v4978_v62 }
 0x476   : > { %4915 = vst.msk [vmem:[#allocation13 + $0x50] sm:$0xff] %vm4904_vm5, %v4882_v56  ;;  %5446 = vrot.lane.b32.xlu1 %v5413_v57, %s9115_s28  ;;  %v5090_v58 = vld [vmem:[#allocation4 + $0x20] sm:$0xff] }
 0x477   : > { %5106 = vst.msk [vmem:[#allocation9 + $0x20] sm:$0xff] %vm4904_vm5, %v5090_v58  ;;  %v5316_v6 = vld [vmem:[#allocation4 + $0x1f] sm:$0xff] }
 0x478   : > { %v4474_v59 = vpop.permute.xlu0 %4473  ;;  %v5121_v15 = vld [vmem:[#allocation4 + $0x1d] sm:$0xff] }
 0x479   : > { %4547 = vst.msk [vmem:[#allocation8 + $0xb8] sm:$0xff] %vm4523_vm15, %v4474_v59  ;;  %v3894_v63 = vpop.permute.xlu1 %3893  ;;  %v5219_v17 = vld [vmem:[#allocation4 + $0x22] sm:$0xff] }
 0x47a   : > { %3966 = vst.msk [vmem:[#allocation8 + $0xc0] sm:$0xff] %vm3941_vm4, %v3894_v63  ;;  %v4286_v2 = vpop.permute.xlu2 %4285 }
 0x47b   : > { %4160 = vst.msk [vmem:[#allocation8 + $0xc0] sm:$0xff] %vm4135_vm12, %v10831_v28  ;;  %5252 = vrot.lane.b32.xlu0 %v5218_v3, %s9113_s5 }
 0x47d   : > { %v5010_v5 = vld [vmem:[#allocation13 + $0x42] ss:$2 sm:$0xff] }
 0x47e   : > { %v4745_v7 = vpop.f32.mrf.mxu1  ;;  %5350 = vrot.lane.b32.xlu1 %v5316_v6, %s9114_s4  ;;  %v5053_v8 = vmax.f32 %v5037_v4, %v5010_v5 }
 0x47f   : > { %v4746_v29 = vadd.f32 %v10640_v0, %v4745_v7 }
 0x480   : > { %v4282_v9 = vpop.permute.xlu0 %4281  ;;  %v4580_v10 = vld [vmem:[#allocation8 + $0xb8] sm:$0xff]  ;;  %5074 = vst.msk [vmem:[#allocation4 + $0x2a] sm:$0xff] %vm4904_vm5, %v5053_v8 }
 0x481   : > { %vm4819_vm7 = vcmp.ge.f32.partialorder %v4746_v29, 0.0  ;;  %v4851_v11 = vmul.f32 0.01, %v4746_v29  ;;  %4354 = vst.msk [vmem:[#allocation8 + $0xc0] sm:$0xff] %vm4329_vm13, %v4282_v9  ;;  %v4476_v12 = vpop.permute.xlu1 %4475  ;;  %8442 = vmatmul.msk.f32.gmra.mxu1 %vm4598_vm9, %v4580_v10 }
 0x482   : > { %4548 = vst.msk [vmem:[#allocation8 + $0xc0] sm:$0xff] %vm4523_vm15, %v4476_v12  ;;  %v4094_v14 = vpop.permute.xlu2 %4093 }
 0x483   : > { %v4883_v16 = vsel %vm4819_vm7, %v4746_v29, %v4851_v11  ;;  %5156 = vrot.lane.b32.xlu0 %v5121_v15, %s9111_s3  ;;  %vm5296_vm7 = vcmask 392448  }
 0x484   : > { %4916 = vst.msk [vmem:[#allocation13 + $0x58] sm:$0xff] %vm4904_vm5, %v4883_v16 }
 0x486   : > { %5254 = vrot.lane.b32.xlu1 %v5219_v17, %s9113_s5 }
 0x487   : > { %v4748_v18 = vpop.f32.mrf.mxu1  ;;  %v5414_v39 = vld [vmem:[#allocation4 + $0x24] sm:$0xff] }
 0x488   : > { %v4749_v19 = vadd.f32 %v10640_v0, %v4748_v18  ;;  %v4090_v20 = vpop.permute.xlu0 %4089  ;;  %5448 = vrot.lane.b32.xlu2 %v5414_v39, %s9115_s28  ;;  %v5091_v25 = vld [vmem:[#allocation4 + $0x28] sm:$0xff] }
 0x489   : > { %4161 = vst.msk [vmem:[#allocation8 + $0xc8] sm:$0xff] %vm4135_vm12, %v4090_v20  ;;  %v4284_v21 = vpop.permute.xlu1 %4283  ;;  %v4581_v22 = vld [vmem:[#allocation8 + $0xc0] sm:$0xff] }
 0x48a   : > { %vm4820_vm14 = vcmp.ge.f32.partialorder %v4749_v19, 0.0  ;;  %v4852_v23 = vmul.f32 0.01, %v4749_v19  ;;  %4355 = vst.msk [vmem:[#allocation8 + $0xc8] sm:$0xff] %vm4329_vm13, %v4284_v21  ;;  %v3902_v24 = vpop.permute.xlu2 %3901  ;;  %8443 = vmatmul.msk.f32.gmra.mxu1 %vm4598_vm9, %v4581_v22  ;;  %v5122_v27 = vld [vmem:[#allocation4 + $0x25] sm:$0xff]  ;;  %v5535_v21 = vld [vmem:[%s11697_s0 + $0x48] sm:$0xff] }
 0x48b   : > { %4549 = vst.msk [vmem:[#allocation8 + $0xc8] sm:$0xff] %vm4523_vm15, %v4478_v52  ;;  %v5317_v28 = vld [vmem:[#allocation4 + $0x27] sm:$0xff]  ;;  %v4948_v30 = vld [vmem:[#allocation13 + $0x50] ss:$2 sm:$0xff]  ;;  %5595 = vmatpush.msra.mxu2 %v5535_v21 }
 0x48c   : > { %v4884_v26 = vsel %vm4820_vm14, %v4749_v19, %v4852_v23  ;;  %3970 = vst.msk [vmem:[#allocation8 + $0xe0] sm:$0xff] %vm3941_vm4, %v3902_v24  ;;  %v4980_v31 = vld [vmem:[#allocation13 + $0x51] ss:$2 sm:$0xff]  ;;  %v5220_v43 = vld [vmem:[#allocation4 + $0x2a] sm:$0xff]  ;;  %vm5394_vm14 = vcmask 523648  }
 0x48d   : > { %4917 = vst.msk [vmem:[#allocation13 + $0x60] sm:$0xff] %vm4904_vm5, %v4884_v26  ;;  %v5038_v37 = vmax.f32 %v4948_v30, %v4980_v31  ;;  %v5086_v26 = vld [vmem:[#allocation4] sm:$0xff] }
 0x48e   : > { %5158 = vrot.lane.b32.xlu1 %v5122_v27, %s9111_s3  ;;  %5107 = vst.msk [vmem:[#allocation9 + $0x28] sm:$0xff] %vm4904_vm5, %v5091_v25  ;;  %v5534_v25 = vld [vmem:[%s11697_s0 + $0x40] sm:$0xff] }
 0x48f   : > { %5596 = vmatpush.msra.mxu2 %v5534_v25  ;;  %5102 = vst.msk [vmem:[#allocation9] sm:$0xff] %vm4904_vm5, %v5086_v26 }
 0x490   : > { %v3898_v60 = vpop.permute.xlu0 %3897  ;;  %v4751_v32 = vpop.f32.mrf.mxu1  ;;  %5352 = vrot.lane.b32.xlu2 %v5317_v28, %s9114_s4  ;;  %v5533_v28 = vld [vmem:[%s11697_s0 + $0x38] sm:$0xff] }
 0x491   : > { %3968 = vst.msk [vmem:[#allocation8 + $0xd0] sm:$0xff] %vm3941_vm4, %v3898_v60  ;;  %v4092_v33 = vpop.permute.xlu1 %4091  ;;  %v4752_v34 = vadd.f32 %v10640_v0, %v4751_v32  ;;  %5597 = vmatpush.msra.mxu2 %v5533_v28 }
 0x492   : > { %4162 = vst.msk [vmem:[#allocation8 + $0xd0] sm:$0xff] %vm4135_vm12, %v4092_v33  ;;  %v4484_v35 = vpop.permute.xlu2 %4483  ;;  %v4582_v36 = vld [vmem:[#allocation8 + $0xc8] sm:$0xff]  ;;  %v5532_v33 = vld [vmem:[%s11697_s0 + $0x30] sm:$0xff] }
 0x493   : > { %4356 = vst.msk [vmem:[#allocation8 + $0xd0] sm:$0xff] %vm4329_vm13, %v4286_v2  ;;  %vm4821_vm1 = vcmp.ge.f32.partialorder %v4752_v34, 0.0  ;;  %v4853_v38 = vmul.f32 0.01, %v4752_v34  ;;  %8444 = vmatmul.msk.f32.gmra.mxu1 %vm4598_vm9, %v4582_v36  ;;  %5598 = vmatpush.msra.mxu2 %v5532_v33  ;;  %v5531_v36 = vld [vmem:[%s11697_s0 + $0x28] sm:$0xff] }
 0x494   : > { %v5012_v40 = vld [vmem:[#allocation13 + $0x52] ss:$2 sm:$0xff] }
 0x495   : > { %v4885_v41 = vsel %vm4821_vm1, %v4752_v34, %v4853_v38  ;;  %v5054_v42 = vmax.f32 %v5038_v37, %v5012_v40  ;;  %v5530_v38 = vld [vmem:[%s11697_s0 + $0x20] sm:$0xff]  ;;  %5599 = vmatpush.msra.mxu2 %v5531_v36  ;;  %vm5492_vm1 = vcmask 654848  }
 0x496   : > { %4918 = vst.msk [vmem:[#allocation13 + $0x68] sm:$0xff] %vm4904_vm5, %v4885_v41 }
 0x497   : > { %5075 = vst.msk [vmem:[#allocation4 + $0x32] sm:$0xff] %vm4904_vm5, %v5054_v42  ;;  %v5529_v42 = vld [vmem:[%s11697_s0 + $0x18] sm:$0xff]  ;;  %5600 = vmatpush.msra.mxu2 %v5530_v38 }
 0x498   : > { %v4480_v0 = vpop.permute.xlu0 %4479  ;;  %5256 = vrot.lane.b32.xlu2 %v5220_v43, %s9113_s5 }
 0x499   : > { %4550 = vst.msk [vmem:[#allocation8 + $0xd0] sm:$0xff] %vm4523_vm15, %v4480_v0  ;;  %v3900_v44 = vpop.permute.xlu1 %3899  ;;  %5601 = vmatpush.msra.mxu2 %v5529_v42 }
 0x49a   : > { %3969 = vst.msk [vmem:[#allocation8 + $0xd8] sm:$0xff] %vm3941_vm4, %v3900_v44  ;;  %v4292_v45 = vpop.permute.xlu2 %4291 }
 0x49b   : > { %4163 = vst.msk [vmem:[#allocation8 + $0xd8] sm:$0xff] %vm4135_vm12, %v4094_v14 }
 0x49d   : > { %v4950_v58 = vld [vmem:[#allocation13 + $0x60] ss:$2 sm:$0xff]  ;;  %v4982_v59 = vld [vmem:[#allocation13 + $0x61] ss:$2 sm:$0xff] }
 0x49e   : > { %v4754_v46 = vpop.f32.mrf.mxu1  ;;  %v5415_v13 = vld [vmem:[#allocation4 + $0x2c] sm:$0xff]  ;;  %v5039_v4 = vmax.f32 %v4950_v58, %v4982_v59 }
 0x49f   : > { %v5123_v47 = vld [vmem:[#allocation4 + $0x2d] sm:$0xff]  ;;  %v4755_v49 = vadd.f32 %v10894_v48, %v4754_v46  ;;  %5450 = vrot.lane.b32.xlu0 %v5415_v13, %s9115_s28  ;;  %v5528_v13 = vld [vmem:[%s11697_s0 + $0x10] sm:$0xff] }
 0x4a0   : > { %v5092_v50 = vld [vmem:[#allocation4 + $0x30] sm:$0xff]  ;;  %v4288_v51 = vpop.permute.xlu0 %4287  ;;  %5160 = vrot.lane.b32.xlu2 %v5123_v47, %s9111_s3  ;;  %v4583_v52 = vld [vmem:[#allocation8 + $0xd0] sm:$0xff]  ;;  %5602 = vmatpush.msra.mxu2 %v5528_v13 }
 0x4a1   : > { %5108 = vst.msk [vmem:[#allocation9 + $0x30] sm:$0xff] %vm4904_vm5, %v5092_v50  ;;  %vm4822_vm10 = vcmp.ge.f32.partialorder %v4755_v49, 0.0  ;;  %v4854_v53 = vmul.f32 0.01, %v4755_v49  ;;  %v4482_v54 = vpop.permute.xlu1 %4481  ;;  %8445 = vmatmul.msk.f32.gmra.mxu1 %vm4598_vm9, %v4583_v52  ;;  %v5318_v57 = vld [vmem:[#allocation4 + $0x2f] sm:$0xff] }
 0x4a2   : > { %4357 = vst.msk [vmem:[#allocation8 + $0xd8] sm:$0xff] %vm4329_vm13, %v4288_v51  ;;  %v4100_v55 = vpop.permute.xlu2 %4099  ;;  %v5221_v9 = vld [vmem:[#allocation4 + $0x32] sm:$0xff] }
 0x4a3   : > { %4551 = vst.msk [vmem:[#allocation8 + $0xd8] sm:$0xff] %vm4523_vm15, %v4482_v54  ;;  %v4886_v56 = vsel %vm4822_vm10, %v4755_v49, %v4854_v53  ;;  %v5527_v51 = vld [vmem:[%s11697_s0 + $0x8] sm:$0xff]  ;;  %v5526_v54 = vld [vmem:[%s11697_s0] sm:$0xff]  ;;  %vm5540_vm10 = vcmask 654336  }
 0x4a4   : > { %4919 = vst.msk [vmem:[#allocation13 + $0x70] sm:$0xff] %vm4904_vm5, %v4886_v56  ;;  %5603 = vmatpush.msra.mxu2 %v5527_v51 }
 0x4a6   : > { %5604 = vmatpush.msra.mxu2 %v5526_v54 }
 0x4a7   : > { %v4757_v61 = vpop.f32.mrf.mxu1  ;;  %5354 = vrot.lane.b32.xlu0 %v5318_v57, %s9114_s4 }
 0x4a8   : > { %v4758_v62 = vadd.f32 %v10894_v48, %v4757_v61  ;;  %v4096_v63 = vpop.permute.xlu0 %4095 }
 0x4a9   : > { %4164 = vst.msk [vmem:[#allocation8 + $0xe0] sm:$0xff] %vm4135_vm12, %v4096_v63  ;;  %v4290_v2 = vpop.permute.xlu1 %4289 }
 0x4aa   : > { %v4584_v3 = vld [vmem:[#allocation8 + $0xd8] sm:$0xff]  ;;  %vm4823_vm0 = vcmp.ge.f32.partialorder %v4758_v62, 0.0  ;;  %v4855_v5 = vmul.f32 0.01, %v4758_v62  ;;  %4358 = vst.msk [vmem:[#allocation8 + $0xe0] sm:$0xff] %vm4329_vm13, %v4290_v2  ;;  %v3908_v6 = vpop.permute.xlu2 %3907 }
 0x4ab   : > { %8446 = vmatmul.msk.f32.gmra.mxu1 %vm4598_vm9, %v4584_v3  ;;  %v5014_v7 = vld [vmem:[#allocation13 + $0x62] ss:$2 sm:$0xff]  ;;  %4552 = vst.msk [vmem:[#allocation8 + $0xe0] sm:$0xff] %vm4523_vm15, %v4484_v35 }
 0x4ac   : > { %v4887_v8 = vsel %vm4823_vm0, %v4758_v62, %v4855_v5  ;;  %3974 = vst.msk [vmem:[#allocation8 + $0xf8] sm:$0x7f] %vm3973_vm8, %v3908_v6  ;;  %v5055_v29 = vmax.f32 %v5039_v4, %v5014_v7 }
 0x4ad   : > { %4920 = vst.msk [vmem:[#allocation13 + $0x78] sm:$0xff] %vm4904_vm5, %v4887_v8 }
 0x4ae   : > { %5076 = vst.msk [vmem:[#allocation4 + $0x3a] sm:$0xff] %vm4904_vm5, %v5055_v29 }
 0x4af   : > { %5258 = vrot.lane.b32.xlu0 %v5221_v9, %s9113_s5 }
 0x4b0   : > { %v3904_v10 = vpop.permute.xlu0 %3903  ;;  %v4760_v11 = vpop.f32.mrf.mxu1 }
 0x4b1   : > { %v4098_v12 = vpop.permute.xlu1 %4097  ;;  %3971 = vst.msk [vmem:[#allocation8 + $0xe8] sm:$0xff] %vm3941_vm4, %v3904_v10  ;;  %v4761_v14 = vadd.f32 %v10894_v48, %v4760_v11 }
 0x4b2   : > { %4165 = vst.msk [vmem:[#allocation8 + $0xe8] sm:$0xff] %vm4135_vm12, %v4098_v12  ;;  %v10916_v15 = vpop.permute.xlu2 %4489  ;;  %v4585_v16 = vld [vmem:[#allocation8 + $0xe0] sm:$0xff] }
 0x4b3   : > { %4359 = vst.msk [vmem:[#allocation8 + $0xe8] sm:$0xff] %vm4329_vm13, %v4292_v45  ;;  %vm4824_vm11 = vcmp.ge.f32.partialorder %v4761_v14, 0.0  ;;  %v4856_v17 = vmul.f32 0.01, %v4761_v14  ;;  %8447 = vmatmul.msk.f32.gmra.mxu1 %vm4598_vm9, %v4585_v16 }
 0x4b4   : > { %v4952_v22 = vld [vmem:[#allocation13 + $0x70] ss:$2 sm:$0xff]  ;;  %v4984_v23 = vld [vmem:[#allocation13 + $0x71] ss:$2 sm:$0xff] }
 0x4b5   : > { %v4888_v18 = vsel %vm4824_vm11, %v4761_v14, %v4856_v17  ;;  %v5416_v39 = vld [vmem:[#allocation4 + $0x34] sm:$0xff]  ;;  %v5040_v30 = vmax.f32 %v4952_v22, %v4984_v23 }
 0x4b6   : > { %v5124_v19 = vld [vmem:[#allocation4 + $0x35] sm:$0xff]  ;;  %4921 = vst.msk [vmem:[#allocation13 + $0x80] sm:$0xff] %vm4904_vm5, %v4888_v18  ;;  %5452 = vrot.lane.b32.xlu1 %v5416_v39, %s9115_s28 }
 0x4b7   : > { %v5093_v20 = vld [vmem:[#allocation4 + $0x38] sm:$0xff]  ;;  %5162 = vrot.lane.b32.xlu0 %v5124_v19, %s9111_s3 }
 0x4b8   : > { %5109 = vst.msk [vmem:[#allocation9 + $0x38] sm:$0xff] %vm4904_vm5, %v5093_v20  ;;  %v5319_v32 = vld [vmem:[#allocation4 + $0x37] sm:$0xff] }
 0x4b9   : > { %v3906_v24 = vpop.permute.xlu1 %3905  ;;  %v5222_v46 = vld [vmem:[#allocation4 + $0x3a] sm:$0xff] }
 0x4ba   : > { %3972 = vst.msk [vmem:[#allocation8 + $0xf0] sm:$0xff] %vm3941_vm4, %v3906_v24  ;;  %v10931_v27 = vpop.permute.xlu2 %5346 }
 0x4bb   : > { %4166 = vst.msk [vmem:[#allocation8 + $0xf0] sm:$0xff] %vm4135_vm12, %v4100_v55  ;;  %vm5198_vm12 = vcmask 261248  }
 0x4bd   : > { %v5016_v31 = vld [vmem:[#allocation13 + $0x72] ss:$2 sm:$0xff]  ;;  %v4486_v60 = vpop.permute.xlu0 %4485 }
 0x4be   : > { %4553 = vst.msk [vmem:[#allocation8 + $0xe8] sm:$0xff] %vm4523_vm15, %v4486_v60  ;;  %v4763_v34 = vpop.f32.mrf.mxu1  ;;  %5356 = vrot.lane.b32.xlu1 %v5319_v32, %s9114_s4  ;;  %v5056_v35 = vmax.f32 %v5040_v30, %v5016_v31 }
 0x4bf   : > { %v4764_v37 = vadd.f32 %v10894_v48, %v4763_v34 }
 0x4c0   : > { %5077 = vst.msk [vmem:[#allocation4 + $0x42] sm:$0xff] %vm4904_vm5, %v5056_v35 }
 0x4c1   : > { %vm4825_vm4 = vcmp.ge.f32.partialorder %v4764_v37, 0.0  ;;  %v4857_v40 = vmul.f32 0.01, %v4764_v37  ;;  %v4488_v41 = vpop.permute.xlu1 %4487 }
 0x4c2   : > { %v10954_v43 = vpop.permute.xlu2 %5250 }
 0x4c3   : > { %v4889_v0 = vsel %vm4825_vm4, %v4764_v37, %v4857_v40 }
 0x4c4   : > { %4922 = vst.msk [vmem:[#allocation13 + $0x88] sm:$0xff] %vm4904_vm5, %v4889_v0 }
 0x4c5   : > { %v4294_v44 = vpop.permute.xlu0 %4293  ;;  %v4586_v45 = vld [vmem:[#allocation8 + $0xe8] sm:$0xff] }
 0x4c6   : > { %4360 = vst.msk [vmem:[#allocation8 + $0xf0] sm:$0xff] %vm4329_vm13, %v4294_v44  ;;  %8448 = vmatmul.msk.f32.gmra.mxu1 %vm4598_vm9, %v4586_v45  ;;  %5260 = vrot.lane.b32.xlu1 %v5222_v46, %s9113_s5 }
 0x4c7   : > { %4554 = vst.msk [vmem:[#allocation8 + $0xf0] sm:$0xff] %vm4523_vm15, %v4488_v41  ;;  %v4766_v47 = vpop.f32.mrf.mxu1  ;;  %v5417_v49 = vld [vmem:[#allocation4 + $0x3c] sm:$0xff]  ;;  %vm4167_vm15 = vcmask 194688  }
 0x4c8   : > { %v4767_v50 = vadd.f32 %v10894_v48, %v4766_v47  ;;  %5454 = vrot.lane.b32.xlu2 %v5417_v49, %s9115_s28  ;;  %v5094_v52 = vld [vmem:[#allocation4 + $0x40] sm:$0xff] }
 0x4c9   : > { %v4296_v53 = vpop.permute.xlu1 %4295  ;;  %5110 = vst.msk [vmem:[#allocation9 + $0x40] sm:$0xff] %vm4904_vm5, %v5094_v52  ;;  %v5125_v59 = vld [vmem:[#allocation4 + $0x3d] sm:$0xff] }
 0x4ca   : > { %vm4826_vm13 = vcmp.ge.f32.partialorder %v4767_v50, 0.0  ;;  %v4858_v55 = vmul.f32 0.01, %v4767_v50  ;;  %v5155_v56 = vpop.permute.xlu2 %5154  ;;  %v5320_v62 = vld [vmem:[#allocation4 + $0x3f] sm:$0xff] }
 0x4cb   : > { %5201 = vst.msk [vmem:[#allocation9 + $0x10] sm:$0xff] %vm5198_vm12, %v5155_v56  ;;  %v4954_v4 = vld [vmem:[#allocation13 + $0x80] ss:$2 sm:$0xff]  ;;  %v4986_v5 = vld [vmem:[#allocation13 + $0x81] ss:$2 sm:$0xff] }
 0x4cc   : > { %v4890_v57 = vsel %vm4826_vm13, %v4767_v50, %v4858_v55  ;;  %v5041_v9 = vmax.f32 %v4954_v4, %v4986_v5  ;;  %v5223_v11 = vld [vmem:[#allocation4 + $0x42] sm:$0xff] }
 0x4cd   : > { %4923 = vst.msk [vmem:[#allocation13 + $0x90] sm:$0xff] %vm4904_vm5, %v4890_v57  ;;  %v4102_v58 = vpop.permute.xlu0 %4101 }
 0x4ce   : > { %4168 = vst.msk [vmem:[#allocation8 + $0xf8] sm:$0x7f] %vm4167_vm15, %v4102_v58  ;;  %v4587_v61 = vld [vmem:[#allocation8 + $0xf0] sm:$0xff]  ;;  %5164 = vrot.lane.b32.xlu1 %v5125_v59, %s9111_s3 }
 0x4cf   : > { %4362 = vst.msk [vmem:[#allocation8 + $0xf8] sm:$0x7f] %vm4361_vm2, %v4296_v53  ;;  %8449 = vmatmul.msk.f32.gmra.mxu1 %vm4598_vm9, %v4587_v61 }
 0x4d0   : > { %4556 = vst.msk [vmem:[#allocation8 + $0xf8] sm:$0x7f] %vm4555_vm3, %v10916_v15  ;;  %v4769_v63 = vpop.f32.mrf.mxu1  ;;  %5358 = vrot.lane.b32.xlu2 %v5320_v62, %s9114_s4 }
 0x4d1   : > { %v4770_v2 = vadd.f32 %v10894_v48, %v4769_v63  ;;  %v5249_v3 = vpop.permute.xlu1 %5248 }
 0x4d3   : > { %vm4827_vm6 = vcmp.ge.f32.partialorder %v4770_v2, 0.0  ;;  %v4859_v6 = vmul.f32 0.01, %v4770_v2 }
 0x4d4   : > { %v5018_v7 = vld [vmem:[#allocation13 + $0x82] ss:$2 sm:$0xff] }
 0x4d5   : > { %v4891_v8 = vsel %vm4827_vm6, %v4770_v2, %v4859_v6  ;;  %v5151_v29 = vpop.permute.xlu0 %5150  ;;  %v5057_v12 = vmax.f32 %v5041_v9, %v5018_v7 }
 0x4d6   : > { %4924 = vst.msk [vmem:[#allocation13 + $0x98] sm:$0xff] %vm4904_vm5, %v4891_v8 }
 0x4d7   : > { %5199 = vst.msk [vmem:[#allocation9] sm:$0xff] %vm5198_vm12, %v5151_v29  ;;  %v4588_v10 = vld [vmem:[#allocation8 + $0xf8] sm:$0x7f] }
 0x4d8   : > { %5297 = vst.msk [vmem:[#allocation9] sm:$0xff] %vm5296_vm7, %v5249_v3  ;;  %8450 = vmatmul.msk.f32.gmra.mxu1 %vm4598_vm9, %v4588_v10  ;;  %5262 = vrot.lane.b32.xlu2 %v5223_v11, %s9113_s5 }
 0x4d9   : > { %v5153_v14 = vpop.permute.xlu1 %5152  ;;  %5395 = vst.msk [vmem:[#allocation9] sm:$0xff] %vm5394_vm14, %v10931_v27 }
 0x4da   : > { %5200 = vst.msk [vmem:[#allocation9 + $0x8] sm:$0xff] %vm5198_vm12, %v5153_v14 }
 0x4db   : > { %5298 = vst.msk [vmem:[#allocation9 + $0x8] sm:$0xff] %vm5296_vm7, %v10954_v43 }
 0x4dc   : > { %5078 = vst.msk [vmem:[#allocation4 + $0x4a] sm:$0xff] %vm4904_vm5, %v5057_v12 }
 0x4dd   : > { %v5445_v15 = vpop.permute.xlu0 %5444  ;;  %v4956_v25 = vld [vmem:[#allocation13 + $0x90] ss:$2 sm:$0xff]  ;;  %v4988_v26 = vld [vmem:[#allocation13 + $0x91] ss:$2 sm:$0xff] }
 0x4de   : > { %5493 = vst.msk [vmem:[#allocation9] sm:$0xff] %vm5492_vm1, %v5445_v15  ;;  %v4772_v16 = vpop.f32.mrf.mxu1  ;;  %v5042_v31 = vmax.f32 %v4956_v25, %v4988_v26 }
 0x4df   : > { %v4773_v17 = vadd.f32 %v10894_v48, %v4772_v16 }
 0x4e1   : > { %vm4828_vm9 = vcmp.ge.f32.partialorder %v4773_v17, 0.0  ;;  %v4860_v18 = vmul.f32 0.01, %v4773_v17 }
 0x4e2   : > { %v5449_v39 = vpop.permute.xlu2 %5448 }
 0x4e3   : > { %v4892_v19 = vsel %vm4828_vm9, %v4773_v17, %v4860_v18  ;;  %v5418_v20 = vld [vmem:[#allocation4 + $0x44] sm:$0xff]  ;;  %vm5702_vm9 = vcmask 261120  }
 0x4e4   : > { %v5126_v21 = vld [vmem:[#allocation4 + $0x45] sm:$0xff]  ;;  %4925 = vst.msk [vmem:[#allocation13 + $0xa0] sm:$0xff] %vm4904_vm5, %v4892_v19  ;;  %5456 = vrot.lane.b32.xlu0 %v5418_v20, %s9115_s28 }
 0x4e5   : > { %5166 = vrot.lane.b32.xlu2 %v5126_v21, %s9111_s3  ;;  %v5095_v22 = vld [vmem:[#allocation4 + $0x48] sm:$0xff]  ;;  %v5349_v23 = vpop.permute.xlu0 %5348  ;;  %5783 = vst.msk [vmem:[#allocation5] sm:$0xff] %vm5702_vm9, %v9105_v1 }
 0x4e6   : > { %v5510_v24 = vld [vmem:[#allocation9] sm:$0xff]  ;;  %5111 = vst.msk [vmem:[#allocation9 + $0x48] sm:$0xff] %vm4904_vm5, %v5095_v22 }
 0x4e7   : > { %5396 = vst.msk [vmem:[#allocation9 + $0x8] sm:$0xff] %vm5394_vm14, %v5349_v23  ;;  %8451 = vmatmul.msk.f32.vlgmr.msra.gmra.mxu2 %vm5540_vm10, %v5510_v24  ;;  %v4775_v27 = vpop.f32.mrf.mxu1  ;;  %v5321_v34 = vld [vmem:[#allocation4 + $0x47] sm:$0xff] }
 0x4e8   : > { %v4776_v28 = vadd.f32 %v10894_v48, %v4775_v27  ;;  %v5447_v30 = vpop.permute.xlu1 %5446  ;;  %v5224_v0 = vld [vmem:[#allocation4 + $0x4a] sm:$0xff]  ;;  %5786 = vst.msk [vmem:[#allocation5 + $0x49] sm:$0xff] %vm5702_vm9, %v9105_v1 }
 0x4e9   : > { %5494 = vst.msk [vmem:[#allocation9 + $0x8] sm:$0xff] %vm5492_vm1, %v5447_v30 }
 0x4ea   : > { %vm4829_vm8 = vcmp.ge.f32.partialorder %v4776_v28, 0.0  ;;  %v4861_v60 = vmul.f32 0.01, %v4776_v28  ;;  %v5353_v32 = vpop.permute.xlu2 %5352  ;;  %6191 = vst.msk [vmem:[#allocation6] sm:$0xff] %vm5702_vm9, %v9105_v1 }
 0x4eb   : > { %v5020_v33 = vld [vmem:[#allocation13 + $0x92] ss:$2 sm:$0xff]  ;;  %6193 = vst.msk [vmem:[#allocation6 + $0x29] sm:$0xff] %vm5702_vm9, %v9105_v1 }
 0x4ec   : > { %v4893_v35 = vsel %vm4829_vm8, %v4776_v28, %v4861_v60  ;;  %5360 = vrot.lane.b32.xlu0 %v5321_v34, %s9114_s4  ;;  %v5058_v36 = vmax.f32 %v5042_v31, %v5020_v33 }
 0x4ed   : > { %4926 = vst.msk [vmem:[#allocation13 + $0xa8] sm:$0xff] %vm4904_vm5, %v4893_v35  ;;  %v5253_v37 = vpop.permute.xlu0 %5252 }
 0x4ee   : > { %5299 = vst.msk [vmem:[#allocation9 + $0x10] sm:$0xff] %vm5296_vm7, %v5253_v37 }
 0x4ef   : > { %5079 = vst.msk [vmem:[#allocation4 + $0x52] sm:$0xff] %vm4904_vm5, %v5058_v36 }
 0x4f0   : > { %v4778_v38 = vpop.f32.mrf.mxu1  ;;  %v5351_v40 = vpop.permute.xlu1 %5350  ;;  %v5511_v41 = vld [vmem:[#allocation9 + $0x8] sm:$0xff] }
 0x4f1   : > { %v4779_v42 = vadd.f32 %v10894_v48, %v4778_v38  ;;  %5397 = vst.msk [vmem:[#allocation9 + $0x10] sm:$0xff] %vm5394_vm14, %v5351_v40  ;;  %8452 = vmatmul.msk.f32.gmra.mxu2 %vm5540_vm10, %v5511_v41 }
 0x4f2   : > { %5495 = vst.msk [vmem:[#allocation9 + $0x10] sm:$0xff] %vm5492_vm1, %v5449_v39  ;;  %v5257_v43 = vpop.permute.xlu2 %5256 }
 0x4f3   : > { %vm4830_vm0 = vcmp.ge.f32.partialorder %v4779_v42, 0.0  ;;  %v4862_v44 = vmul.f32 0.01, %v4779_v42 }
 0x4f4   : > { %5264 = vrot.lane.b32.xlu0 %v5224_v0, %s9113_s5  ;;  %v4958_v49 = vld [vmem:[#allocation13 + $0xa0] ss:$2 sm:$0xff]  ;;  %v4990_v51 = vld [vmem:[#allocation13 + $0xa1] ss:$2 sm:$0xff] }
 0x4f5   : > { %v4894_v45 = vsel %vm4830_vm0, %v4779_v42, %v4862_v44  ;;  %v5157_v46 = vpop.permute.xlu0 %5156  ;;  %v5043_v55 = vmax.f32 %v4958_v49, %v4990_v51 }
 0x4f6   : > { %4927 = vst.msk [vmem:[#allocation13 + $0xb0] sm:$0xff] %vm4904_vm5, %v4894_v45  ;;  %v5419_v13 = vld [vmem:[#allocation4 + $0x4c] sm:$0xff] }
 0x4f7   : > { %5202 = vst.msk [vmem:[#allocation9 + $0x18] sm:$0xff] %vm5198_vm12, %v5157_v46  ;;  %5458 = vrot.lane.b32.xlu1 %v5419_v13, %s9115_s28  ;;  %v5096_v47 = vld [vmem:[#allocation4 + $0x50] sm:$0xff] }
 0x4f8   : > { %v5255_v50 = vpop.permute.xlu1 %5254  ;;  %5112 = vst.msk [vmem:[#allocation9 + $0x50] sm:$0xff] %vm4904_vm5, %v5096_v47  ;;  %v5127_v52 = vld [vmem:[#allocation4 + $0x4d] sm:$0xff] }
 0x4f9   : > { %5300 = vst.msk [vmem:[#allocation9 + $0x18] sm:$0xff] %vm5296_vm7, %v5255_v50  ;;  %v5512_v53 = vld [vmem:[#allocation9 + $0x10] sm:$0xff]  ;;  %v5322_v58 = vld [vmem:[#allocation4 + $0x4f] sm:$0xff] }
 0x4fa   : > { %5398 = vst.msk [vmem:[#allocation9 + $0x18] sm:$0xff] %vm5394_vm14, %v5353_v32  ;;  %v5161_v54 = vpop.permute.xlu2 %5160  ;;  %8453 = vmatmul.msk.f32.gmra.mxu2 %vm5540_vm10, %v5512_v53  ;;  %v5225_v3 = vld [vmem:[#allocation4 + $0x52] sm:$0xff] }
 0x4fb   : > { %5204 = vst.msk [vmem:[#allocation9 + $0x28] sm:$0xff] %vm5198_vm12, %v5161_v54 }
 0x4fc   : > { %5168 = vrot.lane.b32.xlu0 %v5127_v52, %s9111_s3 }
 0x4fd   : > { %v5022_v56 = vld [vmem:[#allocation13 + $0xa2] ss:$2 sm:$0xff] }
 0x4fe   : > { %v4781_v57 = vpop.f32.mrf.mxu1  ;;  %v5059_v59 = vmax.f32 %v5043_v55, %v5022_v56 }
 0x4ff   : > { %v4782_v61 = vadd.f32 %v10894_v48, %v4781_v57  ;;  %5362 = vrot.lane.b32.xlu1 %v5322_v58, %s9114_s4 }
 0x500   : > { %v5159_v62 = vpop.permute.xlu1 %5158  ;;  %5080 = vst.msk [vmem:[#allocation4 + $0x5a] sm:$0xff] %vm4904_vm5, %v5059_v59 }
 0x501   : > { %vm4831_vm11 = vcmp.ge.f32.partialorder %v4782_v61, 0.0  ;;  %v4863_v63 = vmul.f32 0.01, %v4782_v61  ;;  %5203 = vst.msk [vmem:[#allocation9 + $0x20] sm:$0xff] %vm5198_vm12, %v5159_v62 }
 0x502   : > { %5301 = vst.msk [vmem:[#allocation9 + $0x20] sm:$0xff] %vm5296_vm7, %v5257_v43 }
 0x503   : > { %v4895_v2 = vsel %vm4831_vm11, %v4782_v61, %v4863_v63  ;;  %vm4936_vm11 = vcmask 129024  }
 0x504   : > { %4928 = vst.msk [vmem:[#allocation13 + $0xb8] sm:$0xff] %vm4904_vm5, %v4895_v2 }
 0x507   : > { %5266 = vrot.lane.b32.xlu1 %v5225_v3, %s9113_s5  ;;  %v4784_v4 = vpop.f32.mrf.mxu1  ;;  %v5420_v5 = vld [vmem:[#allocation4 + $0x54] sm:$0xff] }
 0x508   : > { %v4785_v6 = vadd.f32 %v10894_v48, %v4784_v4  ;;  %5460 = vrot.lane.b32.xlu2 %v5420_v5, %s9115_s28  ;;  %v5097_v7 = vld [vmem:[#allocation4 + $0x58] sm:$0xff] }
 0x509   : > { %5113 = vst.msk [vmem:[#allocation9 + $0x58] sm:$0xff] %vm4904_vm5, %v5097_v7  ;;  %v5128_v9 = vld [vmem:[#allocation4 + $0x55] sm:$0xff] }
 0x50a   : > { %vm4832_vm4 = vcmp.ge.f32.partialorder %v4785_v6, 0.0  ;;  %v4864_v8 = vmul.f32 0.01, %v4785_v6  ;;  %v5323_v10 = vld [vmem:[#allocation4 + $0x57] sm:$0xff] }
 0x50b   : > { %v4960_v11 = vld [vmem:[#allocation13 + $0xb0] ss:$2 sm:$0xff]  ;;  %v4992_v12 = vld [vmem:[#allocation13 + $0xb1] ss:$2 sm:$0xff] }
 0x50c   : > { %v4896_v29 = vsel %vm4832_vm4, %v4785_v6, %v4864_v8  ;;  %v5044_v17 = vmax.f32 %v4960_v11, %v4992_v12  ;;  %v5226_v21 = vld [vmem:[#allocation4 + $0x5a] sm:$0xff]  ;;  %vm5784_vm4 = vcmask 254976  }
 0x50d   : > { %4929 = vst.msk [vmem:[#allocation13 + $0xc0] sm:$0xff] %vm4904_vm5, %v4896_v29 }
 0x50e   : > { %5785 = vst.msk [vmem:[#allocation5 + $0x8] sm:$0x3] %vm5784_vm4, %v9105_v1 }
 0x50f   : > { %5170 = vrot.lane.b32.xlu1 %v5128_v9, %s9111_s3  ;;  %5787 = vst.msk [vmem:[#allocation5 + $0x51] sm:$0x3] %vm5784_vm4, %v9105_v1 }
 0x510   : > { %v4787_v14 = vpop.f32.mrf.mxu1  ;;  %5364 = vrot.lane.b32.xlu2 %v5323_v10, %s9114_s4  ;;  %6194 = vst.msk [vmem:[#allocation6 + $0x31] sm:$0x3] %vm5784_vm4, %v9105_v1 }
 0x511   : > { %v4788_v15 = vadd.f32 %v10894_v48, %v4787_v14  ;;  %v5451_v16 = vpop.permute.xlu0 %5450  ;;  %6192 = vst.msk [vmem:[#allocation6 + $0x8] sm:$0x3] %vm5784_vm4, %v9105_v1  ;;  %vm5902_vm4 = vcmask 785920  }
 0x512   : > { %5496 = vst.msk [vmem:[#allocation9 + $0x18] sm:$0xff] %vm5492_vm1, %v5451_v16 }
 0x513   : > { %vm4833_vm13 = vcmp.ge.f32.partialorder %v4788_v15, 0.0  ;;  %v4865_v18 = vmul.f32 0.01, %v4788_v15 }
 0x514   : > { %v5024_v39 = vld [vmem:[#allocation13 + $0xb2] ss:$2 sm:$0xff] }
 0x515   : > { %v4897_v19 = vsel %vm4833_vm13, %v4788_v15, %v4865_v18  ;;  %v5060_v20 = vmax.f32 %v5044_v17, %v5024_v39 }
 0x516   : > { %4930 = vst.msk [vmem:[#allocation13 + $0xc8] sm:$0xff] %vm4904_vm5, %v4897_v19 }
 0x517   : > { %5081 = vst.msk [vmem:[#allocation4 + $0x62] sm:$0xff] %vm4904_vm5, %v5060_v20 }
 0x518   : > { %5268 = vrot.lane.b32.xlu2 %v5226_v21, %s9113_s5 }
 0x519   : > { %v5355_v22 = vpop.permute.xlu0 %5354  ;;  %v5513_v23 = vld [vmem:[#allocation9 + $0x18] sm:$0xff] }
 0x51a   : > { %5399 = vst.msk [vmem:[#allocation9 + $0x20] sm:$0xff] %vm5394_vm14, %v5355_v22  ;;  %8454 = vmatmul.msk.f32.gmra.mxu2 %vm5540_vm10, %v5513_v23 }
 0x51d   : > { %v4962_v34 = vld [vmem:[#allocation13 + $0xc0] ss:$2 sm:$0xff]  ;;  %v4994_v35 = vld [vmem:[#allocation13 + $0xc1] ss:$2 sm:$0xff] }
 0x51e   : > { %v4790_v24 = vpop.f32.mrf.mxu1  ;;  %v5421_v25 = vld [vmem:[#allocation4 + $0x5c] sm:$0xff]  ;;  %v5045_v41 = vmax.f32 %v4962_v34, %v4994_v35 }
 0x51f   : > { %v5129_v26 = vld [vmem:[#allocation4 + $0x5d] sm:$0xff]  ;;  %v4791_v27 = vadd.f32 %v10894_v48, %v4790_v24  ;;  %5462 = vrot.lane.b32.xlu0 %v5421_v25, %s9115_s28 }
 0x520   : > { %v5098_v28 = vld [vmem:[#allocation4 + $0x60] sm:$0xff]  ;;  %5172 = vrot.lane.b32.xlu2 %v5129_v26, %s9111_s3 }
 0x521   : > { %5114 = vst.msk [vmem:[#allocation9 + $0x60] sm:$0xff] %vm4904_vm5, %v5098_v28  ;;  %vm4834_vm15 = vcmp.ge.f32.partialorder %v4791_v27, 0.0  ;;  %v4866_v30 = vmul.f32 0.01, %v4791_v27  ;;  %v5259_v31 = vpop.permute.xlu0 %5258  ;;  %v5324_v33 = vld [vmem:[#allocation4 + $0x5f] sm:$0xff] }
 0x522   : > { %5302 = vst.msk [vmem:[#allocation9 + $0x28] sm:$0xff] %vm5296_vm7, %v5259_v31  ;;  %v5455_v60 = vpop.permute.xlu2 %5454  ;;  %v5227_v46 = vld [vmem:[#allocation4 + $0x62] sm:$0xff] }
 0x523   : > { %v4898_v32 = vsel %vm4834_vm15, %v4791_v27, %v4866_v30 }
 0x524   : > { %4931 = vst.msk [vmem:[#allocation13 + $0xd0] sm:$0xff] %vm4904_vm5, %v4898_v32 }
 0x527   : > { %5366 = vrot.lane.b32.xlu0 %v5324_v33, %s9114_s4 }
 0x528   : > { %v4793_v36 = vpop.f32.mrf.mxu1  ;;  %v5453_v38 = vpop.permute.xlu1 %5452 }
 0x529   : > { %v4794_v37 = vadd.f32 %v10894_v48, %v4793_v36  ;;  %5497 = vst.msk [vmem:[#allocation9 + $0x20] sm:$0xff] %vm5492_vm1, %v5453_v38  ;;  %v5163_v40 = vpop.permute.xlu0 %5162 }
 0x52a   : > { %5205 = vst.msk [vmem:[#allocation9 + $0x30] sm:$0xff] %vm5198_vm12, %v5163_v40  ;;  %v5359_v43 = vpop.permute.xlu2 %5358 }
 0x52b   : > { %vm4835_vm2 = vcmp.ge.f32.partialorder %v4794_v37, 0.0  ;;  %v4867_v42 = vmul.f32 0.01, %v4794_v37  ;;  %v5026_v0 = vld [vmem:[#allocation13 + $0xc2] ss:$2 sm:$0xff] }
 0x52c   : > { %v5061_v45 = vmax.f32 %v5045_v41, %v5026_v0  ;;  %v11095_v41 = vld [vmem:[#allocation24] ss:$0 sm:$0xff] }
 0x52d   : > { %v4899_v44 = vsel %vm4835_vm2, %v4794_v37, %v4867_v42 }
 0x52e   : > { %4932 = vst.msk [vmem:[#allocation13 + $0xd8] sm:$0xff] %vm4904_vm5, %v4899_v44 }
 0x52f   : > { %5082 = vst.msk [vmem:[#allocation4 + $0x6a] sm:$0xff] %vm4904_vm5, %v5061_v45  ;;  %5270 = vrot.lane.b32.xlu0 %v5227_v46, %s9113_s5 }
 0x530   : > { %v4796_v13 = vpop.f32.mrf.mxu1  ;;  %v5357_v47 = vpop.permute.xlu1 %5356  ;;  %v5514_v49 = vld [vmem:[#allocation9 + $0x20] sm:$0xff] }
 0x531   : > { %v4797_v50 = vadd.f32 %v10894_v48, %v4796_v13  ;;  %5400 = vst.msk [vmem:[#allocation9 + $0x28] sm:$0xff] %vm5394_vm14, %v5357_v47  ;;  %8455 = vmatmul.msk.f32.gmra.mxu2 %vm5540_vm10, %v5514_v49 }
 0x532   : > { %5498 = vst.msk [vmem:[#allocation9 + $0x28] sm:$0xff] %vm5492_vm1, %v5455_v60  ;;  %v5263_v52 = vpop.permute.xlu2 %5262 }
 0x533   : > { %vm4836_vm3 = vcmp.ge.f32.partialorder %v4797_v50, 0.0  ;;  %v4868_v51 = vmul.f32 0.01, %v4797_v50 }
 0x535   : > { %v4900_v53 = vsel %vm4836_vm3, %v4797_v50, %v4868_v51  ;;  %v4964_v58 = vld [vmem:[#allocation13 + $0xd0] ss:$2 sm:$0xff]  ;;  %v4996_v59 = vld [vmem:[#allocation13 + $0xd1] ss:$2 sm:$0xff] }
 0x536   : > { %v5422_v54 = vld [vmem:[#allocation4 + $0x64] sm:$0xff]  ;;  %4933 = vst.msk [vmem:[#allocation13 + $0xe0] sm:$0xff] %vm4904_vm5, %v4900_v53  ;;  %v5046_v62 = vmax.f32 %v4964_v58, %v4996_v59 }
 0x537   : > { %v5130_v55 = vld [vmem:[#allocation4 + $0x65] sm:$0xff]  ;;  %5464 = vrot.lane.b32.xlu1 %v5422_v54, %s9115_s28 }
 0x538   : > { %v5099_v56 = vld [vmem:[#allocation4 + $0x68] sm:$0xff]  ;;  %5174 = vrot.lane.b32.xlu0 %v5130_v55, %s9111_s3  ;;  %v5261_v57 = vpop.permute.xlu1 %5260 }
 0x539   : > { %5115 = vst.msk [vmem:[#allocation9 + $0x68] sm:$0xff] %vm4904_vm5, %v5099_v56  ;;  %v5515_v61 = vld [vmem:[#allocation9 + $0x28] sm:$0xff]  ;;  %v5325_v2 = vld [vmem:[#allocation4 + $0x67] sm:$0xff] }
 0x53a   : > { %5303 = vst.msk [vmem:[#allocation9 + $0x30] sm:$0xff] %vm5296_vm7, %v5261_v57  ;;  %8456 = vmatmul.msk.f32.gmra.mxu2 %vm5540_vm10, %v5515_v61  ;;  %v5228_v8 = vld [vmem:[#allocation4 + $0x6a] sm:$0xff] }
 0x53b   : > { %5401 = vst.msk [vmem:[#allocation9 + $0x30] sm:$0xff] %vm5394_vm14, %v5359_v43 }
 0x53d   : > { %v5028_v63 = vld [vmem:[#allocation13 + $0xd2] ss:$2 sm:$0xff] }
 0x53e   : > { %v5062_v4 = vmax.f32 %v5046_v62, %v5028_v63 }
 0x53f   : > { %v5167_v3 = vpop.permute.xlu2 %5166  ;;  %5368 = vrot.lane.b32.xlu1 %v5325_v2, %s9114_s4 }
 0x540   : > { %5207 = vst.msk [vmem:[#allocation9 + $0x40] sm:$0xff] %vm5198_vm12, %v5167_v3  ;;  %v5165_v5 = vpop.permute.xlu1 %5164 }
 0x541   : > { %5083 = vst.msk [vmem:[#allocation4 + $0x72] sm:$0xff] %vm4904_vm5, %v5062_v4 }
 0x542   : > { %5206 = vst.msk [vmem:[#allocation9 + $0x38] sm:$0xff] %vm5198_vm12, %v5165_v5 }
 0x543   : > { %5304 = vst.msk [vmem:[#allocation9 + $0x38] sm:$0xff] %vm5296_vm7, %v5263_v52  ;;  %v4799_v6 = vpop.f32.mrf.mxu1 }
 0x544   : > { %v4800_v7 = vadd.f32 %v10894_v48, %v4799_v6 }
 0x546   : > { %vm4837_vm6 = vcmp.ge.f32.partialorder %v4800_v7, 0.0  ;;  %v4869_v29 = vmul.f32 0.01, %v4800_v7 }
 0x547   : > { %5272 = vrot.lane.b32.xlu1 %v5228_v8, %s9113_s5  ;;  %v5427_v8 = vld [vmem:[#allocation4 + $0x8c] sm:$0x7f] }
 0x548   : > { %v5423_v9 = vld [vmem:[#allocation4 + $0x6c] sm:$0xff]  ;;  %v4901_v10 = vsel %vm4837_vm6, %v4800_v7, %v4869_v29 }
 0x549   : > { %5466 = vrot.lane.b32.xlu2 %v5423_v9, %s9115_s28  ;;  %v5100_v11 = vld [vmem:[#allocation4 + $0x70] sm:$0xff]  ;;  %4934 = vst.msk [vmem:[#allocation13 + $0xe8] sm:$0xff] %vm4904_vm5, %v4901_v10 }
 0x54a   : > { %5116 = vst.msk [vmem:[#allocation9 + $0x70] sm:$0xff] %vm4904_vm5, %v5100_v11  ;;  %v5131_v15 = vld [vmem:[#allocation4 + $0x6d] sm:$0xff] }
 0x54b   : > { %v5326_v17 = vld [vmem:[#allocation4 + $0x6f] sm:$0xff] }
 0x54c   : > { %v4802_v12 = vpop.f32.mrf.mxu1  ;;  %v5229_v23 = vld [vmem:[#allocation4 + $0x72] sm:$0xff] }
 0x54d   : > { %v4803_v14 = vadd.f32 %v10894_v48, %v4802_v12 }
 0x54f   : > { %5176 = vrot.lane.b32.xlu1 %v5131_v15, %s9111_s3  ;;  %vm4838_vm8 = vcmp.ge.f32.partialorder %v4803_v14, 0.0  ;;  %v4870_v16 = vmul.f32 0.01, %v4803_v14 }
 0x550   : > { %v4966_v39 = vld [vmem:[#allocation13 + $0xe0] ss:$2 sm:$0xff]  ;;  %v4998_v19 = vld [vmem:[#allocation13 + $0xe1] ss:$2 sm:$0xff] }
 0x551   : > { %5370 = vrot.lane.b32.xlu2 %v5326_v17, %s9114_s4  ;;  %v4902_v18 = vsel %vm4838_vm8, %v4803_v14, %v4870_v16  ;;  %v5047_v24 = vmax.f32 %v4966_v39, %v4998_v19  ;;  %vm5214_vm8 = vcmask 260224  }
 0x552   : > { %4935 = vst.msk [vmem:[#allocation13 + $0xf0] sm:$0xff] %vm4904_vm5, %v4902_v18 }
 0x555   : > { %v4805_v20 = vpop.f32.mrf.mxu1 }
 0x556   : > { %v5457_v21 = vpop.permute.xlu0 %5456  ;;  %v4806_v22 = vadd.f32 %v10894_v48, %v4805_v20 }
 0x557   : > { %5499 = vst.msk [vmem:[#allocation9 + $0x30] sm:$0xff] %vm5492_vm1, %v5457_v21 }
 0x558   : > { %vm4839_vm0 = vcmp.ge.f32.partialorder %v4806_v22, 0.0  ;;  %v4871_v25 = vmul.f32 0.01, %v4806_v22 }
 0x559   : > { %5274 = vrot.lane.b32.xlu2 %v5229_v23, %s9113_s5  ;;  %v5030_v26 = vld [vmem:[#allocation13 + $0xe2] ss:$2 sm:$0xff] }
 0x55a   : > { %v4903_v27 = vsel %vm4839_vm0, %v4806_v22, %v4871_v25  ;;  %v5063_v28 = vmax.f32 %v5047_v24, %v5030_v26  ;;  %vm5410_vm0 = vcmask 522624  }
 0x55b   : > { %4937 = vst.msk [vmem:[#allocation13 + $0xf8] sm:$0x7f] %vm4936_vm11, %v4903_v27 }
 0x55c   : > { %5084 = vst.msk [vmem:[#allocation4 + $0x7a] sm:$0xff] %vm4904_vm5, %v5063_v28 }
 0x55e   : > { %v5361_v30 = vpop.permute.xlu0 %5360  ;;  %v5516_v31 = vld [vmem:[#allocation9 + $0x30] sm:$0xff] }
 0x55f   : > { %5402 = vst.msk [vmem:[#allocation9 + $0x38] sm:$0xff] %vm5394_vm14, %v5361_v30  ;;  %8457 = vmatmul.msk.f32.gmra.mxu2 %vm5540_vm10, %v5516_v31 }
 0x562   : > { %v4968_v48 = vld [vmem:[#allocation13 + $0xf0] ss:$2 sm:$0x7f]  ;;  %v5000_v60 = vld [vmem:[#allocation13 + $0xf1] ss:$2 sm:$0x7f]  ;;  %v5461_v32 = vpop.permute.xlu2 %5460 }
 0x563   : > { %v5048_v33 = vmax.f32 %v4968_v48, %v5000_v60  ;;  %v5132_v34 = vld [vmem:[#allocation4 + $0x75] sm:$0xff] }
 0x564   : > { %v5424_v35 = vld [vmem:[#allocation4 + $0x74] sm:$0xff]  ;;  %5178 = vrot.lane.b32.xlu2 %v5132_v34, %s9111_s3 }
 0x565   : > { %v5032_v36 = vld [vmem:[#allocation13 + $0xf2] ss:$2 sm:$0x7f]  ;;  %5468 = vrot.lane.b32.xlu0 %v5424_v35, %s9115_s28 }
 0x566   : > { %v5101_v37 = vld [vmem:[#allocation4 + $0x78] sm:$0x7f]  ;;  %v5064_v38 = vmax.f32 %v5048_v33, %v5032_v36  ;;  %v5265_v40 = vpop.permute.xlu0 %5264 }
 0x567   : > { %5117 = vst.msk [vmem:[#allocation9 + $0x78] sm:$0x7f] %vm4936_vm11, %v5101_v37  ;;  %v5327_v45 = vld [vmem:[#allocation4 + $0x77] sm:$0xff] }
 0x568   : > { %5085 = vst.msk [vmem:[#allocation4 + $0x82] sm:$0x7f] %vm4936_vm11, %v5064_v38  ;;  %v5230_v54 = vld [vmem:[#allocation4 + $0x7a] sm:$0xff] }
 0x569   : > { %5305 = vst.msk [vmem:[#allocation9 + $0x40] sm:$0xff] %vm5296_vm7, %v5265_v40  ;;  %v5459_v43 = vpop.permute.xlu1 %5458 }
 0x56a   : > { %v5606_v42 = vpop.f32.mrf.mxu2  ;;  %5500 = vst.msk [vmem:[#allocation9 + $0x38] sm:$0xff] %vm5492_vm1, %v5459_v43  ;;  %v5365_v44 = vpop.permute.xlu2 %5364 }
 0x56b   : > { %v5607_v0 = vadd.f32 %v11095_v41, %v5606_v42 }
 0x56d   : > { %vm5654_vm5 = vcmp.ge.f32.partialorder %v5607_v0, 0.0  ;;  %v5670_v46 = vmul.f32 0.01, %v5607_v0  ;;  %5372 = vrot.lane.b32.xlu0 %v5327_v45, %s9114_s4 }
 0x56e   : > { %v5169_v47 = vpop.permute.xlu0 %5168 }
 0x56f   : > { %v5686_v13 = vsel %vm5654_vm5, %v5607_v0, %v5670_v46  ;;  %v5426_v49 = vld [vmem:[#allocation4 + $0x84] sm:$0xff]  ;;  %v5425_v50 = vld [vmem:[#allocation4 + $0x7c] sm:$0xff]  ;;  %5208 = vst.msk [vmem:[#allocation9 + $0x48] sm:$0xff] %vm5198_vm12, %v5169_v47  ;;  %vm5852_vm5 = vcmask 523520  }
 0x570   : > { %5703 = vst.msk [vmem:[#allocation14] sm:$0xff] %vm5702_vm9, %v5686_v13  ;;  %5472 = vrot.lane.b32.xlu2 %v5426_v49, %s9115_s28  ;;  %5470 = vrot.lane.b32.xlu1 %v5425_v50, %s9115_s28  ;;  %v5329_v57 = vld [vmem:[#allocation4 + $0x87] sm:$0x7f]  ;;  %v5328_v58 = vld [vmem:[#allocation4 + $0x7f] sm:$0xff] }
 0x571   : > { %v5363_v51 = vpop.permute.xlu1 %5362  ;;  %v5517_v52 = vld [vmem:[#allocation9 + $0x38] sm:$0xff] }
 0x572   : > { %5403 = vst.msk [vmem:[#allocation9 + $0x40] sm:$0xff] %vm5394_vm14, %v5363_v51  ;;  %8458 = vmatmul.msk.f32.gmra.mxu2 %vm5540_vm10, %v5517_v52  ;;  %v5269_v53 = vpop.permute.xlu2 %5268  ;;  %v5133_v3 = vld [vmem:[#allocation4 + $0x7d] sm:$0x7f] }
 0x573   : > { %5501 = vst.msk [vmem:[#allocation9 + $0x40] sm:$0xff] %vm5492_vm1, %v5461_v32  ;;  %v5231_v5 = vld [vmem:[#allocation4 + $0x82] sm:$0x7f] }
 0x574   : > { %v5609_v55 = vpop.f32.mrf.mxu2 }
 0x575   : > { %5276 = vrot.lane.b32.xlu0 %v5230_v54, %s9113_s5  ;;  %v5610_v56 = vadd.f32 %v11095_v41, %v5609_v55 }
 0x577   : > { %vm5655_vm13 = vcmp.ge.f32.partialorder %v5610_v56, 0.0  ;;  %v5671_v59 = vmul.f32 0.01, %v5610_v56 }
 0x578   : > { %5376 = vrot.lane.b32.xlu2 %v5329_v57, %s9114_s4  ;;  %5374 = vrot.lane.b32.xlu1 %v5328_v58, %s9114_s4 }
 0x579   : > { %v5687_v61 = vsel %vm5655_vm13, %v5610_v56, %v5671_v59  ;;  %v5267_v62 = vpop.permute.xlu1 %5266 }
 0x57a   : > { %5704 = vst.msk [vmem:[#allocation14 + $0x8] sm:$0xff] %vm5702_vm9, %v5687_v61  ;;  %v5173_v63 = vpop.permute.xlu2 %5172  ;;  %v5518_v2 = vld [vmem:[#allocation9 + $0x40] sm:$0xff] }
 0x57b   : > { %5306 = vst.msk [vmem:[#allocation9 + $0x48] sm:$0xff] %vm5296_vm7, %v5267_v62  ;;  %8459 = vmatmul.msk.f32.gmra.mxu2 %vm5540_vm10, %v5518_v2 }
 0x57c   : > { %5404 = vst.msk [vmem:[#allocation9 + $0x48] sm:$0xff] %vm5394_vm14, %v5365_v44 }
 0x57d   : > { %5180 = vrot.lane.b32.xlu0 %v5133_v3, %s9111_s3  ;;  %5210 = vst.msk [vmem:[#allocation9 + $0x58] sm:$0xff] %vm5198_vm12, %v5173_v63  ;;  %v5612_v4 = vpop.f32.mrf.mxu2  ;;  %s9116_s3 = smov 96  }
 0x57e   : > { %v5613_v1 = vadd.f32 %v11095_v41, %v5612_v4 }
 0x580   : > { %5278 = vrot.lane.b32.xlu1 %v5231_v5, %s9113_s5  ;;  %vm5656_vm15 = vcmp.ge.f32.partialorder %v5613_v1, 0.0  ;;  %v5672_v6 = vmul.f32 0.01, %v5613_v1 }
 0x581   : > { %v5171_v7 = vpop.permute.xlu1 %5170  ;;  %v5720_v9 = vld [vmem:[#allocation14] ss:$2 sm:$0xff]  ;;  %v5736_v10 = vld [vmem:[#allocation14 + $0x1] ss:$2 sm:$0xff] }
 0x582   : > { %v5688_v29 = vsel %vm5656_vm15, %v5613_v1, %v5672_v6  ;;  %5209 = vst.msk [vmem:[#allocation9 + $0x50] sm:$0xff] %vm5198_vm12, %v5171_v7  ;;  %v5767_v11 = vmax.f32 %v5720_v9, %v5736_v10  ;;  %v5796_v1 = vld [vmem:[#allocation5] sm:$0xff]  ;;  %vm5952_vm15 = vcmask 1048320  }
 0x583   : > { %5705 = vst.msk [vmem:[#allocation14 + $0x10] sm:$0xff] %vm5702_vm9, %v5688_v29 }
 0x584   : > { %5307 = vst.msk [vmem:[#allocation9 + $0x50] sm:$0xff] %vm5296_vm7, %v5269_v53 }
 0x585   : > { %5474 = vrot.lane.b32.xlu0 %v5427_v8, %s9115_s28  ;;  %5804 = vst.msk [vmem:[#allocation10] sm:$0xff] %vm5702_vm9, %v5796_v1 }
 0x58a   : > { %v5752_v12 = vld [vmem:[#allocation14 + $0x2] ss:$2 sm:$0xff] }
 0x58b   : > { %v5775_v14 = vmax.f32 %v5767_v11, %v5752_v12 }
 0x58d   : > { %5788 = vst.msk [vmem:[#allocation5 + $0xa] sm:$0xff] %vm5702_vm9, %v5775_v14 }
 0x591   : > { %v5463_v15 = vpop.permute.xlu0 %5462 }
 0x592   : > { %5502 = vst.msk [vmem:[#allocation9 + $0x48] sm:$0xff] %vm5492_vm1, %v5463_v15 }
 0x594   : > { %v5862_v16 = vld [vmem:[#allocation5 + $0xa] sm:$0xff] }
 0x595   : > { %v5812_v17 = vld [vmem:[#allocation5 + $0x5] sm:$0xff]  ;;  %5878 = vrot.lane.b32.xlu2 %v5862_v16, %s9115_s28 }
 0x596   : > { %v5797_v18 = vld [vmem:[#allocation5 + $0x8] sm:$0xff]  ;;  %5828 = vrot.lane.b32.xlu1 %v5812_v17, %s9113_s5 }
 0x597   : > { %5805 = vst.msk [vmem:[#allocation10 + $0x10] sm:$0xff] %vm5702_vm9, %v5797_v18 }
 0x599   : > { %v5367_v39 = vpop.permute.xlu0 %5366  ;;  %v5519_v19 = vld [vmem:[#allocation9 + $0x48] sm:$0xff] }
 0x59a   : > { %5405 = vst.msk [vmem:[#allocation9 + $0x50] sm:$0xff] %vm5394_vm14, %v5367_v39  ;;  %8460 = vmatmul.msk.f32.gmra.mxu2 %vm5540_vm10, %v5519_v19 }
 0x59d   : > { %v5615_v20 = vpop.f32.mrf.mxu2 }
 0x59e   : > { %v5616_v21 = vadd.f32 %v11095_v41, %v5615_v20 }
 0x5a0   : > { %vm5657_vm2 = vcmp.ge.f32.partialorder %v5616_v21, 0.0  ;;  %v5673_v22 = vmul.f32 0.01, %v5616_v21 }
 0x5a1   : > { %v5271_v23 = vpop.permute.xlu0 %5270 }
 0x5a2   : > { %v5689_v24 = vsel %vm5657_vm2, %v5616_v21, %v5673_v22  ;;  %5308 = vst.msk [vmem:[#allocation9 + $0x58] sm:$0xff] %vm5296_vm7, %v5271_v23 }
 0x5a3   : > { %v5467_v25 = vpop.permute.xlu2 %5466  ;;  %5706 = vst.msk [vmem:[#allocation14 + $0x18] sm:$0xff] %vm5702_vm9, %v5689_v24 }
 0x5a9   : > { %v5465_v26 = vpop.permute.xlu1 %5464 }
 0x5aa   : > { %5503 = vst.msk [vmem:[#allocation9 + $0x50] sm:$0xff] %vm5492_vm1, %v5465_v26  ;;  %v5175_v27 = vpop.permute.xlu0 %5174  ;;  %v5722_v37 = vld [vmem:[#allocation14 + $0x10] ss:$2 sm:$0xff]  ;;  %v5738_v38 = vld [vmem:[#allocation14 + $0x11] ss:$2 sm:$0xff] }
 0x5ab   : > { %5211 = vst.msk [vmem:[#allocation9 + $0x60] sm:$0xff] %vm5198_vm12, %v5175_v27  ;;  %v5371_v28 = vpop.permute.xlu2 %5370  ;;  %v5768_v0 = vmax.f32 %v5722_v37, %v5738_v38  ;;  %v6005_v37 = vld [vmem:[%s11656_s7 + $0x58] sm:$0xff]  ;;  %v6004_v38 = vld [vmem:[%s11656_s7 + $0x50] sm:$0xff] }
 0x5b1   : > { %v5369_v30 = vpop.permute.xlu1 %5368  ;;  %v5520_v31 = vld [vmem:[#allocation9 + $0x50] sm:$0xff] }
 0x5b2   : > { %5406 = vst.msk [vmem:[#allocation9 + $0x58] sm:$0xff] %vm5394_vm14, %v5369_v30  ;;  %8461 = vmatmul.msk.f32.gmra.mxu2 %vm5540_vm10, %v5520_v31 }
 0x5b3   : > { %5504 = vst.msk [vmem:[#allocation9 + $0x58] sm:$0xff] %vm5492_vm1, %v5467_v25  ;;  %v5275_v32 = vpop.permute.xlu2 %5274 }
 0x5b4   : > { %v5618_v48 = vpop.f32.mrf.mxu2 }
 0x5b5   : > { %v5619_v60 = vadd.f32 %v11095_v41, %v5618_v48 }
 0x5b7   : > { %vm5658_vm3 = vcmp.ge.f32.partialorder %v5619_v60, 0.0  ;;  %v5674_v33 = vmul.f32 0.01, %v5619_v60 }
 0x5b9   : > { %v5273_v34 = vpop.permute.xlu1 %5272  ;;  %v5690_v35 = vsel %vm5658_vm3, %v5619_v60, %v5674_v33  ;;  %v6008_v33 = vld [vmem:[%s11656_s7 + $0x70] sm:$0xff] }
 0x5ba   : > { %5309 = vst.msk [vmem:[#allocation9 + $0x60] sm:$0xff] %vm5296_vm7, %v5273_v34  ;;  %v5521_v36 = vld [vmem:[#allocation9 + $0x58] sm:$0xff] }
 0x5bb   : > { %5707 = vst.msk [vmem:[#allocation14 + $0x20] sm:$0xff] %vm5702_vm9, %v5690_v35  ;;  %8462 = vmatmul.msk.f32.gmra.mxu2 %vm5540_vm10, %v5521_v36  ;;  %v6007_v35 = vld [vmem:[%s11656_s7 + $0x68] sm:$0xff]  ;;  %v6006_v36 = vld [vmem:[%s11656_s7 + $0x60] sm:$0xff] }
 0x5bc   : > { %5407 = vst.msk [vmem:[#allocation9 + $0x60] sm:$0xff] %vm5394_vm14, %v5371_v28 }
 0x5bd   : > { %v5621_v40 = vpop.f32.mrf.mxu2 }
 0x5be   : > { %v5179_v42 = vpop.permute.xlu2 %5178  ;;  %v5622_v43 = vadd.f32 %v11095_v41, %v5621_v40 }
 0x5bf   : > { %5213 = vst.msk [vmem:[#allocation9 + $0x70] sm:$0xff] %vm5198_vm12, %v5179_v42 }
 0x5c0   : > { %vm5659_vm6 = vcmp.ge.f32.partialorder %v5622_v43, 0.0  ;;  %v5675_v44 = vmul.f32 0.01, %v5622_v43 }
 0x5c1   : > { %v5177_v45 = vpop.permute.xlu1 %5176 }
 0x5c2   : > { %v5754_v46 = vld [vmem:[#allocation14 + $0x12] ss:$2 sm:$0xff]  ;;  %5212 = vst.msk [vmem:[#allocation9 + $0x68] sm:$0xff] %vm5198_vm12, %v5177_v45  ;;  %v5691_v13 = vsel %vm5659_vm6, %v5622_v43, %v5675_v44  ;;  %v6003_v45 = vld [vmem:[%s11656_s7 + $0x48] sm:$0xff] }
 0x5c3   : > { %5310 = vst.msk [vmem:[#allocation9 + $0x68] sm:$0xff] %vm5296_vm7, %v5275_v32  ;;  %v5776_v47 = vmax.f32 %v5768_v0, %v5754_v46  ;;  %v6009_v32 = vld [vmem:[%s11656_s7 + $0x78] sm:$0xff] }
 0x5c4   : > { %5708 = vst.msk [vmem:[#allocation14 + $0x28] sm:$0xff] %vm5702_vm9, %v5691_v13  ;;  %6042 = vmatpush.msra.mxu3 %v6009_v32  ;;  %v6002_v13 = vld [vmem:[%s11656_s7 + $0x40] sm:$0xff] }
 0x5c5   : > { %5789 = vst.msk [vmem:[#allocation5 + $0x12] sm:$0xff] %vm5702_vm9, %v5776_v47 }
 0x5c6   : > { %6043 = vmatpush.msra.mxu3 %v6008_v33 }
 0x5c8   : > { %6044 = vmatpush.msra.mxu3 %v6007_v35 }
 0x5ca   : > { %v5473_v63 = vpop.permute.xlu2 %5472  ;;  %6045 = vmatpush.msra.mxu3 %v6006_v36 }
 0x5cb   : > { %v5724_v4 = vld [vmem:[#allocation14 + $0x20] ss:$2 sm:$0xff]  ;;  %v5740_v5 = vld [vmem:[#allocation14 + $0x21] ss:$2 sm:$0xff] }
 0x5cc   : > { %v5912_v49 = vld [vmem:[#allocation5 + $0xf] sm:$0xff]  ;;  %v5769_v6 = vmax.f32 %v5724_v4, %v5740_v5  ;;  %6046 = vmatpush.msra.mxu3 %v6005_v37 }
 0x5cd   : > { %v5863_v50 = vld [vmem:[#allocation5 + $0x12] sm:$0xff]  ;;  %5928 = vrot.lane.b32.xlu0 %v5912_v49, %s9116_s3  ;;  %v6001_v49 = vld [vmem:[%s11656_s7 + $0x38] sm:$0xff] }
 0x5ce   : > { %v5813_v51 = vld [vmem:[#allocation5 + $0xd] sm:$0xff]  ;;  %5880 = vrot.lane.b32.xlu2 %v5863_v50, %s9115_s28  ;;  %6047 = vmatpush.msra.mxu3 %v6004_v38 }
 0x5cf   : > { %v5798_v52 = vld [vmem:[#allocation5 + $0x10] sm:$0xff]  ;;  %5830 = vrot.lane.b32.xlu1 %v5813_v51, %s9113_s5  ;;  %v6000_v51 = vld [vmem:[%s11656_s7 + $0x30] sm:$0xff] }
 0x5d0   : > { %5806 = vst.msk [vmem:[#allocation10 + $0x20] sm:$0xff] %vm5702_vm9, %v5798_v52  ;;  %6048 = vmatpush.msra.mxu3 %v6003_v45  ;;  %v5999_v52 = vld [vmem:[%s11656_s7 + $0x28] sm:$0xff] }
 0x5d2   : > { %v5377_v10 = vpop.permute.xlu2 %5376  ;;  %6049 = vmatpush.msra.mxu3 %v6002_v13 }
 0x5d4   : > { %6050 = vmatpush.msra.mxu3 %v6001_v49 }
 0x5d6   : > { %6051 = vmatpush.msra.mxu3 %v6000_v51 }
 0x5d7   : > { %v5469_v53 = vpop.permute.xlu0 %5468 }
 0x5d8   : > { %5505 = vst.msk [vmem:[#allocation9 + $0x60] sm:$0xff] %vm5492_vm1, %v5469_v53  ;;  %6052 = vmatpush.msra.mxu3 %v5999_v52 }
 0x5df   : > { %v5373_v54 = vpop.permute.xlu0 %5372  ;;  %v5522_v55 = vld [vmem:[#allocation9 + $0x60] sm:$0xff] }
 0x5e0   : > { %5408 = vst.msk [vmem:[#allocation9 + $0x68] sm:$0xff] %vm5394_vm14, %v5373_v54  ;;  %8463 = vmatmul.msk.f32.gmra.mxu2 %vm5540_vm10, %v5522_v55  ;;  %v5998_v54 = vld [vmem:[%s11656_s7 + $0x20] sm:$0xff]  ;;  %v5997_v55 = vld [vmem:[%s11656_s7 + $0x18] sm:$0xff] }
 0x5e1   : > { %6053 = vmatpush.msra.mxu3 %v5998_v54 }
 0x5e2   : > { %v5471_v56 = vpop.permute.xlu1 %5470  ;;  %v5624_v57 = vpop.f32.mrf.mxu2 }
 0x5e3   : > { %5506 = vst.msk [vmem:[#allocation9 + $0x68] sm:$0xff] %vm5492_vm1, %v5471_v56  ;;  %v5625_v58 = vadd.f32 %v11095_v41, %v5624_v57  ;;  %6054 = vmatpush.msra.mxu3 %v5997_v55  ;;  %v5996_v56 = vld [vmem:[%s11656_s7 + $0x10] sm:$0xff]  ;;  %v5995_v57 = vld [vmem:[%s11656_s7 + $0x8] sm:$0xff] }
 0x5e5   : > { %vm5660_vm12 = vcmp.ge.f32.partialorder %v5625_v58, 0.0  ;;  %v5676_v59 = vmul.f32 0.01, %v5625_v58  ;;  %6055 = vmatpush.msra.mxu3 %v5996_v56 }
 0x5e7   : > { %v5277_v61 = vpop.permute.xlu0 %5276  ;;  %v5692_v62 = vsel %vm5660_vm12, %v5625_v58, %v5676_v59  ;;  %v5994_v58 = vld [vmem:[%s11656_s7] sm:$0xff]  ;;  %6056 = vmatpush.msra.mxu3 %v5995_v57 }
 0x5e8   : > { %5311 = vst.msk [vmem:[#allocation9 + $0x70] sm:$0xff] %vm5296_vm7, %v5277_v61  ;;  %vm5312_vm7 = vcmask 391424  }
 0x5e9   : > { %5709 = vst.msk [vmem:[#allocation14 + $0x30] sm:$0xff] %vm5702_vm9, %v5692_v62  ;;  %6057 = vmatpush.msra.mxu3 %v5994_v58 }
 0x5ea   : > { %v5375_v2 = vpop.permute.xlu1 %5374  ;;  %v5523_v3 = vld [vmem:[#allocation9 + $0x68] sm:$0xff] }
 0x5eb   : > { %5409 = vst.msk [vmem:[#allocation9 + $0x70] sm:$0xff] %vm5394_vm14, %v5375_v2  ;;  %8464 = vmatmul.msk.f32.gmra.mxu2 %vm5540_vm10, %v5523_v3  ;;  %vm5508_vm14 = vcmask 653824  }
 0x5ec   : > { %5507 = vst.msk [vmem:[#allocation9 + $0x70] sm:$0xff] %vm5492_vm1, %v5473_v63 }
 0x5ef   : > { %v5181_v7 = vpop.permute.xlu0 %5180  ;;  %v5879_v31 = vpop.permute.xlu2 %5878 }
 0x5f0   : > { %v5756_v8 = vld [vmem:[#allocation14 + $0x22] ss:$2 sm:$0xff]  ;;  %5215 = vst.msk [vmem:[#allocation9 + $0x78] sm:$0x7f] %vm5214_vm8, %v5181_v7 }
 0x5f1   : > { %v5777_v29 = vmax.f32 %v5769_v6, %v5756_v8 }
 0x5f2   : > { %v5279_v9 = vpop.permute.xlu1 %5278 }
 0x5f3   : > { %5313 = vst.msk [vmem:[#allocation9 + $0x78] sm:$0x7f] %vm5312_vm7, %v5279_v9  ;;  %v5524_v11 = vld [vmem:[#allocation9 + $0x70] sm:$0xff]  ;;  %vm5718_vm7 = vcmask 260096  }
 0x5f4   : > { %8465 = vmatmul.msk.f32.gmra.mxu2 %vm5540_vm10, %v5524_v11  ;;  %5411 = vst.msk [vmem:[#allocation9 + $0x78] sm:$0x7f] %vm5410_vm0, %v5377_v10  ;;  %vm5860_vm0 = vcmask 522496  }
 0x5f5   : > { %5790 = vst.msk [vmem:[#allocation5 + $0x1a] sm:$0xff] %vm5702_vm9, %v5777_v29  ;;  %v5627_v12 = vpop.f32.mrf.mxu2 }
 0x5f6   : > { %v5628_v15 = vadd.f32 %v11095_v41, %v5627_v12 }
 0x5f7   : > { %v5475_v14 = vpop.permute.xlu0 %5474 }
 0x5f8   : > { %5509 = vst.msk [vmem:[#allocation9 + $0x78] sm:$0x7f] %vm5508_vm14, %v5475_v14  ;;  %vm5661_vm1 = vcmp.ge.f32.partialorder %v5628_v15, 0.0  ;;  %v5677_v16 = vmul.f32 0.01, %v5628_v15  ;;  %vm5910_vm14 = vcmask 784896  }
 0x5fa   : > { %v5693_v17 = vsel %vm5661_vm1, %v5628_v15, %v5677_v16  ;;  %vm5960_vm1 = vcmask 1047296  }
 0x5fb   : > { %5710 = vst.msk [vmem:[#allocation14 + $0x38] sm:$0xff] %vm5702_vm9, %v5693_v17 }
 0x5fc   : > { %v5913_v18 = vld [vmem:[#allocation5 + $0x17] sm:$0xff] }
 0x5fd   : > { %v5864_v39 = vld [vmem:[#allocation5 + $0x1a] sm:$0xff]  ;;  %5930 = vrot.lane.b32.xlu0 %v5913_v18, %s9116_s3 }
 0x5fe   : > { %v5814_v19 = vld [vmem:[#allocation5 + $0x15] sm:$0xff]  ;;  %5882 = vrot.lane.b32.xlu2 %v5864_v39, %s9115_s28  ;;  %v5630_v22 = vpop.f32.mrf.mxu2 }
 0x5ff   : > { %v5799_v20 = vld [vmem:[#allocation5 + $0x18] sm:$0xff]  ;;  %5832 = vrot.lane.b32.xlu1 %v5814_v19, %s9113_s5  ;;  %v5525_v23 = vld [vmem:[#allocation9 + $0x78] sm:$0x7f]  ;;  %v5631_v24 = vadd.f32 %v11095_v41, %v5630_v22 }
 0x600   : > { %v5962_v21 = vld [vmem:[#allocation5 + $0x14] sm:$0xff]  ;;  %5807 = vst.msk [vmem:[#allocation10 + $0x30] sm:$0xff] %vm5702_vm9, %v5799_v20  ;;  %8466 = vmatmul.msk.f32.gmra.mxu2 %vm5540_vm10, %v5525_v23 }
 0x601   : > { %5970 = vst.msk [vmem:[#allocation10 + $0x8] sm:$0xff] %vm5702_vm9, %v5962_v21  ;;  %vm5662_vm11 = vcmp.ge.f32.partialorder %v5631_v24, 0.0  ;;  %v5678_v25 = vmul.f32 0.01, %v5631_v24 }
 0x602   : > { %v5726_v27 = vld [vmem:[#allocation14 + $0x30] ss:$2 sm:$0xff]  ;;  %v5742_v28 = vld [vmem:[#allocation14 + $0x31] ss:$2 sm:$0xff] }
 0x603   : > { %v5694_v26 = vsel %vm5662_vm11, %v5631_v24, %v5678_v25  ;;  %v5770_v48 = vmax.f32 %v5726_v27, %v5742_v28 }
 0x604   : > { %5711 = vst.msk [vmem:[#allocation14 + $0x40] sm:$0xff] %vm5702_vm9, %v5694_v26 }
 0x608   : > { %v5829_v30 = vpop.permute.xlu1 %5828 }
 0x609   : > { %5853 = vst.msk [vmem:[#allocation10] sm:$0xff] %vm5852_vm5, %v5829_v30 }
 0x60a   : > { %5903 = vst.msk [vmem:[#allocation10] sm:$0xff] %vm5902_vm4, %v5879_v31 }
 0x60b   : > { %v5758_v60 = vld [vmem:[#allocation14 + $0x32] ss:$2 sm:$0xff] }
 0x60c   : > { %v5778_v34 = vmax.f32 %v5770_v48, %v5758_v60 }
 0x60e   : > { %5791 = vst.msk [vmem:[#allocation5 + $0x22] sm:$0xff] %vm5702_vm9, %v5778_v34 }
 0x615   : > { %v5914_v40 = vld [vmem:[#allocation5 + $0x1f] sm:$0xff] }
 0x616   : > { %v5865_v42 = vld [vmem:[#allocation5 + $0x22] sm:$0xff]  ;;  %5932 = vrot.lane.b32.xlu0 %v5914_v40, %s9116_s3 }
 0x617   : > { %v5815_v43 = vld [vmem:[#allocation5 + $0x1d] sm:$0xff]  ;;  %5884 = vrot.lane.b32.xlu2 %v5865_v42, %s9115_s28 }
 0x618   : > { %v5800_v0 = vld [vmem:[#allocation5 + $0x20] sm:$0xff]  ;;  %5834 = vrot.lane.b32.xlu1 %v5815_v43, %s9113_s5 }
 0x619   : > { %v5963_v44 = vld [vmem:[#allocation5 + $0x1c] sm:$0xff]  ;;  %5808 = vst.msk [vmem:[#allocation10 + $0x40] sm:$0xff] %vm5702_vm9, %v5800_v0 }
 0x61a   : > { %5971 = vst.msk [vmem:[#allocation10 + $0x18] sm:$0xff] %vm5702_vm9, %v5963_v44 }
 0x61d   : > { %v5633_v46 = vpop.f32.mrf.mxu2 }
 0x61e   : > { %v5634_v47 = vadd.f32 %v11095_v41, %v5633_v46 }
 0x620   : > { %vm5663_vm10 = vcmp.ge.f32.partialorder %v5634_v47, 0.0  ;;  %v5679_v50 = vmul.f32 0.01, %v5634_v47 }
 0x622   : > { %v5695_v53 = vsel %vm5663_vm10, %v5634_v47, %v5679_v50 }
 0x623   : > { %5712 = vst.msk [vmem:[#allocation14 + $0x48] sm:$0xff] %vm5702_vm9, %v5695_v53 }
 0x628   : > { %v5881_v8 = vpop.permute.xlu2 %5880 }
 0x62a   : > { %v5728_v2 = vld [vmem:[#allocation14 + $0x40] ss:$2 sm:$0xff]  ;;  %v5744_v3 = vld [vmem:[#allocation14 + $0x41] ss:$2 sm:$0xff] }
 0x62b   : > { %v5771_v7 = vmax.f32 %v5728_v2, %v5744_v3 }
 0x635   : > { %v5636_v59 = vpop.f32.mrf.mxu2 }
 0x636   : > { %v5637_v61 = vadd.f32 %v11095_v41, %v5636_v59 }
 0x638   : > { %vm5664_vm13 = vcmp.ge.f32.partialorder %v5637_v61, 0.0  ;;  %v5680_v62 = vmul.f32 0.01, %v5637_v61 }
 0x63a   : > { %v5696_v63 = vsel %vm5664_vm13, %v5637_v61, %v5680_v62 }
 0x63b   : > { %5713 = vst.msk [vmem:[#allocation14 + $0x50] sm:$0xff] %vm5702_vm9, %v5696_v63 }
 0x63e   : > { %v5639_v4 = vpop.f32.mrf.mxu2 }
 0x63f   : > { %v5640_v5 = vadd.f32 %v11095_v41, %v5639_v4  ;;  %v5929_v1 = vpop.permute.xlu0 %5928 }
 0x640   : > { %5953 = vst.msk [vmem:[#allocation10] sm:$0xff] %vm5952_vm15, %v5929_v1 }
 0x641   : > { %v5831_v6 = vpop.permute.xlu1 %5830  ;;  %vm5665_vm2 = vcmp.ge.f32.partialorder %v5640_v5, 0.0  ;;  %v5681_v29 = vmul.f32 0.01, %v5640_v5 }
 0x642   : > { %5854 = vst.msk [vmem:[#allocation10 + $0x10] sm:$0xff] %vm5852_vm5, %v5831_v6  ;;  %v5760_v9 = vld [vmem:[#allocation14 + $0x42] ss:$2 sm:$0xff] }
 0x643   : > { %5904 = vst.msk [vmem:[#allocation10 + $0x10] sm:$0xff] %vm5902_vm4, %v5881_v8  ;;  %v5697_v10 = vsel %vm5665_vm2, %v5640_v5, %v5681_v29  ;;  %v5779_v11 = vmax.f32 %v5771_v7, %v5760_v9 }
 0x644   : > { %5714 = vst.msk [vmem:[#allocation14 + $0x58] sm:$0xff] %vm5702_vm9, %v5697_v10 }
 0x645   : > { %5792 = vst.msk [vmem:[#allocation5 + $0x2a] sm:$0xff] %vm5702_vm9, %v5779_v11 }
 0x647   : > { %v5978_v12 = vld [vmem:[#allocation10] sm:$0xff] }
 0x648   : > { %6058 = vmatmul.f32.vlgmr.msra.gmra.mxu3 %v5978_v12 }
 0x64b   : > { %v5730_v22 = vld [vmem:[#allocation14 + $0x50] ss:$2 sm:$0xff]  ;;  %v5746_v23 = vld [vmem:[#allocation14 + $0x51] ss:$2 sm:$0xff] }
 0x64c   : > { %v5915_v14 = vld [vmem:[#allocation5 + $0x27] sm:$0xff]  ;;  %v5772_v25 = vmax.f32 %v5730_v22, %v5746_v23  ;;  %v6010_v23 = vld [vmem:[%s11656_s7 + $0x80] sm:$0xff] }
 0x64d   : > { %v5866_v15 = vld [vmem:[#allocation5 + $0x2a] sm:$0xff]  ;;  %5934 = vrot.lane.b32.xlu0 %v5915_v14, %s9116_s3 }
 0x64e   : > { %v5816_v16 = vld [vmem:[#allocation5 + $0x25] sm:$0xff]  ;;  %5886 = vrot.lane.b32.xlu2 %v5866_v15, %s9115_s28 }
 0x64f   : > { %v5801_v17 = vld [vmem:[#allocation5 + $0x28] sm:$0xff]  ;;  %5836 = vrot.lane.b32.xlu1 %v5816_v16, %s9113_s5 }
 0x650   : > { %v5964_v18 = vld [vmem:[#allocation5 + $0x24] sm:$0xff]  ;;  %5809 = vst.msk [vmem:[#allocation10 + $0x50] sm:$0xff] %vm5702_vm9, %v5801_v17 }
 0x651   : > { %5972 = vst.msk [vmem:[#allocation10 + $0x28] sm:$0xff] %vm5702_vm9, %v5964_v18  ;;  %v6013_v18 = vld [vmem:[%s11656_s7 + $0x98] sm:$0xff] }
 0x652   : > { %6095 = vmatpush.msrb.mxu3 %v6013_v18 }
 0x658   : > { %v5883_v31 = vpop.permute.xlu2 %5882 }
 0x663   : > { %v5642_v39 = vpop.f32.mrf.mxu2 }
 0x664   : > { %v5643_v19 = vadd.f32 %v11095_v41, %v5642_v39  ;;  %v6012_v39 = vld [vmem:[%s11656_s7 + $0x90] sm:$0xff] }
 0x665   : > { %6096 = vmatpush.msrb.mxu3 %v6012_v39 }
 0x666   : > { %vm5666_vm3 = vcmp.ge.f32.partialorder %v5643_v19, 0.0  ;;  %v5682_v20 = vmul.f32 0.01, %v5643_v19 }
 0x668   : > { %v5698_v21 = vsel %vm5666_vm3, %v5643_v19, %v5682_v20 }
 0x669   : > { %5715 = vst.msk [vmem:[#allocation14 + $0x60] sm:$0xff] %vm5702_vm9, %v5698_v21  ;;  %v6011_v21 = vld [vmem:[%s11656_s7 + $0x88] sm:$0xff] }
 0x66a   : > { %6097 = vmatpush.msrb.mxu3 %v6011_v21 }
 0x66c   : > { %6098 = vmatpush.msrb.mxu3 %v6010_v23  ;;  %v6314_v23 = vld [vmem:[%s11658_s9 + $0x98] sm:$0xff] }
 0x66e   : > { %v5645_v24 = vpop.f32.mrf.mxu2  ;;  %6372 = vmatpush.msra.mxu3 %v6314_v23 }
 0x66f   : > { %v5931_v26 = vpop.permute.xlu0 %5930  ;;  %v5646_v27 = vadd.f32 %v11095_v41, %v5645_v24 }
 0x670   : > { %v5762_v28 = vld [vmem:[#allocation14 + $0x52] ss:$2 sm:$0xff]  ;;  %5954 = vst.msk [vmem:[#allocation10 + $0x10] sm:$0xff] %vm5952_vm15, %v5931_v26 }
 0x671   : > { %v5833_v30 = vpop.permute.xlu1 %5832  ;;  %vm5667_vm6 = vcmp.ge.f32.partialorder %v5646_v27, 0.0  ;;  %v5683_v48 = vmul.f32 0.01, %v5646_v27  ;;  %v5780_v60 = vmax.f32 %v5772_v25, %v5762_v28  ;;  %v5885_v55 = vpop.permute.xlu2 %5884 }
 0x672   : > { %5855 = vst.msk [vmem:[#allocation10 + $0x20] sm:$0xff] %vm5852_vm5, %v5833_v30 }
 0x673   : > { %5905 = vst.msk [vmem:[#allocation10 + $0x20] sm:$0xff] %vm5902_vm4, %v5883_v31  ;;  %v5699_v32 = vsel %vm5667_vm6, %v5646_v27, %v5683_v48  ;;  %v5979_v48 = vld [vmem:[#allocation10 + $0x8] sm:$0xff] }
 0x674   : > { %5793 = vst.msk [vmem:[#allocation5 + $0x32] sm:$0xff] %vm5702_vm9, %v5780_v60  ;;  %v5981_v60 = vld [vmem:[#allocation10 + $0x18] sm:$0xff] }
 0x675   : > { %5716 = vst.msk [vmem:[#allocation14 + $0x68] sm:$0xff] %vm5702_vm9, %v5699_v32  ;;  %v5983_v32 = vld [vmem:[#allocation10 + $0x28] sm:$0xff] }
 0x677   : > { %v5980_v33 = vld [vmem:[#allocation10 + $0x10] sm:$0xff]  ;;  %v5648_v34 = vpop.f32.mrf.mxu2 }
 0x678   : > { %6061 = vmatmul.f32.gmra.mxu3 %v5980_v33  ;;  %v5649_v35 = vadd.f32 %v11095_v41, %v5648_v34  ;;  %v5969_v33 = vld [vmem:[#allocation5 + $0x4c] sm:$0x7f] }
 0x679   : > { %5977 = vst.msk [vmem:[#allocation10 + $0x78] sm:$0x7f] %vm5718_vm7, %v5969_v33 }
 0x67a   : > { %vm5668_vm12 = vcmp.ge.f32.partialorder %v5649_v35, 0.0  ;;  %v5684_v36 = vmul.f32 0.01, %v5649_v35 }
 0x67b   : > { %v5916_v37 = vld [vmem:[#allocation5 + $0x2f] sm:$0xff] }
 0x67c   : > { %v5867_v38 = vld [vmem:[#allocation5 + $0x32] sm:$0xff]  ;;  %5936 = vrot.lane.b32.xlu0 %v5916_v37, %s9116_s3  ;;  %v5700_v43 = vsel %vm5668_vm12, %v5649_v35, %v5684_v36 }
 0x67d   : > { %v5817_v40 = vld [vmem:[#allocation5 + $0x2d] sm:$0xff]  ;;  %5888 = vrot.lane.b32.xlu2 %v5867_v38, %s9115_s28  ;;  %5717 = vst.msk [vmem:[#allocation14 + $0x70] sm:$0xff] %vm5702_vm9, %v5700_v43 }
 0x67e   : > { %v5802_v42 = vld [vmem:[#allocation5 + $0x30] sm:$0xff]  ;;  %5838 = vrot.lane.b32.xlu1 %v5817_v40, %s9113_s5 }
 0x67f   : > { %5810 = vst.msk [vmem:[#allocation10 + $0x60] sm:$0xff] %vm5702_vm9, %v5802_v42  ;;  %v5965_v0 = vld [vmem:[#allocation5 + $0x2c] sm:$0xff] }
 0x680   : > { %5973 = vst.msk [vmem:[#allocation10 + $0x38] sm:$0xff] %vm5702_vm9, %v5965_v0  ;;  %v5732_v44 = vld [vmem:[#allocation14 + $0x60] ss:$2 sm:$0xff]  ;;  %v5748_v45 = vld [vmem:[#allocation14 + $0x61] ss:$2 sm:$0xff] }
 0x681   : > { %v5773_v46 = vmax.f32 %v5732_v44, %v5748_v45  ;;  %v5993_v38 = vld [vmem:[#allocation10 + $0x78] sm:$0x7f] }
 0x683   : > { %v5651_v13 = vpop.f32.mrf.mxu2 }
 0x684   : > { %v5764_v47 = vld [vmem:[#allocation14 + $0x62] ss:$2 sm:$0xff]  ;;  %v5652_v49 = vadd.f32 %v11095_v41, %v5651_v13 }
 0x685   : > { %v5781_v50 = vmax.f32 %v5773_v46, %v5764_v47  ;;  %v11324_v47 = vld [vmem:[#allocation26] ss:$0 sm:$0xff] }
 0x686   : > { %vm5669_vm8 = vcmp.ge.f32.partialorder %v5652_v49, 0.0  ;;  %v5685_v51 = vmul.f32 0.01, %v5652_v49 }
 0x687   : > { %5794 = vst.msk [vmem:[#allocation5 + $0x3a] sm:$0xff] %vm5702_vm9, %v5781_v50  ;;  %v5985_v34 = vld [vmem:[#allocation10 + $0x38] sm:$0xff] }
 0x688   : > { %v5701_v52 = vsel %vm5669_vm8, %v5652_v49, %v5685_v51  ;;  %v5933_v53 = vpop.permute.xlu0 %5932 }
 0x689   : > { %5719 = vst.msk [vmem:[#allocation14 + $0x78] sm:$0x7f] %vm5718_vm7, %v5701_v52 }
 0x68a   : > { %5955 = vst.msk [vmem:[#allocation10 + $0x20] sm:$0xff] %vm5952_vm15, %v5933_v53  ;;  %v5835_v54 = vpop.permute.xlu1 %5834 }
 0x68b   : > { %5856 = vst.msk [vmem:[#allocation10 + $0x30] sm:$0xff] %vm5852_vm5, %v5835_v54 }
 0x68c   : > { %5906 = vst.msk [vmem:[#allocation10 + $0x30] sm:$0xff] %vm5902_vm4, %v5885_v55 }
 0x68e   : > { %v5917_v56 = vld [vmem:[#allocation5 + $0x37] sm:$0xff] }
 0x68f   : > { %v5868_v41 = vld [vmem:[#allocation5 + $0x3a] sm:$0xff]  ;;  %5938 = vrot.lane.b32.xlu0 %v5917_v56, %s9116_s3 }
 0x690   : > { %v5818_v57 = vld [vmem:[#allocation5 + $0x35] sm:$0xff]  ;;  %5890 = vrot.lane.b32.xlu2 %v5868_v41, %s9115_s28  ;;  %v5734_v61 = vld [vmem:[#allocation14 + $0x70] ss:$2 sm:$0x7f] }
 0x691   : > { %v5803_v58 = vld [vmem:[#allocation5 + $0x38] sm:$0x7f]  ;;  %v5750_v62 = vld [vmem:[#allocation14 + $0x71] ss:$2 sm:$0x7f]  ;;  %5840 = vrot.lane.b32.xlu1 %v5818_v57, %s9113_s5  ;;  %v5982_v2 = vld [vmem:[#allocation10 + $0x20] sm:$0xff] }
 0x692   : > { %v5966_v59 = vld [vmem:[#allocation5 + $0x34] sm:$0xff]  ;;  %v5774_v63 = vmax.f32 %v5734_v61, %v5750_v62  ;;  %5811 = vst.msk [vmem:[#allocation10 + $0x70] sm:$0x7f] %vm5718_vm7, %v5803_v58  ;;  %v5766_v3 = vld [vmem:[#allocation14 + $0x72] ss:$2 sm:$0x7f]  ;;  %6064 = vmatmul.f32.gmra.mxu3 %v5982_v2 }
 0x693   : > { %5974 = vst.msk [vmem:[#allocation10 + $0x48] sm:$0xff] %vm5702_vm9, %v5966_v59 }
 0x694   : > { %v5782_v4 = vmax.f32 %v5774_v63, %v5766_v3 }
 0x696   : > { %5795 = vst.msk [vmem:[#allocation5 + $0x42] sm:$0x7f] %vm5718_vm7, %v5782_v4 }
 0x69a   : > { %v5987_v35 = vld [vmem:[#allocation10 + $0x48] sm:$0xff] }
 0x69d   : > { %v5918_v5 = vld [vmem:[#allocation5 + $0x3f] sm:$0xff]  ;;  %v5919_v29 = vld [vmem:[#allocation5 + $0x47] sm:$0x7f] }
 0x69e   : > { %v5869_v1 = vld [vmem:[#allocation5 + $0x42] sm:$0x7f]  ;;  %5940 = vrot.lane.b32.xlu0 %v5918_v5, %s9116_s3 }
 0x69f   : > { %v5819_v6 = vld [vmem:[#allocation5 + $0x3d] sm:$0x7f]  ;;  %5892 = vrot.lane.b32.xlu2 %v5869_v1, %s9115_s28  ;;  %v5968_v8 = vld [vmem:[#allocation5 + $0x44] sm:$0xff] }
 0x6a0   : > { %v5967_v7 = vld [vmem:[#allocation5 + $0x3c] sm:$0xff]  ;;  %5842 = vrot.lane.b32.xlu1 %v5819_v6, %s9113_s5  ;;  %5976 = vst.msk [vmem:[#allocation10 + $0x68] sm:$0xff] %vm5702_vm9, %v5968_v8 }
 0x6a1   : > { %5975 = vst.msk [vmem:[#allocation10 + $0x58] sm:$0xff] %vm5702_vm9, %v5967_v7 }
 0x6a6   : > { %5942 = vrot.lane.b32.xlu0 %v5919_v29, %s9116_s3 }
 0x6a7   : > { %v5991_v37 = vld [vmem:[#allocation10 + $0x68] sm:$0xff] }
 0x6a8   : > { %v5887_v11 = vpop.permute.xlu2 %5886  ;;  %v5989_v36 = vld [vmem:[#allocation10 + $0x58] sm:$0xff] }
 0x6bf   : > { %v5935_v9 = vpop.permute.xlu0 %5934 }
 0x6c0   : > { %5956 = vst.msk [vmem:[#allocation10 + $0x30] sm:$0xff] %vm5952_vm15, %v5935_v9 }
 0x6c1   : > { %v5837_v10 = vpop.permute.xlu1 %5836 }
 0x6c2   : > { %5857 = vst.msk [vmem:[#allocation10 + $0x40] sm:$0xff] %vm5852_vm5, %v5837_v10 }
 0x6c3   : > { %5907 = vst.msk [vmem:[#allocation10 + $0x40] sm:$0xff] %vm5902_vm4, %v5887_v11 }
 0x6c7   : > { %v5984_v12 = vld [vmem:[#allocation10 + $0x30] sm:$0xff] }
 0x6c8   : > { %6067 = vmatmul.f32.gmra.mxu3 %v5984_v12 }
 0x6cb   : > { %v6059_v40 = vpop.f32.mrf.mxu3 }
 0x6cc   : > { %v6060_v49 = vadd.f32 %v11324_v47, %v6059_v40 }
 0x6d7   : > { %v5889_v16 = vpop.permute.xlu2 %5888 }
 0x6ea   : > { %v5891_v22 = vpop.permute.xlu2 %5890 }
 0x6ee   : > { %v5937_v14 = vpop.permute.xlu0 %5936 }
 0x6ef   : > { %5957 = vst.msk [vmem:[#allocation10 + $0x40] sm:$0xff] %vm5952_vm15, %v5937_v14 }
 0x6f0   : > { %v5839_v15 = vpop.permute.xlu1 %5838 }
 0x6f1   : > { %5858 = vst.msk [vmem:[#allocation10 + $0x50] sm:$0xff] %vm5852_vm5, %v5839_v15 }
 0x6f2   : > { %5908 = vst.msk [vmem:[#allocation10 + $0x50] sm:$0xff] %vm5902_vm4, %v5889_v16 }
 0x6f6   : > { %v5986_v17 = vld [vmem:[#allocation10 + $0x40] sm:$0xff] }
 0x6f7   : > { %6070 = vmatmul.f32.gmra.mxu3 %v5986_v17 }
 0x6f9   : > { %v5893_v27 = vpop.permute.xlu2 %5892 }
 0x6fb   : > { %v6062_v42 = vpop.f32.mrf.mxu3 }
 0x6fc   : > { %v6063_v54 = vadd.f32 %v11324_v47, %v6062_v42 }
 0x701   : > { %v5939_v19 = vpop.permute.xlu0 %5938 }
 0x702   : > { %5958 = vst.msk [vmem:[#allocation10 + $0x50] sm:$0xff] %vm5952_vm15, %v5939_v19 }
 0x703   : > { %v5841_v20 = vpop.permute.xlu1 %5840 }
 0x704   : > { %5859 = vst.msk [vmem:[#allocation10 + $0x60] sm:$0xff] %vm5852_vm5, %v5841_v20 }
 0x705   : > { %5909 = vst.msk [vmem:[#allocation10 + $0x60] sm:$0xff] %vm5902_vm4, %v5891_v22 }
 0x709   : > { %v5988_v24 = vld [vmem:[#allocation10 + $0x50] sm:$0xff] }
 0x70a   : > { %6073 = vmatmul.f32.gmra.mxu3 %v5988_v24  ;;  %v6313_v24 = vld [vmem:[%s11658_s9 + $0x90] sm:$0xff] }
 0x70b   : > { %6373 = vmatpush.msra.mxu3 %v6313_v24 }
 0x710   : > { %v5941_v25 = vpop.permute.xlu0 %5940 }
 0x711   : > { %5959 = vst.msk [vmem:[#allocation10 + $0x60] sm:$0xff] %vm5952_vm15, %v5941_v25 }
 0x712   : > { %v5843_v26 = vpop.permute.xlu1 %5842 }
 0x713   : > { %5861 = vst.msk [vmem:[#allocation10 + $0x70] sm:$0x7f] %vm5860_vm0, %v5843_v26 }
 0x714   : > { %5911 = vst.msk [vmem:[#allocation10 + $0x70] sm:$0x7f] %vm5910_vm14, %v5893_v27  ;;  %v6312_v27 = vld [vmem:[%s11658_s9 + $0x88] sm:$0xff] }
 0x715   : > { %v6065_v43 = vpop.f32.mrf.mxu3  ;;  %6374 = vmatpush.msra.mxu3 %v6312_v27 }
 0x716   : > { %v6066_v58 = vadd.f32 %v11324_v47, %v6065_v43 }
 0x718   : > { %v5943_v28 = vpop.permute.xlu0 %5942  ;;  %v5990_v30 = vld [vmem:[#allocation10 + $0x60] sm:$0xff] }
 0x719   : > { %5961 = vst.msk [vmem:[#allocation10 + $0x70] sm:$0x7f] %vm5960_vm1, %v5943_v28  ;;  %6076 = vmatmul.f32.gmra.mxu3 %v5990_v30 }
 0x720   : > { %v5992_v31 = vld [vmem:[#allocation10 + $0x70] sm:$0x7f] }
 0x721   : > { %6079 = vmatmul.f32.gmra.mxu3 %v5992_v31 }
 0x729   : > { %8467 = vmatmul.msk.f32.vlgmr.msrb.gmra.mxu3 %vm5702_vm9, %v5979_v48  ;;  %v6311_v48 = vld [vmem:[%s11658_s9 + $0x80] sm:$0xff] }
 0x72a   : > { %6375 = vmatpush.msra.mxu3 %v6311_v48 }
 0x731   : > { %8468 = vmatmul.msk.f32.gmra.mxu3 %vm5702_vm9, %v5981_v60 }
 0x739   : > { %8469 = vmatmul.msk.f32.gmra.mxu3 %vm5702_vm9, %v5983_v32 }
 0x741   : > { %8470 = vmatmul.msk.f32.gmra.mxu3 %vm5702_vm9, %v5985_v34 }
 0x749   : > { %8471 = vmatmul.msk.f32.gmra.mxu3 %vm5702_vm9, %v5987_v35 }
 0x74b   : > { %v6068_v0 = vpop.f32.mrf.mxu3 }
 0x74c   : > { %v6069_v2 = vadd.f32 %v11324_v47, %v6068_v0 }
 0x751   : > { %8472 = vmatmul.msk.f32.gmra.mxu3 %vm5702_vm9, %v5989_v36 }
 0x759   : > { %8473 = vmatmul.msk.f32.gmra.mxu3 %vm5702_vm9, %v5991_v37 }
 0x761   : > { %8474 = vmatmul.msk.f32.gmra.mxu3 %vm5702_vm9, %v5993_v38 }
 0x77a   : > { %v6071_v44 = vpop.f32.mrf.mxu3 }
 0x77b   : > { %v6072_v10 = vadd.f32 %v11324_v47, %v6071_v44 }
 0x78d   : > { %v6074_v45 = vpop.f32.mrf.mxu3 }
 0x78e   : > { %v6075_v16 = vadd.f32 %v11324_v47, %v6074_v45 }
 0x79c   : > { %v11320_v46 = vpop.f32.mrf.mxu3 }
 0x79d   : > { %v6078_v60 = vadd.f32 %v11324_v47, %v11320_v46 }
 0x7a4   : > { %v11322_v13 = vpop.f32.mrf.mxu3 }
 0x7a5   : > { %v6081_v36 = vadd.f32 %v11324_v47, %v11322_v13 }
 0x7ac   : > { %v6100_v50 = vpop.f32.mrf.mxu3 }
 0x7ad   : > { %v6101_v51 = vadd.f32 %v6100_v50, %v6060_v49 }
 0x7af   : > { %vm6124_vm11 = vcmp.ge.f32.partialorder %v6101_v51, 0.0  ;;  %v6132_v52 = vmul.f32 0.01, %v6101_v51 }
 0x7b1   : > { %v6140_v53 = vsel %vm6124_vm11, %v6101_v51, %v6132_v52 }
 0x7b2   : > { %6148 = vst.msk [vmem:[#allocation15] sm:$0xff] %vm5702_vm9, %v6140_v53 }
 0x7b4   : > { %v6103_v55 = vpop.f32.mrf.mxu3 }
 0x7b5   : > { %v6104_v56 = vadd.f32 %v6103_v55, %v6063_v54 }
 0x7b7   : > { %vm6125_vm10 = vcmp.ge.f32.partialorder %v6104_v56, 0.0  ;;  %v6133_v41 = vmul.f32 0.01, %v6104_v56 }
 0x7b9   : > { %v6141_v57 = vsel %vm6125_vm10, %v6104_v56, %v6133_v41 }
 0x7ba   : > { %6149 = vst.msk [vmem:[#allocation15 + $0x8] sm:$0xff] %vm5702_vm9, %v6141_v57 }
 0x7bc   : > { %v6106_v59 = vpop.f32.mrf.mxu3 }
 0x7bd   : > { %v6107_v61 = vadd.f32 %v6106_v59, %v6066_v58 }
 0x7bf   : > { %vm6126_vm13 = vcmp.ge.f32.partialorder %v6107_v61, 0.0  ;;  %v6134_v62 = vmul.f32 0.01, %v6107_v61 }
 0x7c1   : > { %v6142_v63 = vsel %vm6126_vm13, %v6107_v61, %v6134_v62  ;;  %v6156_v4 = vld [vmem:[#allocation15] ss:$2 sm:$0xff]  ;;  %v6164_v5 = vld [vmem:[#allocation15 + $0x1] ss:$2 sm:$0xff]  ;;  %vm7791_vm13 = vcmask 785408  }
 0x7c2   : > { %6150 = vst.msk [vmem:[#allocation15 + $0x10] sm:$0xff] %vm5702_vm9, %v6142_v63  ;;  %v6179_v7 = vmax.f32 %v6156_v4, %v6164_v5 }
 0x7c4   : > { %v6109_v3 = vpop.f32.mrf.mxu3 }
 0x7c5   : > { %v6110_v1 = vadd.f32 %v6109_v3, %v6069_v2 }
 0x7c7   : > { %vm6127_vm2 = vcmp.ge.f32.partialorder %v6110_v1, 0.0  ;;  %v6135_v6 = vmul.f32 0.01, %v6110_v1 }
 0x7c9   : > { %v6172_v8 = vld [vmem:[#allocation15 + $0x2] ss:$2 sm:$0xff]  ;;  %v6143_v29 = vsel %vm6127_vm2, %v6110_v1, %v6135_v6  ;;  %vm7988_vm2 = vcmask 916480  }
 0x7ca   : > { %6151 = vst.msk [vmem:[#allocation15 + $0x18] sm:$0xff] %vm5702_vm9, %v6143_v29  ;;  %v6183_v9 = vmax.f32 %v6179_v7, %v6172_v8  ;;  %v6310_v7 = vld [vmem:[%s11658_s9 + $0x78] sm:$0xff]  ;;  %v6309_v8 = vld [vmem:[%s11658_s9 + $0x70] sm:$0xff]  ;;  %v6199_v29 = vld [vmem:[#allocation6] sm:$0xff] }
 0x7cb   : > { %6331 = vmatpush.msrb.mxu2 %v6310_v7  ;;  %6203 = vst.msk [vmem:[#allocation11] sm:$0xff] %vm5702_vm9, %v6199_v29  ;;  %v6521_v29 = vld [vmem:[#allocation29 + $0x40] sm:$0xff] }
 0x7cc   : > { %v6112_v11 = vpop.f32.mrf.mxu3  ;;  %6195 = vst.msk [vmem:[#allocation6 + $0xa] sm:$0xff] %vm5702_vm9, %v6183_v9 }
 0x7cd   : > { %v6113_v12 = vadd.f32 %v6112_v11, %v6072_v10  ;;  %6187 = vst.msk [vmem:[%s11338_s25] sm:$0xff] %vm5702_vm9, %v6183_v9  ;;  %v6308_v9 = vld [vmem:[%s11658_s9 + $0x68] sm:$0xff]  ;;  %6332 = vmatpush.msrb.mxu2 %v6309_v8  ;;  %v6307_v10 = vld [vmem:[%s11658_s9 + $0x60] sm:$0xff]  ;;  %v6306_v11 = vld [vmem:[%s11658_s9 + $0x58] sm:$0xff] }
 0x7cf   : > { %vm6128_vm3 = vcmp.ge.f32.partialorder %v6113_v12, 0.0  ;;  %v6136_v14 = vmul.f32 0.01, %v6113_v12  ;;  %6333 = vmatpush.msrb.mxu2 %v6308_v9 }
 0x7d1   : > { %v6144_v15 = vsel %vm6128_vm3, %v6113_v12, %v6136_v14  ;;  %v6158_v20 = vld [vmem:[#allocation15 + $0x10] ss:$2 sm:$0xff]  ;;  %v6166_v21 = vld [vmem:[#allocation15 + $0x11] ss:$2 sm:$0xff]  ;;  %6334 = vmatpush.msrb.mxu2 %v6307_v10  ;;  %v6304_v14 = vld [vmem:[%s11658_s9 + $0x48] sm:$0xff]  ;;  %vm8087_vm3 = vcmask 1043456  }
 0x7d2   : > { %6152 = vst.msk [vmem:[#allocation15 + $0x20] sm:$0xff] %vm5702_vm9, %v6144_v15  ;;  %v6180_v26 = vmax.f32 %v6158_v20, %v6166_v21  ;;  %v6305_v12 = vld [vmem:[%s11658_s9 + $0x50] sm:$0xff]  ;;  %v6303_v15 = vld [vmem:[%s11658_s9 + $0x40] sm:$0xff]  ;;  %v6296_v21 = vld [vmem:[%s11658_s9 + $0x8] sm:$0xff] }
 0x7d3   : > { %v6231_v17 = vld [vmem:[#allocation6 + $0xa] sm:$0xff]  ;;  %6335 = vmatpush.msrb.mxu2 %v6306_v11 }
 0x7d4   : > { %v6207_v18 = vld [vmem:[#allocation6 + $0x5] sm:$0xff]  ;;  %v6115_v19 = vpop.f32.mrf.mxu3  ;;  %6239 = vrot.lane.b32.xlu2 %v6231_v17, %s9115_s28 }
 0x7d5   : > { %v6200_v39 = vld [vmem:[#allocation6 + $0x8] sm:$0xff]  ;;  %6215 = vrot.lane.b32.xlu1 %v6207_v18, %s9113_s5  ;;  %v6116_v22 = vadd.f32 %v6115_v19, %v6075_v16  ;;  %6336 = vmatpush.msrb.mxu2 %v6305_v12  ;;  %v6302_v16 = vld [vmem:[%s11658_s9 + $0x38] sm:$0xff]  ;;  %v6300_v18 = vld [vmem:[%s11658_s9 + $0x28] sm:$0xff] }
 0x7d6   : > { %6204 = vst.msk [vmem:[#allocation11 + $0x10] sm:$0xff] %vm5702_vm9, %v6200_v39  ;;  %v6301_v17 = vld [vmem:[%s11658_s9 + $0x30] sm:$0xff]  ;;  %v6299_v39 = vld [vmem:[%s11658_s9 + $0x20] sm:$0xff]  ;;  %v6298_v19 = vld [vmem:[%s11658_s9 + $0x18] sm:$0xff] }
 0x7d7   : > { %vm6129_vm6 = vcmp.ge.f32.partialorder %v6116_v22, 0.0  ;;  %v6137_v25 = vmul.f32 0.01, %v6116_v22  ;;  %6337 = vmatpush.msrb.mxu2 %v6304_v14  ;;  %v6297_v20 = vld [vmem:[%s11658_s9 + $0x10] sm:$0xff] }
 0x7d9   : > { %v6174_v28 = vld [vmem:[#allocation15 + $0x12] ss:$2 sm:$0xff]  ;;  %v6145_v30 = vsel %vm6129_vm6, %v6116_v22, %v6137_v25  ;;  %6338 = vmatpush.msrb.mxu2 %v6303_v15  ;;  %vm8049_vm6 = vcmask 982016  }
 0x7da   : > { %6153 = vst.msk [vmem:[#allocation15 + $0x28] sm:$0xff] %vm5702_vm9, %v6145_v30  ;;  %v6184_v31 = vmax.f32 %v6180_v26, %v6174_v28  ;;  %v6295_v22 = vld [vmem:[%s11658_s9] sm:$0xff]  ;;  %v6282_v30 = vld [vmem:[#allocation6 + $0x2c] sm:$0x7f] }
 0x7db   : > { %6339 = vmatpush.msrb.mxu2 %v6302_v16  ;;  %6286 = vst.msk [vmem:[#allocation11 + $0x38] sm:$0x7f] %vm5718_vm7, %v6282_v30  ;;  %v6825_v30 = vld [vmem:[#allocation29 + $0x9c0] sm:$0xff] }
 0x7dc   : > { %v6118_v32 = vpop.f32.mrf.mxu3  ;;  %6188 = vst.msk [vmem:[%s11338_s25 + $0x8] sm:$0xff] %vm5702_vm9, %v6184_v31 }
 0x7dd   : > { %v6119_v33 = vadd.f32 %v6118_v32, %v6078_v60  ;;  %6196 = vst.msk [vmem:[#allocation6 + $0x12] sm:$0xff] %vm5702_vm9, %v6184_v31  ;;  %6340 = vmatpush.msrb.mxu2 %v6301_v17 }
 0x7df   : > { %vm6130_vm12 = vcmp.ge.f32.partialorder %v6119_v33, 0.0  ;;  %v6138_v34 = vmul.f32 0.01, %v6119_v33  ;;  %6341 = vmatpush.msrb.mxu2 %v6300_v18 }
 0x7e1   : > { %v6146_v35 = vsel %vm6130_vm12, %v6119_v33, %v6138_v34  ;;  %v6160_v43 = vld [vmem:[#allocation15 + $0x20] ss:$2 sm:$0xff]  ;;  %v6168_v0 = vld [vmem:[#allocation15 + $0x21] ss:$2 sm:$0xff]  ;;  %6342 = vmatpush.msrb.mxu2 %v6299_v39  ;;  %vm8083_vm12 = vcmask 490496  }
 0x7e2   : > { %6154 = vst.msk [vmem:[#allocation15 + $0x30] sm:$0xff] %vm5702_vm9, %v6146_v35  ;;  %v6181_v13 = vmax.f32 %v6160_v43, %v6168_v0  ;;  %v6294_v32 = vld [vmem:[#allocation11 + $0x38] sm:$0x7f] }
 0x7e3   : > { %6343 = vmatpush.msrb.mxu2 %v6298_v19 }
 0x7e4   : > { %v6121_v37 = vpop.f32.mrf.mxu3  ;;  %v6255_v38 = vld [vmem:[#allocation6 + $0xf] sm:$0xff] }
 0x7e5   : > { %v6232_v40 = vld [vmem:[#allocation6 + $0x12] sm:$0xff]  ;;  %v6122_v44 = vadd.f32 %v6121_v37, %v6081_v36  ;;  %6263 = vrot.lane.b32.xlu0 %v6255_v38, %s9116_s3  ;;  %6344 = vmatpush.msrb.mxu2 %v6297_v20 }
 0x7e6   : > { %v6208_v42 = vld [vmem:[#allocation6 + $0xd] sm:$0xff]  ;;  %6241 = vrot.lane.b32.xlu2 %v6232_v40, %s9115_s28 }
 0x7e7   : > { %v6201_v45 = vld [vmem:[#allocation6 + $0x10] sm:$0xff]  ;;  %6217 = vrot.lane.b32.xlu1 %v6208_v42, %s9113_s5  ;;  %vm6131_vm8 = vcmp.ge.f32.partialorder %v6122_v44, 0.0  ;;  %v6139_v46 = vmul.f32 0.01, %v6122_v44  ;;  %6345 = vmatpush.msrb.mxu2 %v6296_v21 }
 0x7e8   : > { %6205 = vst.msk [vmem:[#allocation11 + $0x20] sm:$0xff] %vm5702_vm9, %v6201_v45  ;;  %v8654_v42 = vld [vmem:[#allocation27] ss:$0 sm:$0xff] }
 0x7e9   : > { %v6176_v47 = vld [vmem:[#allocation15 + $0x22] ss:$2 sm:$0xff]  ;;  %v6147_v49 = vsel %vm6131_vm8, %v6122_v44, %v6139_v46  ;;  %6346 = vmatpush.msrb.mxu2 %v6295_v22  ;;  %vm8111_vm8 = vcmask 0  }
 0x7ea   : > { %6155 = vst.msk [vmem:[#allocation15 + $0x38] sm:$0x7f] %vm5718_vm7, %v6147_v49  ;;  %v6185_v50 = vmax.f32 %v6181_v13, %v6176_v47 }
 0x7ec   : > { %6189 = vst.msk [vmem:[%s11338_s25 + $0x10] sm:$0xff] %vm5702_vm9, %v6185_v50 }
 0x7ed   : > { %6197 = vst.msk [vmem:[#allocation6 + $0x1a] sm:$0xff] %vm5702_vm9, %v6185_v50 }
 0x7f1   : > { %v6162_v51 = vld [vmem:[#allocation15 + $0x30] ss:$2 sm:$0x7f]  ;;  %v6170_v52 = vld [vmem:[#allocation15 + $0x31] ss:$2 sm:$0x7f] }
 0x7f2   : > { %v6182_v53 = vmax.f32 %v6162_v51, %v6170_v52  ;;  %v6178_v54 = vld [vmem:[#allocation15 + $0x32] ss:$2 sm:$0x7f] }
 0x7f4   : > { %v6256_v55 = vld [vmem:[#allocation6 + $0x17] sm:$0xff]  ;;  %v6186_v57 = vmax.f32 %v6182_v53, %v6178_v54 }
 0x7f5   : > { %v6233_v56 = vld [vmem:[#allocation6 + $0x1a] sm:$0xff]  ;;  %6265 = vrot.lane.b32.xlu0 %v6256_v55, %s9116_s3 }
 0x7f6   : > { %v6209_v41 = vld [vmem:[#allocation6 + $0x15] sm:$0xff]  ;;  %6243 = vrot.lane.b32.xlu2 %v6233_v56, %s9115_s28  ;;  %6190 = vst.msk [vmem:[%s11338_s25 + $0x18] sm:$0x7f] %vm5718_vm7, %v6186_v57 }
 0x7f7   : > { %v6279_v58 = vld [vmem:[#allocation6 + $0x14] sm:$0xff]  ;;  %6219 = vrot.lane.b32.xlu1 %v6209_v41, %s9113_s5  ;;  %6198 = vst.msk [vmem:[#allocation6 + $0x22] sm:$0x7f] %vm5718_vm7, %v6186_v57 }
 0x7f8   : > { %6283 = vst.msk [vmem:[#allocation11 + $0x8] sm:$0xff] %vm5702_vm9, %v6279_v58  ;;  %v6202_v59 = vld [vmem:[#allocation6 + $0x18] sm:$0x7f] }
 0x7f9   : > { %6206 = vst.msk [vmem:[#allocation11 + $0x30] sm:$0x7f] %vm5718_vm7, %v6202_v59 }
 0x7fe   : > { %v6257_v62 = vld [vmem:[#allocation6 + $0x1f] sm:$0xff]  ;;  %v6258_v5 = vld [vmem:[#allocation6 + $0x27] sm:$0x7f] }
 0x7ff   : > { %v6288_v61 = vld [vmem:[#allocation11 + $0x8] sm:$0xff]  ;;  %6267 = vrot.lane.b32.xlu0 %v6257_v62, %s9116_s3 }
 0x800   : > { %8475 = vmatmul.msk.f32.vlgmr.msra.gmra.mxu3 %vm5702_vm9, %v6288_v61  ;;  %v6234_v63 = vld [vmem:[#allocation6 + $0x22] sm:$0x7f] }
 0x801   : > { %v6210_v2 = vld [vmem:[#allocation6 + $0x1d] sm:$0x7f]  ;;  %6245 = vrot.lane.b32.xlu2 %v6234_v63, %s9115_s28  ;;  %v6281_v4 = vld [vmem:[#allocation6 + $0x24] sm:$0xff] }
 0x802   : > { %v6280_v3 = vld [vmem:[#allocation6 + $0x1c] sm:$0xff]  ;;  %6221 = vrot.lane.b32.xlu1 %v6210_v2, %s9113_s5  ;;  %6285 = vst.msk [vmem:[#allocation11 + $0x28] sm:$0xff] %vm5702_vm9, %v6281_v4  ;;  %v6422_v4 = vlaneseq }
 0x803   : > { %6284 = vst.msk [vmem:[#allocation11 + $0x18] sm:$0xff] %vm5702_vm9, %v6280_v3 }
 0x804   : > { %vm6435_vm11 = vcmp.lt.s32.totalorder %v6422_v4, 128 }
 0x807   : > { %6269 = vrot.lane.b32.xlu0 %v6258_v5, %s9116_s3 }
 0x809   : > { %v6292_v6 = vld [vmem:[#allocation11 + $0x28] sm:$0xff] }
 0x80a   : > { %v6290_v1 = vld [vmem:[#allocation11 + $0x18] sm:$0xff] }
 0x80b   : > { %8476 = vmatmul.msk.f32.gmra.mxu3 %vm5702_vm9, %v6290_v1 }
 0x813   : > { %8477 = vmatmul.msk.f32.gmra.mxu3 %vm5702_vm9, %v6292_v6 }
 0x81b   : > { %8478 = vmatmul.msk.f32.gmra.mxu3 %vm5702_vm9, %v6294_v32  ;;  %v6573_v32 = vld [vmem:[#allocation29 + $0x1e0] sm:$0xff] }
 0x81c   : > { %7021 = vmatpush.msra.mxu2 %v6573_v32  ;;  %v6749_v32 = vld [vmem:[#allocation29 + $0x760] sm:$0xff] }
 0x82e   : > { %v6240_v24 = vpop.permute.xlu2 %6239 }
 0x840   : > { %v6242_v27 = vpop.permute.xlu2 %6241 }
 0x847   : > { %v6216_v23 = vpop.permute.xlu1 %6215 }
 0x848   : > { %6227 = vst.msk [vmem:[#allocation11] sm:$0xff] %vm5852_vm5, %v6216_v23 }
 0x849   : > { %6251 = vst.msk [vmem:[#allocation11] sm:$0xff] %vm5902_vm4, %v6240_v24 }
 0x850   : > { %v6244_v60 = vpop.permute.xlu2 %6243 }
 0x857   : > { %v6264_v25 = vpop.permute.xlu0 %6263 }
 0x858   : > { %6275 = vst.msk [vmem:[#allocation11] sm:$0xff] %vm5952_vm15, %v6264_v25  ;;  %v7695_v25 = vld [vmem:[#allocation32 + $0xf0] sm:$0xff] }
 0x859   : > { %v6218_v26 = vpop.permute.xlu1 %6217  ;;  %7795 = vmatpush.msrb.mxu0 %v7695_v25  ;;  %v6693_v25 = vld [vmem:[#allocation29 + $0x5a0] sm:$0xff] }
 0x85a   : > { %6228 = vst.msk [vmem:[#allocation11 + $0x10] sm:$0xff] %vm5852_vm5, %v6218_v26  ;;  %v6957_v26 = vld [vmem:[#allocation29 + $0xde0] sm:$0xff] }
 0x85b   : > { %6252 = vst.msk [vmem:[#allocation11 + $0x10] sm:$0xff] %vm5902_vm4, %v6242_v27  ;;  %v6246_v36 = vpop.permute.xlu2 %6245  ;;  %7141 = vmatpush.msrb.mxu1 %v6957_v26  ;;  %v6757_v26 = vld [vmem:[#allocation29 + $0x7a0] sm:$0xff] }
 0x85f   : > { %v6287_v28 = vld [vmem:[#allocation11] sm:$0xff] }
 0x860   : > { %6347 = vmatmul.f32.vlgmr.msrb.gmra.mxu2 %v6287_v28 }
 0x867   : > { %v6266_v31 = vpop.permute.xlu0 %6265 }
 0x868   : > { %6276 = vst.msk [vmem:[#allocation11 + $0x10] sm:$0xff] %vm5952_vm15, %v6266_v31 }
 0x869   : > { %v6220_v48 = vpop.permute.xlu1 %6219 }
 0x86a   : > { %6229 = vst.msk [vmem:[#allocation11 + $0x20] sm:$0xff] %vm5852_vm5, %v6220_v48  ;;  %vm6401_vm5 = vcmask 523264  }
 0x86b   : > { %6253 = vst.msk [vmem:[#allocation11 + $0x20] sm:$0xff] %vm5902_vm4, %v6244_v60  ;;  %v7693_v60 = vld [vmem:[#allocation32 + $0xe0] sm:$0xff] }
 0x86c   : > { %7796 = vmatpush.msrb.mxu0 %v7693_v60  ;;  %v6685_v60 = vld [vmem:[#allocation29 + $0x560] sm:$0xff] }
 0x86f   : > { %v6289_v33 = vld [vmem:[#allocation11 + $0x10] sm:$0xff] }
 0x870   : > { %6350 = vmatmul.f32.gmra.mxu2 %v6289_v33  ;;  %v6637_v33 = vld [vmem:[#allocation29 + $0x3e0] sm:$0xff] }
 0x871   : > { %v6268_v34 = vpop.permute.xlu0 %6267  ;;  %7041 = vmatpush.msrb.mxu3 %v6637_v33  ;;  %v6686_v33 = vld [vmem:[#allocation29 + $0x568] sm:$0xff] }
 0x872   : > { %6277 = vst.msk [vmem:[#allocation11 + $0x20] sm:$0xff] %vm5952_vm15, %v6268_v34  ;;  %v6569_v34 = vld [vmem:[#allocation29 + $0x1c0] sm:$0xff] }
 0x873   : > { %7022 = vmatpush.msra.mxu2 %v6569_v34  ;;  %v6681_v34 = vld [vmem:[#allocation29 + $0x540] sm:$0xff] }
 0x874   : > { %v6222_v35 = vpop.permute.xlu1 %6221 }
 0x875   : > { %6230 = vst.msk [vmem:[#allocation11 + $0x30] sm:$0x7f] %vm5860_vm0, %v6222_v35  ;;  %vm6405_vm0 = vcmask 522240   ;;  %v6633_v35 = vld [vmem:[#allocation29 + $0x3c0] sm:$0xff] }
 0x876   : > { %6254 = vst.msk [vmem:[#allocation11 + $0x30] sm:$0x7f] %vm5910_vm14, %v6246_v36  ;;  %vm11461_vm14 = vcmp.lt.s32.totalorder %v6422_v4, 64  ;;  %v6953_v36 = vld [vmem:[#allocation29 + $0xdc0] sm:$0xff]  ;;  %7042 = vmatpush.msrb.mxu3 %v6633_v35 }
 0x877   : > { %7142 = vmatpush.msrb.mxu1 %v6953_v36  ;;  %v6745_v35 = vld [vmem:[#allocation29 + $0x740] sm:$0xff]  ;;  %v6682_v36 = vld [vmem:[#allocation29 + $0x548] sm:$0xff] }
 0x879   : > { %v6270_v37 = vpop.permute.xlu0 %6269  ;;  %v6291_v38 = vld [vmem:[#allocation11 + $0x20] sm:$0xff] }
 0x87a   : > { %6278 = vst.msk [vmem:[#allocation11 + $0x30] sm:$0x7f] %vm5960_vm1, %v6270_v37  ;;  %6353 = vmatmul.f32.gmra.mxu2 %v6291_v38  ;;  %vm6434_vm1 = vcmp.ge.s32.totalorder %v6422_v4, 64  ;;  %v6565_v37 = vld [vmem:[#allocation29 + $0x1a0] sm:$0xff] }
 0x87b   : > { %vm11488_vm10 = vmand %vm6434_vm1, %vm6435_vm11  ;;  %v6949_v38 = vld [vmem:[#allocation29 + $0xda0] sm:$0xff]  ;;  %7023 = vmatpush.msra.mxu2 %v6565_v37 }
 0x87c   : > { %7143 = vmatpush.msrb.mxu1 %v6949_v38  ;;  %v6593_v4 = vld [vmem:[#allocation29 + $0x280] sm:$0xff] }
 0x87d   : > { %v6677_v37 = vld [vmem:[#allocation29 + $0x520] sm:$0xff] }
 0x87e   : > { %v6741_v38 = vld [vmem:[#allocation29 + $0x720] sm:$0xff] }
 0x881   : > { %v6293_v40 = vld [vmem:[#allocation11 + $0x30] sm:$0x7f] }
 0x882   : > { %6356 = vmatmul.f32.gmra.mxu2 %v6293_v40  ;;  %v6629_v40 = vld [vmem:[#allocation29 + $0x3a0] sm:$0xff] }
 0x883   : > { %v6377_v44 = vpop.f32.mrf.mxu3  ;;  %7043 = vmatpush.msrb.mxu3 %v6629_v40  ;;  %v6678_v40 = vld [vmem:[#allocation29 + $0x528] sm:$0xff] }
 0x88e   : > { %v6380_v49 = vpop.f32.mrf.mxu3 }
 0x896   : > { %v6383_v54 = vpop.f32.mrf.mxu3 }
 0x89e   : > { %v6386_v61 = vpop.f32.mrf.mxu3 }
 0x8e3   : > { %v6348_v43 = vpop.f32.mrf.mxu2 }
 0x8e4   : > { %v6349_v0 = vadd.f32 %v8654_v42, %v6348_v43  ;;  %v6561_v43 = vld [vmem:[#allocation29 + $0x180] sm:$0xff] }
 0x8e5   : > { %7024 = vmatpush.msra.mxu2 %v6561_v43  ;;  %v6673_v43 = vld [vmem:[#allocation29 + $0x500] sm:$0xff] }
 0x8e6   : > { %v6378_v45 = vadd.f32 %v6377_v44, %v6349_v0  ;;  %v6625_v0 = vld [vmem:[#allocation29 + $0x380] sm:$0xff] }
 0x8e7   : > { %v6941_v44 = vld [vmem:[#allocation29 + $0xd60] sm:$0xff]  ;;  %7044 = vmatpush.msrb.mxu3 %v6625_v0 }
 0x8e8   : > { %vm6389_vm9 = vcmp.ge.f32.partialorder %v6378_v45, 0.0  ;;  %v6393_v46 = vmul.f32 0.01, %v6378_v45  ;;  %v6737_v0 = vld [vmem:[#allocation29 + $0x700] sm:$0xff] }
 0x8ea   : > { %v6397_v13 = vsel %vm6389_vm9, %v6378_v45, %v6393_v46  ;;  %v6557_v45 = vld [vmem:[#allocation29 + $0x160] sm:$0xff] }
 0x8eb   : > { %6402 = vst.msk [vmem:[#allocation16] sm:$0xff] %vm6401_vm5, %v6397_v13  ;;  %v6621_v46 = vld [vmem:[#allocation29 + $0x360] sm:$0xff]  ;;  %7025 = vmatpush.msra.mxu2 %v6557_v45 }
 0x8ec   : > { %v6937_v13 = vld [vmem:[#allocation29 + $0xd40] sm:$0xff]  ;;  %7045 = vmatpush.msrb.mxu3 %v6621_v46 }
 0x8ed   : > { %v6669_v45 = vld [vmem:[#allocation29 + $0x4e0] sm:$0xff] }
 0x8ee   : > { %v6733_v46 = vld [vmem:[#allocation29 + $0x6e0] sm:$0xff] }
 0x8f3   : > { %v6351_v47 = vpop.f32.mrf.mxu2 }
 0x8f4   : > { %v6352_v50 = vadd.f32 %v8654_v42, %v6351_v47  ;;  %v6553_v47 = vld [vmem:[#allocation29 + $0x140] sm:$0xff] }
 0x8f5   : > { %7026 = vmatpush.msra.mxu2 %v6553_v47  ;;  %v6665_v47 = vld [vmem:[#allocation29 + $0x4c0] sm:$0xff] }
 0x8f6   : > { %v6381_v51 = vadd.f32 %v6380_v49, %v6352_v50  ;;  %v6617_v49 = vld [vmem:[#allocation29 + $0x340] sm:$0xff] }
 0x8f7   : > { %7046 = vmatpush.msrb.mxu3 %v6617_v49  ;;  %v6549_v50 = vld [vmem:[#allocation29 + $0x120] sm:$0xff] }
 0x8f8   : > { %vm6390_vm4 = vcmp.ge.f32.partialorder %v6381_v51, 0.0  ;;  %v6394_v52 = vmul.f32 0.01, %v6381_v51  ;;  %7027 = vmatpush.msra.mxu2 %v6549_v50  ;;  %v6729_v49 = vld [vmem:[#allocation29 + $0x6c0] sm:$0xff]  ;;  %v6666_v50 = vld [vmem:[#allocation29 + $0x4c8] sm:$0xff] }
 0x8fa   : > { %v6398_v53 = vsel %vm6390_vm4, %v6381_v51, %v6394_v52  ;;  %v6613_v51 = vld [vmem:[#allocation29 + $0x320] sm:$0xff] }
 0x8fb   : > { %6403 = vst.msk [vmem:[#allocation16 + $0x8] sm:$0xff] %vm6401_vm5, %v6398_v53  ;;  %v6933_v52 = vld [vmem:[#allocation29 + $0xd20] sm:$0xff]  ;;  %7047 = vmatpush.msrb.mxu3 %v6613_v51 }
 0x8fc   : > { %v6545_v53 = vld [vmem:[#allocation29 + $0x100] sm:$0xff] }
 0x8fd   : > { %v6354_v55 = vpop.f32.mrf.mxu2  ;;  %7028 = vmatpush.msra.mxu2 %v6545_v53  ;;  %v6661_v51 = vld [vmem:[#allocation29 + $0x4a0] sm:$0xff]  ;;  %v6662_v53 = vld [vmem:[#allocation29 + $0x4a8] sm:$0xff] }
 0x8fe   : > { %v6355_v56 = vadd.f32 %v8654_v42, %v6354_v55  ;;  %v6929_v55 = vld [vmem:[#allocation29 + $0xd00] sm:$0xff] }
 0x900   : > { %v6384_v41 = vadd.f32 %v6383_v54, %v6355_v56  ;;  %v6609_v54 = vld [vmem:[#allocation29 + $0x300] sm:$0xff] }
 0x901   : > { %v6541_v56 = vld [vmem:[#allocation29 + $0xe0] sm:$0xff]  ;;  %7048 = vmatpush.msrb.mxu3 %v6609_v54 }
 0x902   : > { %vm6391_vm15 = vcmp.ge.f32.partialorder %v6384_v41, 0.0  ;;  %v6395_v57 = vmul.f32 0.01, %v6384_v41  ;;  %v6407_v63 = vld [vmem:[#allocation16] ss:$2 sm:$0xff]  ;;  %7029 = vmatpush.msra.mxu2 %v6541_v56 }
 0x903   : > { %v6411_v2 = vld [vmem:[#allocation16 + $0x1] ss:$2 sm:$0xff] }
 0x904   : > { %v6399_v58 = vsel %vm6391_vm15, %v6384_v41, %v6395_v57  ;;  %v6418_v1 = vmax.f32 %v6407_v63, %v6411_v2  ;;  %v6605_v41 = vld [vmem:[#allocation29 + $0x2e0] sm:$0xff]  ;;  %v6658_v56 = vld [vmem:[#allocation29 + $0x488] sm:$0xff] }
 0x905   : > { %6404 = vst.msk [vmem:[#allocation16 + $0x10] sm:$0xff] %vm6401_vm5, %v6399_v58  ;;  %v6357_v59 = vpop.f32.mrf.mxu2  ;;  %v6925_v57 = vld [vmem:[#allocation29 + $0xce0] sm:$0xff]  ;;  %7049 = vmatpush.msrb.mxu3 %v6605_v41 }
 0x906   : > { %v6358_v62 = vadd.f32 %v8654_v42, %v6357_v59  ;;  %v6945_v42 = vld [vmem:[#allocation29 + $0xd80] sm:$0xff] }
 0x907   : > { %7144 = vmatpush.msrb.mxu1 %v6945_v42  ;;  %v6537_v58 = vld [vmem:[#allocation29 + $0xc0] sm:$0xff] }
 0x908   : > { %v6387_v3 = vadd.f32 %v6386_v61, %v6358_v62  ;;  %v6601_v59 = vld [vmem:[#allocation29 + $0x2c0] sm:$0xff]  ;;  %7030 = vmatpush.msra.mxu2 %v6537_v58  ;;  %v6654_v58 = vld [vmem:[#allocation29 + $0x468] sm:$0xff] }
 0x909   : > { %7145 = vmatpush.msrb.mxu1 %v6941_v44  ;;  %v6921_v61 = vld [vmem:[#allocation29 + $0xcc0] sm:$0xff]  ;;  %7050 = vmatpush.msrb.mxu3 %v6601_v59  ;;  %v6674_v44 = vld [vmem:[#allocation29 + $0x508] sm:$0xff] }
 0x90a   : > { %vm6392_vm7 = vcmp.ge.f32.partialorder %v6387_v3, 0.0  ;;  %v6396_v5 = vmul.f32 0.01, %v6387_v3  ;;  %v6533_v62 = vld [vmem:[#allocation29 + $0xa0] sm:$0xff] }
 0x90b   : > { %7146 = vmatpush.msrb.mxu1 %v6937_v13  ;;  %v6597_v63 = vld [vmem:[#allocation29 + $0x2a0] sm:$0xff]  ;;  %7031 = vmatpush.msra.mxu2 %v6533_v62  ;;  %v6670_v13 = vld [vmem:[#allocation29 + $0x4e8] sm:$0xff] }
 0x90c   : > { %v6415_v6 = vld [vmem:[#allocation16 + $0x2] ss:$2 sm:$0xff]  ;;  %v6400_v7 = vsel %vm6392_vm7, %v6387_v3, %v6396_v5  ;;  %7051 = vmatpush.msrb.mxu3 %v6597_v63 }
 0x90d   : > { %v6420_v8 = vmax.f32 %v6418_v1, %v6415_v6  ;;  %6406 = vst.msk [vmem:[#allocation16 + $0x18] sm:$0x7f] %vm6405_vm0, %v6400_v7  ;;  %7147 = vmatpush.msrb.mxu1 %v6933_v52  ;;  %v6917_v2 = vld [vmem:[#allocation29 + $0xca0] sm:$0xff]  ;;  %v6650_v62 = vld [vmem:[#allocation29 + $0x448] sm:$0xff] }
 0x90e   : > { %v6529_v3 = vld [vmem:[#allocation29 + $0x80] sm:$0xff]  ;;  %7052 = vmatpush.msrb.mxu3 %v6593_v4 }
 0x90f   : > { %6428 = vst [vmem:[#allocation1] sm:$0xff] %v6420_v8  ;;  %7148 = vmatpush.msrb.mxu1 %v6929_v55  ;;  %v6913_v5 = vld [vmem:[#allocation29 + $0xc80] sm:$0xff]  ;;  %7032 = vmatpush.msra.mxu2 %v6529_v3  ;;  %v6646_v3 = vld [vmem:[#allocation29 + $0x428] sm:$0xff] }
 0x910   : > { %6426 = vst.msk [vmem:[#allocation17] sm:$0x1] %vm11461_vm14, %v6420_v8  ;;  %v6525_v1 = vld [vmem:[#allocation29 + $0x60] sm:$0xff] }
 0x911   : > { %7149 = vmatpush.msrb.mxu1 %v6925_v57  ;;  %v6589_v6 = vld [vmem:[#allocation29 + $0x260] sm:$0xff]  ;;  %7033 = vmatpush.msra.mxu2 %v6525_v1  ;;  %v6642_v1 = vld [vmem:[#allocation29 + $0x408] sm:$0xff] }
 0x912   : > { %v6909_v7 = vld [vmem:[#allocation29 + $0xc60] sm:$0xff]  ;;  %7053 = vmatpush.msrb.mxu3 %v6589_v6 }
 0x913   : > { %7150 = vmatpush.msrb.mxu1 %v6921_v61  ;;  %7034 = vmatpush.msra.mxu2 %v6521_v29  ;;  %v6725_v52 = vld [vmem:[#allocation29 + $0x6a0] sm:$0xff] }
 0x914   : > { %v6409_v9 = vld [vmem:[#allocation16 + $0x10] ss:$2 sm:$0x7f]  ;;  %v6413_v10 = vld [vmem:[#allocation16 + $0x11] ss:$2 sm:$0x7f] }
 0x915   : > { %v6419_v11 = vmax.f32 %v6409_v9, %v6413_v10  ;;  %v6417_v12 = vld [vmem:[#allocation16 + $0x12] ss:$2 sm:$0x7f]  ;;  %7151 = vmatpush.msrb.mxu1 %v6917_v2  ;;  %v7689_v6 = vld [vmem:[#allocation32 + $0xc0] sm:$0xff] }
 0x916   : > { %v6430_v14 = vld [vmem:[#allocation1 + $0x1] ss:$9 sm:$0xff] }
 0x917   : > { %v6421_v15 = vmax.f32 %v6419_v11, %v6417_v12  ;;  %6431 = vrot.lane.b32.xlu1 %v6430_v14, %s9115_s28  ;;  %6438 = vst [vmem:[#allocation1] sm:$0xff] %v6420_v8  ;;  %7152 = vmatpush.msrb.mxu1 %v6913_v5  ;;  %v6585_v9 = vld [vmem:[#allocation29 + $0x240] sm:$0xff] }
 0x918   : > { %v6905_v10 = vld [vmem:[#allocation29 + $0xc40] sm:$0xff]  ;;  %7054 = vmatpush.msrb.mxu3 %v6585_v9 }
 0x919   : > { %6474 = vst.msk [vmem:[#allocation17 + $0x4] sm:$0x1] %vm11461_vm14, %v6421_v15  ;;  %7153 = vmatpush.msrb.mxu1 %v6909_v7  ;;  %v6517_v11 = vld [vmem:[#allocation29 + $0x20] sm:$0xff] }
 0x91a   : > { %v6581_v12 = vld [vmem:[#allocation29 + $0x220] sm:$0xff]  ;;  %7035 = vmatpush.msra.mxu2 %v6517_v11 }
 0x91b   : > { %7154 = vmatpush.msrb.mxu1 %v6905_v10  ;;  %7055 = vmatpush.msrb.mxu3 %v6581_v12  ;;  %v6657_v54 = vld [vmem:[#allocation29 + $0x480] sm:$0xff] }
 0x91c   : > { %v6721_v55 = vld [vmem:[#allocation29 + $0x680] sm:$0xff] }
 0x91d   : > { %v6653_v41 = vld [vmem:[#allocation29 + $0x460] sm:$0xff] }
 0x91e   : > { %v6440_v16 = vld [vmem:[#allocation1 + $0x2] ss:$9 sm:$0xff] }
 0x91f   : > { %6443 = vst [vmem:[#allocation1] sm:$0xff] %v6420_v8  ;;  %v6717_v57 = vld [vmem:[#allocation29 + $0x660] sm:$0xff] }
 0x920   : > { %6442 = vst.msk [vmem:[#allocation17 + $0x1] sm:$0x1] %vm11461_vm14, %v6440_v16  ;;  %v6901_v16 = vld [vmem:[#allocation29 + $0xc20] sm:$0xff] }
 0x921   : > { %7155 = vmatpush.msrb.mxu1 %v6901_v16  ;;  %v6649_v59 = vld [vmem:[#allocation29 + $0x440] sm:$0xff] }
 0x922   : > { %v6713_v61 = vld [vmem:[#allocation29 + $0x640] sm:$0xff] }
 0x923   : > { %v6645_v63 = vld [vmem:[#allocation29 + $0x420] sm:$0xff] }
 0x924   : > { %v6709_v2 = vld [vmem:[#allocation29 + $0x620] sm:$0xff] }
 0x925   : > { %v6641_v4 = vld [vmem:[#allocation29 + $0x400] sm:$0xff] }
 0x926   : > { %v6445_v17 = vld [vmem:[#allocation1 + $0x3] ss:$9 sm:$0xff] }
 0x927   : > { %6446 = vrot.lane.b32.xlu2 %v6445_v17, %s9115_s28  ;;  %6450 = vst [vmem:[#allocation1] sm:$0xff] %v6420_v8  ;;  %v6513_v17 = vld [vmem:[#allocation29] sm:$0xff] }
 0x928   : > { %7036 = vmatpush.msra.mxu2 %v6513_v17  ;;  %v6705_v5 = vld [vmem:[#allocation29 + $0x600] sm:$0xff]  ;;  %v6890_v17 = vld [vmem:[#allocation29 + $0xbc8] sm:$0xff] }
 0x929   : > { %v6829_v11 = vld [vmem:[#allocation29 + $0x9e0] sm:$0xff] }
 0x92a   : > { %v6893_v12 = vld [vmem:[#allocation29 + $0xbe0] sm:$0xff] }
 0x92b   : > { %v6889_v16 = vld [vmem:[#allocation29 + $0xbc0] sm:$0xff] }
 0x92e   : > { %v6452_v18 = vld [vmem:[#allocation1 + $0x4] ss:$9 sm:$0xff] }
 0x92f   : > { %6455 = vst [vmem:[#allocation1] sm:$0xff] %v6420_v8 }
 0x930   : > { %6454 = vst.msk [vmem:[#allocation17 + $0x2] sm:$0x1] %vm11461_vm14, %v6452_v18  ;;  %v6577_v18 = vld [vmem:[#allocation29 + $0x200] sm:$0xff] }
 0x931   : > { %7056 = vmatpush.msrb.mxu3 %v6577_v18  ;;  %v6821_v18 = vld [vmem:[#allocation29 + $0x9a0] sm:$0xff] }
 0x936   : > { %v6457_v39 = vld [vmem:[#allocation1 + $0x5] ss:$9 sm:$0xff] }
 0x937   : > { %6458 = vrot.lane.b32.xlu0 %v6457_v39, %s9115_s28  ;;  %6462 = vst [vmem:[#allocation1] sm:$0xff] %v6420_v8  ;;  %v6897_v39 = vld [vmem:[#allocation29 + $0xc00] sm:$0xff] }
 0x938   : > { %7156 = vmatpush.msrb.mxu1 %v6897_v39  ;;  %v6885_v39 = vld [vmem:[#allocation29 + $0xba0] sm:$0xff] }
 0x93e   : > { %v6464_v19 = vld [vmem:[#allocation1 + $0x6] ss:$9 sm:$0xff] }
 0x93f   : > { %6467 = vst [vmem:[#allocation1] sm:$0xff] %v6420_v8  ;;  %v7691_v8 = vld [vmem:[#allocation32 + $0xd0] sm:$0xff] }
 0x940   : > { %6466 = vst.msk [vmem:[#allocation17 + $0x3] sm:$0x1] %vm11461_vm14, %v6464_v19  ;;  %7797 = vmatpush.msrb.mxu0 %v7691_v8  ;;  %v6701_v19 = vld [vmem:[#allocation29 + $0x5e0] sm:$0xff] }
 0x941   : > { %7061 = vmatpush.msrb.mxu2 %v6701_v19  ;;  %v6886_v19 = vld [vmem:[#allocation29 + $0xba8] sm:$0xff] }
 0x942   : > { %7798 = vmatpush.msrb.mxu0 %v7689_v6  ;;  %v6570_v6 = vld [vmem:[#allocation29 + $0x1c8] sm:$0xff] }
 0x946   : > { %v6469_v20 = vld [vmem:[#allocation1 + $0x7] ss:$9 sm:$0xff] }
 0x947   : > { %6470 = vrot.lane.b32.xlu1 %v6469_v20, %s9115_s28  ;;  %6476 = vst [vmem:[#allocation1] sm:$0xff] %v6421_v15  ;;  %v6765_v20 = vld [vmem:[#allocation29 + $0x7e0] sm:$0xff] }
 0x948   : > { %7081 = vmatpush.msra.mxu3 %v6765_v20  ;;  %v6817_v20 = vld [vmem:[#allocation29 + $0x980] sm:$0xff] }
 0x94e   : > { %v6478_v21 = vld [vmem:[#allocation1 + $0x1] ss:$9 sm:$0xff] }
 0x94f   : > { %6479 = vrot.lane.b32.xlu2 %v6478_v21, %s9115_s28  ;;  %6483 = vst [vmem:[#allocation1] sm:$0xff] %v6421_v15  ;;  %v6702_v21 = vld [vmem:[#allocation29 + $0x5e8] sm:$0xff] }
 0x950   : > { %7221 = vmatpush.msra.mxu1 %v6702_v21  ;;  %v6881_v21 = vld [vmem:[#allocation29 + $0xb80] sm:$0xff] }
 0x956   : > { %v6485_v22 = vld [vmem:[#allocation1 + $0x2] ss:$9 sm:$0xff] }
 0x957   : > { %6488 = vst [vmem:[#allocation1] sm:$0xff] %v6421_v15 }
 0x958   : > { %6487 = vst.msk [vmem:[#allocation17 + $0x5] sm:$0x1] %vm11461_vm14, %v6485_v22  ;;  %v6697_v22 = vld [vmem:[#allocation29 + $0x5c0] sm:$0xff] }
 0x959   : > { %7062 = vmatpush.msrb.mxu2 %v6697_v22  ;;  %v6882_v22 = vld [vmem:[#allocation29 + $0xb88] sm:$0xff] }
 0x95b   : > { %7063 = vmatpush.msrb.mxu2 %v6693_v25  ;;  %v6813_v25 = vld [vmem:[#allocation29 + $0x960] sm:$0xff] }
 0x95e   : > { %v6490_v23 = vld [vmem:[#allocation1 + $0x3] ss:$9 sm:$0xff] }
 0x95f   : > { %6491 = vrot.lane.b32.xlu0 %v6490_v23, %s9115_s28  ;;  %6495 = vst [vmem:[#allocation1] sm:$0xff] %v6421_v15  ;;  %v6761_v23 = vld [vmem:[#allocation29 + $0x7c0] sm:$0xff] }
 0x960   : > { %7082 = vmatpush.msra.mxu3 %v6761_v23 }
 0x962   : > { %7083 = vmatpush.msra.mxu3 %v6757_v26  ;;  %v6877_v26 = vld [vmem:[#allocation29 + $0xb60] sm:$0xff] }
 0x966   : > { %v6497_v24 = vld [vmem:[#allocation1 + $0x4] ss:$9 sm:$0xff] }
 0x967   : > { %6500 = vst [vmem:[#allocation1] sm:$0xff] %v6421_v15 }
 0x968   : > { %6499 = vst.msk [vmem:[#allocation17 + $0x6] sm:$0x1] %vm11461_vm14, %v6497_v24  ;;  %v6698_v24 = vld [vmem:[#allocation29 + $0x5c8] sm:$0xff] }
 0x969   : > { %7222 = vmatpush.msra.mxu1 %v6698_v24 }
 0x96e   : > { %v6502_v27 = vld [vmem:[#allocation1 + $0x5] ss:$9 sm:$0xff] }
 0x96f   : > { %6503 = vrot.lane.b32.xlu1 %v6502_v27, %s9115_s28  ;;  %6507 = vst [vmem:[#allocation1] sm:$0xff] %v6421_v15  ;;  %v6694_v27 = vld [vmem:[#allocation29 + $0x5a8] sm:$0xff]  ;;  %s889_s28 = scalar_lea.vmem %s11671_s22, %s11704_s23 }
 0x970   : > { %7223 = vmatpush.msra.mxu1 %v6694_v27  ;;  %v7687_v27 = vld [vmem:[#allocation32 + $0xb0] sm:$0xff] }
 0x971   : > { %7799 = vmatpush.msrb.mxu0 %v7687_v27  ;;  %v6551_v27 = vld [vmem:[#allocation29 + $0x130] sm:$0xff] }
 0x976   : > { %v6509_v28 = vld [vmem:[#allocation1 + $0x6] ss:$9 sm:$0xff] }
 0x977   : > { %6511 = vst.msk [vmem:[#allocation17 + $0x7] sm:$0x1] %vm11461_vm14, %v6509_v28  ;;  %v6689_v28 = vld [vmem:[#allocation29 + $0x580] sm:$0xff] }
 0x978   : > { %7064 = vmatpush.msrb.mxu2 %v6689_v28  ;;  %v6878_v28 = vld [vmem:[#allocation29 + $0xb68] sm:$0xff] }
 0x97a   : > { %7065 = vmatpush.msrb.mxu2 %v6685_v60  ;;  %v6874_v60 = vld [vmem:[#allocation29 + $0xb48] sm:$0xff] }
 0x97c   : > { %7066 = vmatpush.msrb.mxu2 %v6681_v34  ;;  %v6870_v34 = vld [vmem:[#allocation29 + $0xb28] sm:$0xff] }
 0x97e   : > { %7067 = vmatpush.msrb.mxu2 %v6677_v37  ;;  %v6866_v37 = vld [vmem:[#allocation29 + $0xb08] sm:$0xff] }
 0x980   : > { %7068 = vmatpush.msrb.mxu2 %v6673_v43  ;;  %v6793_v43 = vld [vmem:[#allocation29 + $0x8c0] sm:$0xff] }
 0x981   : > { %v6447_v31 = vpop.permute.xlu2 %6446 }
 0x982   : > { %6449 = vst.msk [vmem:[#allocation17 + $0x1] sm:$0x1] %vm11488_vm10, %v6447_v31  ;;  %v6753_v31 = vld [vmem:[#allocation29 + $0x780] sm:$0xff]  ;;  %7069 = vmatpush.msrb.mxu2 %v6669_v45 }
 0x983   : > { %7084 = vmatpush.msra.mxu3 %v6753_v31  ;;  %v6809_v31 = vld [vmem:[#allocation29 + $0x940] sm:$0xff] }
 0x984   : > { %7070 = vmatpush.msrb.mxu2 %v6665_v47  ;;  %v6789_v45 = vld [vmem:[#allocation29 + $0x8a0] sm:$0xff] }
 0x985   : > { %7085 = vmatpush.msra.mxu3 %v6749_v32  ;;  %v6805_v32 = vld [vmem:[#allocation29 + $0x920] sm:$0xff] }
 0x986   : > { %7071 = vmatpush.msrb.mxu2 %v6661_v51  ;;  %v6785_v47 = vld [vmem:[#allocation29 + $0x880] sm:$0xff] }
 0x987   : > { %7086 = vmatpush.msra.mxu3 %v6745_v35  ;;  %v6801_v35 = vld [vmem:[#allocation29 + $0x900] sm:$0xff] }
 0x988   : > { %7072 = vmatpush.msrb.mxu2 %v6657_v54  ;;  %v6781_v51 = vld [vmem:[#allocation29 + $0x860] sm:$0xff] }
 0x989   : > { %v6432_v48 = vpop.permute.xlu1 %6431  ;;  %7087 = vmatpush.msra.mxu3 %v6741_v38  ;;  %v6797_v38 = vld [vmem:[#allocation29 + $0x8e0] sm:$0xff] }
 0x98a   : > { %6437 = vst.msk [vmem:[#allocation17] sm:$0x1] %vm11488_vm10, %v6432_v48  ;;  %v6690_v48 = vld [vmem:[#allocation29 + $0x588] sm:$0xff]  ;;  %7073 = vmatpush.msrb.mxu2 %v6653_v41  ;;  %v6777_v54 = vld [vmem:[#allocation29 + $0x840] sm:$0xff] }
 0x98b   : > { %7224 = vmatpush.msra.mxu1 %v6690_v48  ;;  %7088 = vmatpush.msra.mxu3 %v6737_v0  ;;  %v6873_v48 = vld [vmem:[#allocation29 + $0xb40] sm:$0xff] }
 0x98c   : > { %7074 = vmatpush.msrb.mxu2 %v6649_v59  ;;  %v6857_v0 = vld [vmem:[#allocation29 + $0xac0] sm:$0xff] }
 0x98d   : > { %7225 = vmatpush.msra.mxu1 %v6686_v33  ;;  %7089 = vmatpush.msra.mxu3 %v6733_v46  ;;  %v6869_v33 = vld [vmem:[#allocation29 + $0xb20] sm:$0xff] }
 0x98e   : > { %7075 = vmatpush.msrb.mxu2 %v6645_v63  ;;  %v6853_v46 = vld [vmem:[#allocation29 + $0xaa0] sm:$0xff] }
 0x98f   : > { %7226 = vmatpush.msra.mxu1 %v6682_v36  ;;  %7090 = vmatpush.msra.mxu3 %v6729_v49  ;;  %v6865_v36 = vld [vmem:[#allocation29 + $0xb00] sm:$0xff] }
 0x990   : > { %7076 = vmatpush.msrb.mxu2 %v6641_v4  ;;  %v6849_v49 = vld [vmem:[#allocation29 + $0xa80] sm:$0xff]  ;;  %v6574_v4 = vld [vmem:[#allocation29 + $0x1e8] sm:$0xff] }
 0x991   : > { %7227 = vmatpush.msra.mxu1 %v6678_v40  ;;  %7091 = vmatpush.msra.mxu3 %v6725_v52  ;;  %v6861_v40 = vld [vmem:[#allocation29 + $0xae0] sm:$0xff] }
 0x992   : > { %v6845_v52 = vld [vmem:[#allocation29 + $0xa60] sm:$0xff] }
 0x993   : > { %7228 = vmatpush.msra.mxu1 %v6674_v44  ;;  %7092 = vmatpush.msra.mxu3 %v6721_v55  ;;  %v6858_v44 = vld [vmem:[#allocation29 + $0xac8] sm:$0xff]  ;;  %v6841_v55 = vld [vmem:[#allocation29 + $0xa40] sm:$0xff] }
 0x994   : > { %v6773_v41 = vld [vmem:[#allocation29 + $0x820] sm:$0xff] }
 0x995   : > { %7229 = vmatpush.msra.mxu1 %v6670_v13  ;;  %7093 = vmatpush.msra.mxu3 %v6717_v57  ;;  %v6854_v13 = vld [vmem:[#allocation29 + $0xaa8] sm:$0xff]  ;;  %v6837_v57 = vld [vmem:[#allocation29 + $0xa20] sm:$0xff] }
 0x996   : > { %v6769_v59 = vld [vmem:[#allocation29 + $0x800] sm:$0xff] }
 0x997   : > { %7230 = vmatpush.msra.mxu1 %v6666_v50  ;;  %7094 = vmatpush.msra.mxu3 %v6713_v61  ;;  %v6850_v50 = vld [vmem:[#allocation29 + $0xa88] sm:$0xff]  ;;  %v6833_v61 = vld [vmem:[#allocation29 + $0xa00] sm:$0xff] }
 0x999   : > { %7231 = vmatpush.msra.mxu1 %v6662_v53  ;;  %7095 = vmatpush.msra.mxu3 %v6709_v2  ;;  %v6846_v53 = vld [vmem:[#allocation29 + $0xa68] sm:$0xff] }
 0x99b   : > { %7232 = vmatpush.msra.mxu1 %v6658_v56  ;;  %7096 = vmatpush.msra.mxu3 %v6705_v5  ;;  %v6842_v56 = vld [vmem:[#allocation29 + $0xa48] sm:$0xff]  ;;  %v6575_v5 = vld [vmem:[#allocation29 + $0x1f0] sm:$0xff] }
 0x99d   : > { %7233 = vmatpush.msra.mxu1 %v6654_v58  ;;  %v6838_v58 = vld [vmem:[#allocation29 + $0xa28] sm:$0xff] }
 0x99f   : > { %7234 = vmatpush.msra.mxu1 %v6650_v62  ;;  %v6834_v62 = vld [vmem:[#allocation29 + $0xa08] sm:$0xff] }
 0x9a1   : > { %7235 = vmatpush.msra.mxu1 %v6646_v3  ;;  %v6989_v3 = vld [vmem:[#allocation29 + $0xee0] sm:$0xff] }
 0x9a3   : > { %7236 = vmatpush.msra.mxu1 %v6642_v1  ;;  %v6985_v1 = vld [vmem:[#allocation29 + $0xec0] sm:$0xff] }
 0x9a9   : > { %v6459_v14 = vpop.permute.xlu0 %6458  ;;  %v6480_v15 = vpop.permute.xlu2 %6479 }
 0x9aa   : > { %6461 = vst.msk [vmem:[#allocation17 + $0x2] sm:$0x1] %vm11488_vm10, %v6459_v14 }
 0x9ab   : > { %6482 = vst.msk [vmem:[#allocation17 + $0x4] sm:$0x1] %vm11488_vm10, %v6480_v15  ;;  %v6894_v15 = vld [vmem:[#allocation29 + $0xbe8] sm:$0xff] }
 0x9b9   : > { %v6471_v42 = vpop.permute.xlu1 %6470 }
 0x9ba   : > { %6473 = vst.msk [vmem:[#allocation17 + $0x3] sm:$0x1] %vm11488_vm10, %v6471_v42  ;;  %v6862_v42 = vld [vmem:[#allocation29 + $0xae8] sm:$0xff] }
 0x9d1   : > { %v6492_v7 = vpop.permute.xlu0 %6491 }
 0x9d2   : > { %6494 = vst.msk [vmem:[#allocation17 + $0x5] sm:$0x1] %vm11488_vm10, %v6492_v7  ;;  %v6571_v7 = vld [vmem:[#allocation29 + $0x1d0] sm:$0xff] }
 0x9e1   : > { %v6504_v8 = vpop.permute.xlu1 %6503 }
 0x9e2   : > { %6506 = vst.msk [vmem:[#allocation17 + $0x6] sm:$0x1] %vm11488_vm10, %v6504_v8  ;;  %v6981_v8 = vld [vmem:[#allocation29 + $0xea0] sm:$0xff] }
 0x9e9   : > { %v11506_v29 = vld [vmem:[#allocation17] sm:$0xff] }
 0x9ea   : > { %v11509_v9 = vperm.slane %v11506_v29, 0  ;;  %v11512_v10 = vperm.slane %v11506_v29, 1  ;;  %v11515_v14 = vperm.slane %v11506_v29, 6  ;;  %v11521_v23 = vperm.slane %v11506_v29, 2 }
 0x9eb   : > { %v11524_v24 = vperm.slane %v11506_v29, 3  ;;  %v11530_v63 = vperm.slane %v11506_v29, 4  ;;  %v11533_v2 = vperm.slane %v11506_v29, 5 }
 0x9ec   : > { %7037 = vmatmul.f32.vlgmr.msra.gmra.mxu2 %v11509_v9  ;;  %7057 = vmatmul.f32.vlgmr.msrb.gmra.mxu3 %v11512_v10 }
 0x9ed   : > { %7101 = vmatpush.msra.mxu2 %v6829_v11  ;;  %7121 = vmatpush.msrb.mxu3 %v6893_v12  ;;  %v6566_v11 = vld [vmem:[#allocation29 + $0x1a8] sm:$0xff]  ;;  %v6567_v12 = vld [vmem:[#allocation29 + $0x1b0] sm:$0xff] }
 0x9ee   : > { %7157 = vmatmul.f32.vlgmr.msrb.gmra.mxu1 %v11515_v14 }
 0x9ef   : > { %7281 = vmatpush.msrb.mxu1 %v6894_v15  ;;  %7102 = vmatpush.msra.mxu2 %v6825_v30  ;;  %v6977_v15 = vld [vmem:[#allocation29 + $0xe80] sm:$0xff]  ;;  %v6562_v30 = vld [vmem:[#allocation29 + $0x188] sm:$0xff] }
 0x9f0   : > { %7122 = vmatpush.msrb.mxu3 %v6889_v16  ;;  %v6563_v16 = vld [vmem:[#allocation29 + $0x190] sm:$0xff] }
 0x9f1   : > { %7282 = vmatpush.msrb.mxu1 %v6890_v17  ;;  %7103 = vmatpush.msra.mxu2 %v6821_v18  ;;  %v6973_v17 = vld [vmem:[#allocation29 + $0xe60] sm:$0xff] }
 0x9f2   : > { %7123 = vmatpush.msrb.mxu3 %v6885_v39  ;;  %v7685_v18 = vld [vmem:[#allocation32 + $0xa0] sm:$0xff] }
 0x9f3   : > { %7283 = vmatpush.msrb.mxu1 %v6886_v19  ;;  %7104 = vmatpush.msra.mxu2 %v6817_v20  ;;  %v6558_v39 = vld [vmem:[#allocation29 + $0x168] sm:$0xff]  ;;  %v6559_v19 = vld [vmem:[#allocation29 + $0x170] sm:$0xff]  ;;  %v6969_v20 = vld [vmem:[#allocation29 + $0xe40] sm:$0xff] }
 0x9f4   : > { %7124 = vmatpush.msrb.mxu3 %v6881_v21  ;;  %7077 = vmatmul.f32.vlgmr.msrb.gmra.mxu2 %v11521_v23  ;;  %v6554_v21 = vld [vmem:[#allocation29 + $0x148] sm:$0xff] }
 0x9f5   : > { %7284 = vmatpush.msrb.mxu1 %v6882_v22  ;;  %7097 = vmatmul.f32.vlgmr.msra.gmra.mxu3 %v11524_v24  ;;  %v6555_v22 = vld [vmem:[#allocation29 + $0x150] sm:$0xff] }
 0x9f6   : > { %7105 = vmatpush.msra.mxu2 %v6813_v25  ;;  %7125 = vmatpush.msrb.mxu3 %v6877_v26  ;;  %v6965_v25 = vld [vmem:[#allocation29 + $0xe20] sm:$0xff]  ;;  %v6550_v26 = vld [vmem:[#allocation29 + $0x128] sm:$0xff] }
 0x9f7   : > { %7237 = vmatmul.f32.vlgmr.msra.gmra.mxu1 %v11521_v23  ;;  %7800 = vmatpush.msrb.mxu0 %v7685_v18  ;;  %v6742_v18 = vld [vmem:[#allocation29 + $0x728] sm:$0xff] }
 0x9f8   : > { %7285 = vmatpush.msrb.mxu1 %v6878_v28  ;;  %7106 = vmatpush.msra.mxu2 %v6809_v31  ;;  %v6961_v28 = vld [vmem:[#allocation29 + $0xe00] sm:$0xff]  ;;  %v6546_v31 = vld [vmem:[#allocation29 + $0x108] sm:$0xff] }
 0x9f9   : > { %7126 = vmatpush.msrb.mxu3 %v6873_v48  ;;  %v6547_v48 = vld [vmem:[#allocation29 + $0x110] sm:$0xff] }
 0x9fa   : > { %7286 = vmatpush.msrb.mxu1 %v6874_v60  ;;  %7107 = vmatpush.msra.mxu2 %v6805_v32  ;;  %v11539_v60 = vperm.slane %v11506_v29, 7  ;;  %v6638_v32 = vld [vmem:[#allocation29 + $0x3e8] sm:$0xff] }
 0x9fb   : > { %7127 = vmatpush.msrb.mxu3 %v6869_v33  ;;  %v6542_v33 = vld [vmem:[#allocation29 + $0xe8] sm:$0xff] }
 0x9fc   : > { %7287 = vmatpush.msrb.mxu1 %v6870_v34  ;;  %7108 = vmatpush.msra.mxu2 %v6801_v35  ;;  %v6543_v34 = vld [vmem:[#allocation29 + $0xf0] sm:$0xff]  ;;  %v6634_v35 = vld [vmem:[#allocation29 + $0x3c8] sm:$0xff] }
 0x9fd   : > { %7128 = vmatpush.msrb.mxu3 %v6865_v36  ;;  %v6538_v36 = vld [vmem:[#allocation29 + $0xc8] sm:$0xff] }
 0x9fe   : > { %7288 = vmatpush.msrb.mxu1 %v6866_v37  ;;  %7109 = vmatpush.msra.mxu2 %v6797_v38  ;;  %v6539_v37 = vld [vmem:[#allocation29 + $0xd0] sm:$0xff]  ;;  %v6630_v38 = vld [vmem:[#allocation29 + $0x3a8] sm:$0xff] }
 0x9ff   : > { %7129 = vmatpush.msrb.mxu3 %v6861_v40  ;;  %v6534_v29 = vld [vmem:[#allocation29 + $0xa8] sm:$0xff]  ;;  %v6535_v40 = vld [vmem:[#allocation29 + $0xb0] sm:$0xff] }
 0xa00   : > { %7289 = vmatpush.msrb.mxu1 %v6862_v42  ;;  %7110 = vmatpush.msra.mxu2 %v6793_v43  ;;  %v6626_v42 = vld [vmem:[#allocation29 + $0x388] sm:$0xff] }
 0xa01   : > { %7130 = vmatpush.msrb.mxu3 %v6857_v0  ;;  %v6530_v43 = vld [vmem:[#allocation29 + $0x88] sm:$0xff]  ;;  %v6531_v0 = vld [vmem:[#allocation29 + $0x90] sm:$0xff] }
 0xa02   : > { %7290 = vmatpush.msrb.mxu1 %v6858_v44  ;;  %7111 = vmatpush.msra.mxu2 %v6789_v45  ;;  %v6622_v44 = vld [vmem:[#allocation29 + $0x368] sm:$0xff] }
 0xa03   : > { %7131 = vmatpush.msrb.mxu3 %v6853_v46  ;;  %v6526_v45 = vld [vmem:[#allocation29 + $0x68] sm:$0xff]  ;;  %v6527_v46 = vld [vmem:[#allocation29 + $0x70] sm:$0xff] }
 0xa04   : > { %7291 = vmatpush.msrb.mxu1 %v6854_v13  ;;  %7112 = vmatpush.msra.mxu2 %v6785_v47  ;;  %v6618_v13 = vld [vmem:[#allocation29 + $0x348] sm:$0xff] }
 0xa05   : > { %7132 = vmatpush.msrb.mxu3 %v6849_v49  ;;  %v6522_v47 = vld [vmem:[#allocation29 + $0x48] sm:$0xff]  ;;  %v6523_v49 = vld [vmem:[#allocation29 + $0x50] sm:$0xff] }
 0xa06   : > { %7292 = vmatpush.msrb.mxu1 %v6850_v50  ;;  %7113 = vmatpush.msra.mxu2 %v6781_v51  ;;  %v6614_v50 = vld [vmem:[#allocation29 + $0x328] sm:$0xff] }
 0xa07   : > { %7133 = vmatpush.msrb.mxu3 %v6845_v52  ;;  %v6518_v51 = vld [vmem:[#allocation29 + $0x28] sm:$0xff]  ;;  %v6519_v52 = vld [vmem:[#allocation29 + $0x30] sm:$0xff] }
 0xa08   : > { %7293 = vmatpush.msrb.mxu1 %v6846_v53  ;;  %7114 = vmatpush.msra.mxu2 %v6777_v54  ;;  %v6610_v53 = vld [vmem:[#allocation29 + $0x308] sm:$0xff] }
 0xa09   : > { %7134 = vmatpush.msrb.mxu3 %v6841_v55  ;;  %v6514_v54 = vld [vmem:[#allocation29 + $0x8] sm:$0xff]  ;;  %v6515_v55 = vld [vmem:[#allocation29 + $0x10] sm:$0xff] }
 0xa0a   : > { %7294 = vmatpush.msrb.mxu1 %v6842_v56  ;;  %7115 = vmatpush.msra.mxu2 %v6773_v41  ;;  %v6606_v56 = vld [vmem:[#allocation29 + $0x2e8] sm:$0xff] }
 0xa0b   : > { %7135 = vmatpush.msrb.mxu3 %v6837_v57  ;;  %v6766_v41 = vld [vmem:[#allocation29 + $0x7e8] sm:$0xff]  ;;  %v6767_v57 = vld [vmem:[#allocation29 + $0x7f0] sm:$0xff] }
 0xa0c   : > { %7295 = vmatpush.msrb.mxu1 %v6838_v58  ;;  %7116 = vmatpush.msra.mxu2 %v6769_v59  ;;  %v6602_v58 = vld [vmem:[#allocation29 + $0x2c8] sm:$0xff] }
 0xa0d   : > { %7136 = vmatpush.msrb.mxu3 %v6833_v61  ;;  %7117 = vmatmul.f32.vlgmr.msra.gmra.mxu2 %v11530_v63  ;;  %v6762_v59 = vld [vmem:[#allocation29 + $0x7c8] sm:$0xff]  ;;  %v6763_v61 = vld [vmem:[#allocation29 + $0x7d0] sm:$0xff] }
 0xa0e   : > { %7296 = vmatpush.msrb.mxu1 %v6834_v62  ;;  %7137 = vmatmul.f32.vlgmr.msrb.gmra.mxu3 %v11533_v2  ;;  %v6598_v62 = vld [vmem:[#allocation29 + $0x2a8] sm:$0xff] }
 0xa0f   : > { %7169 = vmatpush.msrb.mxu2 %v6989_v3  ;;  %7181 = vmatpush.msra.mxu3 %v6574_v4  ;;  %v6758_v3 = vld [vmem:[#allocation29 + $0x7a8] sm:$0xff]  ;;  %v6759_v4 = vld [vmem:[#allocation29 + $0x7b0] sm:$0xff] }
 0xa10   : > { %7297 = vmatmul.f32.vlgmr.msrb.gmra.mxu1 %v11533_v2 }
 0xa11   : > { %7341 = vmatpush.msra.mxu1 %v6575_v5  ;;  %7170 = vmatpush.msrb.mxu2 %v6985_v1  ;;  %v6594_v5 = vld [vmem:[#allocation29 + $0x288] sm:$0xff] }
 0xa12   : > { %7182 = vmatpush.msra.mxu3 %v6570_v6  ;;  %v6754_v1 = vld [vmem:[#allocation29 + $0x788] sm:$0xff]  ;;  %v6755_v6 = vld [vmem:[#allocation29 + $0x790] sm:$0xff] }
 0xa13   : > { %7342 = vmatpush.msra.mxu1 %v6571_v7  ;;  %7171 = vmatpush.msrb.mxu2 %v6981_v8  ;;  %v6590_v7 = vld [vmem:[#allocation29 + $0x268] sm:$0xff] }
 0xa14   : > { %7183 = vmatpush.msra.mxu3 %v6566_v11  ;;  %v6750_v8 = vld [vmem:[#allocation29 + $0x768] sm:$0xff]  ;;  %v6751_v11 = vld [vmem:[#allocation29 + $0x770] sm:$0xff] }
 0xa15   : > { %7343 = vmatpush.msra.mxu1 %v6567_v12  ;;  %7172 = vmatpush.msrb.mxu2 %v6977_v15  ;;  %v6586_v12 = vld [vmem:[#allocation29 + $0x248] sm:$0xff]  ;;  %v7683_v15 = vld [vmem:[#allocation32 + $0x90] sm:$0xff] }
 0xa16   : > { %7184 = vmatpush.msra.mxu3 %v6562_v30  ;;  %v6746_v30 = vld [vmem:[#allocation29 + $0x748] sm:$0xff]  ;;  %7801 = vmatpush.msrb.mxu0 %v7683_v15 }
 0xa17   : > { %7344 = vmatpush.msra.mxu1 %v6563_v16  ;;  %7173 = vmatpush.msrb.mxu2 %v6973_v17  ;;  %v6747_v16 = vld [vmem:[#allocation29 + $0x750] sm:$0xff]  ;;  %v6582_v17 = vld [vmem:[#allocation29 + $0x228] sm:$0xff] }
 0xa18   : > { %7185 = vmatpush.msra.mxu3 %v6558_v39  ;;  %v6743_v39 = vld [vmem:[#allocation29 + $0x730] sm:$0xff]  ;;  %v6930_v15 = vld [vmem:[#allocation29 + $0xd08] sm:$0xff] }
 0xa19   : > { %7345 = vmatpush.msra.mxu1 %v6559_v19  ;;  %7174 = vmatpush.msrb.mxu2 %v6969_v20  ;;  %v6578_v19 = vld [vmem:[#allocation29 + $0x208] sm:$0xff] }
 0xa1a   : > { %7186 = vmatpush.msra.mxu3 %v6554_v21  ;;  %v6738_v20 = vld [vmem:[#allocation29 + $0x708] sm:$0xff]  ;;  %v6739_v21 = vld [vmem:[#allocation29 + $0x710] sm:$0xff] }
 0xa1b   : > { %7346 = vmatpush.msra.mxu1 %v6555_v22  ;;  %7175 = vmatpush.msrb.mxu2 %v6965_v25  ;;  %v6830_v22 = vld [vmem:[#allocation29 + $0x9e8] sm:$0xff] }
 0xa1c   : > { %7187 = vmatpush.msra.mxu3 %v6550_v26  ;;  %v6734_v25 = vld [vmem:[#allocation29 + $0x6e8] sm:$0xff]  ;;  %v6735_v26 = vld [vmem:[#allocation29 + $0x6f0] sm:$0xff] }
 0xa1d   : > { %7347 = vmatpush.msra.mxu1 %v6551_v27  ;;  %7176 = vmatpush.msrb.mxu2 %v6961_v28  ;;  %v6826_v27 = vld [vmem:[#allocation29 + $0x9c8] sm:$0xff] }
 0xa1e   : > { %7188 = vmatpush.msra.mxu3 %v6546_v31  ;;  %8479 = vmatmul.msk.f32.vlgmr.msrb.gmra.mxu2 %vm6401_vm5, %v11539_v60  ;;  %v6730_v28 = vld [vmem:[#allocation29 + $0x6c8] sm:$0xff]  ;;  %v6731_v31 = vld [vmem:[#allocation29 + $0x6d0] sm:$0xff] }
 0xa1f   : > { %7348 = vmatpush.msra.mxu1 %v6547_v48  ;;  %7201 = vmatpush.msra.mxu2 %v6638_v32  ;;  %v6822_v48 = vld [vmem:[#allocation29 + $0x9a8] sm:$0xff] }
 0xa20   : > { %7189 = vmatpush.msra.mxu3 %v6542_v33  ;;  %v6726_v32 = vld [vmem:[#allocation29 + $0x6a8] sm:$0xff]  ;;  %v6727_v33 = vld [vmem:[#allocation29 + $0x6b0] sm:$0xff] }
 0xa21   : > { %7349 = vmatpush.msra.mxu1 %v6543_v34  ;;  %7202 = vmatpush.msra.mxu2 %v6634_v35  ;;  %v6818_v34 = vld [vmem:[#allocation29 + $0x988] sm:$0xff] }
 0xa22   : > { %7190 = vmatpush.msra.mxu3 %v6538_v36  ;;  %v6722_v35 = vld [vmem:[#allocation29 + $0x688] sm:$0xff]  ;;  %v6723_v36 = vld [vmem:[#allocation29 + $0x690] sm:$0xff] }
 0xa23   : > { %7350 = vmatpush.msra.mxu1 %v6539_v37  ;;  %7203 = vmatpush.msra.mxu2 %v6630_v38  ;;  %v6814_v37 = vld [vmem:[#allocation29 + $0x968] sm:$0xff] }
 0xa24   : > { %7191 = vmatpush.msra.mxu3 %v6534_v29  ;;  %v6718_v38 = vld [vmem:[#allocation29 + $0x668] sm:$0xff]  ;;  %v6719_v29 = vld [vmem:[#allocation29 + $0x670] sm:$0xff] }
 0xa25   : > { %7351 = vmatpush.msra.mxu1 %v6535_v40  ;;  %7204 = vmatpush.msra.mxu2 %v6626_v42  ;;  %v6810_v40 = vld [vmem:[#allocation29 + $0x948] sm:$0xff] }
 0xa26   : > { %7192 = vmatpush.msra.mxu3 %v6530_v43  ;;  %v6714_v42 = vld [vmem:[#allocation29 + $0x648] sm:$0xff]  ;;  %v6715_v43 = vld [vmem:[#allocation29 + $0x650] sm:$0xff] }
 0xa27   : > { %7352 = vmatpush.msra.mxu1 %v6531_v0  ;;  %7205 = vmatpush.msra.mxu2 %v6622_v44  ;;  %v6806_v0 = vld [vmem:[#allocation29 + $0x928] sm:$0xff] }
 0xa28   : > { %7193 = vmatpush.msra.mxu3 %v6526_v45  ;;  %v6710_v44 = vld [vmem:[#allocation29 + $0x628] sm:$0xff]  ;;  %v6711_v45 = vld [vmem:[#allocation29 + $0x630] sm:$0xff] }
 0xa29   : > { %7353 = vmatpush.msra.mxu1 %v6527_v46  ;;  %7206 = vmatpush.msra.mxu2 %v6618_v13  ;;  %v6802_v46 = vld [vmem:[#allocation29 + $0x908] sm:$0xff] }
 0xa2a   : > { %7194 = vmatpush.msra.mxu3 %v6522_v47  ;;  %v6706_v13 = vld [vmem:[#allocation29 + $0x608] sm:$0xff]  ;;  %v6707_v47 = vld [vmem:[#allocation29 + $0x610] sm:$0xff] }
 0xa2b   : > { %7354 = vmatpush.msra.mxu1 %v6523_v49  ;;  %7207 = vmatpush.msra.mxu2 %v6614_v50  ;;  %v6798_v49 = vld [vmem:[#allocation29 + $0x8e8] sm:$0xff] }
 0xa2c   : > { %7195 = vmatpush.msra.mxu3 %v6518_v51  ;;  %v6958_v50 = vld [vmem:[#allocation29 + $0xde8] sm:$0xff]  ;;  %v6959_v51 = vld [vmem:[#allocation29 + $0xdf0] sm:$0xff] }
 0xa2d   : > { %7355 = vmatpush.msra.mxu1 %v6519_v52  ;;  %7208 = vmatpush.msra.mxu2 %v6610_v53  ;;  %v6794_v52 = vld [vmem:[#allocation29 + $0x8c8] sm:$0xff] }
 0xa2e   : > { %7196 = vmatpush.msra.mxu3 %v6514_v54  ;;  %v6954_v53 = vld [vmem:[#allocation29 + $0xdc8] sm:$0xff]  ;;  %v6955_v54 = vld [vmem:[#allocation29 + $0xdd0] sm:$0xff] }
 0xa2f   : > { %7356 = vmatpush.msra.mxu1 %v6515_v55  ;;  %7197 = vmatmul.f32.vlgmr.msra.gmra.mxu3 %v11509_v9  ;;  %v6790_v55 = vld [vmem:[#allocation29 + $0x8a8] sm:$0xff] }
 0xa30   : > { %7209 = vmatpush.msra.mxu2 %v6606_v56  ;;  %7241 = vmatpush.msrb.mxu3 %v6766_v41  ;;  %v6950_v56 = vld [vmem:[#allocation29 + $0xda8] sm:$0xff]  ;;  %v6951_v41 = vld [vmem:[#allocation29 + $0xdb0] sm:$0xff] }
 0xa31   : > { %7357 = vmatmul.f32.vlgmr.msra.gmra.mxu1 %v11509_v9 }
 0xa32   : > { %7401 = vmatpush.msrb.mxu1 %v6767_v57  ;;  %7210 = vmatpush.msra.mxu2 %v6602_v58  ;;  %v6786_v57 = vld [vmem:[#allocation29 + $0x888] sm:$0xff] }
 0xa33   : > { %7242 = vmatpush.msrb.mxu3 %v6762_v59  ;;  %v6946_v58 = vld [vmem:[#allocation29 + $0xd88] sm:$0xff]  ;;  %v6947_v59 = vld [vmem:[#allocation29 + $0xd90] sm:$0xff] }
 0xa34   : > { %7402 = vmatpush.msrb.mxu1 %v6763_v61  ;;  %7211 = vmatpush.msra.mxu2 %v6598_v62  ;;  %v6782_v61 = vld [vmem:[#allocation29 + $0x868] sm:$0xff] }
 0xa35   : > { %7243 = vmatpush.msrb.mxu3 %v6758_v3  ;;  %v6942_v62 = vld [vmem:[#allocation29 + $0xd68] sm:$0xff]  ;;  %v6943_v3 = vld [vmem:[#allocation29 + $0xd70] sm:$0xff] }
 0xa36   : > { %7403 = vmatpush.msrb.mxu1 %v6759_v4  ;;  %7212 = vmatpush.msra.mxu2 %v6594_v5  ;;  %v6778_v4 = vld [vmem:[#allocation29 + $0x848] sm:$0xff] }
 0xa37   : > { %7244 = vmatpush.msrb.mxu3 %v6754_v1  ;;  %v7681_v5 = vld [vmem:[#allocation32 + $0x80] sm:$0xff] }
 0xa38   : > { %7404 = vmatpush.msrb.mxu1 %v6755_v6  ;;  %7213 = vmatpush.msra.mxu2 %v6590_v7  ;;  %v6938_v1 = vld [vmem:[#allocation29 + $0xd48] sm:$0xff]  ;;  %v6939_v6 = vld [vmem:[#allocation29 + $0xd50] sm:$0xff] }
 0xa39   : > { %7245 = vmatpush.msrb.mxu3 %v6750_v8  ;;  %v6774_v7 = vld [vmem:[#allocation29 + $0x828] sm:$0xff]  ;;  %7802 = vmatpush.msrb.mxu0 %v7681_v5  ;;  %v6619_v5 = vld [vmem:[#allocation29 + $0x350] sm:$0xff] }
 0xa3a   : > { %7405 = vmatpush.msrb.mxu1 %v6751_v11  ;;  %7214 = vmatpush.msra.mxu2 %v6586_v12  ;;  %v6934_v8 = vld [vmem:[#allocation29 + $0xd28] sm:$0xff]  ;;  %v6935_v11 = vld [vmem:[#allocation29 + $0xd30] sm:$0xff] }
 0xa3b   : > { %7246 = vmatpush.msrb.mxu3 %v6746_v30  ;;  %v6770_v12 = vld [vmem:[#allocation29 + $0x808] sm:$0xff]  ;;  %v6931_v30 = vld [vmem:[#allocation29 + $0xd10] sm:$0xff] }
 0xa3c   : > { %7406 = vmatpush.msrb.mxu1 %v6747_v16  ;;  %7215 = vmatpush.msra.mxu2 %v6582_v17  ;;  %v6990_v16 = vld [vmem:[#allocation29 + $0xee8] sm:$0xff] }
 0xa3d   : > { %7247 = vmatpush.msrb.mxu3 %v6742_v18  ;;  %v6926_v17 = vld [vmem:[#allocation29 + $0xce8] sm:$0xff]  ;;  %v6927_v18 = vld [vmem:[#allocation29 + $0xcf0] sm:$0xff] }
 0xa3e   : > { %7407 = vmatpush.msrb.mxu1 %v6743_v39  ;;  %7216 = vmatpush.msra.mxu2 %v6578_v19  ;;  %v6986_v39 = vld [vmem:[#allocation29 + $0xec8] sm:$0xff] }
 0xa3f   : > { %7248 = vmatpush.msrb.mxu3 %v6738_v20  ;;  %7217 = vmatmul.f32.vlgmr.msra.gmra.mxu2 %v11512_v10  ;;  %v6922_v19 = vld [vmem:[#allocation29 + $0xcc8] sm:$0xff]  ;;  %v6923_v20 = vld [vmem:[#allocation29 + $0xcd0] sm:$0xff] }
 0xa40   : > { %7408 = vmatpush.msrb.mxu1 %v6739_v21  ;;  %7261 = vmatpush.msrb.mxu2 %v6830_v22  ;;  %v6982_v21 = vld [vmem:[#allocation29 + $0xea8] sm:$0xff] }
 0xa41   : > { %7249 = vmatpush.msrb.mxu3 %v6734_v25  ;;  %v6918_v22 = vld [vmem:[#allocation29 + $0xca8] sm:$0xff]  ;;  %v6919_v25 = vld [vmem:[#allocation29 + $0xcb0] sm:$0xff] }
 0xa42   : > { %7409 = vmatpush.msrb.mxu1 %v6735_v26  ;;  %7262 = vmatpush.msrb.mxu2 %v6826_v27  ;;  %v6978_v26 = vld [vmem:[#allocation29 + $0xe88] sm:$0xff] }
 0xa43   : > { %7250 = vmatpush.msrb.mxu3 %v6730_v28  ;;  %v6914_v27 = vld [vmem:[#allocation29 + $0xc88] sm:$0xff]  ;;  %v6915_v28 = vld [vmem:[#allocation29 + $0xc90] sm:$0xff] }
 0xa44   : > { %7410 = vmatpush.msrb.mxu1 %v6731_v31  ;;  %7263 = vmatpush.msrb.mxu2 %v6822_v48  ;;  %v6974_v31 = vld [vmem:[#allocation29 + $0xe68] sm:$0xff]  ;;  %v7679_v48 = vld [vmem:[#allocation32 + $0x70] sm:$0xff] }
 0xa45   : > { %7251 = vmatpush.msrb.mxu3 %v6726_v32  ;;  %v6910_v32 = vld [vmem:[#allocation29 + $0xc68] sm:$0xff]  ;;  %7803 = vmatpush.msrb.mxu0 %v7679_v48 }
 0xa46   : > { %7411 = vmatpush.msrb.mxu1 %v6727_v33  ;;  %7264 = vmatpush.msrb.mxu2 %v6818_v34  ;;  %v6911_v33 = vld [vmem:[#allocation29 + $0xc70] sm:$0xff]  ;;  %v6970_v34 = vld [vmem:[#allocation29 + $0xe48] sm:$0xff] }
 0xa47   : > { %7252 = vmatpush.msrb.mxu3 %v6722_v35  ;;  %v7677_v35 = vld [vmem:[#allocation32 + $0x60] sm:$0xff]  ;;  %v7686_v48 = vld [vmem:[#allocation32 + $0xa8] sm:$0xff] }
 0xa48   : > { %7412 = vmatpush.msrb.mxu1 %v6723_v36  ;;  %7265 = vmatpush.msrb.mxu2 %v6814_v37  ;;  %v6906_v36 = vld [vmem:[#allocation29 + $0xc48] sm:$0xff]  ;;  %v6907_v37 = vld [vmem:[#allocation29 + $0xc50] sm:$0xff] }
 0xa49   : > { %7253 = vmatpush.msrb.mxu3 %v6718_v38  ;;  %v6966_v38 = vld [vmem:[#allocation29 + $0xe28] sm:$0xff]  ;;  %7804 = vmatpush.msrb.mxu0 %v7677_v35  ;;  %v6595_v35 = vld [vmem:[#allocation29 + $0x290] sm:$0xff] }
 0xa4a   : > { %7413 = vmatpush.msrb.mxu1 %v6719_v29  ;;  %7266 = vmatpush.msrb.mxu2 %v6810_v40  ;;  %v7675_v29 = vld [vmem:[#allocation32 + $0x50] sm:$0xff]  ;;  %v6902_v40 = vld [vmem:[#allocation29 + $0xc28] sm:$0xff] }
 0xa4b   : > { %7254 = vmatpush.msrb.mxu3 %v6714_v42  ;;  %v6903_v42 = vld [vmem:[#allocation29 + $0xc30] sm:$0xff]  ;;  %7805 = vmatpush.msrb.mxu0 %v7675_v29 }
 0xa4c   : > { %7414 = vmatpush.msrb.mxu1 %v6715_v43  ;;  %7267 = vmatpush.msrb.mxu2 %v6806_v0  ;;  %v6962_v43 = vld [vmem:[#allocation29 + $0xe08] sm:$0xff]  ;;  %v6591_v29 = vld [vmem:[#allocation29 + $0x270] sm:$0xff] }
 0xa4d   : > { %7255 = vmatpush.msrb.mxu3 %v6710_v44  ;;  %v7673_v0 = vld [vmem:[#allocation32 + $0x40] sm:$0xff] }
 0xa4e   : > { %7415 = vmatpush.msrb.mxu1 %v6711_v45  ;;  %7268 = vmatpush.msrb.mxu2 %v6802_v46  ;;  %v6898_v44 = vld [vmem:[#allocation29 + $0xc08] sm:$0xff]  ;;  %v6639_v45 = vld [vmem:[#allocation29 + $0x3f0] sm:$0xff] }
 0xa4f   : > { %7256 = vmatpush.msrb.mxu3 %v6706_v13  ;;  %v6899_v46 = vld [vmem:[#allocation29 + $0xc10] sm:$0xff]  ;;  %7806 = vmatpush.msrb.mxu0 %v7673_v0  ;;  %v6656_v0 = vld [vmem:[#allocation29 + $0x478] sm:$0xff] }
 0xa50   : > { %7416 = vmatpush.msrb.mxu1 %v6707_v47  ;;  %7257 = vmatmul.f32.vlgmr.msrb.gmra.mxu3 %v11524_v24  ;;  %v6703_v13 = vld [vmem:[#allocation29 + $0x5f0] sm:$0xff]  ;;  %v6704_v47 = vld [vmem:[#allocation29 + $0x5f8] sm:$0xff] }
 0xa51   : > { %7269 = vmatpush.msrb.mxu2 %v6798_v49  ;;  %7301 = vmatpush.msra.mxu3 %v6958_v50  ;;  %v6635_v49 = vld [vmem:[#allocation29 + $0x3d0] sm:$0xff] }
 0xa52   : > { %7417 = vmatmul.f32.vlgmr.msrb.gmra.mxu1 %v11524_v24  ;;  %v7671_v50 = vld [vmem:[#allocation32 + $0x30] sm:$0xff] }
 0xa53   : > { %7461 = vmatpush.msra.mxu1 %v6959_v51  ;;  %7270 = vmatpush.msrb.mxu2 %v6794_v52  ;;  %v6699_v51 = vld [vmem:[#allocation29 + $0x5d0] sm:$0xff]  ;;  %v6700_v52 = vld [vmem:[#allocation29 + $0x5d8] sm:$0xff] }
 0xa54   : > { %7302 = vmatpush.msra.mxu3 %v6954_v53  ;;  %v6631_v53 = vld [vmem:[#allocation29 + $0x3b0] sm:$0xff]  ;;  %7807 = vmatpush.msrb.mxu0 %v7671_v50 }
 0xa55   : > { %7462 = vmatpush.msra.mxu1 %v6955_v54  ;;  %7271 = vmatpush.msrb.mxu2 %v6790_v55  ;;  %v7669_v54 = vld [vmem:[#allocation32 + $0x20] sm:$0xff]  ;;  %v6695_v55 = vld [vmem:[#allocation29 + $0x5b0] sm:$0xff] }
 0xa56   : > { %7303 = vmatpush.msra.mxu3 %v6950_v56  ;;  %v6696_v56 = vld [vmem:[#allocation29 + $0x5b8] sm:$0xff]  ;;  %7808 = vmatpush.msrb.mxu0 %v7669_v54  ;;  %v7678_v50 = vld [vmem:[#allocation32 + $0x68] sm:$0xff] }
 0xa57   : > { %7463 = vmatpush.msra.mxu1 %v6951_v41  ;;  %7272 = vmatpush.msrb.mxu2 %v6786_v57  ;;  %v6627_v41 = vld [vmem:[#allocation29 + $0x390] sm:$0xff] }
 0xa58   : > { %7304 = vmatpush.msra.mxu3 %v6946_v58  ;;  %v7667_v57 = vld [vmem:[#allocation32 + $0x10] sm:$0xff] }
 0xa59   : > { %7464 = vmatpush.msra.mxu1 %v6947_v59  ;;  %7273 = vmatpush.msrb.mxu2 %v6782_v61  ;;  %v6691_v58 = vld [vmem:[#allocation29 + $0x590] sm:$0xff]  ;;  %v6692_v59 = vld [vmem:[#allocation29 + $0x598] sm:$0xff] }
 0xa5a   : > { %7305 = vmatpush.msra.mxu3 %v6942_v62  ;;  %v6623_v61 = vld [vmem:[#allocation29 + $0x370] sm:$0xff]  ;;  %v7665_v62 = vld [vmem:[#allocation32] sm:$0xff]  ;;  %7809 = vmatpush.msrb.mxu0 %v7667_v57 }
 0xa5b   : > { %7465 = vmatpush.msra.mxu1 %v6943_v3  ;;  %7274 = vmatpush.msrb.mxu2 %v6778_v4  ;;  %v6687_v3 = vld [vmem:[#allocation29 + $0x570] sm:$0xff]  ;;  %v6688_v4 = vld [vmem:[#allocation29 + $0x578] sm:$0xff] }
 0xa5c   : > { %7306 = vmatpush.msra.mxu3 %v6938_v1  ;;  %v7696_v1 = vld [vmem:[#allocation32 + $0xf8] sm:$0xff]  ;;  %7810 = vmatpush.msrb.mxu0 %v7665_v62  ;;  %v6831_v57 = vld [vmem:[#allocation29 + $0x9f0] sm:$0xff] }
 0xa5d   : > { %7466 = vmatpush.msra.mxu1 %v6939_v6  ;;  %7275 = vmatpush.msrb.mxu2 %v6774_v7  ;;  %v6683_v6 = vld [vmem:[#allocation29 + $0x550] sm:$0xff]  ;;  %v6684_v7 = vld [vmem:[#allocation29 + $0x558] sm:$0xff] }
 0xa5e   : > { %7307 = vmatpush.msra.mxu3 %v6934_v8  ;;  %v6615_v8 = vld [vmem:[#allocation29 + $0x330] sm:$0xff]  ;;  %7875 = vmatpush.msra.mxu0 %v7696_v1  ;;  %v6896_v62 = vld [vmem:[#allocation29 + $0xbf8] sm:$0xff] }
 0xa5f   : > { %7467 = vmatpush.msra.mxu1 %v6935_v11  ;;  %7276 = vmatpush.msrb.mxu2 %v6770_v12  ;;  %v7694_v11 = vld [vmem:[#allocation32 + $0xe8] sm:$0xff] }
 0xa60   : > { %7308 = vmatpush.msra.mxu3 %v6930_v15  ;;  %7277 = vmatmul.f32.vlgmr.msrb.gmra.mxu2 %v11530_v63  ;;  %v6679_v12 = vld [vmem:[#allocation29 + $0x530] sm:$0xff]  ;;  %v6680_v15 = vld [vmem:[#allocation29 + $0x538] sm:$0xff] }
 0xa61   : > { %7468 = vmatpush.msra.mxu1 %v6931_v30  ;;  %7329 = vmatpush.msra.mxu2 %v6990_v16  ;;  %v6611_v30 = vld [vmem:[#allocation29 + $0x310] sm:$0xff]  ;;  %v7692_v16 = vld [vmem:[#allocation32 + $0xd8] sm:$0xff] }
 0xa62   : > { %7309 = vmatpush.msra.mxu3 %v6926_v17  ;;  %v6675_v17 = vld [vmem:[#allocation29 + $0x510] sm:$0xff]  ;;  %7876 = vmatpush.msra.mxu0 %v7694_v11  ;;  %v7672_v11 = vld [vmem:[#allocation32 + $0x38] sm:$0xff] }
 0xa63   : > { %7469 = vmatpush.msra.mxu1 %v6927_v18  ;;  %7330 = vmatpush.msra.mxu2 %v6986_v39  ;;  %v6676_v18 = vld [vmem:[#allocation29 + $0x518] sm:$0xff]  ;;  %v6607_v39 = vld [vmem:[#allocation29 + $0x2f0] sm:$0xff] }
 0xa64   : > { %7310 = vmatpush.msra.mxu3 %v6922_v19  ;;  %v7690_v19 = vld [vmem:[#allocation32 + $0xc8] sm:$0xff]  ;;  %7877 = vmatpush.msra.mxu0 %v7692_v16 }
 0xa65   : > { %7470 = vmatpush.msra.mxu1 %v6923_v20  ;;  %7331 = vmatpush.msra.mxu2 %v6982_v21  ;;  %v6671_v20 = vld [vmem:[#allocation29 + $0x4f0] sm:$0xff]  ;;  %v6672_v21 = vld [vmem:[#allocation29 + $0x4f8] sm:$0xff] }
 0xa66   : > { %7311 = vmatpush.msra.mxu3 %v6918_v22  ;;  %v6603_v22 = vld [vmem:[#allocation29 + $0x2d0] sm:$0xff]  ;;  %7878 = vmatpush.msra.mxu0 %v7690_v19  ;;  %v6884_v19 = vld [vmem:[#allocation29 + $0xb98] sm:$0xff] }
 0xa67   : > { %7471 = vmatpush.msra.mxu1 %v6919_v25  ;;  %7332 = vmatpush.msra.mxu2 %v6978_v26  ;;  %v7688_v25 = vld [vmem:[#allocation32 + $0xb8] sm:$0xff]  ;;  %v6667_v26 = vld [vmem:[#allocation29 + $0x4d0] sm:$0xff] }
 0xa68   : > { %7312 = vmatpush.msra.mxu3 %v6914_v27  ;;  %v6668_v27 = vld [vmem:[#allocation29 + $0x4d8] sm:$0xff]  ;;  %7879 = vmatpush.msra.mxu0 %v7688_v25 }
 0xa69   : > { %7472 = vmatpush.msra.mxu1 %v6915_v28  ;;  %7333 = vmatpush.msra.mxu2 %v6974_v31  ;;  %v6599_v31 = vld [vmem:[#allocation29 + $0x2b0] sm:$0xff]  ;;  %v6880_v25 = vld [vmem:[#allocation29 + $0xb78] sm:$0xff] }
 0xa6a   : > { %7313 = vmatpush.msra.mxu3 %v6910_v32  ;;  %v6663_v32 = vld [vmem:[#allocation29 + $0x4b0] sm:$0xff]  ;;  %7880 = vmatpush.msra.mxu0 %v7686_v48  ;;  %v6876_v48 = vld [vmem:[#allocation29 + $0xb58] sm:$0xff] }
 0xa6b   : > { %7473 = vmatpush.msra.mxu1 %v6911_v33  ;;  %7334 = vmatpush.msra.mxu2 %v6970_v34  ;;  %v6664_v33 = vld [vmem:[#allocation29 + $0x4b8] sm:$0xff]  ;;  %v11553_v34 = vld [vmem:[#allocation30] sm:$0xf] }
 0xa6c   : > { %7314 = vmatpush.msra.mxu3 %v6906_v36  ;;  %v7684_v36 = vld [vmem:[#allocation32 + $0x98] sm:$0xff] }
 0xa6d   : > { %7474 = vmatpush.msra.mxu1 %v6907_v37  ;;  %7335 = vmatpush.msra.mxu2 %v6966_v38  ;;  %v6659_v37 = vld [vmem:[#allocation29 + $0x490] sm:$0xff]  ;;  %v6660_v38 = vld [vmem:[#allocation29 + $0x498] sm:$0xff] }
 0xa6e   : > { %7315 = vmatpush.msra.mxu3 %v6902_v40  ;;  %v7682_v40 = vld [vmem:[#allocation32 + $0x88] sm:$0xff]  ;;  %7881 = vmatpush.msra.mxu0 %v7684_v36  ;;  %v6872_v36 = vld [vmem:[#allocation29 + $0xb38] sm:$0xff] }
 0xa6f   : > { %7475 = vmatpush.msra.mxu1 %v6903_v42  ;;  %7336 = vmatpush.msra.mxu2 %v6962_v43  ;;  %v7038_v28 = vpop.f32.mrf.mxu2  ;;  %v7011_v42 = vperm.slane %v11553_v34, 0  ;;  %v6655_v43 = vld [vmem:[#allocation29 + $0x470] sm:$0xff] }
 0xa70   : > { %7316 = vmatpush.msra.mxu3 %v6898_v44  ;;  %8480 = vmatmul.msk.f32.vlgmr.msra.gmra.mxu2 %vm6401_vm5, %v11539_v60  ;;  %v7058_v44 = vpop.f32.mrf.mxu3 }
 0xa71   : > { %7361 = vmatpush.msrb.mxu2 %v6639_v45  ;;  %7476 = vmatpush.msra.mxu1 %v6899_v46  ;;  %v6587_v45 = vld [vmem:[#allocation29 + $0x250] sm:$0xff]  ;;  %v7680_v46 = vld [vmem:[#allocation32 + $0x78] sm:$0xff] }
 0xa72   : > { %7317 = vmatmul.f32.vlgmr.msra.gmra.mxu3 %v11515_v14  ;;  %7477 = vmatmul.f32.vlgmr.msra.gmra.mxu1 %v11515_v14 }
 0xa73   : > { %7381 = vmatpush.msrb.mxu3 %v6703_v13  ;;  %7541 = vmatpush.msrb.mxu1 %v6704_v47  ;;  %v6651_v13 = vld [vmem:[#allocation29 + $0x450] sm:$0xff]  ;;  %v6652_v47 = vld [vmem:[#allocation29 + $0x458] sm:$0xff] }
 0xa74   : > { %7362 = vmatpush.msrb.mxu2 %v6635_v49  ;;  %7882 = vmatpush.msra.mxu0 %v7682_v40  ;;  %v6583_v49 = vld [vmem:[#allocation29 + $0x230] sm:$0xff]  ;;  %v6868_v40 = vld [vmem:[#allocation29 + $0xb18] sm:$0xff] }
 0xa75   : > { %7382 = vmatpush.msrb.mxu3 %v6699_v51  ;;  %7542 = vmatpush.msrb.mxu1 %v6700_v52  ;;  %v7039_v51 = vadd.f32 %v7038_v28, %v7011_v42  ;;  %v6647_v52 = vld [vmem:[#allocation29 + $0x430] sm:$0xff] }
 0xa76   : > { %7363 = vmatpush.msrb.mxu2 %v6631_v53  ;;  %v6648_v53 = vld [vmem:[#allocation29 + $0x438] sm:$0xff]  ;;  %7883 = vmatpush.msra.mxu0 %v7680_v46  ;;  %v6799_v42 = vld [vmem:[#allocation29 + $0x8f0] sm:$0xff] }
 0xa77   : > { %7383 = vmatpush.msrb.mxu3 %v6695_v55  ;;  %7543 = vmatpush.msrb.mxu1 %v6696_v56  ;;  %v7078_v54 = vpop.f32.mrf.mxu2  ;;  %v6579_v55 = vld [vmem:[#allocation29 + $0x210] sm:$0xff]  ;;  %v7676_v56 = vld [vmem:[#allocation32 + $0x58] sm:$0xff] }
 0xa78   : > { %7364 = vmatpush.msrb.mxu2 %v6627_v41  ;;  %v6643_v41 = vld [vmem:[#allocation29 + $0x410] sm:$0xff]  ;;  %7884 = vmatpush.msra.mxu0 %v7678_v50  ;;  %v7098_v1 = vpop.f32.mrf.mxu3 }
 0xa79   : > { %7384 = vmatpush.msrb.mxu3 %v6691_v58  ;;  %7544 = vmatpush.msrb.mxu1 %v6692_v59  ;;  %v6644_v58 = vld [vmem:[#allocation29 + $0x418] sm:$0xff]  ;;  %v7059_v59 = vadd.f32 %v7058_v44, %v7039_v51  ;;  %v6795_v46 = vld [vmem:[#allocation29 + $0x8d0] sm:$0xff] }
 0xa7a   : > { %7365 = vmatpush.msrb.mxu2 %v6623_v61  ;;  %7885 = vmatpush.msra.mxu0 %v7676_v56  ;;  %v6895_v61 = vld [vmem:[#allocation29 + $0xbf0] sm:$0xff]  ;;  %v6864_v44 = vld [vmem:[#allocation29 + $0xaf8] sm:$0xff] }
 0xa7b   : > { %7385 = vmatpush.msrb.mxu3 %v6687_v3  ;;  %7545 = vmatpush.msrb.mxu1 %v6688_v4  ;;  %v7079_v3 = vadd.f32 %v7078_v54, %v7059_v59  ;;  %v6827_v4 = vld [vmem:[#allocation29 + $0x9d0] sm:$0xff]  ;;  %v6852_v56 = vld [vmem:[#allocation29 + $0xa98] sm:$0xff] }
 0xa7c   : > { %7366 = vmatpush.msrb.mxu2 %v6619_v5  ;;  %v7674_v5 = vld [vmem:[#allocation32 + $0x48] sm:$0xff] }
 0xa7d   : > { %7386 = vmatpush.msrb.mxu3 %v6683_v6  ;;  %7546 = vmatpush.msrb.mxu1 %v6684_v7  ;;  %v6891_v6 = vld [vmem:[#allocation29 + $0xbd0] sm:$0xff]  ;;  %v6892_v7 = vld [vmem:[#allocation29 + $0xbd8] sm:$0xff]  ;;  %v7099_v16 = vadd.f32 %v7098_v1, %v7079_v3 }
 0xa7e   : > { %7367 = vmatpush.msrb.mxu2 %v6615_v8  ;;  %v6823_v8 = vld [vmem:[#allocation29 + $0x9b0] sm:$0xff]  ;;  %7886 = vmatpush.msra.mxu0 %v7674_v5  ;;  %v6840_v5 = vld [vmem:[#allocation29 + $0xa38] sm:$0xff] }
 0xa7f   : > { %7387 = vmatpush.msrb.mxu3 %v6679_v12  ;;  %7547 = vmatpush.msrb.mxu1 %v6680_v15  ;;  %v6887_v12 = vld [vmem:[#allocation29 + $0xbb0] sm:$0xff]  ;;  %v6888_v15 = vld [vmem:[#allocation29 + $0xbb8] sm:$0xff] }
 0xa80   : > { %7368 = vmatpush.msrb.mxu2 %v6611_v30  ;;  %7887 = vmatpush.msra.mxu0 %v7672_v11  ;;  %v6791_v50 = vld [vmem:[#allocation29 + $0x8b0] sm:$0xff]  ;;  %v6576_v11 = vld [vmem:[#allocation29 + $0x1f8] sm:$0xff] }
 0xa81   : > { %7388 = vmatpush.msrb.mxu3 %v6675_v17  ;;  %7548 = vmatpush.msrb.mxu1 %v6676_v18  ;;  %v6819_v17 = vld [vmem:[#allocation29 + $0x990] sm:$0xff] }
 0xa82   : > { %7369 = vmatpush.msrb.mxu2 %v6607_v39  ;;  %v7670_v18 = vld [vmem:[#allocation32 + $0x28] sm:$0xff] }
 0xa83   : > { %7389 = vmatpush.msrb.mxu3 %v6671_v20  ;;  %7549 = vmatpush.msrb.mxu1 %v6672_v21  ;;  %v6883_v39 = vld [vmem:[#allocation29 + $0xb90] sm:$0xff]  ;;  %v7668_v21 = vld [vmem:[#allocation32 + $0x18] sm:$0xff] }
 0xa84   : > { %7370 = vmatpush.msrb.mxu2 %v6603_v22  ;;  %v6815_v20 = vld [vmem:[#allocation29 + $0x970] sm:$0xff]  ;;  %7888 = vmatpush.msra.mxu0 %v7670_v18  ;;  %v6568_v18 = vld [vmem:[#allocation29 + $0x1b8] sm:$0xff] }
 0xa85   : > { %7390 = vmatpush.msrb.mxu3 %v6667_v26  ;;  %7550 = vmatpush.msrb.mxu1 %v6668_v27  ;;  %v6879_v22 = vld [vmem:[#allocation29 + $0xb70] sm:$0xff] }
 0xa86   : > { %7371 = vmatpush.msrb.mxu2 %v6599_v31  ;;  %v6811_v26 = vld [vmem:[#allocation29 + $0x950] sm:$0xff]  ;;  %7889 = vmatpush.msra.mxu0 %v7668_v21  ;;  %v7721_v21 = vld [vmem:[#allocation32 + $0x1c0] sm:$0xff] }
 0xa87   : > { %7391 = vmatpush.msrb.mxu3 %v6663_v32  ;;  %7551 = vmatpush.msrb.mxu1 %v6664_v33  ;;  %v7666_v27 = vld [vmem:[#allocation32 + $0x8] sm:$0xff] }
 0xa88   : > { %7372 = vmatpush.msrb.mxu2 %v6595_v35  ;;  %v6875_v31 = vld [vmem:[#allocation29 + $0xb50] sm:$0xff]  ;;  %7890 = vmatpush.msra.mxu0 %v7666_v27 }
 0xa89   : > { %7392 = vmatpush.msrb.mxu3 %v6659_v37  ;;  %7552 = vmatpush.msrb.mxu1 %v6660_v38  ;;  %v6807_v33 = vld [vmem:[#allocation29 + $0x930] sm:$0xff]  ;;  %v7158_v38 = vpop.f32.mrf.mxu1 }
 0xa8a   : > { %7373 = vmatpush.msrb.mxu2 %v6591_v29  ;;  %v6871_v35 = vld [vmem:[#allocation29 + $0xb30] sm:$0xff] }
 0xa8b   : > { %7393 = vmatpush.msrb.mxu3 %v6655_v43  ;;  %7553 = vmatpush.msrb.mxu1 %v6656_v0  ;;  %v6803_v37 = vld [vmem:[#allocation29 + $0x910] sm:$0xff] }
 0xa8c   : > { %7374 = vmatpush.msrb.mxu2 %v6587_v45  ;;  %v6867_v29 = vld [vmem:[#allocation29 + $0xb10] sm:$0xff] }
 0xa8d   : > { %7394 = vmatpush.msrb.mxu3 %v6651_v13  ;;  %7554 = vmatpush.msrb.mxu1 %v6652_v47  ;;  %v6863_v0 = vld [vmem:[#allocation29 + $0xaf0] sm:$0xff] }
 0xa8e   : > { %7375 = vmatpush.msrb.mxu2 %v6583_v49  ;;  %v6859_v47 = vld [vmem:[#allocation29 + $0xad0] sm:$0xff]  ;;  %v6860_v49 = vld [vmem:[#allocation29 + $0xad8] sm:$0xff] }
 0xa8f   : > { %7395 = vmatpush.msrb.mxu3 %v6647_v52  ;;  %7555 = vmatpush.msrb.mxu1 %v6648_v53  ;;  %v6855_v52 = vld [vmem:[#allocation29 + $0xab0] sm:$0xff]  ;;  %v6856_v53 = vld [vmem:[#allocation29 + $0xab8] sm:$0xff] }
 0xa90   : > { %7376 = vmatpush.msrb.mxu2 %v6579_v55  ;;  %v7118_v30 = vpop.f32.mrf.mxu2  ;;  %v6787_v54 = vld [vmem:[#allocation29 + $0x890] sm:$0xff] }
 0xa91   : > { %7377 = vmatmul.f32.vlgmr.msrb.gmra.mxu2 %v11512_v10  ;;  %7396 = vmatpush.msrb.mxu3 %v6643_v41  ;;  %v7138_v28 = vpop.f32.mrf.mxu3  ;;  %v6851_v55 = vld [vmem:[#allocation29 + $0xa90] sm:$0xff] }
 0xa92   : > { %7421 = vmatpush.msra.mxu2 %v6831_v57  ;;  %7556 = vmatpush.msrb.mxu1 %v6644_v58  ;;  %v6783_v41 = vld [vmem:[#allocation29 + $0x870] sm:$0xff]  ;;  %v6848_v58 = vld [vmem:[#allocation29 + $0xa78] sm:$0xff] }
 0xa93   : > { %7397 = vmatmul.f32.vlgmr.msrb.gmra.mxu3 %v11521_v23  ;;  %7557 = vmatmul.f32.vlgmr.msrb.gmra.mxu1 %v11521_v23  ;;  %v7119_v23 = vadd.f32 %v7118_v30, %v7099_v16  ;;  %v6847_v57 = vld [vmem:[#allocation29 + $0xa70] sm:$0xff]  ;;  %v6572_v30 = vld [vmem:[#allocation29 + $0x1d8] sm:$0xff] }
 0xa94   : > { %7441 = vmatpush.msra.mxu3 %v6895_v61  ;;  %7601 = vmatpush.msra.mxu1 %v6896_v62  ;;  %v6779_v59 = vld [vmem:[#allocation29 + $0x850] sm:$0xff]  ;;  %v6844_v62 = vld [vmem:[#allocation29 + $0xa58] sm:$0xff] }
 0xa95   : > { %7422 = vmatpush.msra.mxu2 %v6827_v4  ;;  %v7139_v32 = vadd.f32 %v7138_v28, %v7119_v23  ;;  %v6843_v61 = vld [vmem:[#allocation29 + $0xa50] sm:$0xff]  ;;  %v6564_v23 = vld [vmem:[#allocation29 + $0x198] sm:$0xff]  ;;  %v7717_v28 = vld [vmem:[#allocation32 + $0x1a0] sm:$0xff] }
 0xa96   : > { %7442 = vmatpush.msra.mxu3 %v6891_v6  ;;  %7602 = vmatpush.msra.mxu1 %v6892_v7  ;;  %v6775_v3 = vld [vmem:[#allocation29 + $0x830] sm:$0xff] }
 0xa97   : > { %7423 = vmatpush.msra.mxu2 %v6823_v8  ;;  %v7159_v43 = vadd.f32 %v7158_v38, %v7139_v32  ;;  %v6839_v4 = vld [vmem:[#allocation29 + $0xa30] sm:$0xff]  ;;  %v6836_v8 = vld [vmem:[#allocation29 + $0xa18] sm:$0xff] }
 0xa98   : > { %7443 = vmatpush.msra.mxu3 %v6887_v12  ;;  %7603 = vmatpush.msra.mxu1 %v6888_v15  ;;  %v6771_v1 = vld [vmem:[#allocation29 + $0x810] sm:$0xff]  ;;  %v6636_v38 = vld [vmem:[#allocation29 + $0x3d8] sm:$0xff] }
 0xa99   : > { %7424 = vmatpush.msra.mxu2 %v6819_v17  ;;  %v6835_v6 = vld [vmem:[#allocation29 + $0xa10] sm:$0xff]  ;;  %v7725_v17 = vld [vmem:[#allocation32 + $0x1e0] sm:$0xff] }
 0xa9a   : > { %7444 = vmatpush.msra.mxu3 %v6883_v39  ;;  %7604 = vmatpush.msra.mxu1 %v6884_v19  ;;  %v6991_v7 = vld [vmem:[#allocation29 + $0xef0] sm:$0xff] }
 0xa9b   : > { %7425 = vmatpush.msra.mxu2 %v6815_v20  ;;  %v6987_v12 = vld [vmem:[#allocation29 + $0xed0] sm:$0xff] }
 0xa9c   : > { %7445 = vmatpush.msra.mxu3 %v6879_v22  ;;  %7605 = vmatpush.msra.mxu1 %v6880_v25  ;;  %v7727_v15 = vld [vmem:[#allocation32 + $0x1f0] sm:$0xff] }
 0xa9d   : > { %7426 = vmatpush.msra.mxu2 %v6811_v26  ;;  %v6983_v16 = vld [vmem:[#allocation29 + $0xeb0] sm:$0xff]  ;;  %v6560_v22 = vld [vmem:[#allocation29 + $0x178] sm:$0xff] }
 0xa9e   : > { %7446 = vmatpush.msra.mxu3 %v6875_v31  ;;  %7606 = vmatpush.msra.mxu1 %v6876_v48  ;;  %v6979_v39 = vld [vmem:[#allocation29 + $0xe90] sm:$0xff]  ;;  %v6556_v26 = vld [vmem:[#allocation29 + $0x158] sm:$0xff] }
 0xa9f   : > { %7427 = vmatpush.msra.mxu2 %v6807_v33  ;;  %v7723_v19 = vld [vmem:[#allocation32 + $0x1d0] sm:$0xff] }
 0xaa0   : > { %7447 = vmatpush.msra.mxu3 %v6871_v35  ;;  %7607 = vmatpush.msra.mxu1 %v6872_v36  ;;  %v6975_v20 = vld [vmem:[#allocation29 + $0xe70] sm:$0xff]  ;;  %v6552_v31 = vld [vmem:[#allocation29 + $0x138] sm:$0xff]  ;;  %v7713_v36 = vld [vmem:[#allocation32 + $0x180] sm:$0xff] }
 0xaa1   : > { %7428 = vmatpush.msra.mxu2 %v6803_v37  ;;  %v7178_v45 = vpop.f32.mrf.mxu2  ;;  %v6971_v25 = vld [vmem:[#allocation29 + $0xe50] sm:$0xff]  ;;  %v6548_v33 = vld [vmem:[#allocation29 + $0x118] sm:$0xff] }
 0xaa2   : > { %7448 = vmatpush.msra.mxu3 %v6867_v29  ;;  %7608 = vmatpush.msra.mxu1 %v6868_v40  ;;  %v7179_v13 = vadd.f32 %v7178_v45, %v7159_v43  ;;  %v6967_v27 = vld [vmem:[#allocation29 + $0xe30] sm:$0xff]  ;;  %v6640_v35 = vld [vmem:[#allocation29 + $0x3f8] sm:$0xff]  ;;  %v7709_v43 = vld [vmem:[#allocation32 + $0x160] sm:$0xff] }
 0xaa3   : > { %7429 = vmatpush.msra.mxu2 %v6799_v42  ;;  %v6963_v48 = vld [vmem:[#allocation29 + $0xe10] sm:$0xff]  ;;  %v6544_v37 = vld [vmem:[#allocation29 + $0xf8] sm:$0xff] }
 0xaa4   : > { %7449 = vmatpush.msra.mxu3 %v6863_v0  ;;  %7609 = vmatpush.msra.mxu1 %v6864_v44  ;;  %v7661_v51 = vmax.f32 %v7179_v13, 0.0  ;;  %v7715_v32 = vld [vmem:[#allocation32 + $0x190] sm:$0xff] }
 0xaa5   : > { %7430 = vmatpush.msra.mxu2 %v6795_v46  ;;  %v7711_v29 = vld [vmem:[#allocation32 + $0x170] sm:$0xff] }
 0xaa6   : > { %7450 = vmatpush.msra.mxu3 %v6859_v47  ;;  %7610 = vmatpush.msra.mxu1 %v6860_v49  ;;  %v6540_v40 = vld [vmem:[#allocation29 + $0xd8] sm:$0xff]  ;;  %v7705_v47 = vld [vmem:[#allocation32 + $0x140] sm:$0xff] }
 0xaa7   : > { %7431 = vmatpush.msra.mxu2 %v6791_v50  ;;  %7811 = vmatmul.f32.vlgmr.msrb.gmra.mxu0 %v7661_v51  ;;  %v6632_v42 = vld [vmem:[#allocation29 + $0x3b8] sm:$0xff] }
 0xaa8   : > { %7451 = vmatpush.msra.mxu3 %v6855_v52  ;;  %7611 = vmatpush.msra.mxu1 %v6856_v53  ;;  %v6536_v0 = vld [vmem:[#allocation29 + $0xb8] sm:$0xff] }
 0xaa9   : > { %7432 = vmatpush.msra.mxu2 %v6787_v54  ;;  %v6628_v44 = vld [vmem:[#allocation29 + $0x398] sm:$0xff]  ;;  %v7701_v54 = vld [vmem:[#allocation32 + $0x120] sm:$0xff] }
 0xaaa   : > { %7452 = vmatpush.msra.mxu3 %v6851_v55  ;;  %7612 = vmatpush.msra.mxu1 %v6852_v56  ;;  %v7707_v45 = vld [vmem:[#allocation32 + $0x150] sm:$0xff] }
 0xaab   : > { %7433 = vmatpush.msra.mxu2 %v6783_v41  ;;  %v6532_v46 = vld [vmem:[#allocation29 + $0x98] sm:$0xff] }
 0xaac   : > { %7453 = vmatpush.msra.mxu3 %v6847_v57  ;;  %7613 = vmatpush.msra.mxu1 %v6848_v58  ;;  %v6624_v13 = vld [vmem:[#allocation29 + $0x378] sm:$0xff] }
 0xaad   : > { %7434 = vmatpush.msra.mxu2 %v6779_v59  ;;  %v6528_v49 = vld [vmem:[#allocation29 + $0x78] sm:$0xff]  ;;  %v7697_v59 = vld [vmem:[#allocation32 + $0x100] sm:$0xff] }
 0xaae   : > { %7454 = vmatpush.msra.mxu3 %v6843_v61  ;;  %7614 = vmatpush.msra.mxu1 %v6844_v62  ;;  %v6620_v50 = vld [vmem:[#allocation29 + $0x358] sm:$0xff] }
 0xaaf   : > { %7435 = vmatpush.msra.mxu2 %v6775_v3  ;;  %7891 = vmatmul.f32.vlgmr.msra.gmra.mxu0 %v7661_v51  ;;  %v7703_v51 = vld [vmem:[#allocation32 + $0x130] sm:$0xff]  ;;  %v7728_v3 = vld [vmem:[#allocation32 + $0x1f8] sm:$0xff] }
 0xab0   : > { %7455 = vmatpush.msra.mxu3 %v6839_v4  ;;  %7615 = vmatpush.msra.mxu1 %v6840_v5  ;;  %v6524_v52 = vld [vmem:[#allocation29 + $0x58] sm:$0xff] }
 0xab1   : > { %7436 = vmatpush.msra.mxu2 %v6771_v1  ;;  %v6616_v53 = vld [vmem:[#allocation29 + $0x338] sm:$0xff]  ;;  %v7726_v1 = vld [vmem:[#allocation32 + $0x1e8] sm:$0xff] }
 0xab2   : > { %7437 = vmatmul.f32.vlgmr.msra.gmra.mxu2 %v11530_v63  ;;  %7456 = vmatpush.msra.mxu3 %v6835_v6  ;;  %v6520_v55 = vld [vmem:[#allocation29 + $0x38] sm:$0xff] }
 0xab3   : > { %7489 = vmatpush.msrb.mxu2 %v6991_v7  ;;  %7616 = vmatpush.msra.mxu1 %v6836_v8  ;;  %v6612_v56 = vld [vmem:[#allocation29 + $0x318] sm:$0xff] }
 0xab4   : > { %7457 = vmatmul.f32.vlgmr.msra.gmra.mxu3 %v11533_v2  ;;  %7617 = vmatmul.f32.vlgmr.msra.gmra.mxu1 %v11533_v2  ;;  %v7719_v2 = vld [vmem:[#allocation32 + $0x1b0] sm:$0xff]  ;;  %v7724_v8 = vld [vmem:[#allocation32 + $0x1d8] sm:$0xff] }
 0xab5   : > { %7501 = vmatpush.msrb.mxu3 %v6576_v11  ;;  %7490 = vmatpush.msrb.mxu2 %v6987_v12  ;;  %v7699_v41 = vld [vmem:[#allocation32 + $0x110] sm:$0xff] }
 0xab6   : > { %7815 = vmatpush.msrb.mxu1 %v7727_v15  ;;  %v6516_v57 = vld [vmem:[#allocation29 + $0x18] sm:$0xff]  ;;  %v7722_v15 = vld [vmem:[#allocation32 + $0x1c8] sm:$0xff] }
 0xab7   : > { %7502 = vmatpush.msrb.mxu3 %v6572_v30  ;;  %7491 = vmatpush.msrb.mxu2 %v6983_v16  ;;  %v6608_v58 = vld [vmem:[#allocation29 + $0x2f8] sm:$0xff] }
 0xab8   : > { %7816 = vmatpush.msrb.mxu1 %v7725_v17  ;;  %v6768_v61 = vld [vmem:[#allocation29 + $0x7f8] sm:$0xff] }
 0xab9   : > { %7503 = vmatpush.msrb.mxu3 %v6568_v18  ;;  %7492 = vmatpush.msrb.mxu2 %v6979_v39  ;;  %v6604_v62 = vld [vmem:[#allocation29 + $0x2d8] sm:$0xff]  ;;  %v7718_v39 = vld [vmem:[#allocation32 + $0x1a8] sm:$0xff] }
 0xaba   : > { %7817 = vmatpush.msrb.mxu1 %v7723_v19  ;;  %v6764_v4 = vld [vmem:[#allocation29 + $0x7d8] sm:$0xff] }
 0xabb   : > { %7504 = vmatpush.msrb.mxu3 %v6564_v23  ;;  %7493 = vmatpush.msrb.mxu2 %v6975_v20  ;;  %v6600_v5 = vld [vmem:[#allocation29 + $0x2b8] sm:$0xff] }
 0xabc   : > { %7818 = vmatpush.msrb.mxu1 %v7721_v21  ;;  %v6760_v6 = vld [vmem:[#allocation29 + $0x7b8] sm:$0xff] }
 0xabd   : > { %7505 = vmatpush.msrb.mxu3 %v6560_v22  ;;  %7494 = vmatpush.msrb.mxu2 %v6971_v25  ;;  %v6596_v7 = vld [vmem:[#allocation29 + $0x298] sm:$0xff]  ;;  %v7714_v25 = vld [vmem:[#allocation32 + $0x188] sm:$0xff] }
 0xabe   : > { %7819 = vmatpush.msrb.mxu1 %v7719_v2  ;;  %v6756_v11 = vld [vmem:[#allocation29 + $0x798] sm:$0xff]  ;;  %v7012_v2 = vperm.slane %v11553_v34, 1 }
 0xabf   : > { %7506 = vmatpush.msrb.mxu3 %v6556_v26  ;;  %7495 = vmatpush.msrb.mxu2 %v6967_v27  ;;  %v6592_v12 = vld [vmem:[#allocation29 + $0x278] sm:$0xff] }
 0xac0   : > { %7820 = vmatpush.msrb.mxu1 %v7717_v28  ;;  %v6752_v30 = vld [vmem:[#allocation29 + $0x778] sm:$0xff]  ;;  %v7198_v28 = vpop.f32.mrf.mxu3 }
 0xac1   : > { %7507 = vmatpush.msrb.mxu3 %v6552_v31  ;;  %7496 = vmatpush.msrb.mxu2 %v6963_v48  ;;  %v7720_v16 = vld [vmem:[#allocation32 + $0x1b8] sm:$0xff] }
 0xac2   : > { %8481 = vmatmul.msk.f32.vlgmr.msrb.gmra.mxu2 %vm6401_vm5, %v11539_v60  ;;  %7821 = vmatpush.msrb.mxu1 %v7715_v32  ;;  %v6748_v17 = vld [vmem:[#allocation29 + $0x758] sm:$0xff] }
 0xac3   : > { %7508 = vmatpush.msrb.mxu3 %v6548_v33  ;;  %7521 = vmatpush.msra.mxu2 %v6640_v35  ;;  %v6584_v18 = vld [vmem:[#allocation29 + $0x238] sm:$0xff]  ;;  %v7218_v33 = vpop.f32.mrf.mxu2  ;;  %v7710_v35 = vld [vmem:[#allocation32 + $0x168] sm:$0xff] }
 0xac4   : > { %7822 = vmatpush.msrb.mxu1 %v7713_v36  ;;  %v6744_v19 = vld [vmem:[#allocation29 + $0x738] sm:$0xff]  ;;  %v7199_v36 = vadd.f32 %v7198_v28, %v7012_v2 }
 0xac5   : > { %7509 = vmatpush.msrb.mxu3 %v6544_v37  ;;  %7522 = vmatpush.msra.mxu2 %v6636_v38  ;;  %v6580_v23 = vld [vmem:[#allocation29 + $0x218] sm:$0xff] }
 0xac6   : > { %7823 = vmatpush.msrb.mxu1 %v7711_v29  ;;  %v7716_v20 = vld [vmem:[#allocation32 + $0x198] sm:$0xff]  ;;  %v7219_v29 = vadd.f32 %v7218_v33, %v7199_v36 }
 0xac7   : > { %7510 = vmatpush.msrb.mxu3 %v6540_v40  ;;  %7523 = vmatpush.msra.mxu2 %v6632_v42  ;;  %v6740_v21 = vld [vmem:[#allocation29 + $0x718] sm:$0xff] }
 0xac8   : > { %7824 = vmatpush.msrb.mxu1 %v7709_v43  ;;  %v6832_v22 = vld [vmem:[#allocation29 + $0x9f8] sm:$0xff]  ;;  %v7706_v43 = vld [vmem:[#allocation32 + $0x148] sm:$0xff] }
 0xac9   : > { %7511 = vmatpush.msrb.mxu3 %v6536_v0  ;;  %7524 = vmatpush.msra.mxu2 %v6628_v44  ;;  %v6736_v26 = vld [vmem:[#allocation29 + $0x6f8] sm:$0xff] }
 0xaca   : > { %7825 = vmatpush.msrb.mxu1 %v7707_v45  ;;  %v6828_v27 = vld [vmem:[#allocation29 + $0x9d8] sm:$0xff]  ;;  %v7238_v45 = vpop.f32.mrf.mxu1 }
 0xacb   : > { %7512 = vmatpush.msrb.mxu3 %v6532_v46  ;;  %7525 = vmatpush.msra.mxu2 %v6624_v13  ;;  %v7712_v31 = vld [vmem:[#allocation32 + $0x178] sm:$0xff] }
 0xacc   : > { %7826 = vmatpush.msrb.mxu1 %v7705_v47  ;;  %v6732_v48 = vld [vmem:[#allocation29 + $0x6d8] sm:$0xff]  ;;  %v7239_v47 = vadd.f32 %v7238_v45, %v7219_v29  ;;  %v7757_v29 = vld [vmem:[#allocation32 + $0x2e0] sm:$0xff] }
 0xacd   : > { %7513 = vmatpush.msrb.mxu3 %v6528_v49  ;;  %7526 = vmatpush.msra.mxu2 %v6620_v50  ;;  %v6824_v32 = vld [vmem:[#allocation29 + $0x9b8] sm:$0xff]  ;;  %v7745_v45 = vld [vmem:[#allocation32 + $0x280] sm:$0xff] }
 0xace   : > { %7827 = vmatpush.msrb.mxu1 %v7703_v51  ;;  %v6728_v37 = vld [vmem:[#allocation29 + $0x6b8] sm:$0xff] }
 0xacf   : > { %7514 = vmatpush.msrb.mxu3 %v6524_v52  ;;  %7527 = vmatpush.msra.mxu2 %v6616_v53  ;;  %v6820_v38 = vld [vmem:[#allocation29 + $0x998] sm:$0xff]  ;;  %v7702_v52 = vld [vmem:[#allocation32 + $0x128] sm:$0xff] }
 0xad0   : > { %7828 = vmatpush.msrb.mxu1 %v7701_v54  ;;  %v6724_v40 = vld [vmem:[#allocation29 + $0x698] sm:$0xff] }
 0xad1   : > { %7515 = vmatpush.msrb.mxu3 %v6520_v55  ;;  %7528 = vmatpush.msra.mxu2 %v6612_v56  ;;  %v6816_v42 = vld [vmem:[#allocation29 + $0x978] sm:$0xff] }
 0xad2   : > { %7829 = vmatpush.msrb.mxu1 %v7699_v41  ;;  %v6720_v0 = vld [vmem:[#allocation29 + $0x678] sm:$0xff] }
 0xad3   : > { %7516 = vmatpush.msrb.mxu3 %v6516_v57  ;;  %7529 = vmatpush.msra.mxu2 %v6608_v58  ;;  %v6812_v44 = vld [vmem:[#allocation29 + $0x958] sm:$0xff]  ;;  %v7258_v46 = vpop.f32.mrf.mxu3 }
 0xad4   : > { %7517 = vmatmul.f32.vlgmr.msrb.gmra.mxu3 %v11509_v9  ;;  %7830 = vmatpush.msrb.mxu1 %v7697_v59  ;;  %v6588_v9 = vld [vmem:[#allocation29 + $0x258] sm:$0xff]  ;;  %v7259_v53 = vadd.f32 %v7258_v46, %v7239_v47  ;;  %v7698_v59 = vld [vmem:[#allocation32 + $0x108] sm:$0xff]  ;;  %v7737_v47 = vld [vmem:[#allocation32 + $0x240] sm:$0xff] }
 0xad5   : > { %7561 = vmatpush.msra.mxu3 %v6768_v61  ;;  %7530 = vmatpush.msra.mxu2 %v6604_v62  ;;  %v7704_v13 = vld [vmem:[#allocation32 + $0x138] sm:$0xff]  ;;  %v7743_v46 = vld [vmem:[#allocation32 + $0x270] sm:$0xff] }
 0xad6   : > { %7895 = vmatpush.msra.mxu1 %v7728_v3  ;;  %v6716_v49 = vld [vmem:[#allocation29 + $0x658] sm:$0xff]  ;;  %v7298_v3 = vpop.f32.mrf.mxu1 }
 0xad7   : > { %7562 = vmatpush.msra.mxu3 %v6764_v4  ;;  %7531 = vmatpush.msra.mxu2 %v6600_v5  ;;  %v6808_v50 = vld [vmem:[#allocation29 + $0x938] sm:$0xff] }
 0xad8   : > { %7896 = vmatpush.msra.mxu1 %v7726_v1  ;;  %v6712_v54 = vld [vmem:[#allocation29 + $0x638] sm:$0xff] }
 0xad9   : > { %7563 = vmatpush.msra.mxu3 %v6760_v6  ;;  %7532 = vmatpush.msra.mxu2 %v6596_v7  ;;  %v6804_v55 = vld [vmem:[#allocation29 + $0x918] sm:$0xff] }
 0xada   : > { %7897 = vmatpush.msra.mxu1 %v7724_v8  ;;  %v7700_v56 = vld [vmem:[#allocation32 + $0x118] sm:$0xff] }
 0xadb   : > { %7564 = vmatpush.msra.mxu3 %v6756_v11  ;;  %7533 = vmatpush.msra.mxu2 %v6592_v12  ;;  %v6708_v57 = vld [vmem:[#allocation29 + $0x618] sm:$0xff] }
 0xadc   : > { %7898 = vmatpush.msra.mxu1 %v7722_v15  ;;  %v6800_v58 = vld [vmem:[#allocation29 + $0x8f8] sm:$0xff] }
 0xadd   : > { %7565 = vmatpush.msra.mxu3 %v6752_v30  ;;  %7534 = vmatpush.msra.mxu2 %v6588_v9  ;;  %v6960_v61 = vld [vmem:[#allocation29 + $0xdf8] sm:$0xff] }
 0xade   : > { %7899 = vmatpush.msra.mxu1 %v7720_v16  ;;  %v6796_v62 = vld [vmem:[#allocation29 + $0x8d8] sm:$0xff] }
 0xadf   : > { %7566 = vmatpush.msra.mxu3 %v6748_v17  ;;  %7535 = vmatpush.msra.mxu2 %v6584_v18  ;;  %v6956_v4 = vld [vmem:[#allocation29 + $0xdd8] sm:$0xff] }
 0xae0   : > { %7900 = vmatpush.msra.mxu1 %v7718_v39  ;;  %v6792_v5 = vld [vmem:[#allocation29 + $0x8b8] sm:$0xff] }
 0xae1   : > { %7567 = vmatpush.msra.mxu3 %v6744_v19  ;;  %7536 = vmatpush.msra.mxu2 %v6580_v23  ;;  %v6952_v7 = vld [vmem:[#allocation29 + $0xdb8] sm:$0xff] }
 0xae2   : > { %7537 = vmatmul.f32.vlgmr.msra.gmra.mxu2 %v11512_v10  ;;  %7901 = vmatpush.msra.mxu1 %v7716_v20  ;;  %v7708_v10 = vld [vmem:[#allocation32 + $0x158] sm:$0xff] }
 0xae3   : > { %7568 = vmatpush.msra.mxu3 %v6740_v21  ;;  %7581 = vmatpush.msrb.mxu2 %v6832_v22  ;;  %v7278_v51 = vpop.f32.mrf.mxu2  ;;  %v6788_v8 = vld [vmem:[#allocation29 + $0x898] sm:$0xff] }
 0xae4   : > { %7902 = vmatpush.msra.mxu1 %v7714_v25  ;;  %v7279_v41 = vadd.f32 %v7278_v51, %v7259_v53  ;;  %v6948_v15 = vld [vmem:[#allocation29 + $0xd98] sm:$0xff]  ;;  %v7729_v53 = vld [vmem:[#allocation32 + $0x200] sm:$0xff] }
 0xae5   : > { %7569 = vmatpush.msra.mxu3 %v6736_v26  ;;  %7582 = vmatpush.msrb.mxu2 %v6828_v27  ;;  %v6784_v9 = vld [vmem:[#allocation29 + $0x878] sm:$0xff] }
 0xae6   : > { %7903 = vmatpush.msra.mxu1 %v7712_v31  ;;  %v7299_v1 = vadd.f32 %v7298_v3, %v7279_v41  ;;  %v6780_v17 = vld [vmem:[#allocation29 + $0x858] sm:$0xff]  ;;  %v7758_v41 = vld [vmem:[#allocation32 + $0x2e8] sm:$0xff] }
 0xae7   : > { %7570 = vmatpush.msra.mxu3 %v6732_v48  ;;  %7583 = vmatpush.msrb.mxu2 %v6824_v32  ;;  %v6940_v18 = vld [vmem:[#allocation29 + $0xd58] sm:$0xff] }
 0xae8   : > { %7904 = vmatpush.msra.mxu1 %v7710_v35  ;;  %v6776_v39 = vld [vmem:[#allocation29 + $0x838] sm:$0xff] }
 0xae9   : > { %7571 = vmatpush.msra.mxu3 %v6728_v37  ;;  %7584 = vmatpush.msrb.mxu2 %v6820_v38  ;;  %v6936_v19 = vld [vmem:[#allocation29 + $0xd38] sm:$0xff] }
 0xaea   : > { %7905 = vmatpush.msra.mxu1 %v7708_v10  ;;  %v6772_v23 = vld [vmem:[#allocation29 + $0x818] sm:$0xff] }
 0xaeb   : > { %7572 = vmatpush.msra.mxu3 %v6724_v40  ;;  %7585 = vmatpush.msrb.mxu2 %v6816_v42  ;;  %v6932_v20 = vld [vmem:[#allocation29 + $0xd18] sm:$0xff]  ;;  %v7753_v42 = vld [vmem:[#allocation32 + $0x2c0] sm:$0xff] }
 0xaec   : > { %7906 = vmatpush.msra.mxu1 %v7706_v43  ;;  %v6992_v21 = vld [vmem:[#allocation29 + $0xef8] sm:$0xff] }
 0xaed   : > { %7573 = vmatpush.msra.mxu3 %v6720_v0  ;;  %7586 = vmatpush.msrb.mxu2 %v6812_v44  ;;  %v6928_v22 = vld [vmem:[#allocation29 + $0xcf8] sm:$0xff]  ;;  %v7749_v0 = vld [vmem:[#allocation32 + $0x2a0] sm:$0xff] }
 0xaee   : > { %7907 = vmatpush.msra.mxu1 %v7704_v13  ;;  %v6988_v25 = vld [vmem:[#allocation29 + $0xed8] sm:$0xff] }
 0xaef   : > { %7574 = vmatpush.msra.mxu3 %v6716_v49  ;;  %7587 = vmatpush.msrb.mxu2 %v6808_v50  ;;  %v6924_v2 = vld [vmem:[#allocation29 + $0xcd8] sm:$0xff]  ;;  %v7733_v49 = vld [vmem:[#allocation32 + $0x220] sm:$0xff]  ;;  %v7013_v50 = vperm.slane %v11553_v34, 2 }
 0xaf0   : > { %7908 = vmatpush.msra.mxu1 %v7702_v52  ;;  %v6984_v26 = vld [vmem:[#allocation29 + $0xeb8] sm:$0xff]  ;;  %v7358_v52 = vpop.f32.mrf.mxu1 }
 0xaf1   : > { %7575 = vmatpush.msra.mxu3 %v6712_v54  ;;  %7588 = vmatpush.msrb.mxu2 %v6804_v55  ;;  %v6920_v27 = vld [vmem:[#allocation29 + $0xcb8] sm:$0xff] }
 0xaf2   : > { %7909 = vmatpush.msra.mxu1 %v7700_v56  ;;  %v6980_v28 = vld [vmem:[#allocation29 + $0xe98] sm:$0xff]  ;;  %v7359_v56 = vadd.f32 %v7358_v52, %v7013_v50 }
 0xaf3   : > { %7576 = vmatpush.msra.mxu3 %v6708_v57  ;;  %7589 = vmatpush.msrb.mxu2 %v6800_v58  ;;  %v7338_v12 = vpop.f32.mrf.mxu2  ;;  %v6916_v31 = vld [vmem:[#allocation29 + $0xc98] sm:$0xff] }
 0xaf4   : > { %7577 = vmatmul.f32.vlgmr.msra.gmra.mxu3 %v11524_v24  ;;  %7910 = vmatpush.msra.mxu1 %v7698_v59  ;;  %v6944_v24 = vld [vmem:[#allocation29 + $0xd78] sm:$0xff] }
 0xaf5   : > { %7621 = vmatpush.msrb.mxu3 %v6960_v61  ;;  %7590 = vmatpush.msrb.mxu2 %v6796_v62  ;;  %v7318_v6 = vpop.f32.mrf.mxu3  ;;  %v6976_v48 = vld [vmem:[#allocation29 + $0xe78] sm:$0xff]  ;;  %v7754_v61 = vld [vmem:[#allocation32 + $0x2c8] sm:$0xff] }
 0xaf6   : > { %v7319_v11 = vadd.f32 %v7318_v6, %v7299_v1  ;;  %v6912_v32 = vld [vmem:[#allocation29 + $0xc78] sm:$0xff] }
 0xaf7   : > { %7622 = vmatpush.msrb.mxu3 %v6956_v4  ;;  %7591 = vmatpush.msrb.mxu2 %v6792_v5  ;;  %v6972_v33 = vld [vmem:[#allocation29 + $0xe58] sm:$0xff]  ;;  %v7750_v5 = vld [vmem:[#allocation32 + $0x2a8] sm:$0xff] }
 0xaf8   : > { %v7339_v30 = vadd.f32 %v7338_v12, %v7319_v11  ;;  %v6968_v35 = vld [vmem:[#allocation29 + $0xe38] sm:$0xff]  ;;  %v7418_v34 = vpop.f32.mrf.mxu1  ;;  %v7746_v11 = vld [vmem:[#allocation32 + $0x288] sm:$0xff] }
 0xaf9   : > { %7623 = vmatpush.msrb.mxu3 %v6952_v7  ;;  %7592 = vmatpush.msrb.mxu2 %v6788_v8  ;;  %v6904_v36 = vld [vmem:[#allocation29 + $0xc38] sm:$0xff] }
 0xafa   : > { %v7662_v16 = vmax.f32 %v7339_v30, 0.0  ;;  %v6964_v37 = vld [vmem:[#allocation29 + $0xe18] sm:$0xff]  ;;  %v7742_v30 = vld [vmem:[#allocation32 + $0x268] sm:$0xff] }
 0xafb   : > { %7624 = vmatpush.msrb.mxu3 %v6948_v15  ;;  %7593 = vmatpush.msrb.mxu2 %v6784_v9  ;;  %v6900_v38 = vld [vmem:[#allocation29 + $0xc18] sm:$0xff] }
 0xafc   : > { %7831 = vmatmul.f32.vlgmr.msrb.gmra.mxu1 %v7662_v16  ;;  %v7759_v10 = vld [vmem:[#allocation32 + $0x2f0] sm:$0xff]  ;;  %v7760_v55 = vld [vmem:[#allocation32 + $0x2f8] sm:$0xff] }
 0xafd   : > { %7625 = vmatpush.msrb.mxu3 %v6944_v24  ;;  %7594 = vmatpush.msrb.mxu2 %v6780_v17  ;;  %v7755_v40 = vld [vmem:[#allocation32 + $0x2d0] sm:$0xff]  ;;  %v7756_v59 = vld [vmem:[#allocation32 + $0x2d8] sm:$0xff] }
 0xafe   : > { %v7751_v43 = vld [vmem:[#allocation32 + $0x2b0] sm:$0xff]  ;;  %v7752_v3 = vld [vmem:[#allocation32 + $0x2b8] sm:$0xff] }
 0xaff   : > { %7626 = vmatpush.msrb.mxu3 %v6940_v18  ;;  %7595 = vmatpush.msrb.mxu2 %v6776_v39  ;;  %v7747_v44 = vld [vmem:[#allocation32 + $0x290] sm:$0xff]  ;;  %v7748_v6 = vld [vmem:[#allocation32 + $0x298] sm:$0xff]  ;;  %v7738_v18 = vld [vmem:[#allocation32 + $0x248] sm:$0xff] }
 0xb00   : > { %v7739_v13 = vld [vmem:[#allocation32 + $0x250] sm:$0xff]  ;;  %v7744_v12 = vld [vmem:[#allocation32 + $0x278] sm:$0xff]  ;;  %v7478_v9 = vpop.f32.mrf.mxu1 }
 0xb01   : > { %7627 = vmatpush.msrb.mxu3 %v6936_v19  ;;  %7596 = vmatpush.msrb.mxu2 %v6772_v23  ;;  %v7731_v51 = vld [vmem:[#allocation32 + $0x210] sm:$0xff]  ;;  %v7736_v23 = vld [vmem:[#allocation32 + $0x238] sm:$0xff] }
 0xb02   : > { %7597 = vmatmul.f32.vlgmr.msrb.gmra.mxu2 %v11530_v63  ;;  %v6908_v63 = vld [vmem:[#allocation29 + $0xc58] sm:$0xff] }
 0xb03   : > { %7628 = vmatpush.msrb.mxu3 %v6932_v20  ;;  %7649 = vmatpush.msra.mxu2 %v6992_v21  ;;  %v7734_v20 = vld [vmem:[#allocation32 + $0x228] sm:$0xff]  ;;  %v7732_v21 = vld [vmem:[#allocation32 + $0x218] sm:$0xff] }
 0xb04   : > { %7911 = vmatmul.f32.vlgmr.msra.gmra.mxu1 %v7662_v16  ;;  %v7740_v16 = vld [vmem:[#allocation32 + $0x258] sm:$0xff] }
 0xb05   : > { %7629 = vmatpush.msrb.mxu3 %v6928_v22  ;;  %7650 = vmatpush.msra.mxu2 %v6988_v25  ;;  %v7730_v22 = vld [vmem:[#allocation32 + $0x208] sm:$0xff]  ;;  %v7783_v25 = vld [vmem:[#allocation32 + $0x3b0] sm:$0xff] }
 0xb07   : > { %7630 = vmatpush.msrb.mxu3 %v6924_v2  ;;  %7651 = vmatpush.msra.mxu2 %v6984_v26  ;;  %v7781_v2 = vld [vmem:[#allocation32 + $0x3a0] sm:$0xff]  ;;  %v7779_v26 = vld [vmem:[#allocation32 + $0x390] sm:$0xff] }
 0xb09   : > { %7631 = vmatpush.msrb.mxu3 %v6920_v27  ;;  %7652 = vmatpush.msra.mxu2 %v6980_v28  ;;  %v7777_v27 = vld [vmem:[#allocation32 + $0x380] sm:$0xff]  ;;  %v7775_v28 = vld [vmem:[#allocation32 + $0x370] sm:$0xff] }
 0xb0b   : > { %7632 = vmatpush.msrb.mxu3 %v6916_v31  ;;  %7653 = vmatpush.msra.mxu2 %v6976_v48  ;;  %v7773_v31 = vld [vmem:[#allocation32 + $0x360] sm:$0xff]  ;;  %v7771_v48 = vld [vmem:[#allocation32 + $0x350] sm:$0xff] }
 0xb0d   : > { %7633 = vmatpush.msrb.mxu3 %v6912_v32  ;;  %7654 = vmatpush.msra.mxu2 %v6972_v33  ;;  %v7769_v32 = vld [vmem:[#allocation32 + $0x340] sm:$0xff]  ;;  %v7767_v33 = vld [vmem:[#allocation32 + $0x330] sm:$0xff] }
 0xb0f   : > { %7634 = vmatpush.msrb.mxu3 %v6908_v63  ;;  %7655 = vmatpush.msra.mxu2 %v6968_v35  ;;  %v7765_v63 = vld [vmem:[#allocation32 + $0x320] sm:$0xff]  ;;  %v7763_v35 = vld [vmem:[#allocation32 + $0x310] sm:$0xff] }
 0xb10   : > { %v7558_v52 = vpop.f32.mrf.mxu1 }
 0xb11   : > { %7635 = vmatpush.msrb.mxu3 %v6904_v36  ;;  %7656 = vmatpush.msra.mxu2 %v6964_v37  ;;  %v7761_v36 = vld [vmem:[#allocation32 + $0x300] sm:$0xff]  ;;  %v7784_v37 = vld [vmem:[#allocation32 + $0x3b8] sm:$0xff] }
 0xb12   : > { %8482 = vmatmul.msk.f32.vlgmr.msra.gmra.mxu2 %vm6401_vm5, %v11539_v60  ;;  %v7741_v60 = vld [vmem:[#allocation32 + $0x260] sm:$0xff] }
 0xb13   : > { %7636 = vmatpush.msrb.mxu3 %v6900_v38  ;;  %7835 = vmatpush.msrb.mxu2 %v7759_v10  ;;  %v7782_v38 = vld [vmem:[#allocation32 + $0x3a8] sm:$0xff]  ;;  %v7780_v10 = vld [vmem:[#allocation32 + $0x398] sm:$0xff] }
 0xb14   : > { %7637 = vmatmul.f32.vlgmr.msrb.gmra.mxu3 %v11515_v14  ;;  %v7735_v14 = vld [vmem:[#allocation32 + $0x230] sm:$0xff]  ;;  %v7378_v54 = vpop.f32.mrf.mxu2 }
 0xb15   : > { %7836 = vmatpush.msrb.mxu2 %v7757_v29  ;;  %v7379_v57 = vadd.f32 %v7378_v54, %v7359_v56  ;;  %7859 = vmatpush.msra.mxu3 %v7783_v25  ;;  %v7778_v29 = vld [vmem:[#allocation32 + $0x388] sm:$0xff]  ;;  %v7979_v25 = vld [vmem:[#allocation35 + $0xb0] sm:$0xff] }
 0xb16   : > { %v7398_v58 = vpop.f32.mrf.mxu3 }
 0xb17   : > { %7837 = vmatpush.msrb.mxu2 %v7755_v40  ;;  %v7399_v62 = vadd.f32 %v7398_v58, %v7379_v57  ;;  %7860 = vmatpush.msra.mxu3 %v7781_v2  ;;  %v7776_v40 = vld [vmem:[#allocation32 + $0x378] sm:$0xff]  ;;  %v7958_v2 = vld [vmem:[#allocation35 + $0x8] sm:$0xff] }
 0xb19   : > { %7838 = vmatpush.msrb.mxu2 %v7753_v42  ;;  %v7419_v1 = vadd.f32 %v7418_v34, %v7399_v62  ;;  %7861 = vmatpush.msra.mxu3 %v7779_v26  ;;  %v7774_v42 = vld [vmem:[#allocation32 + $0x368] sm:$0xff] }
 0xb1a   : > { %v7978_v26 = vld [vmem:[#allocation35 + $0xa8] sm:$0xff] }
 0xb1b   : > { %7839 = vmatpush.msrb.mxu2 %v7751_v43  ;;  %7862 = vmatpush.msra.mxu3 %v7777_v27  ;;  %v7772_v43 = vld [vmem:[#allocation32 + $0x358] sm:$0xff]  ;;  %v7957_v27 = vld [vmem:[#allocation35] sm:$0xff] }
 0xb1d   : > { %7840 = vmatpush.msrb.mxu2 %v7749_v0  ;;  %7863 = vmatpush.msra.mxu3 %v7775_v28  ;;  %v7770_v0 = vld [vmem:[#allocation32 + $0x348] sm:$0xff] }
 0xb1e   : > { %v7977_v28 = vld [vmem:[#allocation35 + $0xa0] sm:$0xff] }
 0xb1f   : > { %7841 = vmatpush.msrb.mxu2 %v7747_v44  ;;  %7864 = vmatpush.msra.mxu3 %v7773_v31  ;;  %v7768_v44 = vld [vmem:[#allocation32 + $0x338] sm:$0xff] }
 0xb20   : > { %v7976_v31 = vld [vmem:[#allocation35 + $0x98] sm:$0xff] }
 0xb21   : > { %7842 = vmatpush.msrb.mxu2 %v7745_v45  ;;  %7865 = vmatpush.msra.mxu3 %v7771_v48  ;;  %v7766_v45 = vld [vmem:[#allocation32 + $0x328] sm:$0xff]  ;;  %v7975_v48 = vld [vmem:[#allocation35 + $0x90] sm:$0xff] }
 0xb23   : > { %7843 = vmatpush.msrb.mxu2 %v7743_v46  ;;  %7866 = vmatpush.msra.mxu3 %v7769_v32  ;;  %v7764_v46 = vld [vmem:[#allocation32 + $0x318] sm:$0xff]  ;;  %v7974_v32 = vld [vmem:[#allocation35 + $0x88] sm:$0xff] }
 0xb25   : > { %7844 = vmatpush.msrb.mxu2 %v7741_v60  ;;  %7867 = vmatpush.msra.mxu3 %v7767_v33  ;;  %v7762_v60 = vld [vmem:[#allocation32 + $0x308] sm:$0xff] }
 0xb26   : > { %v7973_v33 = vld [vmem:[#allocation35 + $0x80] sm:$0xff] }
 0xb27   : > { %7845 = vmatpush.msrb.mxu2 %v7739_v13  ;;  %7868 = vmatpush.msra.mxu3 %v7765_v63  ;;  %v8659_v13 = vld [vmem:[#allocation30] sm:$0xf]  ;;  %v8047_v63 = vld [vmem:[%s11666_s17 + $0x70] sm:$0xff] }
 0xb29   : > { %7846 = vmatpush.msrb.mxu2 %v7737_v47  ;;  %7869 = vmatpush.msra.mxu3 %v7763_v35  ;;  %v7014_v47 = vperm.slane %v8659_v13, 3  ;;  %v8046_v35 = vld [vmem:[%s11666_s17 + $0x68] sm:$0xff] }
 0xb2b   : > { %7847 = vmatpush.msrb.mxu2 %v7735_v14  ;;  %7870 = vmatpush.msra.mxu3 %v7761_v36  ;;  %v8045_v36 = vld [vmem:[%s11666_s17 + $0x60] sm:$0xff] }
 0xb2d   : > { %7848 = vmatpush.msrb.mxu2 %v7733_v49  ;;  %7939 = vmatpush.msrb.mxu3 %v7784_v37  ;;  %v8044_v37 = vld [vmem:[%s11666_s17 + $0x58] sm:$0xff] }
 0xb2f   : > { %7849 = vmatpush.msrb.mxu2 %v7731_v51  ;;  %7940 = vmatpush.msrb.mxu3 %v7782_v38  ;;  %v8043_v38 = vld [vmem:[%s11666_s17 + $0x50] sm:$0xff] }
 0xb31   : > { %7850 = vmatpush.msrb.mxu2 %v7729_v53  ;;  %7941 = vmatpush.msrb.mxu3 %v7780_v10  ;;  %v7618_v57 = vpop.f32.mrf.mxu1  ;;  %v7785_v10 = vld [vmem:[#allocation33] sm:$0x3] }
 0xb32   : > { %v7788_v13 = vperm.slane %v7785_v10, 1 }
 0xb33   : > { %7915 = vmatpush.msra.mxu2 %v7760_v55  ;;  %7942 = vmatpush.msrb.mxu3 %v7778_v29  ;;  %v8042_v29 = vld [vmem:[%s11666_s17 + $0x48] sm:$0xff] }
 0xb35   : > { %7916 = vmatpush.msra.mxu2 %v7758_v41  ;;  %v7438_v4 = vpop.f32.mrf.mxu2  ;;  %7943 = vmatpush.msrb.mxu3 %v7776_v40  ;;  %v7812_v40 = vpop.f32.mrf.mxu0 }
 0xb36   : > { %v7439_v7 = vadd.f32 %v7438_v4, %v7419_v1  ;;  %v7972_v4 = vld [vmem:[#allocation35 + $0x78] sm:$0xff]  ;;  %v7970_v1 = vld [vmem:[#allocation35 + $0x68] sm:$0xff] }
 0xb37   : > { %7917 = vmatpush.msra.mxu2 %v7756_v59  ;;  %v7458_v8 = vpop.f32.mrf.mxu3  ;;  %7944 = vmatpush.msrb.mxu3 %v7774_v42  ;;  %v7787_v42 = vperm.slane %v7785_v10, 0 }
 0xb38   : > { %v7459_v15 = vadd.f32 %v7458_v8, %v7439_v7  ;;  %7992 = vmatpush.msrb.mxu0 %v7972_v4  ;;  %v7985_v7 = vld [vmem:[#allocation35 + $0xe0] sm:$0xff] }
 0xb39   : > { %7918 = vmatpush.msra.mxu2 %v7754_v61  ;;  %7945 = vmatpush.msrb.mxu3 %v7772_v43  ;;  %v7969_v8 = vld [vmem:[#allocation35 + $0x60] sm:$0xff] }
 0xb3a   : > { %v7479_v24 = vadd.f32 %v7478_v9, %v7459_v15  ;;  %v7983_v15 = vld [vmem:[#allocation35 + $0xd0] sm:$0xff]  ;;  %v7982_v9 = vld [vmem:[#allocation35 + $0xc8] sm:$0xff]  ;;  %v8041_v43 = vld [vmem:[%s11666_s17 + $0x40] sm:$0xff] }
 0xb3b   : > { %7919 = vmatpush.msra.mxu2 %v7752_v3  ;;  %7946 = vmatpush.msrb.mxu3 %v7770_v0  ;;  %v8034_v4 = vld [vmem:[%s11666_s17 + $0x8] sm:$0xff] }
 0xb3d   : > { %7920 = vmatpush.msra.mxu2 %v7750_v5  ;;  %7947 = vmatpush.msrb.mxu3 %v7768_v44  ;;  %v7971_v5 = vld [vmem:[#allocation35 + $0x70] sm:$0xff] }
 0xb3e   : > { %7993 = vmatpush.msrb.mxu0 %v7971_v5  ;;  %v8040_v44 = vld [vmem:[%s11666_s17 + $0x38] sm:$0xff]  ;;  %v8033_v5 = vld [vmem:[%s11666_s17] sm:$0xff] }
 0xb3f   : > { %7921 = vmatpush.msra.mxu2 %v7748_v6  ;;  %7948 = vmatpush.msrb.mxu3 %v7766_v45  ;;  %v7986_v6 = vld [vmem:[#allocation35 + $0xe8] sm:$0xff] }
 0xb40   : > { %8014 = vmatpush.msrb.mxu1 %v7986_v6  ;;  %7994 = vmatpush.msrb.mxu0 %v7970_v1  ;;  %v8081_v1 = vld [vmem:[%s11668_s19 + $0x38] sm:$0xf]  ;;  %v8080_v6 = vld [vmem:[%s11668_s19 + $0x30] sm:$0xff] }
 0xb41   : > { %7922 = vmatpush.msra.mxu2 %v7746_v11  ;;  %7949 = vmatpush.msrb.mxu3 %v7764_v46  ;;  %v7984_v11 = vld [vmem:[#allocation35 + $0xd8] sm:$0xff]  ;;  %v7813_v46 = vadd.f32 %v7812_v40, %v7787_v42 }
 0xb42   : > { %8015 = vmatpush.msrb.mxu1 %v7985_v7  ;;  %7995 = vmatpush.msrb.mxu0 %v7969_v8  ;;  %v8079_v7 = vld [vmem:[%s11668_s19 + $0x28] sm:$0xff]  ;;  %v8078_v8 = vld [vmem:[%s11668_s19 + $0x20] sm:$0xff] }
 0xb43   : > { %7923 = vmatpush.msra.mxu2 %v7744_v12  ;;  %7950 = vmatpush.msrb.mxu3 %v7762_v60  ;;  %v7968_v12 = vld [vmem:[#allocation35 + $0x58] sm:$0xff] }
 0xb44   : > { %8016 = vmatpush.msrb.mxu1 %v7984_v11  ;;  %7996 = vmatpush.msrb.mxu0 %v7968_v12  ;;  %v8077_v11 = vld [vmem:[%s11668_s19 + $0x18] sm:$0xff]  ;;  %v7987_v12 = vld [vmem:[#allocation36] sm:$0x1] }
 0xb45   : > { %7924 = vmatpush.msra.mxu2 %v7742_v30  ;;  %v7498_v17 = vpop.f32.mrf.mxu2  ;;  %v7967_v30 = vld [vmem:[#allocation35 + $0x50] sm:$0xff] }
 0xb46   : > { %v7499_v39 = vadd.f32 %v7498_v17, %v7479_v24  ;;  %8017 = vmatpush.msrb.mxu1 %v7983_v15  ;;  %v7981_v24 = vld [vmem:[#allocation35 + $0xc0] sm:$0xff]  ;;  %7997 = vmatpush.msrb.mxu0 %v7967_v30 }
 0xb47   : > { %7925 = vmatpush.msra.mxu2 %v7740_v16  ;;  %v7966_v16 = vld [vmem:[#allocation35 + $0x48] sm:$0xff]  ;;  %v7965_v17 = vld [vmem:[#allocation35 + $0x40] sm:$0xff] }
 0xb48   : > { %v7663_v19 = vmax.f32 %v7499_v39, 0.0  ;;  %8018 = vmatpush.msrb.mxu1 %v7982_v9  ;;  %7998 = vmatpush.msrb.mxu0 %v7966_v16  ;;  %v7964_v39 = vld [vmem:[#allocation35 + $0x38] sm:$0xff] }
 0xb49   : > { %7926 = vmatpush.msra.mxu2 %v7738_v18  ;;  %v7980_v18 = vld [vmem:[#allocation35 + $0xb8] sm:$0xff] }
 0xb4a   : > { %7851 = vmatmul.f32.vlgmr.msrb.gmra.mxu2 %v7663_v19  ;;  %8019 = vmatpush.msrb.mxu1 %v7981_v24 }
 0xb4b   : > { %7927 = vmatpush.msra.mxu2 %v7736_v23  ;;  %7999 = vmatpush.msrb.mxu0 %v7965_v17  ;;  %v7962_v23 = vld [vmem:[#allocation35 + $0x28] sm:$0xff] }
 0xb4c   : > { %8020 = vmatpush.msrb.mxu1 %v7980_v18  ;;  %v8076_v17 = vld [vmem:[%s11668_s19 + $0x10] sm:$0xff]  ;;  %v8075_v18 = vld [vmem:[%s11668_s19 + $0x8] sm:$0xff] }
 0xb4d   : > { %7928 = vmatpush.msra.mxu2 %v7734_v20  ;;  %8000 = vmatpush.msrb.mxu0 %v7964_v39  ;;  %v7961_v20 = vld [vmem:[#allocation35 + $0x20] sm:$0xff] }
 0xb4e   : > { %8021 = vmatpush.msrb.mxu1 %v7979_v25  ;;  %v8074_v39 = vld [vmem:[%s11668_s19] sm:$0xff] }
 0xb4f   : > { %7929 = vmatpush.msra.mxu2 %v7732_v21  ;;  %v7960_v21 = vld [vmem:[#allocation35 + $0x18] sm:$0xff] }
 0xb50   : > { %8022 = vmatpush.msrb.mxu1 %v7978_v26 }
 0xb51   : > { %7930 = vmatpush.msra.mxu2 %v7730_v22  ;;  %v7959_v22 = vld [vmem:[#allocation35 + $0x10] sm:$0xff] }
 0xb52   : > { %7931 = vmatmul.f32.vlgmr.msra.gmra.mxu2 %v7663_v19  ;;  %v7963_v19 = vld [vmem:[#allocation35 + $0x30] sm:$0xff]  ;;  %8023 = vmatpush.msrb.mxu1 %v7977_v28 }
 0xb53   : > { %8001 = vmatpush.msrb.mxu0 %v7963_v19  ;;  %8487 = vmatpush.msk.msrb.mxu2 %vm8087_vm3, %v8081_v1  ;;  %v8048_v19 = vld [vmem:[#allocation38] sm:$0x1] }
 0xb54   : > { %8024 = vmatpush.msrb.mxu1 %v7976_v31 }
 0xb55   : > { %8002 = vmatpush.msrb.mxu0 %v7962_v23  ;;  %8100 = vmatpush.msrb.mxu2 %v8080_v6 }
 0xb56   : > { %8025 = vmatpush.msrb.mxu1 %v7975_v48 }
 0xb57   : > { %v7518_v14 = vpop.f32.mrf.mxu3  ;;  %8003 = vmatpush.msrb.mxu0 %v7961_v20  ;;  %8101 = vmatpush.msrb.mxu2 %v8079_v7 }
 0xb58   : > { %v7519_v50 = vadd.f32 %v7518_v14, %v7014_v47  ;;  %8026 = vmatpush.msrb.mxu1 %v7974_v32  ;;  %v7892_v14 = vpop.f32.mrf.mxu0 }
 0xb59   : > { %8004 = vmatpush.msrb.mxu0 %v7960_v21  ;;  %8102 = vmatpush.msrb.mxu2 %v8078_v8 }
 0xb5a   : > { %8027 = vmatpush.msrb.mxu1 %v7973_v33 }
 0xb5b   : > { %8005 = vmatpush.msrb.mxu0 %v7959_v22  ;;  %8103 = vmatpush.msrb.mxu2 %v8077_v11  ;;  %v8082_v22 = vld [vmem:[#allocation18] sm:$0x1] }
 0xb5d   : > { %8006 = vmatpush.msrb.mxu0 %v7958_v2  ;;  %8104 = vmatpush.msrb.mxu2 %v8076_v17 }
 0xb5f   : > { %8007 = vmatpush.msrb.mxu0 %v7957_v27  ;;  %8105 = vmatpush.msrb.mxu2 %v8075_v18 }
 0xb61   : > { %8106 = vmatpush.msrb.mxu2 %v8074_v39 }
 0xb65   : > { %v7538_v49 = vpop.f32.mrf.mxu2 }
 0xb66   : > { %v7539_v51 = vadd.f32 %v7538_v49, %v7519_v50 }
 0xb68   : > { %v7559_v54 = vadd.f32 %v7558_v52, %v7539_v51  ;;  %v7893_v52 = vadd.f32 %v7892_v14, %v7788_v13 }
 0xb77   : > { %v7578_v53 = vpop.f32.mrf.mxu3 }
 0xb78   : > { %v7579_v56 = vadd.f32 %v7578_v53, %v7559_v54 }
 0xb79   : > { %v7832_v0 = vpop.f32.mrf.mxu1 }
 0xb7a   : > { %v7833_v60 = vadd.f32 %v7832_v0, %v7813_v46 }
 0xb81   : > { %v7912_v51 = vpop.f32.mrf.mxu1 }
 0xb85   : > { %v7598_v55 = vpop.f32.mrf.mxu2 }
 0xb86   : > { %v7599_v41 = vadd.f32 %v7598_v55, %v7579_v56  ;;  %v7913_v55 = vadd.f32 %v7912_v51, %v7893_v52 }
 0xb88   : > { %v7619_v58 = vadd.f32 %v7618_v57, %v7599_v41 }
 0xb95   : > { %v7658_v62 = vpop.f32.mrf.mxu2 }
 0xb97   : > { %v7638_v59 = vpop.f32.mrf.mxu3 }
 0xb98   : > { %v7639_v61 = vadd.f32 %v7638_v59, %v7619_v58  ;;  %v8039_v59 = vld [vmem:[%s11666_s17 + $0x30] sm:$0xff] }
 0xb9a   : > { %v7659_v3 = vadd.f32 %v7658_v62, %v7639_v61  ;;  %v8038_v61 = vld [vmem:[%s11666_s17 + $0x28] sm:$0xff]  ;;  %v8037_v62 = vld [vmem:[%s11666_s17 + $0x20] sm:$0xff] }
 0xb9c   : > { %v7664_v34 = vmax.f32 %v7659_v3, 0.0  ;;  %v8036_v3 = vld [vmem:[%s11666_s17 + $0x18] sm:$0xff] }
 0xb9e   : > { %8483 = vmatmul.msk.f32.vlgmr.msra.gmra.mxu3 %vm7791_vm13, %v7664_v34 }
 0xb9f   : > { %8054 = vmatpush.msra.mxu3 %v8047_v63 }
 0xba1   : > { %8055 = vmatpush.msra.mxu3 %v8046_v35 }
 0xba3   : > { %8056 = vmatpush.msra.mxu3 %v8045_v36 }
 0xba5   : > { %8057 = vmatpush.msra.mxu3 %v8044_v37 }
 0xba6   : > { %8484 = vmatmul.msk.f32.vlgmr.msrb.gmra.mxu3 %vm7791_vm13, %v7664_v34  ;;  %v8035_v34 = vld [vmem:[%s11666_s17 + $0x10] sm:$0xff] }
 0xba7   : > { %8058 = vmatpush.msra.mxu3 %v8043_v38 }
 0xba9   : > { %8059 = vmatpush.msra.mxu3 %v8042_v29 }
 0xbab   : > { %8060 = vmatpush.msra.mxu3 %v8041_v43 }
 0xbad   : > { %8061 = vmatpush.msra.mxu3 %v8040_v44 }
 0xbaf   : > { %8062 = vmatpush.msra.mxu3 %v8039_v59 }
 0xbb1   : > { %8063 = vmatpush.msra.mxu3 %v8038_v61 }
 0xbb3   : > { %8064 = vmatpush.msra.mxu3 %v8037_v62 }
 0xbb5   : > { %8065 = vmatpush.msra.mxu3 %v8036_v3 }
 0xbb7   : > { %8066 = vmatpush.msra.mxu3 %v8035_v34 }
 0xbb9   : > { %8067 = vmatpush.msra.mxu3 %v8034_v4 }
 0xbbb   : > { %8068 = vmatpush.msra.mxu3 %v8033_v5 }
 0xbcd   : > { %v7852_v45 = vpop.f32.mrf.mxu2 }
 0xbce   : > { %v7853_v47 = vadd.f32 %v7852_v45, %v7833_v60 }
 0xbd5   : > { %v7932_v54 = vpop.f32.mrf.mxu2 }
 0xbd6   : > { %v7933_v56 = vadd.f32 %v7932_v54, %v7913_v55 }
 0xc21   : > { %v7872_v49 = vpop.f32.mrf.mxu3 }
 0xc22   : > { %v7873_v50 = vadd.f32 %v7872_v49, %v7853_v47 }
 0xc24   : > { %v7955_v53 = vmax.f32 %v7873_v50, 0.0 }
 0xc26   : > { %8008 = vmatmul.f32.vlgmr.msrb.gmra.mxu0 %v7955_v53 }
 0xc29   : > { %v7952_v41 = vpop.f32.mrf.mxu3 }
 0xc2a   : > { %v7953_v57 = vadd.f32 %v7952_v41, %v7933_v56 }
 0xc2c   : > { %v7956_v58 = vmax.f32 %v7953_v57, 0.0 }
 0xc2e   : > { %8485 = vmatmul.msk.f32.vlgmr.msrb.gmra.mxu1 %vm7988_vm2, %v7956_v58 }
 0xca3   : > { %v8009_v15 = vpop.f32.mrf.mxu0 }
 0xca4   : > { %v8010_v30 = vadd.f32 %v8009_v15, %v7987_v12 }
 0xcab   : > { %v8029_v9 = vpop.f32.mrf.mxu1 }
 0xcac   : > { %v8030_v16 = vadd.f32 %v8029_v9, %v8010_v30 }
 0xcae   : > { %v8032_v24 = vmax.f32 %v8030_v16, 0.0 }
 0xcb0   : > { %8486 = vmatmul.msk.f32.vlgmr.msra.gmra.mxu3 %vm8049_vm6, %v8032_v24 }
 0xd33   : > { %v8070_v23 = vpop.f32.mrf.mxu3 }
 0xd34   : > { %v8071_v20 = vadd.f32 %v8070_v23, %v8048_v19 }
 0xd36   : > { %v8073_v21 = vmax.f32 %v8071_v20, 0.0 }
 0xd38   : > { %8488 = vmatmul.msk.f32.vlgmr.msrb.gmra.mxu2 %vm8083_vm12, %v8073_v21 }
 0xdbb   : > { %v8108_v25 = vpop.f32.mrf.mxu2 }
 0xdbc   : > { %v8109_v2 = vadd.f32 %v8108_v25, %v8082_v22 }
 0xdbe   : > { %8112 = vst.msk [vmem:[%s889_s28] sm:$0x1] %vm8111_vm8, %v8109_v2 }
 0xdbf PF: > { %s11702_s10 = sld [smem:[#allocation46_spill]] }
 0xdc5   : > { %s42_s29 = sadd.s32 1, %s11702_s10  }
 0xdc6   : > { %p39_p7 = scmp.ge.s32.totalorder %s42_s29, 4  }
 0xdc8   :  { %41 = sbr.rel (!%p39_p7) target bundleno = 18 (0x12), region = 393 }
 0xdcd   :  { %8146 = vsyncpa [#allocation20], 1 }
 0xdce   :  { %8148 = vsyncpa [#allocation20 + $0x1], 1 }
 0xdcf   :  { %8149 = vsyncpa [#allocation22], 1 }
 0xdd0   :  { %8150 = vsyncpa [#allocation25], 1 }
 0xdd1   :  { %8151 = vsyncpa [#allocation28], 1 }
 0xdd2   :  { %8152 = vsyncpa [#allocation31], 1 }
 0xdd3   :  { %8153 = vsyncpa [#allocation34], 1 }
 0xdd4   :  { %8154 = vsyncpa [#allocation37], 1 }

</bundles_post_ra>
